<compile_context>
chip_gen: v7x
topology: tpu7x:2x2x1
jax: 0.10.0
libtpu: 0.0.40
codegen_flags: <defaults>
</compile_context>

<pallas_src>
import jax
import jax.numpy as jnp
from jax import lax
from jax.experimental import pallas as pl
from jax.experimental.pallas import tpu as pltpu

EPS = 1e-5
LANE = 128


def basic_block_kernel(xhalo_ref, w1_ref, g1_ref, b1_ref,
                       w2_ref, g2_ref, b2_ref, out_ref,
                       pad1_ref, pad2_ref):
    n, hp, wp, c = xhalo_ref.shape          # halo-padded input, real channels
    cp = pad1_ref.shape[-1]                 # lane-dense channel count
    h, w = hp - 2, wp - 2
    flat = n * h * w
    inv_flat = 1.0 / flat

    def conv3x3(src_ref, w_ref):
        # Direct 9-tap MXU accumulation (no im2col scratch): each shifted tap
        # is cast to bf16 and fed straight to the MXU; accumulate in f32.
        acc = jnp.zeros((flat, cp), jnp.float32)
        for ky in range(3):
            for kx in range(3):
                k = ky * 3 + kx
                tap = src_ref[:, ky:ky + h, kx:kx + w, :].reshape(flat, cp)
                acc = acc + jnp.dot(tap.astype(jnp.bfloat16),
                                    w_ref[k * cp:(k + 1) * cp, :],
                                    preferred_element_type=jnp.float32)
        return acc

    def bn_scale_offset(acc, g_ref, b_ref):
        # Training-mode BN over (N,H,W).  sum and sum-of-squares are computed
        # back-to-back from the same f32 accumulator (single statistical
        # pass); biased variance, clamped >= 0 against cancellation.
        s1 = jnp.sum(acc, axis=0, keepdims=True)
        s2 = jnp.sum(acc * acc, axis=0, keepdims=True)
        mean = s1 * inv_flat
        var = jnp.maximum(s2 * inv_flat - mean * mean, 0.0)
        scale = g_ref[...] * lax.rsqrt(var + EPS)
        offset = b_ref[...] - mean * scale
        return scale, offset

    # ---- build the lane-dense, halo-padded conv1 input in VMEM ------------
    # Only the real C channels were DMA'd; zero the buffer once so the padded
    # channel lanes never carry garbage into the MXU, then masked-store x.
    pad1_ref[...] = jnp.zeros(pad1_ref.shape, pad1_ref.dtype)
    pad1_ref[:, :, :, 0:c] = xhalo_ref[...]

    # ---- conv1 -> bn1 -> relu, fused straight into conv2's padded input ---
    acc1 = conv3x3(pad1_ref, w1_ref)
    sc1, of1 = bn_scale_offset(acc1, g1_ref, b1_ref)

    # zero only the 1-pixel halo of the conv2 input, then write the interior
    zrow = jnp.zeros((n, 1, wp, cp), jnp.float32)
    pad2_ref[:, 0:1, :, :] = zrow
    pad2_ref[:, hp - 1:hp, :, :] = zrow
    zcol = jnp.zeros((n, h, 1, cp), jnp.float32)
    pad2_ref[:, 1:1 + h, 0:1, :] = zcol
    pad2_ref[:, 1:1 + h, wp - 1:wp, :] = zcol
    pad2_ref[:, 1:1 + h, 1:1 + w, :] = jnp.maximum(
        acc1 * sc1 + of1, 0.0).reshape(n, h, w, cp)

    # ---- conv2 -> bn2 -> +identity -> relu (one fused lane-dense store) ---
    acc2 = conv3x3(pad2_ref, w2_ref)
    sc2, of2 = bn_scale_offset(acc2, g2_ref, b2_ref)
    identity = pad1_ref[:, 1:1 + h, 1:1 + w, :].reshape(flat, cp)   # exact f32
    out_ref[...] = jnp.maximum(acc2 * sc2 + of2 + identity,
                               0.0).reshape(n, h, w, cp)


def basic_block_forward(x_nchw, w1, g1, b1, w2, g2, b2):
    """x_nchw: (N, C, H, W) f32; conv weights in torch OIHW layout (C, C, 3, 3)."""
    n, c, h, w = x_nchw.shape
    cout = w1.shape[0]
    assert cout == c, "stride=1 / downsample=None requires inplanes == planes"
    cp = ((c + LANE - 1) // LANE) * LANE      # lane-dense channels (in VMEM only)

    x = jnp.transpose(x_nchw, (0, 2, 3, 1)).astype(jnp.float32)       # NHWC
    # Spatial halo pad only — real channel count goes over HBM/DMA.
    xhalo = jnp.pad(x, ((0, 0), (1, 1), (1, 1), (0, 0)))

    def prep_w(wgt):
        # (Cout, Cin, 3, 3) -> (ky, kx, Cin, Cout) -> pad channels -> (9*Cp, Cp) bf16
        wk = jnp.transpose(wgt, (2, 3, 1, 0)).astype(jnp.float32)
        wk = jnp.pad(wk, ((0, 0), (0, 0), (0, cp - c), (0, cp - c)))
        return wk.reshape(9 * cp, cp).astype(jnp.bfloat16)

    def prep_gb(v, fill):
        return jnp.pad(v.astype(jnp.float32), (0, cp - c),
                       constant_values=fill).reshape(1, cp)

    flat = n * h * w
    flops = 2 * 2 * flat * (9 * cp) * cp                 # two 3x3 convs on MXU
    bytes_accessed = (xhalo.size * 4                     # input activations
                      + 2 * 9 * cp * cp * 2              # bf16 weights
                      + flat * cp * 4)                   # output writeback

    out_nhwc = pl.pallas_call(
        basic_block_kernel,
        out_shape=jax.ShapeDtypeStruct((n, h, w, cp), jnp.float32),
        in_specs=[pl.BlockSpec(memory_space=pltpu.MemorySpace.VMEM)] * 7,
        out_specs=pl.BlockSpec(memory_space=pltpu.MemorySpace.VMEM),
        scratch_shapes=[
            pltpu.VMEM((n, h + 2, w + 2, cp), jnp.float32),  # conv1 in + identity
            pltpu.VMEM((n, h + 2, w + 2, cp), jnp.float32),  # conv2 padded input
        ],
        cost_estimate=pl.CostEstimate(flops=flops, transcendentals=0,
                                      bytes_accessed=bytes_accessed),
        compiler_params=pltpu.CompilerParams(
            vmem_limit_bytes=32 * 1024 * 1024),
    )(xhalo, prep_w(w1), prep_gb(g1, 1.0), prep_gb(b1, 0.0),
      prep_w(w2), prep_gb(g2, 1.0), prep_gb(b2, 0.0))

    # TODO(synk): if the consumer can take NHWC (and/or padded channels), skip
    # this slice+transpose pass over HBM.
    return jnp.transpose(out_nhwc[..., :c], (0, 3, 1, 2))             # NCHW


# ------------------------- pure-JAX reference (for checking) -------------------------
def _ref_forward(x_nchw, w1, g1, b1, w2, g2, b2):
    def conv(x, wgt):  # NCHW, OIHW, padding=1, stride=1
        return lax.conv_general_dilated(x, wgt, (1, 1), ((1, 1), (1, 1)),
                                        dimension_numbers=("NCHW", "OIHW", "NCHW"))

    def bn(x, g, b):
        mean = jnp.mean(x, axis=(0, 2, 3), keepdims=True)
        var = jnp.mean((x - mean) ** 2, axis=(0, 2, 3), keepdims=True)
        return (x - mean) * lax.rsqrt(var + EPS) * g.reshape(1, -1, 1, 1) \
            + b.reshape(1, -1, 1, 1)

    out = jnp.maximum(bn(conv(x_nchw, w1), g1, b1), 0.0)
    out = bn(conv(out, w2), g2, b2)
    return jnp.maximum(out + x_nchw, 0.0)


if __name__ == "__main__":
    N, C, H, W = 2, 8, 16, 16          # inplanes = planes = 8, stride = 1
    key = jax.random.PRNGKey(0)
    kx, k1, k2 = jax.random.split(key, 3)

    x = jax.random.normal(kx, (N, C, H, W), dtype=jnp.float32)

    # Deterministic synthetic parameters (conv weights in torch OIHW layout).
    fan_in = C * 3 * 3
    w1 = jax.random.normal(k1, (C, C, 3, 3), dtype=jnp.float32) / jnp.sqrt(fan_in)
    w2 = jax.random.normal(k2, (C, C, 3, 3), dtype=jnp.float32) / jnp.sqrt(fan_in)
    g1 = jnp.ones((C,), jnp.float32)   # BatchNorm default init: weight=1, bias=0
    b1 = jnp.zeros((C,), jnp.float32)
    g2 = jnp.ones((C,), jnp.float32)
    b2 = jnp.zeros((C,), jnp.float32)

    out = basic_block_forward(x, w1, g1, b1, w2, g2, b2)
    out = jax.block_until_ready(out)

    ref = _ref_forward(x, w1, g1, b1, w2, g2, b2)
    assert out.shape == (N, C, H, W)
    # bf16 MXU operands (f32 accumulation): tolerance relaxed per review.
    max_err = jnp.max(jnp.abs(out - ref))
    assert jnp.allclose(out, ref, atol=4e-2, rtol=4e-2), \
        f"max abs err = {max_err}"

    print("KERNEL_OK")
</pallas_src>

<mosaic_0001>
module attributes {stable_mosaic.version = 11 : i64} {
  func.func @basic_block_kernel(%arg0: memref<2x18x18x8xf32, #tpu.memory_space<vmem>>, %arg1: memref<1152x128xbf16, #tpu.memory_space<vmem>>, %arg2: memref<1x128xf32, #tpu.memory_space<vmem>>, %arg3: memref<1x128xf32, #tpu.memory_space<vmem>>, %arg4: memref<1152x128xbf16, #tpu.memory_space<vmem>>, %arg5: memref<1x128xf32, #tpu.memory_space<vmem>>, %arg6: memref<1x128xf32, #tpu.memory_space<vmem>>, %arg7: memref<2x16x16x128xf32, #tpu.memory_space<vmem>>, %arg8: memref<2x18x18x128xf32, #tpu.memory_space<vmem>>, %arg9: memref<2x18x18x128xf32, #tpu.memory_space<vmem>>) attributes {dimension_semantics = [], scalar_prefetch = 0 : i64, scratch_operands = 2 : i64, tpu.core_type = #tpu.core_type<tc>} {
    %cst = arith.constant 0.000000e+00 : f32
    %0 = vector.broadcast %cst : f32 to vector<2x18x18x128xf32>
    %c0 = arith.constant 0 : index
    %c0_0 = arith.constant 0 : index
    %c0_1 = arith.constant 0 : index
    %c0_2 = arith.constant 0 : index
    %1 = vector.load %arg8[%c0, %c0_0, %c0_1, %c0_2] : memref<2x18x18x128xf32, #tpu.memory_space<vmem>>, vector<2x18x18x128xf32>
    tpu.vector_store %arg8[%c0, %c0_0, %c0_1, %c0_2], %0 {strides = array<i32>} : memref<2x18x18x128xf32, #tpu.memory_space<vmem>>, vector<2x18x18x128xf32>,
    %c0_3 = arith.constant 0 : index
    %c0_4 = arith.constant 0 : index
    %c0_5 = arith.constant 0 : index
    %c0_6 = arith.constant 0 : index
    %2 = vector.load %arg0[%c0_3, %c0_4, %c0_5, %c0_6] : memref<2x18x18x8xf32, #tpu.memory_space<vmem>>, vector<2x18x18x8xf32>
    %c0_7 = arith.constant 0 : index
    %c0_8 = arith.constant 0 : index
    %c0_9 = arith.constant 0 : index
    %c0_10 = arith.constant 0 : index
    %3 = vector.load %arg8[%c0_7, %c0_8, %c0_9, %c0_10] : memref<2x18x18x128xf32, #tpu.memory_space<vmem>>, vector<2x18x18x8xf32>
    tpu.vector_store %arg8[%c0_7, %c0_8, %c0_9, %c0_10], %2 {strides = array<i32>} : memref<2x18x18x128xf32, #tpu.memory_space<vmem>>, vector<2x18x18x8xf32>,
    %cst_11 = arith.constant 0.000000e+00 : f32
    %4 = vector.broadcast %cst_11 : f32 to vector<512x128xf32>
    %c0_12 = arith.constant 0 : index
    %c0_13 = arith.constant 0 : index
    %c0_14 = arith.constant 0 : index
    %c0_15 = arith.constant 0 : index
    %5 = vector.load %arg8[%c0_12, %c0_13, %c0_14, %c0_15] : memref<2x18x18x128xf32, #tpu.memory_space<vmem>>, vector<2x16x16x128xf32>
    %6 = vector.shape_cast %5 : vector<2x16x16x128xf32> to vector<512x128xf32>
    %7 = arith.truncf %6 : vector<512x128xf32> to vector<512x128xbf16>
    %c0_16 = arith.constant 0 : index
    %c0_17 = arith.constant 0 : index
    %8 = vector.load %arg1[%c0_16, %c0_17] : memref<1152x128xbf16, #tpu.memory_space<vmem>>, vector<128x128xbf16>
    %cst_18 = arith.constant dense<0.000000e+00> : vector<512x128xf32>
    %9 = tpu.matmul %7, %8, %cst_18 {dimension_numbers = #tpu.dot_dimension_numbers<[1], [0], [0], [1], [0, 0, 1, 1], [], []>} : vector<512x128xbf16>, vector<128x128xbf16>, vector<512x128xf32> -> vector<512x128xf32>
    %10 = arith.addf %4, %9 : vector<512x128xf32>
    %c0_19 = arith.constant 0 : index
    %c0_20 = arith.constant 0 : index
    %c1 = arith.constant 1 : index
    %c0_21 = arith.constant 0 : index
    %11 = vector.load %arg8[%c0_19, %c0_20, %c1, %c0_21] : memref<2x18x18x128xf32, #tpu.memory_space<vmem>>, vector<2x16x16x128xf32>
    %12 = vector.shape_cast %11 : vector<2x16x16x128xf32> to vector<512x128xf32>
    %13 = arith.truncf %12 : vector<512x128xf32> to vector<512x128xbf16>
    %c128 = arith.constant 128 : index
    %c0_22 = arith.constant 0 : index
    %14 = vector.load %arg1[%c128, %c0_22] : memref<1152x128xbf16, #tpu.memory_space<vmem>>, vector<128x128xbf16>
    %cst_23 = arith.constant dense<0.000000e+00> : vector<512x128xf32>
    %15 = tpu.matmul %13, %14, %cst_23 {dimension_numbers = #tpu.dot_dimension_numbers<[1], [0], [0], [1], [0, 0, 1, 1], [], []>} : vector<512x128xbf16>, vector<128x128xbf16>, vector<512x128xf32> -> vector<512x128xf32>
    %16 = arith.addf %10, %15 : vector<512x128xf32>
    %c0_24 = arith.constant 0 : index
    %c0_25 = arith.constant 0 : index
    %c2 = arith.constant 2 : index
    %c0_26 = arith.constant 0 : index
    %17 = vector.load %arg8[%c0_24, %c0_25, %c2, %c0_26] : memref<2x18x18x128xf32, #tpu.memory_space<vmem>>, vector<2x16x16x128xf32>
    %18 = vector.shape_cast %17 : vector<2x16x16x128xf32> to vector<512x128xf32>
    %19 = arith.truncf %18 : vector<512x128xf32> to vector<512x128xbf16>
    %c256 = arith.constant 256 : index
    %c0_27 = arith.constant 0 : index
    %20 = vector.load %arg1[%c256, %c0_27] : memref<1152x128xbf16, #tpu.memory_space<vmem>>, vector<128x128xbf16>
    %cst_28 = arith.constant dense<0.000000e+00> : vector<512x128xf32>
    %21 = tpu.matmul %19, %20, %cst_28 {dimension_numbers = #tpu.dot_dimension_numbers<[1], [0], [0], [1], [0, 0, 1, 1], [], []>} : vector<512x128xbf16>, vector<128x128xbf16>, vector<512x128xf32> -> vector<512x128xf32>
    %22 = arith.addf %16, %21 : vector<512x128xf32>
    %c0_29 = arith.constant 0 : index
    %c1_30 = arith.constant 1 : index
    %c0_31 = arith.constant 0 : index
    %c0_32 = arith.constant 0 : index
    %23 = vector.load %arg8[%c0_29, %c1_30, %c0_31, %c0_32] : memref<2x18x18x128xf32, #tpu.memory_space<vmem>>, vector<2x16x16x128xf32>
    %24 = vector.shape_cast %23 : vector<2x16x16x128xf32> to vector<512x128xf32>
    %25 = arith.truncf %24 : vector<512x128xf32> to vector<512x128xbf16>
    %c384 = arith.constant 384 : index
    %c0_33 = arith.constant 0 : index
    %26 = vector.load %arg1[%c384, %c0_33] : memref<1152x128xbf16, #tpu.memory_space<vmem>>, vector<128x128xbf16>
    %cst_34 = arith.constant dense<0.000000e+00> : vector<512x128xf32>
    %27 = tpu.matmul %25, %26, %cst_34 {dimension_numbers = #tpu.dot_dimension_numbers<[1], [0], [0], [1], [0, 0, 1, 1], [], []>} : vector<512x128xbf16>, vector<128x128xbf16>, vector<512x128xf32> -> vector<512x128xf32>
    %28 = arith.addf %22, %27 : vector<512x128xf32>
    %c0_35 = arith.constant 0 : index
    %c1_36 = arith.constant 1 : index
    %c1_37 = arith.constant 1 : index
    %c0_38 = arith.constant 0 : index
    %29 = vector.load %arg8[%c0_35, %c1_36, %c1_37, %c0_38] : memref<2x18x18x128xf32, #tpu.memory_space<vmem>>, vector<2x16x16x128xf32>
    %30 = vector.shape_cast %29 : vector<2x16x16x128xf32> to vector<512x128xf32>
    %31 = arith.truncf %30 : vector<512x128xf32> to vector<512x128xbf16>
    %c512 = arith.constant 512 : index
    %c0_39 = arith.constant 0 : index
    %32 = vector.load %arg1[%c512, %c0_39] : memref<1152x128xbf16, #tpu.memory_space<vmem>>, vector<128x128xbf16>
    %cst_40 = arith.constant dense<0.000000e+00> : vector<512x128xf32>
    %33 = tpu.matmul %31, %32, %cst_40 {dimension_numbers = #tpu.dot_dimension_numbers<[1], [0], [0], [1], [0, 0, 1, 1], [], []>} : vector<512x128xbf16>, vector<128x128xbf16>, vector<512x128xf32> -> vector<512x128xf32>
    %34 = arith.addf %28, %33 : vector<512x128xf32>
    %c0_41 = arith.constant 0 : index
    %c1_42 = arith.constant 1 : index
    %c2_43 = arith.constant 2 : index
    %c0_44 = arith.constant 0 : index
    %35 = vector.load %arg8[%c0_41, %c1_42, %c2_43, %c0_44] : memref<2x18x18x128xf32, #tpu.memory_space<vmem>>, vector<2x16x16x128xf32>
    %36 = vector.shape_cast %35 : vector<2x16x16x128xf32> to vector<512x128xf32>
    %37 = arith.truncf %36 : vector<512x128xf32> to vector<512x128xbf16>
    %c640 = arith.constant 640 : index
    %c0_45 = arith.constant 0 : index
    %38 = vector.load %arg1[%c640, %c0_45] : memref<1152x128xbf16, #tpu.memory_space<vmem>>, vector<128x128xbf16>
    %cst_46 = arith.constant dense<0.000000e+00> : vector<512x128xf32>
    %39 = tpu.matmul %37, %38, %cst_46 {dimension_numbers = #tpu.dot_dimension_numbers<[1], [0], [0], [1], [0, 0, 1, 1], [], []>} : vector<512x128xbf16>, vector<128x128xbf16>, vector<512x128xf32> -> vector<512x128xf32>
    %40 = arith.addf %34, %39 : vector<512x128xf32>
    %c0_47 = arith.constant 0 : index
    %c2_48 = arith.constant 2 : index
    %c0_49 = arith.constant 0 : index
    %c0_50 = arith.constant 0 : index
    %41 = vector.load %arg8[%c0_47, %c2_48, %c0_49, %c0_50] : memref<2x18x18x128xf32, #tpu.memory_space<vmem>>, vector<2x16x16x128xf32>
    %42 = vector.shape_cast %41 : vector<2x16x16x128xf32> to vector<512x128xf32>
    %43 = arith.truncf %42 : vector<512x128xf32> to vector<512x128xbf16>
    %c768 = arith.constant 768 : index
    %c0_51 = arith.constant 0 : index
    %44 = vector.load %arg1[%c768, %c0_51] : memref<1152x128xbf16, #tpu.memory_space<vmem>>, vector<128x128xbf16>
    %cst_52 = arith.constant dense<0.000000e+00> : vector<512x128xf32>
    %45 = tpu.matmul %43, %44, %cst_52 {dimension_numbers = #tpu.dot_dimension_numbers<[1], [0], [0], [1], [0, 0, 1, 1], [], []>} : vector<512x128xbf16>, vector<128x128xbf16>, vector<512x128xf32> -> vector<512x128xf32>
    %46 = arith.addf %40, %45 : vector<512x128xf32>
    %c0_53 = arith.constant 0 : index
    %c2_54 = arith.constant 2 : index
    %c1_55 = arith.constant 1 : index
    %c0_56 = arith.constant 0 : index
    %47 = vector.load %arg8[%c0_53, %c2_54, %c1_55, %c0_56] : memref<2x18x18x128xf32, #tpu.memory_space<vmem>>, vector<2x16x16x128xf32>
    %48 = vector.shape_cast %47 : vector<2x16x16x128xf32> to vector<512x128xf32>
    %49 = arith.truncf %48 : vector<512x128xf32> to vector<512x128xbf16>
    %c896 = arith.constant 896 : index
    %c0_57 = arith.constant 0 : index
    %50 = vector.load %arg1[%c896, %c0_57] : memref<1152x128xbf16, #tpu.memory_space<vmem>>, vector<128x128xbf16>
    %cst_58 = arith.constant dense<0.000000e+00> : vector<512x128xf32>
    %51 = tpu.matmul %49, %50, %cst_58 {dimension_numbers = #tpu.dot_dimension_numbers<[1], [0], [0], [1], [0, 0, 1, 1], [], []>} : vector<512x128xbf16>, vector<128x128xbf16>, vector<512x128xf32> -> vector<512x128xf32>
    %52 = arith.addf %46, %51 : vector<512x128xf32>
    %c0_59 = arith.constant 0 : index
    %c2_60 = arith.constant 2 : index
    %c2_61 = arith.constant 2 : index
    %c0_62 = arith.constant 0 : index
    %53 = vector.load %arg8[%c0_59, %c2_60, %c2_61, %c0_62] : memref<2x18x18x128xf32, #tpu.memory_space<vmem>>, vector<2x16x16x128xf32>
    %54 = vector.shape_cast %53 : vector<2x16x16x128xf32> to vector<512x128xf32>
    %55 = arith.truncf %54 : vector<512x128xf32> to vector<512x128xbf16>
    %c1024 = arith.constant 1024 : index
    %c0_63 = arith.constant 0 : index
    %56 = vector.load %arg1[%c1024, %c0_63] : memref<1152x128xbf16, #tpu.memory_space<vmem>>, vector<128x128xbf16>
    %cst_64 = arith.constant dense<0.000000e+00> : vector<512x128xf32>
    %57 = tpu.matmul %55, %56, %cst_64 {dimension_numbers = #tpu.dot_dimension_numbers<[1], [0], [0], [1], [0, 0, 1, 1], [], []>} : vector<512x128xbf16>, vector<128x128xbf16>, vector<512x128xf32> -> vector<512x128xf32>
    %58 = arith.addf %52, %57 : vector<512x128xf32>
    %cst_65 = arith.constant dense<0.000000e+00> : vector<128xf32>
    %59 = vector.multi_reduction <add>, %58, %cst_65 [0] : vector<512x128xf32> to vector<128xf32>
    %60 = vector.shape_cast %59 : vector<128xf32> to vector<1x128xf32>
    %61 = arith.mulf %58, %58 : vector<512x128xf32>
    %cst_66 = arith.constant dense<0.000000e+00> : vector<128xf32>
    %62 = vector.multi_reduction <add>, %61, %cst_66 [0] : vector<512x128xf32> to vector<128xf32>
    %63 = vector.shape_cast %62 : vector<128xf32> to vector<1x128xf32>
    %cst_67 = arith.constant 0.001953125 : f32
    %64 = vector.broadcast %cst_67 : f32 to vector<1x128xf32>
    %65 = arith.mulf %60, %64 : vector<1x128xf32>
    %cst_68 = arith.constant 0.001953125 : f32
    %66 = vector.broadcast %cst_68 : f32 to vector<1x128xf32>
    %67 = arith.mulf %63, %66 : vector<1x128xf32>
    %68 = arith.mulf %65, %65 : vector<1x128xf32>
    %69 = arith.subf %67, %68 : vector<1x128xf32>
    %cst_69 = arith.constant 0.000000e+00 : f32
    %70 = vector.broadcast %cst_69 : f32 to vector<1x128xf32>
    %71 = arith.maximumf %69, %70 : vector<1x128xf32>
    %c0_70 = arith.constant 0 : index
    %c0_71 = arith.constant 0 : index
    %72 = vector.load %arg2[%c0_70, %c0_71] : memref<1x128xf32, #tpu.memory_space<vmem>>, vector<1x128xf32>
    %cst_72 = arith.constant 9.99999974E-6 : f32
    %73 = vector.broadcast %cst_72 : f32 to vector<1x128xf32>
    %74 = arith.addf %71, %73 : vector<1x128xf32>
    %75 = math.rsqrt %74 : vector<1x128xf32>
    %76 = arith.mulf %72, %75 : vector<1x128xf32>
    %c0_73 = arith.constant 0 : index
    %c0_74 = arith.constant 0 : index
    %77 = vector.load %arg3[%c0_73, %c0_74] : memref<1x128xf32, #tpu.memory_space<vmem>>, vector<1x128xf32>
    %78 = arith.mulf %65, %76 : vector<1x128xf32>
    %79 = arith.subf %77, %78 : vector<1x128xf32>
    %cst_75 = arith.constant 0.000000e+00 : f32
    %80 = vector.broadcast %cst_75 : f32 to vector<2x1x18x128xf32>
    %c0_76 = arith.constant 0 : index
    %c0_77 = arith.constant 0 : index
    %c0_78 = arith.constant 0 : index
    %c0_79 = arith.constant 0 : index
    %81 = vector.load %arg9[%c0_76, %c0_77, %c0_78, %c0_79] : memref<2x18x18x128xf32, #tpu.memory_space<vmem>>, vector<2x1x18x128xf32>
    tpu.vector_store %arg9[%c0_76, %c0_77, %c0_78, %c0_79], %80 {strides = array<i32>} : memref<2x18x18x128xf32, #tpu.memory_space<vmem>>, vector<2x1x18x128xf32>,
    %c0_80 = arith.constant 0 : index
    %c17 = arith.constant 17 : index
    %c0_81 = arith.constant 0 : index
    %c0_82 = arith.constant 0 : index
    %82 = vector.load %arg9[%c0_80, %c17, %c0_81, %c0_82] : memref<2x18x18x128xf32, #tpu.memory_space<vmem>>, vector<2x1x18x128xf32>
    tpu.vector_store %arg9[%c0_80, %c17, %c0_81, %c0_82], %80 {strides = array<i32>} : memref<2x18x18x128xf32, #tpu.memory_space<vmem>>, vector<2x1x18x128xf32>,
    %cst_83 = arith.constant 0.000000e+00 : f32
    %83 = vector.broadcast %cst_83 : f32 to vector<2x16x1x128xf32>
    %c0_84 = arith.constant 0 : index
    %c1_85 = arith.constant 1 : index
    %c0_86 = arith.constant 0 : index
    %c0_87 = arith.constant 0 : index
    %84 = vector.load %arg9[%c0_84, %c1_85, %c0_86, %c0_87] : memref<2x18x18x128xf32, #tpu.memory_space<vmem>>, vector<2x16x1x128xf32>
    tpu.vector_store %arg9[%c0_84, %c1_85, %c0_86, %c0_87], %83 {strides = array<i32>} : memref<2x18x18x128xf32, #tpu.memory_space<vmem>>, vector<2x16x1x128xf32>,
    %c0_88 = arith.constant 0 : index
    %c1_89 = arith.constant 1 : index
    %c17_90 = arith.constant 17 : index
    %c0_91 = arith.constant 0 : index
    %85 = vector.load %arg9[%c0_88, %c1_89, %c17_90, %c0_91] : memref<2x18x18x128xf32, #tpu.memory_space<vmem>>, vector<2x16x1x128xf32>
    tpu.vector_store %arg9[%c0_88, %c1_89, %c17_90, %c0_91], %83 {strides = array<i32>} : memref<2x18x18x128xf32, #tpu.memory_space<vmem>>, vector<2x16x1x128xf32>,
    %86 = vector.broadcast %76 : vector<1x128xf32> to vector<512x128xf32>
    %87 = arith.mulf %58, %86 : vector<512x128xf32>
    %88 = vector.broadcast %79 : vector<1x128xf32> to vector<512x128xf32>
    %89 = arith.addf %87, %88 : vector<512x128xf32>
    %cst_92 = arith.constant 0.000000e+00 : f32
    %90 = vector.broadcast %cst_92 : f32 to vector<512x128xf32>
    %91 = arith.maximumf %89, %90 : vector<512x128xf32>
    %92 = vector.shape_cast %91 : vector<512x128xf32> to vector<2x16x16x128xf32>
    %c0_93 = arith.constant 0 : index
    %c1_94 = arith.constant 1 : index
    %c1_95 = arith.constant 1 : index
    %c0_96 = arith.constant 0 : index
    %93 = vector.load %arg9[%c0_93, %c1_94, %c1_95, %c0_96] : memref<2x18x18x128xf32, #tpu.memory_space<vmem>>, vector<2x16x16x128xf32>
    tpu.vector_store %arg9[%c0_93, %c1_94, %c1_95, %c0_96], %92 {strides = array<i32>} : memref<2x18x18x128xf32, #tpu.memory_space<vmem>>, vector<2x16x16x128xf32>,
    %cst_97 = arith.constant 0.000000e+00 : f32
    %94 = vector.broadcast %cst_97 : f32 to vector<512x128xf32>
    %c0_98 = arith.constant 0 : index
    %c0_99 = arith.constant 0 : index
    %c0_100 = arith.constant 0 : index
    %c0_101 = arith.constant 0 : index
    %95 = vector.load %arg9[%c0_98, %c0_99, %c0_100, %c0_101] : memref<2x18x18x128xf32, #tpu.memory_space<vmem>>, vector<2x16x16x128xf32>
    %96 = vector.shape_cast %95 : vector<2x16x16x128xf32> to vector<512x128xf32>
    %97 = arith.truncf %96 : vector<512x128xf32> to vector<512x128xbf16>
    %c0_102 = arith.constant 0 : index
    %c0_103 = arith.constant 0 : index
    %98 = vector.load %arg4[%c0_102, %c0_103] : memref<1152x128xbf16, #tpu.memory_space<vmem>>, vector<128x128xbf16>
    %cst_104 = arith.constant dense<0.000000e+00> : vector<512x128xf32>
    %99 = tpu.matmul %97, %98, %cst_104 {dimension_numbers = #tpu.dot_dimension_numbers<[1], [0], [0], [1], [0, 0, 1, 1], [], []>} : vector<512x128xbf16>, vector<128x128xbf16>, vector<512x128xf32> -> vector<512x128xf32>
    %100 = arith.addf %94, %99 : vector<512x128xf32>
    %c0_105 = arith.constant 0 : index
    %c0_106 = arith.constant 0 : index
    %c1_107 = arith.constant 1 : index
    %c0_108 = arith.constant 0 : index
    %101 = vector.load %arg9[%c0_105, %c0_106, %c1_107, %c0_108] : memref<2x18x18x128xf32, #tpu.memory_space<vmem>>, vector<2x16x16x128xf32>
    %102 = vector.shape_cast %101 : vector<2x16x16x128xf32> to vector<512x128xf32>
    %103 = arith.truncf %102 : vector<512x128xf32> to vector<512x128xbf16>
    %c128_109 = arith.constant 128 : index
    %c0_110 = arith.constant 0 : index
    %104 = vector.load %arg4[%c128_109, %c0_110] : memref<1152x128xbf16, #tpu.memory_space<vmem>>, vector<128x128xbf16>
    %cst_111 = arith.constant dense<0.000000e+00> : vector<512x128xf32>
    %105 = tpu.matmul %103, %104, %cst_111 {dimension_numbers = #tpu.dot_dimension_numbers<[1], [0], [0], [1], [0, 0, 1, 1], [], []>} : vector<512x128xbf16>, vector<128x128xbf16>, vector<512x128xf32> -> vector<512x128xf32>
    %106 = arith.addf %100, %105 : vector<512x128xf32>
    %c0_112 = arith.constant 0 : index
    %c0_113 = arith.constant 0 : index
    %c2_114 = arith.constant 2 : index
    %c0_115 = arith.constant 0 : index
    %107 = vector.load %arg9[%c0_112, %c0_113, %c2_114, %c0_115] : memref<2x18x18x128xf32, #tpu.memory_space<vmem>>, vector<2x16x16x128xf32>
    %108 = vector.shape_cast %107 : vector<2x16x16x128xf32> to vector<512x128xf32>
    %109 = arith.truncf %108 : vector<512x128xf32> to vector<512x128xbf16>
    %c256_116 = arith.constant 256 : index
    %c0_117 = arith.constant 0 : index
    %110 = vector.load %arg4[%c256_116, %c0_117] : memref<1152x128xbf16, #tpu.memory_space<vmem>>, vector<128x128xbf16>
    %cst_118 = arith.constant dense<0.000000e+00> : vector<512x128xf32>
    %111 = tpu.matmul %109, %110, %cst_118 {dimension_numbers = #tpu.dot_dimension_numbers<[1], [0], [0], [1], [0, 0, 1, 1], [], []>} : vector<512x128xbf16>, vector<128x128xbf16>, vector<512x128xf32> -> vector<512x128xf32>
    %112 = arith.addf %106, %111 : vector<512x128xf32>
    %c0_119 = arith.constant 0 : index
    %c1_120 = arith.constant 1 : index
    %c0_121 = arith.constant 0 : index
    %c0_122 = arith.constant 0 : index
    %113 = vector.load %arg9[%c0_119, %c1_120, %c0_121, %c0_122] : memref<2x18x18x128xf32, #tpu.memory_space<vmem>>, vector<2x16x16x128xf32>
    %114 = vector.shape_cast %113 : vector<2x16x16x128xf32> to vector<512x128xf32>
    %115 = arith.truncf %114 : vector<512x128xf32> to vector<512x128xbf16>
    %c384_123 = arith.constant 384 : index
    %c0_124 = arith.constant 0 : index
    %116 = vector.load %arg4[%c384_123, %c0_124] : memref<1152x128xbf16, #tpu.memory_space<vmem>>, vector<128x128xbf16>
    %cst_125 = arith.constant dense<0.000000e+00> : vector<512x128xf32>
    %117 = tpu.matmul %115, %116, %cst_125 {dimension_numbers = #tpu.dot_dimension_numbers<[1], [0], [0], [1], [0, 0, 1, 1], [], []>} : vector<512x128xbf16>, vector<128x128xbf16>, vector<512x128xf32> -> vector<512x128xf32>
    %118 = arith.addf %112, %117 : vector<512x128xf32>
    %c0_126 = arith.constant 0 : index
    %c1_127 = arith.constant 1 : index
    %c1_128 = arith.constant 1 : index
    %c0_129 = arith.constant 0 : index
    %119 = vector.load %arg9[%c0_126, %c1_127, %c1_128, %c0_129] : memref<2x18x18x128xf32, #tpu.memory_space<vmem>>, vector<2x16x16x128xf32>
    %120 = vector.shape_cast %119 : vector<2x16x16x128xf32> to vector<512x128xf32>
    %121 = arith.truncf %120 : vector<512x128xf32> to vector<512x128xbf16>
    %c512_130 = arith.constant 512 : index
    %c0_131 = arith.constant 0 : index
    %122 = vector.load %arg4[%c512_130, %c0_131] : memref<1152x128xbf16, #tpu.memory_space<vmem>>, vector<128x128xbf16>
    %cst_132 = arith.constant dense<0.000000e+00> : vector<512x128xf32>
    %123 = tpu.matmul %121, %122, %cst_132 {dimension_numbers = #tpu.dot_dimension_numbers<[1], [0], [0], [1], [0, 0, 1, 1], [], []>} : vector<512x128xbf16>, vector<128x128xbf16>, vector<512x128xf32> -> vector<512x128xf32>
    %124 = arith.addf %118, %123 : vector<512x128xf32>
    %c0_133 = arith.constant 0 : index
    %c1_134 = arith.constant 1 : index
    %c2_135 = arith.constant 2 : index
    %c0_136 = arith.constant 0 : index
    %125 = vector.load %arg9[%c0_133, %c1_134, %c2_135, %c0_136] : memref<2x18x18x128xf32, #tpu.memory_space<vmem>>, vector<2x16x16x128xf32>
    %126 = vector.shape_cast %125 : vector<2x16x16x128xf32> to vector<512x128xf32>
    %127 = arith.truncf %126 : vector<512x128xf32> to vector<512x128xbf16>
    %c640_137 = arith.constant 640 : index
    %c0_138 = arith.constant 0 : index
    %128 = vector.load %arg4[%c640_137, %c0_138] : memref<1152x128xbf16, #tpu.memory_space<vmem>>, vector<128x128xbf16>
    %cst_139 = arith.constant dense<0.000000e+00> : vector<512x128xf32>
    %129 = tpu.matmul %127, %128, %cst_139 {dimension_numbers = #tpu.dot_dimension_numbers<[1], [0], [0], [1], [0, 0, 1, 1], [], []>} : vector<512x128xbf16>, vector<128x128xbf16>, vector<512x128xf32> -> vector<512x128xf32>
    %130 = arith.addf %124, %129 : vector<512x128xf32>
    %c0_140 = arith.constant 0 : index
    %c2_141 = arith.constant 2 : index
    %c0_142 = arith.constant 0 : index
    %c0_143 = arith.constant 0 : index
    %131 = vector.load %arg9[%c0_140, %c2_141, %c0_142, %c0_143] : memref<2x18x18x128xf32, #tpu.memory_space<vmem>>, vector<2x16x16x128xf32>
    %132 = vector.shape_cast %131 : vector<2x16x16x128xf32> to vector<512x128xf32>
    %133 = arith.truncf %132 : vector<512x128xf32> to vector<512x128xbf16>
    %c768_144 = arith.constant 768 : index
    %c0_145 = arith.constant 0 : index
    %134 = vector.load %arg4[%c768_144, %c0_145] : memref<1152x128xbf16, #tpu.memory_space<vmem>>, vector<128x128xbf16>
    %cst_146 = arith.constant dense<0.000000e+00> : vector<512x128xf32>
    %135 = tpu.matmul %133, %134, %cst_146 {dimension_numbers = #tpu.dot_dimension_numbers<[1], [0], [0], [1], [0, 0, 1, 1], [], []>} : vector<512x128xbf16>, vector<128x128xbf16>, vector<512x128xf32> -> vector<512x128xf32>
    %136 = arith.addf %130, %135 : vector<512x128xf32>
    %c0_147 = arith.constant 0 : index
    %c2_148 = arith.constant 2 : index
    %c1_149 = arith.constant 1 : index
    %c0_150 = arith.constant 0 : index
    %137 = vector.load %arg9[%c0_147, %c2_148, %c1_149, %c0_150] : memref<2x18x18x128xf32, #tpu.memory_space<vmem>>, vector<2x16x16x128xf32>
    %138 = vector.shape_cast %137 : vector<2x16x16x128xf32> to vector<512x128xf32>
    %139 = arith.truncf %138 : vector<512x128xf32> to vector<512x128xbf16>
    %c896_151 = arith.constant 896 : index
    %c0_152 = arith.constant 0 : index
    %140 = vector.load %arg4[%c896_151, %c0_152] : memref<1152x128xbf16, #tpu.memory_space<vmem>>, vector<128x128xbf16>
    %cst_153 = arith.constant dense<0.000000e+00> : vector<512x128xf32>
    %141 = tpu.matmul %139, %140, %cst_153 {dimension_numbers = #tpu.dot_dimension_numbers<[1], [0], [0], [1], [0, 0, 1, 1], [], []>} : vector<512x128xbf16>, vector<128x128xbf16>, vector<512x128xf32> -> vector<512x128xf32>
    %142 = arith.addf %136, %141 : vector<512x128xf32>
    %c0_154 = arith.constant 0 : index
    %c2_155 = arith.constant 2 : index
    %c2_156 = arith.constant 2 : index
    %c0_157 = arith.constant 0 : index
    %143 = vector.load %arg9[%c0_154, %c2_155, %c2_156, %c0_157] : memref<2x18x18x128xf32, #tpu.memory_space<vmem>>, vector<2x16x16x128xf32>
    %144 = vector.shape_cast %143 : vector<2x16x16x128xf32> to vector<512x128xf32>
    %145 = arith.truncf %144 : vector<512x128xf32> to vector<512x128xbf16>
    %c1024_158 = arith.constant 1024 : index
    %c0_159 = arith.constant 0 : index
    %146 = vector.load %arg4[%c1024_158, %c0_159] : memref<1152x128xbf16, #tpu.memory_space<vmem>>, vector<128x128xbf16>
    %cst_160 = arith.constant dense<0.000000e+00> : vector<512x128xf32>
    %147 = tpu.matmul %145, %146, %cst_160 {dimension_numbers = #tpu.dot_dimension_numbers<[1], [0], [0], [1], [0, 0, 1, 1], [], []>} : vector<512x128xbf16>, vector<128x128xbf16>, vector<512x128xf32> -> vector<512x128xf32>
    %148 = arith.addf %142, %147 : vector<512x128xf32>
    %cst_161 = arith.constant dense<0.000000e+00> : vector<128xf32>
    %149 = vector.multi_reduction <add>, %148, %cst_161 [0] : vector<512x128xf32> to vector<128xf32>
    %150 = vector.shape_cast %149 : vector<128xf32> to vector<1x128xf32>
    %151 = arith.mulf %148, %148 : vector<512x128xf32>
    %cst_162 = arith.constant dense<0.000000e+00> : vector<128xf32>
    %152 = vector.multi_reduction <add>, %151, %cst_162 [0] : vector<512x128xf32> to vector<128xf32>
    %153 = vector.shape_cast %152 : vector<128xf32> to vector<1x128xf32>
    %cst_163 = arith.constant 0.001953125 : f32
    %154 = vector.broadcast %cst_163 : f32 to vector<1x128xf32>
    %155 = arith.mulf %150, %154 : vector<1x128xf32>
    %cst_164 = arith.constant 0.001953125 : f32
    %156 = vector.broadcast %cst_164 : f32 to vector<1x128xf32>
    %157 = arith.mulf %153, %156 : vector<1x128xf32>
    %158 = arith.mulf %155, %155 : vector<1x128xf32>
    %159 = arith.subf %157, %158 : vector<1x128xf32>
    %cst_165 = arith.constant 0.000000e+00 : f32
    %160 = vector.broadcast %cst_165 : f32 to vector<1x128xf32>
    %161 = arith.maximumf %159, %160 : vector<1x128xf32>
    %c0_166 = arith.constant 0 : index
    %c0_167 = arith.constant 0 : index
    %162 = vector.load %arg5[%c0_166, %c0_167] : memref<1x128xf32, #tpu.memory_space<vmem>>, vector<1x128xf32>
    %cst_168 = arith.constant 9.99999974E-6 : f32
    %163 = vector.broadcast %cst_168 : f32 to vector<1x128xf32>
    %164 = arith.addf %161, %163 : vector<1x128xf32>
    %165 = math.rsqrt %164 : vector<1x128xf32>
    %166 = arith.mulf %162, %165 : vector<1x128xf32>
    %c0_169 = arith.constant 0 : index
    %c0_170 = arith.constant 0 : index
    %167 = vector.load %arg6[%c0_169, %c0_170] : memref<1x128xf32, #tpu.memory_space<vmem>>, vector<1x128xf32>
    %168 = arith.mulf %155, %166 : vector<1x128xf32>
    %169 = arith.subf %167, %168 : vector<1x128xf32>
    %c0_171 = arith.constant 0 : index
    %c1_172 = arith.constant 1 : index
    %c1_173 = arith.constant 1 : index
    %c0_174 = arith.constant 0 : index
    %170 = vector.load %arg8[%c0_171, %c1_172, %c1_173, %c0_174] : memref<2x18x18x128xf32, #tpu.memory_space<vmem>>, vector<2x16x16x128xf32>
    %171 = vector.shape_cast %170 : vector<2x16x16x128xf32> to vector<512x128xf32>
    %172 = vector.broadcast %166 : vector<1x128xf32> to vector<512x128xf32>
    %173 = arith.mulf %148, %172 : vector<512x128xf32>
    %174 = vector.broadcast %169 : vector<1x128xf32> to vector<512x128xf32>
    %175 = arith.addf %173, %174 : vector<512x128xf32>
    %176 = arith.addf %175, %171 : vector<512x128xf32>
    %cst_175 = arith.constant 0.000000e+00 : f32
    %177 = vector.broadcast %cst_175 : f32 to vector<512x128xf32>
    %178 = arith.maximumf %176, %177 : vector<512x128xf32>
    %179 = vector.shape_cast %178 : vector<512x128xf32> to vector<2x16x16x128xf32>
    %c0_176 = arith.constant 0 : index
    %c0_177 = arith.constant 0 : index
    %c0_178 = arith.constant 0 : index
    %c0_179 = arith.constant 0 : index
    %180 = vector.load %arg7[%c0_176, %c0_177, %c0_178, %c0_179] : memref<2x16x16x128xf32, #tpu.memory_space<vmem>>, vector<2x16x16x128xf32>
    tpu.vector_store %arg7[%c0_176, %c0_177, %c0_178, %c0_179], %179 {strides = array<i32>} : memref<2x16x16x128xf32, #tpu.memory_space<vmem>>, vector<2x16x16x128xf32>,
    return
  }
}

</mosaic_0001>

<bundles_post_ra>
// kernel: tpu_custom_call.1
= control target key start
LH: loop header
LB: loop body
LE: loop exit
PB: predicated region body
PF: predicated region fallthrough
CT: control target
= control target key end

     0   :  { %12 = vsyncpa [#allocation5], 0  ;;  %s18217_s0 = inlined_call_operand.vmem [shape: f32[2,18,18,8], index: 0, kind: input, shape index: {}]   ;;  %s18218_s1 = inlined_call_operand.vmem [shape: bf16[1152,128], index: 1, kind: input, shape index: {}]   ;;  %s18219_s2 = inlined_call_operand.hbm [shape: f32[1,128], index: 2, kind: input, shape index: {}]   ;;  %s18220_s3 = inlined_call_operand.hbm [shape: f32[1,128], index: 3, kind: input, shape index: {}]   ;;  %s18221_s4 = inlined_call_operand.vmem [shape: bf16[1152,128], index: 4, kind: input, shape index: {}]   ;;  %s18222_s5 = inlined_call_operand.vmem [shape: f32[1,128], index: 5, kind: input, shape index: {}]   ;;  %s18223_s6 = inlined_call_operand.vmem [shape: f32[1,128], index: 6, kind: input, shape index: {}]   ;;  %s18224_s7 = inlined_call_operand.hbm [shape: f32[2,16,16,128], index: 7, kind: output, shape index: {}]  }
   0x1   :  { %13 = vsyncpa [#allocation8], 0 }
   0x2   :  { %14 = vsyncpa [#allocation6], 0  ;;  %s14103_s24 = smov [#allocation4]   ;;  %s14104_s26 = smov [#allocation7]  }
   0x3   :  { %s25_s25 = sshll.u32 %s14103_s24, 4  ;;  %s35_s27 = sshll.u32 %s14104_s26, 4  ;;  %s26_s25 = int_to_ptr.vmem [resolvable:$true] %s25_s25  ;;  %s36_s27 = int_to_ptr.vmem [resolvable:$true] %s35_s27 }
   0x4   :  { %s14031_s30 = scalar_lea.hbm %s18219_s2, 16 }
   0x5   :  { %p14032_p0 = scmp.ne.s32.totalorder %s18219_s2, %s14031_s30  ;;  %p14035_p1 = scmp.lt.u32.totalorder %s14031_s30, %s18219_s2 }
   0x7   :  { %p14037_p2 = pnand %p14035_p1, %p14032_p0 }
   0x9   :  { %14040 = shalt.err (!%p14037_p2)
}
   0xa   :  { %s14041_s12 = scalar_lea.vmem %s26_s25, 16  ;;  %s14045_s13 = scalar_lea.vmem %s26_s25, 32 }
   0xb   :  { %p14042_p3 = scmp.ne.s32.totalorder %s26_s25, %s14041_s12  ;;  %p14046_p4 = scmp.lt.s32.totalorder %s26_s25, %s26_s25 }
   0xc   :  { %p14047_p5 = scmp.lt.s32.totalorder %s14045_s13, %s14041_s12 }
   0xe   :  { %p14048_p6 = por %p14047_p5, %p14046_p4 }
  0x10   :  { %p14049_p7 = pnand %p14048_p6, %p14042_p3 }
  0x12   :  { %14052 = shalt.err (!%p14049_p7)
}
  0x13   :  { %28 = dma.hbm_to_vmem [thread:$0]  %s18219_s2, 16, %s26_s25, [#allocation5]  }
  0x14   :  { %s14053_s18 = scalar_lea.hbm %s18220_s3, 16 }
  0x15   :  { %p14054_p8 = scmp.ne.s32.totalorder %s18220_s3, %s14053_s18  ;;  %p14057_p9 = scmp.lt.u32.totalorder %s14053_s18, %s18220_s3 }
  0x17   :  { %p14059_p10 = pnand %p14057_p9, %p14054_p8 }
  0x19   :  { %14062 = shalt.err (!%p14059_p10)
}
  0x1a   :  { %s14063_s23 = scalar_lea.vmem %s36_s27, 16  ;;  %s14067_s24 = scalar_lea.vmem %s36_s27, 32 }
  0x1b   :  { %p14064_p11 = scmp.ne.s32.totalorder %s36_s27, %s14063_s23  ;;  %p14068_p12 = scmp.lt.s32.totalorder %s36_s27, %s36_s27 }
  0x1c   :  { %p14069_p13 = scmp.lt.s32.totalorder %s14067_s24, %s14063_s23 }
  0x1e   :  { %p14070_p0 = por %p14069_p13, %p14068_p12 }
  0x20   :  { %p14071_p1 = pnand %p14070_p0, %p14064_p11 }
  0x22   :  { %14074 = shalt.err (!%p14071_p1)
}
  0x23   :  { %38 = dma.hbm_to_vmem [thread:$0]  %s18220_s3, 16, %s36_s27, [#allocation8]  }
  0x24   :  { %14097 = dma.done.wait [#allocation5], 16  }
  0x25   :  { %14098 = vsyncadd [#allocation5], 4294967280 }
  0x26   :  { %14099 = dma.done.wait [#allocation8], 16  }
  0x27   :  { %14100 = vsyncadd [#allocation8], 4294967280  ;;  %v14105_v0 = vmov 0.0   ;;  %v13881_v1 = vld [vmem:[%s18218_s1 + $0x40] sm:$0xff]   ;;  %v13882_v2 = vld [vmem:[%s18218_s1 + $0x48] sm:$0xff]   ;;  %vm268_vm0 = vcmask 64512  }
  0x28   :  { %52 = vst [vmem:[#allocation2] sm:$0xff] %v14105_v0  ;;  %53 = vst [vmem:[#allocation2 + $0x8] sm:$0xff] %v14105_v0  ;;  %11411 = vmatprep.subr.bf16.mxu0 %v13881_v1  ;;  %v13883_v3 = vld [vmem:[%s18218_s1 + $0x50] sm:$0xff]   ;;  %vm271_vm1 = vcmask 58368   ;;  %v13884_v4 = vld [vmem:[%s18218_s1 + $0x58] sm:$0xff]  }
  0x29   :  { %54 = vst [vmem:[#allocation2 + $0x10] sm:$0x3] %v14105_v0  ;;  %55 = vst [vmem:[#allocation2 + $0x18] sm:$0xff] %v14105_v0  ;;  %11412 = vmatpush3.bf16.msra.mxu0 %v13881_v1  ;;  %v160_v5 = vld [vmem:[%s18217_s0] sm:$0xff]  ;;  %v161_v6 = vld [vmem:[%s18217_s0 + $0x8] sm:$0xff] }
  0x2a   :  { %56 = vst [vmem:[#allocation2 + $0x20] sm:$0xff] %v14105_v0  ;;  %57 = vst [vmem:[#allocation2 + $0x28] sm:$0x3] %v14105_v0  ;;  %11413 = vmatprep.subr.bf16.mxu0 %v13882_v2  ;;  %v162_v7 = vld [vmem:[%s18217_s0 + $0x10] sm:$0x3]  ;;  %v163_v8 = vld [vmem:[%s18217_s0 + $0x18] sm:$0xff] }
  0x2b   :  { %58 = vst [vmem:[#allocation2 + $0x30] sm:$0xff] %v14105_v0  ;;  %59 = vst [vmem:[#allocation2 + $0x38] sm:$0xff] %v14105_v0  ;;  %v164_v9 = vld [vmem:[%s18217_s0 + $0x20] sm:$0xff]  ;;  %v165_v10 = vld [vmem:[%s18217_s0 + $0x28] sm:$0x3] }
  0x2c   :  { %60 = vst [vmem:[#allocation2 + $0x40] sm:$0x3] %v14105_v0  ;;  %61 = vst [vmem:[#allocation2 + $0x48] sm:$0xff] %v14105_v0  ;;  %v13885_v11 = vld [vmem:[%s18218_s1 + $0x60] sm:$0xff]   ;;  %v166_v12 = vld [vmem:[%s18217_s0 + $0x30] sm:$0xff] }
  0x2d   :  { %62 = vst [vmem:[#allocation2 + $0x50] sm:$0xff] %v14105_v0  ;;  %63 = vst [vmem:[#allocation2 + $0x58] sm:$0x3] %v14105_v0  ;;  %11414 = vmatpush3.bf16.msra.mxu0 %v13882_v2  ;;  %v167_v13 = vld [vmem:[%s18217_s0 + $0x38] sm:$0xff]  ;;  %v168_v14 = vld [vmem:[%s18217_s0 + $0x40] sm:$0x3] }
  0x2e   :  { %64 = vst [vmem:[#allocation2 + $0x60] sm:$0xff] %v14105_v0  ;;  %65 = vst [vmem:[#allocation2 + $0x68] sm:$0xff] %v14105_v0  ;;  %11415 = vmatprep.subr.bf16.mxu0 %v13883_v3  ;;  %v169_v15 = vld [vmem:[%s18217_s0 + $0x48] sm:$0xff]  ;;  %v170_v16 = vld [vmem:[%s18217_s0 + $0x50] sm:$0xff] }
  0x2f   :  { %66 = vst [vmem:[#allocation2 + $0x70] sm:$0x3] %v14105_v0  ;;  %67 = vst [vmem:[#allocation2 + $0x78] sm:$0xff] %v14105_v0  ;;  %v171_v17 = vld [vmem:[%s18217_s0 + $0x58] sm:$0x3]  ;;  %v172_v18 = vld [vmem:[%s18217_s0 + $0x60] sm:$0xff] }
  0x30   :  { %68 = vst [vmem:[#allocation2 + $0x80] sm:$0xff] %v14105_v0  ;;  %69 = vst [vmem:[#allocation2 + $0x88] sm:$0x3] %v14105_v0  ;;  %v173_v19 = vld [vmem:[%s18217_s0 + $0x68] sm:$0xff]  ;;  %v174_v20 = vld [vmem:[%s18217_s0 + $0x70] sm:$0x3] }
  0x31   :  { %70 = vst [vmem:[#allocation2 + $0x90] sm:$0xff] %v14105_v0  ;;  %71 = vst [vmem:[#allocation2 + $0x98] sm:$0xff] %v14105_v0  ;;  %11416 = vmatpush3.bf16.msra.mxu0 %v13883_v3  ;;  %v175_v21 = vld [vmem:[%s18217_s0 + $0x78] sm:$0xff]  ;;  %v176_v22 = vld [vmem:[%s18217_s0 + $0x80] sm:$0xff] }
  0x32   :  { %72 = vst [vmem:[#allocation2 + $0xa0] sm:$0x3] %v14105_v0  ;;  %73 = vst [vmem:[#allocation2 + $0xa8] sm:$0xff] %v14105_v0  ;;  %11417 = vmatprep.subr.bf16.mxu0 %v13884_v4  ;;  %v177_v23 = vld [vmem:[%s18217_s0 + $0x88] sm:$0x3]  ;;  %v178_v27 = vld [vmem:[%s18217_s0 + $0x90] sm:$0xff] }
  0x33   :  { %74 = vst [vmem:[#allocation2 + $0xb0] sm:$0xff] %v14105_v0  ;;  %75 = vst [vmem:[#allocation2 + $0xb8] sm:$0x3] %v14105_v0  ;;  %v13886_v24 = vld [vmem:[%s18218_s1 + $0x68] sm:$0xff]   ;;  %v179_v29 = vld [vmem:[%s18217_s0 + $0x98] sm:$0xff] }
  0x34   :  { %76 = vst [vmem:[#allocation2 + $0xc0] sm:$0xff] %v14105_v0  ;;  %77 = vst [vmem:[#allocation2 + $0xc8] sm:$0xff] %v14105_v0  ;;  %v180_v30 = vld [vmem:[%s18217_s0 + $0xa0] sm:$0x3]  ;;  %v181_v31 = vld [vmem:[%s18217_s0 + $0xa8] sm:$0xff] }
  0x35   :  { %78 = vst [vmem:[#allocation2 + $0xd0] sm:$0x3] %v14105_v0  ;;  %79 = vst [vmem:[#allocation2 + $0xd8] sm:$0xff] %v14105_v0  ;;  %11418 = vmatpush3.bf16.msra.mxu0 %v13884_v4  ;;  %v182_v32 = vld [vmem:[%s18217_s0 + $0xb0] sm:$0xff]  ;;  %v183_v33 = vld [vmem:[%s18217_s0 + $0xb8] sm:$0x3] }
  0x36   :  { %80 = vst [vmem:[#allocation2 + $0xe0] sm:$0xff] %v14105_v0  ;;  %81 = vst [vmem:[#allocation2 + $0xe8] sm:$0x3] %v14105_v0  ;;  %11419 = vmatprep.subr.bf16.mxu0 %v13885_v11  ;;  %v13887_v34 = vld [vmem:[%s18218_s1 + $0x70] sm:$0xff]   ;;  %v184_v35 = vld [vmem:[%s18217_s0 + $0xc0] sm:$0xff] }
  0x37   :  { %82 = vst [vmem:[#allocation2 + $0xf0] sm:$0xff] %v14105_v0  ;;  %83 = vst [vmem:[#allocation2 + $0xf8] sm:$0xff] %v14105_v0  ;;  %v185_v36 = vld [vmem:[%s18217_s0 + $0xc8] sm:$0xff]  ;;  %v186_v37 = vld [vmem:[%s18217_s0 + $0xd0] sm:$0x3] }
  0x38   :  { %84 = vst [vmem:[#allocation2 + $0x100] sm:$0x3] %v14105_v0  ;;  %85 = vst [vmem:[#allocation2 + $0x108] sm:$0xff] %v14105_v0  ;;  %v187_v38 = vld [vmem:[%s18217_s0 + $0xd8] sm:$0xff]  ;;  %v188_v39 = vld [vmem:[%s18217_s0 + $0xe0] sm:$0xff] }
  0x39   :  { %86 = vst [vmem:[#allocation2 + $0x110] sm:$0xff] %v14105_v0  ;;  %87 = vst [vmem:[#allocation2 + $0x118] sm:$0x3] %v14105_v0  ;;  %11420 = vmatpush3.bf16.msra.mxu0 %v13885_v11  ;;  %v189_v40 = vld [vmem:[%s18217_s0 + $0xe8] sm:$0x3]  ;;  %v13888_v41 = vld [vmem:[%s18218_s1 + $0x78] sm:$0xff]  }
  0x3a   :  { %88 = vst [vmem:[#allocation2 + $0x120] sm:$0xff] %v14105_v0  ;;  %89 = vst [vmem:[#allocation2 + $0x128] sm:$0xff] %v14105_v0  ;;  %11421 = vmatprep.subr.bf16.mxu0 %v13886_v24  ;;  %v190_v43 = vld [vmem:[%s18217_s0 + $0xf0] sm:$0xff]  ;;  %v191_v44 = vld [vmem:[%s18217_s0 + $0xf8] sm:$0xff] }
  0x3b   :  { %90 = vst [vmem:[#allocation2 + $0x130] sm:$0x3] %v14105_v0  ;;  %91 = vst [vmem:[#allocation2 + $0x138] sm:$0xff] %v14105_v0  ;;  %v13889_v46 = vld [vmem:[%s18218_s1] sm:$0xff]   ;;  %v193_v50 = vld [vmem:[%s18217_s0 + $0x108] sm:$0xff] }
  0x3c   :  { %92 = vst [vmem:[#allocation2 + $0x140] sm:$0xff] %v14105_v0  ;;  %93 = vst [vmem:[#allocation2 + $0x148] sm:$0x3] %v14105_v0  ;;  %v192_v48 = vld [vmem:[%s18217_s0 + $0x100] sm:$0x3]  ;;  %v194_v51 = vld [vmem:[%s18217_s0 + $0x110] sm:$0xff] }
  0x3d   :  { %94 = vst [vmem:[#allocation2 + $0x150] sm:$0xff] %v14105_v0  ;;  %95 = vst [vmem:[#allocation2 + $0x158] sm:$0xff] %v14105_v0  ;;  %11422 = vmatpush3.bf16.msra.mxu0 %v13886_v24  ;;  %v195_v52 = vld [vmem:[%s18217_s0 + $0x118] sm:$0x3]  ;;  %v196_v53 = vld [vmem:[%s18217_s0 + $0x120] sm:$0xff] }
  0x3e   :  { %96 = vst [vmem:[#allocation2 + $0x160] sm:$0x3] %v14105_v0  ;;  %97 = vst [vmem:[#allocation2 + $0x168] sm:$0xff] %v14105_v0  ;;  %11423 = vmatprep.subr.bf16.mxu0 %v13887_v34  ;;  %v197_v54 = vld [vmem:[%s18217_s0 + $0x128] sm:$0xff]  ;;  %v198_v55 = vld [vmem:[%s18217_s0 + $0x130] sm:$0x3] }
  0x3f   :  { %98 = vst [vmem:[#allocation2 + $0x170] sm:$0xff] %v14105_v0  ;;  %99 = vst [vmem:[#allocation2 + $0x178] sm:$0x3] %v14105_v0  ;;  %v199_v56 = vld [vmem:[%s18217_s0 + $0x138] sm:$0xff]  ;;  %v200_v58 = vld [vmem:[%s18217_s0 + $0x140] sm:$0xff] }
  0x40   :  { %100 = vst [vmem:[#allocation2 + $0x180] sm:$0xff] %v14105_v0  ;;  %101 = vst [vmem:[#allocation2 + $0x188] sm:$0xff] %v14105_v0  ;;  %v201_v59 = vld [vmem:[%s18217_s0 + $0x148] sm:$0x3]  ;;  %v202_v62 = vld [vmem:[%s18217_s0 + $0x150] sm:$0xff] }
  0x41   :  { %102 = vst [vmem:[#allocation2 + $0x190] sm:$0x3] %v14105_v0  ;;  %103 = vst [vmem:[#allocation2 + $0x198] sm:$0xff] %v14105_v0  ;;  %11424 = vmatpush3.bf16.msra.mxu0 %v13887_v34  ;;  %v13890_v61 = vld [vmem:[%s18218_s1 + $0x8] sm:$0xff]   ;;  %v204_v1 = vld [vmem:[%s18217_s0 + $0x160] sm:$0x3] }
  0x42   :  { %104 = vst [vmem:[#allocation2 + $0x1a0] sm:$0xff] %v14105_v0  ;;  %105 = vst [vmem:[#allocation2 + $0x1a8] sm:$0x3] %v14105_v0  ;;  %11425 = vmatprep.subr.bf16.mxu0 %v13888_v41  ;;  %v205_v3 = vld [vmem:[%s18217_s0 + $0x168] sm:$0xff]  ;;  %v206_v4 = vld [vmem:[%s18217_s0 + $0x170] sm:$0xff] }
  0x43   :  { %106 = vst [vmem:[#allocation2 + $0x1b0] sm:$0xff] %v14105_v0  ;;  %107 = vst [vmem:[#allocation2 + $0x1b8] sm:$0xff] %v14105_v0  ;;  %v216_v11 = vld [vmem:[%s18217_s0 + $0x1c0] sm:$0x3]  ;;  %v223_v24 = vld [vmem:[%s18217_s0 + $0x1f8] sm:$0xff] }
  0x44   :  { %108 = vst [vmem:[#allocation2 + $0x1c0] sm:$0x3] %v14105_v0  ;;  %109 = vst [vmem:[#allocation2 + $0x1c8] sm:$0xff] %v14105_v0 }
  0x45   :  { %110 = vst [vmem:[#allocation2 + $0x1d0] sm:$0xff] %v14105_v0  ;;  %111 = vst [vmem:[#allocation2 + $0x1d8] sm:$0x3] %v14105_v0  ;;  %11426 = vmatpush3.bf16.msra.mxu0 %v13888_v41  ;;  %v235_v41 = vld [vmem:[%s18217_s0 + $0x258] sm:$0xff] }
  0x46   :  { %112 = vst [vmem:[#allocation2 + $0x1e0] sm:$0xff] %v14105_v0  ;;  %113 = vst [vmem:[#allocation2 + $0x1e8] sm:$0xff] %v14105_v0  ;;  %11491 = vmatprep.subr.bf16.mxu0 %v13889_v46 }
  0x47   :  { %114 = vst [vmem:[#allocation2 + $0x1f0] sm:$0x3] %v14105_v0  ;;  %115 = vst [vmem:[#allocation2 + $0x1f8] sm:$0xff] %v14105_v0 }
  0x48   :  { %116 = vst [vmem:[#allocation2 + $0x200] sm:$0xff] %v14105_v0  ;;  %117 = vst [vmem:[#allocation2 + $0x208] sm:$0x3] %v14105_v0 }
  0x49   :  { %118 = vst [vmem:[#allocation2 + $0x210] sm:$0xff] %v14105_v0  ;;  %119 = vst [vmem:[#allocation2 + $0x218] sm:$0xff] %v14105_v0 }
  0x4a   :  { %120 = vst [vmem:[#allocation2 + $0x220] sm:$0x3] %v14105_v0  ;;  %121 = vst [vmem:[#allocation2 + $0x228] sm:$0xff] %v14105_v0 }
  0x4b   :  { %122 = vst [vmem:[#allocation2 + $0x230] sm:$0xff] %v14105_v0  ;;  %123 = vst [vmem:[#allocation2 + $0x238] sm:$0x3] %v14105_v0 }
  0x4c   :  { %124 = vst [vmem:[#allocation2 + $0x240] sm:$0xff] %v14105_v0  ;;  %125 = vst [vmem:[#allocation2 + $0x248] sm:$0xff] %v14105_v0 }
  0x4d   :  { %126 = vst [vmem:[#allocation2 + $0x250] sm:$0x3] %v14105_v0  ;;  %127 = vst [vmem:[#allocation2 + $0x258] sm:$0xff] %v14105_v0 }
  0x4e   :  { %128 = vst [vmem:[#allocation2 + $0x260] sm:$0xff] %v14105_v0  ;;  %129 = vst [vmem:[#allocation2 + $0x268] sm:$0x3] %v14105_v0 }
  0x4f   :  { %130 = vst [vmem:[#allocation2 + $0x270] sm:$0xff] %v14105_v0  ;;  %131 = vst [vmem:[#allocation2 + $0x278] sm:$0xff] %v14105_v0 }
  0x50   :  { %132 = vst [vmem:[#allocation2 + $0x280] sm:$0x3] %v14105_v0  ;;  %133 = vst [vmem:[#allocation2 + $0x288] sm:$0xff] %v14105_v0 }
  0x51   :  { %134 = vst [vmem:[#allocation2 + $0x290] sm:$0xff] %v14105_v0  ;;  %135 = vst [vmem:[#allocation2 + $0x298] sm:$0x3] %v14105_v0 }
  0x52   :  { %136 = vst [vmem:[#allocation2 + $0x2a0] sm:$0xff] %v14105_v0  ;;  %137 = vst [vmem:[#allocation2 + $0x2a8] sm:$0xff] %v14105_v0 }
  0x53   :  { %138 = vst [vmem:[#allocation2 + $0x2b0] sm:$0x3] %v14105_v0  ;;  %139 = vst [vmem:[#allocation2 + $0x2b8] sm:$0xff] %v14105_v0 }
  0x54   :  { %140 = vst [vmem:[#allocation2 + $0x2c0] sm:$0xff] %v14105_v0  ;;  %141 = vst [vmem:[#allocation2 + $0x2c8] sm:$0x3] %v14105_v0 }
  0x55   :  { %142 = vst [vmem:[#allocation2 + $0x2d0] sm:$0xff] %v14105_v0  ;;  %143 = vst [vmem:[#allocation2 + $0x2d8] sm:$0xff] %v14105_v0 }
  0x56   :  { %144 = vst [vmem:[#allocation2 + $0x2e0] sm:$0x3] %v14105_v0  ;;  %145 = vst [vmem:[#allocation2 + $0x2e8] sm:$0xff] %v14105_v0 }
  0x57   :  { %146 = vst [vmem:[#allocation2 + $0x2f0] sm:$0xff] %v14105_v0  ;;  %147 = vst [vmem:[#allocation2 + $0x2f8] sm:$0x3] %v14105_v0 }
  0x58   :  { %148 = vst [vmem:[#allocation2 + $0x300] sm:$0xff] %v14105_v0  ;;  %149 = vst [vmem:[#allocation2 + $0x308] sm:$0xff] %v14105_v0 }
  0x59   :  { %150 = vst [vmem:[#allocation2 + $0x310] sm:$0x3] %v14105_v0  ;;  %151 = vst [vmem:[#allocation2 + $0x318] sm:$0xff] %v14105_v0 }
  0x5a   :  { %152 = vst [vmem:[#allocation2 + $0x320] sm:$0xff] %v14105_v0  ;;  %153 = vst [vmem:[#allocation2 + $0x328] sm:$0x3] %v14105_v0 }
  0x5b   :  { %154 = vst [vmem:[#allocation2 + $0x330] sm:$0xff] %v14105_v0  ;;  %155 = vst [vmem:[#allocation2 + $0x338] sm:$0xff] %v14105_v0 }
  0x5c   :  { %156 = vst [vmem:[#allocation2 + $0x340] sm:$0x3] %v14105_v0  ;;  %157 = vst [vmem:[#allocation2 + $0x348] sm:$0xff] %v14105_v0 }
  0x5d   :  { %158 = vst [vmem:[#allocation2 + $0x350] sm:$0xff] %v14105_v0  ;;  %159 = vst [vmem:[#allocation2 + $0x358] sm:$0x3] %v14105_v0 }
  0x5e   :  { %5083 = vst [vmem:[#allocation3] sm:$0xff] %v14105_v0  ;;  %5084 = vst [vmem:[#allocation3 + $0x8] sm:$0xff] %v14105_v0 }
  0x5f   :  { %5085 = vst [vmem:[#allocation3 + $0x10] sm:$0x3] %v14105_v0  ;;  %5086 = vst [vmem:[#allocation3 + $0x1b0] sm:$0xff] %v14105_v0 }
  0x60   :  { %5087 = vst [vmem:[#allocation3 + $0x1b8] sm:$0xff] %v14105_v0  ;;  %5088 = vst [vmem:[#allocation3 + $0x1c0] sm:$0x3] %v14105_v0 }
  0x61   :  { %5090 = vst [vmem:[#allocation3 + $0x198] sm:$0xff] %v14105_v0  ;;  %5091 = vst [vmem:[#allocation3 + $0x1a0] sm:$0xff] %v14105_v0 }
  0x62   :  { %5092 = vst [vmem:[#allocation3 + $0x1a8] sm:$0x3] %v14105_v0  ;;  %5093 = vst [vmem:[#allocation3 + $0x348] sm:$0xff] %v14105_v0 }
  0x63   :  { %5094 = vst [vmem:[#allocation3 + $0x350] sm:$0xff] %v14105_v0  ;;  %5095 = vst [vmem:[#allocation3 + $0x358] sm:$0x3] %v14105_v0 }
  0x64   :  { %5097 = vst [vmem:[#allocation3 + $0x18] sm:$0x1] %v14105_v0  ;;  %5098 = vst [vmem:[#allocation3 + $0x30] sm:$0x1] %v14105_v0 }
  0x65   :  { %5099 = vst [vmem:[#allocation3 + $0x48] sm:$0x1] %v14105_v0  ;;  %5100 = vst [vmem:[#allocation3 + $0x60] sm:$0x1] %v14105_v0 }
  0x66   :  { %5101 = vst [vmem:[#allocation3 + $0x78] sm:$0x1] %v14105_v0  ;;  %5102 = vst [vmem:[#allocation3 + $0x90] sm:$0x1] %v14105_v0 }
  0x67   :  { %5103 = vst [vmem:[#allocation3 + $0xa8] sm:$0x1] %v14105_v0  ;;  %5104 = vst [vmem:[#allocation3 + $0xc0] sm:$0x1] %v14105_v0 }
  0x68   :  { %5105 = vst [vmem:[#allocation3 + $0xd8] sm:$0x1] %v14105_v0  ;;  %5106 = vst [vmem:[#allocation3 + $0xf0] sm:$0x1] %v14105_v0 }
  0x69   :  { %5107 = vst [vmem:[#allocation3 + $0x108] sm:$0x1] %v14105_v0  ;;  %5108 = vst [vmem:[#allocation3 + $0x120] sm:$0x1] %v14105_v0 }
  0x6a   :  { %5109 = vst [vmem:[#allocation3 + $0x138] sm:$0x1] %v14105_v0  ;;  %5110 = vst [vmem:[#allocation3 + $0x150] sm:$0x1] %v14105_v0 }
  0x6b   :  { %5111 = vst [vmem:[#allocation3 + $0x168] sm:$0x1] %v14105_v0  ;;  %5112 = vst [vmem:[#allocation3 + $0x180] sm:$0x1] %v14105_v0 }
  0x6c   :  { %5113 = vst [vmem:[#allocation3 + $0x1c8] sm:$0x1] %v14105_v0  ;;  %5114 = vst [vmem:[#allocation3 + $0x1e0] sm:$0x1] %v14105_v0 }
  0x6d   :  { %5115 = vst [vmem:[#allocation3 + $0x1f8] sm:$0x1] %v14105_v0  ;;  %5116 = vst [vmem:[#allocation3 + $0x210] sm:$0x1] %v14105_v0 }
  0x6e   :  { %5117 = vst [vmem:[#allocation3 + $0x228] sm:$0x1] %v14105_v0  ;;  %5118 = vst [vmem:[#allocation3 + $0x240] sm:$0x1] %v14105_v0 }
  0x6f   :  { %5119 = vst [vmem:[#allocation3 + $0x258] sm:$0x1] %v14105_v0  ;;  %5120 = vst [vmem:[#allocation3 + $0x270] sm:$0x1] %v14105_v0 }
  0x70   :  { %5121 = vst [vmem:[#allocation3 + $0x288] sm:$0x1] %v14105_v0  ;;  %5122 = vst [vmem:[#allocation3 + $0x2a0] sm:$0x1] %v14105_v0 }
  0x71   :  { %5123 = vst [vmem:[#allocation3 + $0x2b8] sm:$0x1] %v14105_v0  ;;  %5124 = vst [vmem:[#allocation3 + $0x2d0] sm:$0x1] %v14105_v0 }
  0x72   :  { %5125 = vst [vmem:[#allocation3 + $0x2e8] sm:$0x1] %v14105_v0  ;;  %5126 = vst [vmem:[#allocation3 + $0x300] sm:$0x1] %v14105_v0 }
  0x73   :  { %5127 = vst [vmem:[#allocation3 + $0x318] sm:$0x1] %v14105_v0  ;;  %5128 = vst [vmem:[#allocation3 + $0x330] sm:$0x1] %v14105_v0 }
  0x74   :  { %5129 = vst [vmem:[#allocation3 + $0x29] sm:$0x1] %v14105_v0  ;;  %5130 = vst [vmem:[#allocation3 + $0x41] sm:$0x1] %v14105_v0 }
  0x75   :  { %5131 = vst [vmem:[#allocation3 + $0x59] sm:$0x1] %v14105_v0  ;;  %5132 = vst [vmem:[#allocation3 + $0x71] sm:$0x1] %v14105_v0 }
  0x76   :  { %5133 = vst [vmem:[#allocation3 + $0x89] sm:$0x1] %v14105_v0  ;;  %5134 = vst [vmem:[#allocation3 + $0xa1] sm:$0x1] %v14105_v0 }
  0x77   :  { %5135 = vst [vmem:[#allocation3 + $0xb9] sm:$0x1] %v14105_v0  ;;  %5136 = vst [vmem:[#allocation3 + $0xd1] sm:$0x1] %v14105_v0 }
  0x78   :  { %5137 = vst [vmem:[#allocation3 + $0xe9] sm:$0x1] %v14105_v0  ;;  %5138 = vst [vmem:[#allocation3 + $0x101] sm:$0x1] %v14105_v0 }
  0x79   :  { %5139 = vst [vmem:[#allocation3 + $0x119] sm:$0x1] %v14105_v0  ;;  %5140 = vst [vmem:[#allocation3 + $0x131] sm:$0x1] %v14105_v0 }
  0x7a   :  { %5141 = vst [vmem:[#allocation3 + $0x149] sm:$0x1] %v14105_v0  ;;  %5142 = vst [vmem:[#allocation3 + $0x161] sm:$0x1] %v14105_v0 }
  0x7b   :  { %5143 = vst [vmem:[#allocation3 + $0x179] sm:$0x1] %v14105_v0  ;;  %5144 = vst [vmem:[#allocation3 + $0x191] sm:$0x1] %v14105_v0 }
  0x7c   :  { %5145 = vst [vmem:[#allocation3 + $0x1d9] sm:$0x1] %v14105_v0  ;;  %5146 = vst [vmem:[#allocation3 + $0x1f1] sm:$0x1] %v14105_v0 }
  0x7d   :  { %5147 = vst [vmem:[#allocation3 + $0x209] sm:$0x1] %v14105_v0  ;;  %5148 = vst [vmem:[#allocation3 + $0x221] sm:$0x1] %v14105_v0 }
  0x7e   :  { %5149 = vst [vmem:[#allocation3 + $0x239] sm:$0x1] %v14105_v0  ;;  %5150 = vst [vmem:[#allocation3 + $0x251] sm:$0x1] %v14105_v0 }
  0x7f   :  { %5151 = vst [vmem:[#allocation3 + $0x269] sm:$0x1] %v14105_v0  ;;  %5152 = vst [vmem:[#allocation3 + $0x281] sm:$0x1] %v14105_v0 }
  0x80   :  { %5153 = vst [vmem:[#allocation3 + $0x299] sm:$0x1] %v14105_v0  ;;  %5154 = vst [vmem:[#allocation3 + $0x2b1] sm:$0x1] %v14105_v0 }
  0x81   :  { %5155 = vst [vmem:[#allocation3 + $0x2c9] sm:$0x1] %v14105_v0  ;;  %5156 = vst [vmem:[#allocation3 + $0x2e1] sm:$0x1] %v14105_v0 }
  0x82   :  { %5157 = vst [vmem:[#allocation3 + $0x2f9] sm:$0x1] %v14105_v0  ;;  %5158 = vst [vmem:[#allocation3 + $0x311] sm:$0x1] %v14105_v0 }
  0x83   :  { %5159 = vst [vmem:[#allocation3 + $0x329] sm:$0x1] %v14105_v0  ;;  %5160 = vst [vmem:[#allocation3 + $0x341] sm:$0x1] %v14105_v0  ;;  %v203_v0 = vld [vmem:[%s18217_s0 + $0x158] sm:$0xff] }
  0x84   :  { %269 = vst.msk [vmem:[#allocation2] sm:$0xff] %vm268_vm0, %v160_v5  ;;  %270 = vst.msk [vmem:[#allocation2 + $0x8] sm:$0xff] %vm268_vm0, %v161_v6  ;;  %v207_v6 = vld [vmem:[%s18217_s0 + $0x178] sm:$0x3] }
  0x85   :  { %272 = vst.msk [vmem:[#allocation2 + $0x10] sm:$0x3] %vm271_vm1, %v162_v7  ;;  %275 = vst.msk [vmem:[#allocation2 + $0x28] sm:$0x3] %vm271_vm1, %v165_v10  ;;  %v214_v7 = vld [vmem:[%s18217_s0 + $0x1b0] sm:$0xff]  ;;  %v215_v10 = vld [vmem:[%s18217_s0 + $0x1b8] sm:$0xff] }
  0x86   :  { %273 = vst.msk [vmem:[#allocation2 + $0x18] sm:$0xff] %vm268_vm0, %v163_v8  ;;  %274 = vst.msk [vmem:[#allocation2 + $0x20] sm:$0xff] %vm268_vm0, %v164_v9  ;;  %v13891_v9 = vld [vmem:[%s18218_s1 + $0x10] sm:$0xff]  }
  0x87   :  { %276 = vst.msk [vmem:[#allocation2 + $0x30] sm:$0xff] %vm268_vm0, %v166_v12  ;;  %277 = vst.msk [vmem:[#allocation2 + $0x38] sm:$0xff] %vm268_vm0, %v167_v13  ;;  %v217_v12 = vld [vmem:[%s18217_s0 + $0x1c8] sm:$0xff] }
  0x88   :  { %278 = vst.msk [vmem:[#allocation2 + $0x40] sm:$0x3] %vm271_vm1, %v168_v14  ;;  %281 = vst.msk [vmem:[#allocation2 + $0x58] sm:$0x3] %vm271_vm1, %v171_v17  ;;  %v218_v14 = vld [vmem:[%s18217_s0 + $0x1d0] sm:$0xff]  ;;  %v13892_v17 = vld [vmem:[%s18218_s1 + $0x18] sm:$0xff]  }
  0x89   :  { %279 = vst.msk [vmem:[#allocation2 + $0x48] sm:$0xff] %vm268_vm0, %v169_v15  ;;  %280 = vst.msk [vmem:[#allocation2 + $0x50] sm:$0xff] %vm268_vm0, %v170_v16  ;;  %v219_v16 = vld [vmem:[%s18217_s0 + $0x1d8] sm:$0x3] }
  0x8a   :  { %282 = vst.msk [vmem:[#allocation2 + $0x60] sm:$0xff] %vm268_vm0, %v172_v18  ;;  %283 = vst.msk [vmem:[#allocation2 + $0x68] sm:$0xff] %vm268_vm0, %v173_v19  ;;  %v220_v18 = vld [vmem:[%s18217_s0 + $0x1e0] sm:$0xff]  ;;  %v221_v19 = vld [vmem:[%s18217_s0 + $0x1e8] sm:$0xff] }
  0x8b   :  { %284 = vst.msk [vmem:[#allocation2 + $0x70] sm:$0x3] %vm271_vm1, %v174_v20  ;;  %287 = vst.msk [vmem:[#allocation2 + $0x88] sm:$0x3] %vm271_vm1, %v177_v23  ;;  %v490_v25 = vld [vmem:[#allocation2 + $0x1] sm:$0xff] }
  0x8c   :  { %285 = vst.msk [vmem:[#allocation2 + $0x78] sm:$0xff] %vm268_vm0, %v175_v21  ;;  %286 = vst.msk [vmem:[#allocation2 + $0x80] sm:$0xff] %vm268_vm0, %v176_v22  ;;  %v491_v26 = vld [vmem:[#allocation2 + $0x9] sm:$0xff] }
  0x8d   :  { %v554_v28 = vpack.c.bf16 %v491_v26, %v490_v25  ;;  %288 = vst.msk [vmem:[#allocation2 + $0x90] sm:$0xff] %vm268_vm0, %v178_v27  ;;  %289 = vst.msk [vmem:[#allocation2 + $0x98] sm:$0xff] %vm268_vm0, %v179_v29  ;;  %v492_v42 = vld [vmem:[#allocation2 + $0x19] sm:$0xff]  ;;  %v493_v45 = vld [vmem:[#allocation2 + $0x21] sm:$0xff] }
  0x8e   :  { %290 = vst.msk [vmem:[#allocation2 + $0xa0] sm:$0x3] %vm271_vm1, %v180_v30  ;;  %293 = vst.msk [vmem:[#allocation2 + $0xb8] sm:$0x3] %vm271_vm1, %v183_v33  ;;  %v494_v47 = vld [vmem:[#allocation2 + $0x31] sm:$0xff]  ;;  %v555_v57 = vpack.c.bf16 %v493_v45, %v492_v42  ;;  %v224_v25 = vld [vmem:[%s18217_s0 + $0x200] sm:$0xff] }
  0x8f   :  { %11427 = vmatprep.mubr.bf16.mxu0 %v554_v28  ;;  %291 = vst.msk [vmem:[#allocation2 + $0xa8] sm:$0xff] %vm268_vm0, %v181_v31  ;;  %292 = vst.msk [vmem:[#allocation2 + $0xb0] sm:$0xff] %vm268_vm0, %v182_v32  ;;  %v495_v49 = vld [vmem:[#allocation2 + $0x39] sm:$0xff]  ;;  %v222_v22 = vld [vmem:[%s18217_s0 + $0x1f0] sm:$0x3] }
  0x90   :  { %294 = vst.msk [vmem:[#allocation2 + $0xc0] sm:$0xff] %vm268_vm0, %v184_v35  ;;  %295 = vst.msk [vmem:[#allocation2 + $0xc8] sm:$0xff] %vm268_vm0, %v185_v36  ;;  %v556_v60 = vpack.c.bf16 %v495_v49, %v494_v47  ;;  %v496_v63 = vld [vmem:[#allocation2 + $0x49] sm:$0xff]  ;;  %11428 = vmatmul.mubr.bf16.vlgmr.msra.gmra.mrb[0].mxu0 %v555_v57  ;;  %v497_v2 = vld [vmem:[#allocation2 + $0x51] sm:$0xff] }
  0x91   :  { %296 = vst.msk [vmem:[#allocation2 + $0xd0] sm:$0x3] %vm271_vm1, %v186_v37  ;;  %299 = vst.msk [vmem:[#allocation2 + $0xe8] sm:$0x3] %vm271_vm1, %v189_v40  ;;  %11492 = vmatpush3.bf16.msra.mxu0 %v13889_v46  ;;  %v498_v5 = vld [vmem:[#allocation2 + $0x61] sm:$0xff]  ;;  %v557_v13 = vpack.c.bf16 %v497_v2, %v496_v63  ;;  %v226_v28 = vld [vmem:[%s18217_s0 + $0x210] sm:$0xff] }
  0x92   :  { %297 = vst.msk [vmem:[#allocation2 + $0xd8] sm:$0xff] %vm268_vm0, %v187_v38  ;;  %298 = vst.msk [vmem:[#allocation2 + $0xe0] sm:$0xff] %vm268_vm0, %v188_v39  ;;  %11431 = vmatprep.mubr.bf16.mxu0 %v556_v60  ;;  %v499_v8 = vld [vmem:[#allocation2 + $0x69] sm:$0xff]  ;;  %11493 = vmatprep.subr.bf16.mxu0 %v13890_v61  ;;  %v13893_v29 = vld [vmem:[%s18218_s1 + $0x20] sm:$0xff]  }
  0x93   :  { %300 = vst.msk [vmem:[#allocation2 + $0xf0] sm:$0xff] %vm268_vm0, %v190_v43  ;;  %301 = vst.msk [vmem:[#allocation2 + $0xf8] sm:$0xff] %vm268_vm0, %v191_v44  ;;  %v558_v15 = vpack.c.bf16 %v499_v8, %v498_v5  ;;  %v500_v20 = vld [vmem:[#allocation2 + $0x79] sm:$0xff]  ;;  %v501_v21 = vld [vmem:[#allocation2 + $0x81] sm:$0xff] }
  0x94   :  { %302 = vst.msk [vmem:[#allocation2 + $0x100] sm:$0x3] %vm271_vm1, %v192_v48  ;;  %305 = vst.msk [vmem:[#allocation2 + $0x118] sm:$0x3] %vm271_vm1, %v195_v52  ;;  %v502_v23 = vld [vmem:[#allocation2 + $0x91] sm:$0xff]  ;;  %v229_v32 = vld [vmem:[%s18217_s0 + $0x228] sm:$0xff]  ;;  %v559_v34 = vpack.c.bf16 %v501_v21, %v500_v20 }
  0x95   :  { %303 = vst.msk [vmem:[#allocation2 + $0x108] sm:$0xff] %vm268_vm0, %v193_v50  ;;  %304 = vst.msk [vmem:[#allocation2 + $0x110] sm:$0xff] %vm268_vm0, %v194_v51  ;;  %11494 = vmatpush3.bf16.msra.mxu0 %v13890_v61  ;;  %v503_v26 = vld [vmem:[#allocation2 + $0x99] sm:$0xff]  ;;  %v225_v27 = vld [vmem:[%s18217_s0 + $0x208] sm:$0x3] }
  0x96   :  { %306 = vst.msk [vmem:[#allocation2 + $0x120] sm:$0xff] %vm268_vm0, %v196_v53  ;;  %307 = vst.msk [vmem:[#allocation2 + $0x128] sm:$0xff] %vm268_vm0, %v197_v54  ;;  %11495 = vmatprep.subr.bf16.mxu0 %v13891_v9  ;;  %v227_v30 = vld [vmem:[%s18217_s0 + $0x218] sm:$0xff]  ;;  %v228_v31 = vld [vmem:[%s18217_s0 + $0x220] sm:$0x3]  ;;  %v560_v36 = vpack.c.bf16 %v503_v26, %v502_v23 }
  0x97   :  { %308 = vst.msk [vmem:[#allocation2 + $0x130] sm:$0x3] %vm271_vm1, %v198_v55  ;;  %311 = vst.msk [vmem:[#allocation2 + $0x148] sm:$0x3] %vm271_vm1, %v201_v59  ;;  %v230_v33 = vld [vmem:[%s18217_s0 + $0x230] sm:$0xff]  ;;  %v13894_v37 = vld [vmem:[%s18218_s1 + $0x28] sm:$0xff]  }
  0x98   :  { %309 = vst.msk [vmem:[#allocation2 + $0x138] sm:$0xff] %vm268_vm0, %v199_v56  ;;  %310 = vst.msk [vmem:[#allocation2 + $0x140] sm:$0xff] %vm268_vm0, %v200_v58  ;;  %11432 = vmatmul.mubr.bf16.gmra.mrb[4].mxu0 %v557_v13  ;;  %v231_v35 = vld [vmem:[%s18217_s0 + $0x238] sm:$0x3]  ;;  %v232_v38 = vld [vmem:[%s18217_s0 + $0x240] sm:$0xff] }
  0x99   :  { %312 = vst.msk [vmem:[#allocation2 + $0x150] sm:$0xff] %vm268_vm0, %v202_v62  ;;  %313 = vst.msk [vmem:[#allocation2 + $0x158] sm:$0xff] %vm268_vm0, %v203_v0  ;;  %11435 = vmatprep.mubr.bf16.mxu0 %v558_v15  ;;  %11496 = vmatpush3.bf16.msra.mxu0 %v13891_v9  ;;  %v233_v39 = vld [vmem:[%s18217_s0 + $0x248] sm:$0xff]  ;;  %v234_v40 = vld [vmem:[%s18217_s0 + $0x250] sm:$0x3] }
  0x9a   :  { %314 = vst.msk [vmem:[#allocation2 + $0x160] sm:$0x3] %vm271_vm1, %v204_v1  ;;  %317 = vst.msk [vmem:[#allocation2 + $0x178] sm:$0x3] %vm271_vm1, %v207_v6  ;;  %11497 = vmatprep.subr.bf16.mxu0 %v13892_v17  ;;  %v504_v42 = vld [vmem:[#allocation2 + $0xa9] sm:$0xff]  ;;  %v236_v43 = vld [vmem:[%s18217_s0 + $0x260] sm:$0xff] }
  0x9b   :  { %315 = vst.msk [vmem:[#allocation2 + $0x168] sm:$0xff] %vm268_vm0, %v205_v3  ;;  %316 = vst.msk [vmem:[#allocation2 + $0x170] sm:$0xff] %vm268_vm0, %v206_v4  ;;  %v237_v44 = vld [vmem:[%s18217_s0 + $0x268] sm:$0x3]  ;;  %v505_v45 = vld [vmem:[#allocation2 + $0xb1] sm:$0xff] }
  0x9c   :  { %324 = vst.msk [vmem:[#allocation2 + $0x1b0] sm:$0xff] %vm268_vm0, %v214_v7  ;;  %325 = vst.msk [vmem:[#allocation2 + $0x1b8] sm:$0xff] %vm268_vm0, %v215_v10  ;;  %v238_v46 = vld [vmem:[%s18217_s0 + $0x270] sm:$0xff]  ;;  %v239_v47 = vld [vmem:[%s18217_s0 + $0x278] sm:$0xff]  ;;  %v561_v53 = vpack.c.bf16 %v505_v45, %v504_v42 }
  0x9d   :  { %326 = vst.msk [vmem:[#allocation2 + $0x1c0] sm:$0x3] %vm271_vm1, %v216_v11  ;;  %329 = vst.msk [vmem:[#allocation2 + $0x1d8] sm:$0x3] %vm271_vm1, %v219_v16  ;;  %11498 = vmatpush3.bf16.msra.mxu0 %v13892_v17  ;;  %v506_v48 = vld [vmem:[#allocation2 + $0xc1] sm:$0xff]  ;;  %v507_v49 = vld [vmem:[#allocation2 + $0xc9] sm:$0xff] }
  0x9e   :  { %327 = vst.msk [vmem:[#allocation2 + $0x1c8] sm:$0xff] %vm268_vm0, %v217_v12  ;;  %328 = vst.msk [vmem:[#allocation2 + $0x1d0] sm:$0xff] %vm268_vm0, %v218_v14  ;;  %11499 = vmatprep.subr.bf16.mxu0 %v13893_v29  ;;  %v240_v50 = vld [vmem:[%s18217_s0 + $0x280] sm:$0x3]  ;;  %v241_v51 = vld [vmem:[%s18217_s0 + $0x288] sm:$0xff]  ;;  %v562_v55 = vpack.c.bf16 %v507_v49, %v506_v48 }
  0x9f   :  { %330 = vst.msk [vmem:[#allocation2 + $0x1e0] sm:$0xff] %vm268_vm0, %v220_v18  ;;  %331 = vst.msk [vmem:[#allocation2 + $0x1e8] sm:$0xff] %vm268_vm0, %v221_v19  ;;  %v242_v52 = vld [vmem:[%s18217_s0 + $0x290] sm:$0xff]  ;;  %v243_v54 = vld [vmem:[%s18217_s0 + $0x298] sm:$0x3] }
  0xa0   :  { %332 = vst.msk [vmem:[#allocation2 + $0x1f0] sm:$0x3] %vm271_vm1, %v222_v22  ;;  %335 = vst.msk [vmem:[#allocation2 + $0x208] sm:$0x3] %vm271_vm1, %v225_v27  ;;  %11436 = vmatmul.mubr.bf16.gmra.mrb[8].mxu0 %v559_v34  ;;  %v13895_v56 = vld [vmem:[%s18218_s1 + $0x30] sm:$0xff]   ;;  %v244_v57 = vld [vmem:[%s18217_s0 + $0x2a0] sm:$0xff] }
  0xa1   :  { %333 = vst.msk [vmem:[#allocation2 + $0x1f8] sm:$0xff] %vm268_vm0, %v223_v24  ;;  %334 = vst.msk [vmem:[#allocation2 + $0x200] sm:$0xff] %vm268_vm0, %v224_v25  ;;  %11439 = vmatprep.mubr.bf16.mxu0 %v560_v36  ;;  %11500 = vmatpush3.bf16.msra.mxu0 %v13893_v29  ;;  %v245_v58 = vld [vmem:[%s18217_s0 + $0x2a8] sm:$0xff]  ;;  %v246_v59 = vld [vmem:[%s18217_s0 + $0x2b0] sm:$0x3] }
  0xa2   :  { %336 = vst.msk [vmem:[#allocation2 + $0x210] sm:$0xff] %vm268_vm0, %v226_v28  ;;  %337 = vst.msk [vmem:[#allocation2 + $0x218] sm:$0xff] %vm268_vm0, %v227_v30  ;;  %11501 = vmatprep.subr.bf16.mxu0 %v13894_v37  ;;  %v247_v60 = vld [vmem:[%s18217_s0 + $0x2b8] sm:$0xff]  ;;  %v248_v61 = vld [vmem:[%s18217_s0 + $0x2c0] sm:$0xff] }
  0xa3   :  { %338 = vst.msk [vmem:[#allocation2 + $0x220] sm:$0x3] %vm271_vm1, %v228_v31  ;;  %341 = vst.msk [vmem:[#allocation2 + $0x238] sm:$0x3] %vm271_vm1, %v231_v35  ;;  %v508_v62 = vld [vmem:[#allocation2 + $0xd9] sm:$0xff]  ;;  %v509_v63 = vld [vmem:[#allocation2 + $0xe1] sm:$0xff] }
  0xa4   :  { %339 = vst.msk [vmem:[#allocation2 + $0x228] sm:$0xff] %vm268_vm0, %v229_v32  ;;  %340 = vst.msk [vmem:[#allocation2 + $0x230] sm:$0xff] %vm268_vm0, %v230_v33  ;;  %v249_v0 = vld [vmem:[%s18217_s0 + $0x2c8] sm:$0x3]  ;;  %v510_v1 = vld [vmem:[#allocation2 + $0xf1] sm:$0xff]  ;;  %v563_v9 = vpack.c.bf16 %v509_v63, %v508_v62 }
  0xa5   :  { %342 = vst.msk [vmem:[#allocation2 + $0x240] sm:$0xff] %vm268_vm0, %v232_v38  ;;  %343 = vst.msk [vmem:[#allocation2 + $0x248] sm:$0xff] %vm268_vm0, %v233_v39  ;;  %11502 = vmatpush3.bf16.msra.mxu0 %v13894_v37  ;;  %v250_v2 = vld [vmem:[%s18217_s0 + $0x2d0] sm:$0xff]  ;;  %v251_v3 = vld [vmem:[%s18217_s0 + $0x2d8] sm:$0xff] }
  0xa6   :  { %344 = vst.msk [vmem:[#allocation2 + $0x250] sm:$0x3] %vm271_vm1, %v234_v40  ;;  %347 = vst.msk [vmem:[#allocation2 + $0x268] sm:$0x3] %vm271_vm1, %v237_v44  ;;  %11503 = vmatprep.subr.bf16.mxu0 %v13895_v56  ;;  %v511_v4 = vld [vmem:[#allocation2 + $0xf9] sm:$0xff]  ;;  %v253_v6 = vld [vmem:[%s18217_s0 + $0x2e8] sm:$0xff] }
  0xa7   :  { %345 = vst.msk [vmem:[#allocation2 + $0x258] sm:$0xff] %vm268_vm0, %v235_v41  ;;  %346 = vst.msk [vmem:[#allocation2 + $0x260] sm:$0xff] %vm268_vm0, %v236_v43  ;;  %v252_v5 = vld [vmem:[%s18217_s0 + $0x2e0] sm:$0x3]  ;;  %v254_v7 = vld [vmem:[%s18217_s0 + $0x2f0] sm:$0xff]  ;;  %v564_v10 = vpack.c.bf16 %v511_v4, %v510_v1 }
  0xa8   :  { %348 = vst.msk [vmem:[#allocation2 + $0x270] sm:$0xff] %vm268_vm0, %v238_v46  ;;  %349 = vst.msk [vmem:[#allocation2 + $0x278] sm:$0xff] %vm268_vm0, %v239_v47  ;;  %11440 = vmatmul.mubr.bf16.gmra.mrb[12].mxu0 %v561_v53  ;;  %v255_v8 = vld [vmem:[%s18217_s0 + $0x2f8] sm:$0x3]  ;;  %v256_v12 = vld [vmem:[%s18217_s0 + $0x300] sm:$0xff] }
  0xa9   :  { %350 = vst.msk [vmem:[#allocation2 + $0x280] sm:$0x3] %vm271_vm1, %v240_v50  ;;  %353 = vst.msk [vmem:[#allocation2 + $0x298] sm:$0x3] %vm271_vm1, %v243_v54  ;;  %11443 = vmatprep.mubr.bf16.mxu0 %v562_v55  ;;  %11504 = vmatpush3.bf16.msra.mxu0 %v13895_v56  ;;  %v13896_v11 = vld [vmem:[%s18218_s1 + $0x38] sm:$0xff]   ;;  %v257_v13 = vld [vmem:[%s18217_s0 + $0x308] sm:$0xff] }
  0xaa   :  { %351 = vst.msk [vmem:[#allocation2 + $0x288] sm:$0xff] %vm268_vm0, %v241_v51  ;;  %352 = vst.msk [vmem:[#allocation2 + $0x290] sm:$0xff] %vm268_vm0, %v242_v52  ;;  %v258_v14 = vld [vmem:[%s18217_s0 + $0x310] sm:$0x3]  ;;  %11505 = vmatprep.subr.bf16.mxu0 %v13896_v11  ;;  %v259_v15 = vld [vmem:[%s18217_s0 + $0x318] sm:$0xff] }
  0xab   :  { %354 = vst.msk [vmem:[#allocation2 + $0x2a0] sm:$0xff] %vm268_vm0, %v244_v57  ;;  %355 = vst.msk [vmem:[#allocation2 + $0x2a8] sm:$0xff] %vm268_vm0, %v245_v58  ;;  %v260_v16 = vld [vmem:[%s18217_s0 + $0x320] sm:$0xff]  ;;  %v261_v17 = vld [vmem:[%s18217_s0 + $0x328] sm:$0x3] }
  0xac   :  { %356 = vst.msk [vmem:[#allocation2 + $0x2b0] sm:$0x3] %vm271_vm1, %v246_v59  ;;  %359 = vst.msk [vmem:[#allocation2 + $0x2c8] sm:$0x3] %vm271_vm1, %v249_v0  ;;  %v512_v18 = vld [vmem:[#allocation2 + $0x109] sm:$0xff]  ;;  %v513_v19 = vld [vmem:[#allocation2 + $0x111] sm:$0xff] }
  0xad   :  { %357 = vst.msk [vmem:[#allocation2 + $0x2b8] sm:$0xff] %vm268_vm0, %v247_v60  ;;  %358 = vst.msk [vmem:[#allocation2 + $0x2c0] sm:$0xff] %vm268_vm0, %v248_v61  ;;  %11506 = vmatpush3.bf16.msra.mxu0 %v13896_v11  ;;  %v514_v20 = vld [vmem:[#allocation2 + $0x121] sm:$0xff]  ;;  %v515_v21 = vld [vmem:[#allocation2 + $0x129] sm:$0xff]  ;;  %v565_v22 = vpack.c.bf16 %v513_v19, %v512_v18 }
  0xae   :  { %360 = vst.msk [vmem:[#allocation2 + $0x2d0] sm:$0xff] %vm268_vm0, %v250_v2  ;;  %361 = vst.msk [vmem:[#allocation2 + $0x2d8] sm:$0xff] %vm268_vm0, %v251_v3  ;;  %v14792_v23 = vld [vmem:[%s18218_s1 + $0x80] sm:$0xff]   ;;  %v566_v24 = vpack.c.bf16 %v515_v21, %v514_v20  ;;  %v518_v27 = vld [vmem:[#allocation2 + $0x151] sm:$0xff] }
  0xaf   :  { %362 = vst.msk [vmem:[#allocation2 + $0x2e0] sm:$0x3] %vm271_vm1, %v252_v5  ;;  %365 = vst.msk [vmem:[#allocation2 + $0x2f8] sm:$0x3] %vm271_vm1, %v255_v8  ;;  %11571 = vmatprep.subr.bf16.mxu0 %v14792_v23  ;;  %v516_v25 = vld [vmem:[#allocation2 + $0x139] sm:$0xff]  ;;  %v517_v26 = vld [vmem:[#allocation2 + $0x141] sm:$0xff] }
  0xb0   :  { %363 = vst.msk [vmem:[#allocation2 + $0x2e8] sm:$0xff] %vm268_vm0, %v253_v6  ;;  %364 = vst.msk [vmem:[#allocation2 + $0x2f0] sm:$0xff] %vm268_vm0, %v254_v7  ;;  %11444 = vmatmul.mubr.bf16.gmra.mrb[16].mxu0 %v563_v9  ;;  %v519_v28 = vld [vmem:[#allocation2 + $0x159] sm:$0xff]  ;;  %v567_v29 = vpack.c.bf16 %v517_v26, %v516_v25  ;;  %v520_v31 = vld [vmem:[#allocation2 + $0x169] sm:$0xff] }
  0xb1   :  { %366 = vst.msk [vmem:[#allocation2 + $0x300] sm:$0xff] %vm268_vm0, %v256_v12  ;;  %367 = vst.msk [vmem:[#allocation2 + $0x308] sm:$0xff] %vm268_vm0, %v257_v13  ;;  %11447 = vmatprep.mubr.bf16.mxu0 %v564_v10  ;;  %v568_v30 = vpack.c.bf16 %v519_v28, %v518_v27  ;;  %v521_v32 = vld [vmem:[#allocation2 + $0x171] sm:$0xff]  ;;  %v523_v34 = vld [vmem:[#allocation2 + $0x1b9] sm:$0xff] }
  0xb2   :  { %368 = vst.msk [vmem:[#allocation2 + $0x310] sm:$0x3] %vm271_vm1, %v258_v14  ;;  %371 = vst.msk [vmem:[#allocation2 + $0x328] sm:$0x3] %vm271_vm1, %v261_v17  ;;  %v522_v33 = vld [vmem:[#allocation2 + $0x1b1] sm:$0xff]  ;;  %v569_v35 = vpack.c.bf16 %v521_v32, %v520_v31  ;;  %v524_v37 = vld [vmem:[#allocation2 + $0x1c9] sm:$0xff] }
  0xb3   :  { %369 = vst.msk [vmem:[#allocation2 + $0x318] sm:$0xff] %vm268_vm0, %v259_v15  ;;  %370 = vst.msk [vmem:[#allocation2 + $0x320] sm:$0xff] %vm268_vm0, %v260_v16  ;;  %v570_v36 = vpack.c.bf16 %v523_v34, %v522_v33  ;;  %v525_v38 = vld [vmem:[#allocation2 + $0x1d1] sm:$0xff]  ;;  %v526_v39 = vld [vmem:[#allocation2 + $0x1e1] sm:$0xff] }
  0xb4   :  { %v527_v40 = vld [vmem:[#allocation2 + $0x1e9] sm:$0xff]  ;;  %v571_v41 = vpack.c.bf16 %v525_v38, %v524_v37  ;;  %v528_v43 = vld [vmem:[#allocation2 + $0x1f9] sm:$0xff]  ;;  %v529_v44 = vld [vmem:[#allocation2 + $0x201] sm:$0xff] }
  0xb5   :  { %v572_v42 = vpack.c.bf16 %v527_v40, %v526_v39  ;;  %v530_v45 = vld [vmem:[#allocation2 + $0x211] sm:$0xff]  ;;  %v531_v46 = vld [vmem:[#allocation2 + $0x219] sm:$0xff]  ;;  %v573_v47 = vpack.c.bf16 %v529_v44, %v528_v43  ;;  %v532_v49 = vld [vmem:[#allocation2 + $0x229] sm:$0xff] }
  0xb6   :  { %v574_v48 = vpack.c.bf16 %v531_v46, %v530_v45  ;;  %v533_v50 = vld [vmem:[#allocation2 + $0x231] sm:$0xff]  ;;  %v534_v51 = vld [vmem:[#allocation2 + $0x241] sm:$0xff]  ;;  %v535_v52 = vld [vmem:[#allocation2 + $0x249] sm:$0xff] }
  0xb7   :  { %v575_v53 = vpack.c.bf16 %v533_v50, %v532_v49  ;;  %v576_v54 = vpack.c.bf16 %v535_v52, %v534_v51  ;;  %v536_v55 = vld [vmem:[#allocation2 + $0x259] sm:$0xff]  ;;  %v537_v56 = vld [vmem:[#allocation2 + $0x261] sm:$0xff]  ;;  %v538_v57 = vld [vmem:[#allocation2 + $0x271] sm:$0xff] }
  0xb8   :  { %11448 = vmatmul.mubr.bf16.gmra.mrb[20].mxu0 %v565_v22  ;;  %v539_v58 = vld [vmem:[#allocation2 + $0x279] sm:$0xff]  ;;  %v577_v59 = vpack.c.bf16 %v537_v56, %v536_v55  ;;  %v540_v61 = vld [vmem:[#allocation2 + $0x289] sm:$0xff]  ;;  %v541_v62 = vld [vmem:[#allocation2 + $0x291] sm:$0xff] }
  0xb9   :  { %11451 = vmatprep.mubr.bf16.mxu0 %v566_v24  ;;  %v578_v60 = vpack.c.bf16 %v539_v58, %v538_v57  ;;  %v542_v63 = vld [vmem:[#allocation2 + $0x2a1] sm:$0xff]  ;;  %v543_v0 = vld [vmem:[#allocation2 + $0x2a9] sm:$0xff]  ;;  %v579_v1 = vpack.c.bf16 %v541_v62, %v540_v61  ;;  %v544_v3 = vld [vmem:[#allocation2 + $0x2b9] sm:$0xff] }
  0xba   :  { %v580_v2 = vpack.c.bf16 %v543_v0, %v542_v63  ;;  %v545_v4 = vld [vmem:[#allocation2 + $0x2c1] sm:$0xff]  ;;  %v546_v5 = vld [vmem:[#allocation2 + $0x2d1] sm:$0xff]  ;;  %v547_v6 = vld [vmem:[#allocation2 + $0x2d9] sm:$0xff] }
  0xbb   :  { %v581_v7 = vpack.c.bf16 %v545_v4, %v544_v3  ;;  %v582_v8 = vpack.c.bf16 %v547_v6, %v546_v5  ;;  %v548_v9 = vld [vmem:[#allocation2 + $0x2e9] sm:$0xff]  ;;  %v549_v10 = vld [vmem:[#allocation2 + $0x2f1] sm:$0xff]  ;;  %v550_v11 = vld [vmem:[#allocation2 + $0x301] sm:$0xff] }
  0xbc   :  { %v551_v12 = vld [vmem:[#allocation2 + $0x309] sm:$0xff]  ;;  %v583_v13 = vpack.c.bf16 %v549_v10, %v548_v9  ;;  %v378_v15 = vld [vmem:[#allocation2] sm:$0xff]  ;;  %v380_v21 = vld [vmem:[#allocation2 + $0x18] sm:$0xff] }
  0xbd   :  { %v584_v14 = vpack.c.bf16 %v551_v12, %v550_v11  ;;  %v379_v16 = vld [vmem:[#allocation2 + $0x8] sm:$0xff]  ;;  %v552_v17 = vld [vmem:[#allocation2 + $0x319] sm:$0xff]  ;;  %v382_v24 = vld [vmem:[#allocation2 + $0x30] sm:$0xff] }
  0xbe   :  { %v553_v18 = vld [vmem:[#allocation2 + $0x321] sm:$0xff]  ;;  %v442_v20 = vpack.c.bf16 %v379_v16, %v378_v15  ;;  %v383_v25 = vld [vmem:[#allocation2 + $0x38] sm:$0xff]  ;;  %v13899_v33 = vld [vmem:[%s18218_s1 + $0x90] sm:$0xff]  }
  0xbf   :  { %v585_v19 = vpack.c.bf16 %v553_v18, %v552_v17  ;;  %v381_v22 = vld [vmem:[#allocation2 + $0x20] sm:$0xff]  ;;  %v13898_v27 = vld [vmem:[%s18218_s1 + $0x88] sm:$0xff]   ;;  %v14800_v28 = vpack.c.bf16 %v383_v25, %v382_v24  ;;  %v390_v38 = vld [vmem:[#allocation2 + $0x90] sm:$0xff] }
  0xc0   :  { %11452 = vmatmul.mubr.bf16.gmra.mrb[24].mxu0 %v567_v29  ;;  %v14795_v26 = vpack.c.bf16 %v381_v22, %v380_v21  ;;  %v384_v29 = vld [vmem:[#allocation2 + $0x48] sm:$0xff]  ;;  %v386_v31 = vld [vmem:[#allocation2 + $0x60] sm:$0xff]  ;;  %v391_v39 = vld [vmem:[#allocation2 + $0x98] sm:$0xff] }
  0xc1   :  { %11455 = vmatprep.mubr.bf16.mxu0 %v568_v30  ;;  %v385_v30 = vld [vmem:[#allocation2 + $0x50] sm:$0xff]  ;;  %v387_v32 = vld [vmem:[#allocation2 + $0x68] sm:$0xff]  ;;  %v389_v37 = vld [vmem:[#allocation2 + $0x80] sm:$0xff]  ;;  %v14825_v43 = vpack.c.bf16 %v391_v39, %v390_v38 }
  0xc2   :  { %v14808_v34 = vpack.c.bf16 %v385_v30, %v384_v29  ;;  %v13901_v40 = vld [vmem:[%s18218_s1 + $0xa0] sm:$0xff]   ;;  %v392_v44 = vld [vmem:[#allocation2 + $0xa8] sm:$0xff]  ;;  %v393_v45 = vld [vmem:[#allocation2 + $0xb0] sm:$0xff] }
  0xc3   :  { %v394_v46 = vld [vmem:[#allocation2 + $0xc0] sm:$0xff]  ;;  %v14832_v49 = vpack.c.bf16 %v393_v45, %v392_v44  ;;  %v13904_v51 = vld [vmem:[%s18218_s1 + $0xb8] sm:$0xff]   ;;  %v403_v62 = vld [vmem:[#allocation2 + $0x128] sm:$0xff] }
  0xc4   :  { %v396_v52 = vld [vmem:[#allocation2 + $0xd8] sm:$0xff]  ;;  %v14844_v56 = vld [vmem:[%s18218_s1 + $0xc0] sm:$0xff]   ;;  %v406_v3 = vld [vmem:[#allocation2 + $0x150] sm:$0xff] }
  0xc5   :  { %v399_v55 = vld [vmem:[#allocation2 + $0xf8] sm:$0xff]  ;;  %v402_v61 = vld [vmem:[#allocation2 + $0x120] sm:$0xff]  ;;  %v410_v9 = vld [vmem:[#allocation2 + $0x1b0] sm:$0xff] }
  0xc6   :  { %v14855_v0 = vpack.c.bf16 %v403_v62, %v402_v61  ;;  %v407_v4 = vld [vmem:[#allocation2 + $0x158] sm:$0xff]  ;;  %v414_v15 = vld [vmem:[#allocation2 + $0x1e0] sm:$0xff]  ;;  %v415_v16 = vld [vmem:[#allocation2 + $0x1e8] sm:$0xff] }
  0xc7   :  { %v14861_v6 = vpack.c.bf16 %v407_v4, %v406_v3  ;;  %v411_v10 = vld [vmem:[#allocation2 + $0x1b8] sm:$0xff]  ;;  %v14870_v18 = vpack.c.bf16 %v415_v16, %v414_v15  ;;  %v418_v21 = vld [vmem:[#allocation2 + $0x210] sm:$0xff]  ;;  %v422_v30 = vld [vmem:[#allocation2 + $0x240] sm:$0xff] }
  0xc8   :  { %11456 = vmatmul.mubr.bf16.gmra.mrb[28].mxu0 %v569_v35  ;;  %v13900_v35 = vld [vmem:[%s18218_s1 + $0x98] sm:$0xff]   ;;  %v458_v12 = vpack.c.bf16 %v411_v10, %v410_v9  ;;  %v421_v29 = vld [vmem:[#allocation2 + $0x230] sm:$0xff]  ;;  %v430_v45 = vld [vmem:[#allocation2 + $0x2a0] sm:$0xff] }
  0xc9   :  { %11459 = vmatprep.mubr.bf16.mxu0 %v570_v36  ;;  %v14813_v36 = vpack.c.bf16 %v387_v32, %v386_v31  ;;  %v419_v22 = vld [vmem:[#allocation2 + $0x218] sm:$0xff]  ;;  %v423_v31 = vld [vmem:[#allocation2 + $0x248] sm:$0xff]  ;;  %v429_v44 = vld [vmem:[#allocation2 + $0x290] sm:$0xff] }
  0xca   :  { %v14876_v25 = vpack.c.bf16 %v419_v22, %v418_v21  ;;  %v427_v38 = vld [vmem:[#allocation2 + $0x278] sm:$0xff]  ;;  %v437_v61 = vld [vmem:[#allocation2 + $0x2f0] sm:$0xff]  ;;  %v438_v62 = vld [vmem:[#allocation2 + $0x300] sm:$0xff] }
  0xcb   :  { %v440_v4 = vld [vmem:[#allocation2 + $0x318] sm:$0xff]  ;;  %v1277_v9 = vld [vmem:[#allocation2 + $0xa] sm:$0xff] }
  0xcc   :  { %v1280_v15 = vld [vmem:[#allocation2 + $0x32] sm:$0xff]  ;;  %v1281_v16 = vld [vmem:[#allocation2 + $0x3a] sm:$0xff]  ;;  %v13906_v21 = vld [vmem:[%s18218_s1 + $0xc8] sm:$0xff]  }
  0xcd   :  { %v1282_v22 = vld [vmem:[#allocation2 + $0x4a] sm:$0xff] }
  0xd0   :  { %11460 = vmatmul.mubr.bf16.gmra.mrb[32].mxu0 %v571_v41 }
  0xd1   :  { %11463 = vmatprep.mubr.bf16.mxu0 %v572_v42  ;;  %v13902_v42 = vld [vmem:[%s18218_s1 + $0xa8] sm:$0xff]  }
  0xd8   :  { %11464 = vmatmul.mubr.bf16.gmra.mrb[36].mxu0 %v573_v47  ;;  %v395_v47 = vld [vmem:[#allocation2 + $0xc8] sm:$0xff] }
  0xd9   :  { %11467 = vmatprep.mubr.bf16.mxu0 %v574_v48  ;;  %v13903_v48 = vld [vmem:[%s18218_s1 + $0xb0] sm:$0xff]   ;;  %v14834_v50 = vpack.c.bf16 %v395_v47, %v394_v46  ;;  %v431_v46 = vld [vmem:[#allocation2 + $0x2a8] sm:$0xff] }
  0xe0   :  { %11468 = vmatmul.mubr.bf16.gmra.mrb[40].mxu0 %v575_v53  ;;  %v397_v53 = vld [vmem:[#allocation2 + $0xe0] sm:$0xff] }
  0xe1   :  { %11471 = vmatprep.mubr.bf16.mxu0 %v576_v54  ;;  %v398_v54 = vld [vmem:[#allocation2 + $0xf0] sm:$0xff]  ;;  %v14846_v57 = vpack.c.bf16 %v397_v53, %v396_v52  ;;  %v433_v52 = vld [vmem:[#allocation2 + $0x2c0] sm:$0xff] }
  0xe2   :  { %v14848_v58 = vpack.c.bf16 %v399_v55, %v398_v54  ;;  %v434_v53 = vld [vmem:[#allocation2 + $0x2d0] sm:$0xff]  ;;  %v435_v54 = vld [vmem:[#allocation2 + $0x2d8] sm:$0xff] }
  0xe8   :  { %11472 = vmatmul.mubr.bf16.gmra.mrb[44].mxu0 %v577_v59  ;;  %v400_v59 = vld [vmem:[#allocation2 + $0x108] sm:$0xff] }
  0xe9   :  { %11475 = vmatprep.mubr.bf16.mxu0 %v578_v60  ;;  %v401_v60 = vld [vmem:[#allocation2 + $0x110] sm:$0xff] }
  0xea   :  { %v14853_v63 = vpack.c.bf16 %v401_v60, %v400_v59  ;;  %v14900_v59 = vpack.c.bf16 %v435_v54, %v434_v53  ;;  %v436_v60 = vld [vmem:[#allocation2 + $0x2e8] sm:$0xff]  ;;  %v1291_v54 = vld [vmem:[#allocation2 + $0xb2] sm:$0xff] }
  0xeb   :  { %v1290_v53 = vld [vmem:[#allocation2 + $0xaa] sm:$0xff] }
  0xf0   :  { %11476 = vmatmul.mubr.bf16.gmra.mrb[48].mxu0 %v579_v1  ;;  %v404_v1 = vld [vmem:[#allocation2 + $0x138] sm:$0xff] }
  0xf1   :  { %11479 = vmatprep.mubr.bf16.mxu0 %v580_v2  ;;  %v405_v2 = vld [vmem:[#allocation2 + $0x140] sm:$0xff] }
  0xf2   :  { %v14859_v5 = vpack.c.bf16 %v405_v2, %v404_v1  ;;  %v439_v1 = vld [vmem:[#allocation2 + $0x308] sm:$0xff]  ;;  %v14904_v2 = vpack.c.bf16 %v437_v61, %v436_v60 }
  0xf3   :  { %v14906_v3 = vpack.c.bf16 %v439_v1, %v438_v62  ;;  %v1292_v60 = vld [vmem:[#allocation2 + $0xc2] sm:$0xff]  ;;  %v1293_v61 = vld [vmem:[#allocation2 + $0xca] sm:$0xff]  ;;  %v14950_v1 = vpack.c.bf16 %v1291_v54, %v1290_v53 }
  0xf4   :  { %v13911_v62 = vld [vmem:[%s18218_s1 + $0xf0] sm:$0xff]   ;;  %v209_v53 = vld [vmem:[%s18217_s0 + $0x188] sm:$0xff] }
  0xf5   :  { %319 = vst.msk [vmem:[#allocation2 + $0x188] sm:$0xff] %vm268_vm0, %v209_v53  ;;  %v1306_v54 = vld [vmem:[#allocation2 + $0x16a] sm:$0xff] }
  0xf6   :  { %v1318_v53 = vld [vmem:[#allocation2 + $0x22a] sm:$0xff] }
  0xf8   :  { %11480 = vmatmul.mubr.bf16.gmra.mrb[52].mxu0 %v581_v7  ;;  %v408_v7 = vld [vmem:[#allocation2 + $0x168] sm:$0xff] }
  0xf9   :  { %11483 = vmatprep.mubr.bf16.mxu0 %v582_v8  ;;  %v409_v8 = vld [vmem:[#allocation2 + $0x170] sm:$0xff] }
  0xfa   :  { %v14865_v11 = vpack.c.bf16 %v409_v8, %v408_v7  ;;  %v441_v7 = vld [vmem:[#allocation2 + $0x320] sm:$0xff] }
  0xfb   :  { %v1276_v8 = vld [vmem:[#allocation2 + $0x2] sm:$0xff]  ;;  %v14910_v10 = vpack.c.bf16 %v441_v7, %v440_v4  ;;  %v14952_v4 = vpack.c.bf16 %v1293_v61, %v1292_v60  ;;  %v13912_v7 = vld [vmem:[%s18218_s1 + $0xf8] sm:$0xff]  }
  0xfc   :  { %v1307_v60 = vld [vmem:[#allocation2 + $0x172] sm:$0xff] }
  0xfd   :  { %v1308_v61 = vld [vmem:[#allocation2 + $0x1b2] sm:$0xff] }
 0x100   :  { %11484 = vmatmul.mubr.bf16.gmra.mrb[56].mxu0 %v583_v13  ;;  %v412_v13 = vld [vmem:[#allocation2 + $0x1c8] sm:$0xff] }
 0x101   :  { %11487 = vmatprep.mubr.bf16.mxu0 %v584_v14  ;;  %v413_v14 = vld [vmem:[#allocation2 + $0x1d0] sm:$0xff] }
 0x102   :  { %v14868_v17 = vpack.c.bf16 %v413_v14, %v412_v13  ;;  %v1278_v13 = vld [vmem:[#allocation2 + $0x1a] sm:$0xff]  ;;  %v1279_v14 = vld [vmem:[#allocation2 + $0x22] sm:$0xff] }
 0x108   :  { %11488 = vmatmul.mubr.bf16.gmra.mrb[60].mxu0 %v585_v19  ;;  %v416_v19 = vld [vmem:[#allocation2 + $0x1f8] sm:$0xff] }
 0x109   :  { %11507 = vmatprep.mubr.bf16.mxu0 %v442_v20  ;;  %v417_v20 = vld [vmem:[#allocation2 + $0x200] sm:$0xff] }
 0x10a   :  { %v14874_v24 = vpack.c.bf16 %v417_v20, %v416_v19  ;;  %v14913_v19 = vpack.c.bf16 %v1279_v14, %v1278_v13  ;;  %v14915_v20 = vpack.c.bf16 %v1281_v16, %v1280_v15  ;;  %v1297_v13 = vld [vmem:[#allocation2 + $0xfa] sm:$0xff] }
 0x10b   :  { %v14962_v14 = vld [vmem:[%s18218_s1 + $0x100] sm:$0xff]  }
 0x110   :  { %11508 = vmatmul.mubr.bf16.vlgmr.msra.gmra.mrb[0].mxu0 %v14795_v26 }
 0x111   :  { %11572 = vmatpush3.bf16.msra.mxu0 %v14792_v23  ;;  %11511 = vmatprep.mubr.bf16.mxu0 %v14800_v28  ;;  %v388_v23 = vld [vmem:[#allocation2 + $0x78] sm:$0xff] }
 0x112   :  { %11573 = vmatprep.subr.bf16.mxu0 %v13898_v27  ;;  %v14820_v41 = vpack.c.bf16 %v389_v37, %v388_v23  ;;  %v425_v23 = vld [vmem:[#allocation2 + $0x260] sm:$0xff]  ;;  %v426_v37 = vld [vmem:[#allocation2 + $0x270] sm:$0xff] }
 0x115   :  { %11574 = vmatpush3.bf16.msra.mxu0 %v13898_v27  ;;  %v420_v27 = vld [vmem:[#allocation2 + $0x228] sm:$0xff] }
 0x116   :  { %11575 = vmatprep.subr.bf16.mxu0 %v13899_v33  ;;  %v14880_v32 = vpack.c.bf16 %v421_v29, %v420_v27  ;;  %v1283_v27 = vld [vmem:[#allocation2 + $0x52] sm:$0xff]  ;;  %v1284_v29 = vld [vmem:[#allocation2 + $0x62] sm:$0xff] }
 0x118   :  { %11512 = vmatmul.mubr.bf16.gmra.mrb[4].mxu0 %v14808_v34 }
 0x119   :  { %11515 = vmatprep.mubr.bf16.mxu0 %v14813_v36  ;;  %11576 = vmatpush3.bf16.msra.mxu0 %v13899_v33  ;;  %v14882_v33 = vpack.c.bf16 %v423_v31, %v422_v30  ;;  %v1285_v30 = vld [vmem:[#allocation2 + $0x6a] sm:$0xff] }
 0x11a   :  { %11577 = vmatprep.subr.bf16.mxu0 %v13900_v35  ;;  %v13907_v31 = vld [vmem:[%s18218_s1 + $0xd0] sm:$0xff]  }
 0x11d   :  { %11578 = vmatpush3.bf16.msra.mxu0 %v13900_v35  ;;  %v424_v35 = vld [vmem:[#allocation2 + $0x258] sm:$0xff] }
 0x11e   :  { %11579 = vmatprep.subr.bf16.mxu0 %v13901_v40  ;;  %v14886_v39 = vpack.c.bf16 %v425_v23, %v424_v35  ;;  %v14926_v35 = vpack.c.bf16 %v1283_v27, %v1282_v22  ;;  %v14928_v23 = vpack.c.bf16 %v1285_v30, %v1284_v29  ;;  %v1299_v22 = vld [vmem:[#allocation2 + $0x112] sm:$0xff]  ;;  %v1300_v27 = vld [vmem:[#allocation2 + $0x122] sm:$0xff]  ;;  %v1301_v29 = vld [vmem:[#allocation2 + $0x12a] sm:$0xff] }
 0x120   :  { %11516 = vmatmul.mubr.bf16.gmra.mrb[8].mxu0 %v14820_v41 }
 0x121   :  { %11519 = vmatprep.mubr.bf16.mxu0 %v14825_v43  ;;  %11580 = vmatpush3.bf16.msra.mxu0 %v13901_v40  ;;  %v14888_v40 = vpack.c.bf16 %v427_v38, %v426_v37  ;;  %v1286_v37 = vld [vmem:[#allocation2 + $0x7a] sm:$0xff]  ;;  %v1287_v38 = vld [vmem:[#allocation2 + $0x82] sm:$0xff] }
 0x122   :  { %11581 = vmatprep.subr.bf16.mxu0 %v13902_v42 }
 0x125   :  { %11582 = vmatpush3.bf16.msra.mxu0 %v13902_v42  ;;  %v428_v42 = vld [vmem:[#allocation2 + $0x288] sm:$0xff] }
 0x126   :  { %11583 = vmatprep.subr.bf16.mxu0 %v13903_v48  ;;  %v14892_v47 = vpack.c.bf16 %v429_v44, %v428_v42  ;;  %v1288_v42 = vld [vmem:[#allocation2 + $0x92] sm:$0xff]  ;;  %v1289_v44 = vld [vmem:[#allocation2 + $0x9a] sm:$0xff] }
 0x128   :  { %11520 = vmatmul.mubr.bf16.gmra.mrb[12].mxu0 %v14832_v49 }
 0x129   :  { %11523 = vmatprep.mubr.bf16.mxu0 %v14834_v50  ;;  %11584 = vmatpush3.bf16.msra.mxu0 %v13903_v48  ;;  %v14894_v48 = vpack.c.bf16 %v431_v46, %v430_v45  ;;  %v13909_v45 = vld [vmem:[%s18218_s1 + $0xe0] sm:$0xff]   ;;  %v14938_v46 = vpack.c.bf16 %v1287_v38, %v1286_v37  ;;  %v1304_v38 = vld [vmem:[#allocation2 + $0x152] sm:$0xff] }
 0x12a   :  { %11585 = vmatprep.subr.bf16.mxu0 %v13904_v51  ;;  %v1303_v37 = vld [vmem:[#allocation2 + $0x142] sm:$0xff] }
 0x12d   :  { %11586 = vmatpush3.bf16.msra.mxu0 %v13904_v51  ;;  %v432_v51 = vld [vmem:[#allocation2 + $0x2b8] sm:$0xff] }
 0x12e   :  { %11651 = vmatprep.subr.bf16.mxu0 %v14844_v56  ;;  %v14898_v55 = vpack.c.bf16 %v433_v52, %v432_v51  ;;  %v14940_v51 = vpack.c.bf16 %v1289_v44, %v1288_v42  ;;  %v13910_v52 = vld [vmem:[%s18218_s1 + $0xe8] sm:$0xff]   ;;  %v1305_v42 = vld [vmem:[#allocation2 + $0x15a] sm:$0xff] }
 0x130   :  { %11524 = vmatmul.mubr.bf16.gmra.mrb[16].mxu0 %v14846_v57 }
 0x131   :  { %11527 = vmatprep.mubr.bf16.mxu0 %v14848_v58 }
 0x138   :  { %11528 = vmatmul.mubr.bf16.gmra.mrb[20].mxu0 %v14853_v63 }
 0x139   :  { %11531 = vmatprep.mubr.bf16.mxu0 %v14855_v0 }
 0x140   :  { %11532 = vmatmul.mubr.bf16.gmra.mrb[24].mxu0 %v14859_v5 }
 0x141   :  { %11535 = vmatprep.mubr.bf16.mxu0 %v14861_v6 }
 0x148   :  { %11536 = vmatmul.mubr.bf16.gmra.mrb[28].mxu0 %v14865_v11 }
 0x149   :  { %11539 = vmatprep.mubr.bf16.mxu0 %v458_v12  ;;  %v1340_v12 = vpack.c.bf16 %v1277_v9, %v1276_v8  ;;  %v1294_v8 = vld [vmem:[#allocation2 + $0xda] sm:$0xff]  ;;  %v1295_v9 = vld [vmem:[#allocation2 + $0xe2] sm:$0xff] }
 0x14a   :  { %v14964_v15 = vpack.c.bf16 %v1295_v9, %v1294_v8  ;;  %v1310_v9 = vld [vmem:[#allocation2 + $0x1ca] sm:$0xff] }
 0x150   :  { %11540 = vmatmul.mubr.bf16.gmra.mrb[32].mxu0 %v14868_v17 }
 0x151   :  { %11543 = vmatprep.mubr.bf16.mxu0 %v14870_v18 }
 0x158   :  { %11544 = vmatmul.mubr.bf16.gmra.mrb[36].mxu0 %v14874_v24 }
 0x159   :  { %11547 = vmatprep.mubr.bf16.mxu0 %v14876_v25 }
 0x160   :  { %11548 = vmatmul.mubr.bf16.gmra.mrb[40].mxu0 %v14880_v32 }
 0x161   :  { %11551 = vmatprep.mubr.bf16.mxu0 %v14882_v33 }
 0x168   :  { %11552 = vmatmul.mubr.bf16.gmra.mrb[44].mxu0 %v14886_v39 }
 0x169   :  { %11555 = vmatprep.mubr.bf16.mxu0 %v14888_v40 }
 0x170   :  { %11556 = vmatmul.mubr.bf16.gmra.mrb[48].mxu0 %v14892_v47 }
 0x171   :  { %11559 = vmatprep.mubr.bf16.mxu0 %v14894_v48 }
 0x178   :  { %11560 = vmatmul.mubr.bf16.gmra.mrb[52].mxu0 %v14898_v55 }
 0x179   :  { %11563 = vmatprep.mubr.bf16.mxu0 %v14900_v59 }
 0x180   :  { %11564 = vmatmul.mubr.bf16.gmra.mrb[56].mxu0 %v14904_v2 }
 0x181   :  { %11567 = vmatprep.mubr.bf16.mxu0 %v14906_v3 }
 0x188   :  { %11568 = vmatmul.mubr.bf16.gmra.mrb[60].mxu0 %v14910_v10 }
 0x189   :  { %11587 = vmatprep.mubr.bf16.mxu0 %v1340_v12  ;;  %v1296_v12 = vld [vmem:[#allocation2 + $0xf2] sm:$0xff] }
 0x18a   :  { %v14966_v16 = vpack.c.bf16 %v1297_v13, %v1296_v12  ;;  %v1311_v12 = vld [vmem:[#allocation2 + $0x1d2] sm:$0xff]  ;;  %v1312_v13 = vld [vmem:[#allocation2 + $0x1e2] sm:$0xff] }
 0x190   :  { %11588 = vmatmul.mubr.bf16.vlgmr.msra.gmra.mrb[0].mxu0 %v14913_v19 }
 0x191   :  { %11652 = vmatpush3.bf16.msra.mxu0 %v14844_v56  ;;  %11591 = vmatprep.mubr.bf16.mxu0 %v14915_v20  ;;  %v13908_v56 = vld [vmem:[%s18218_s1 + $0xd8] sm:$0xff]  }
 0x192   :  { %11653 = vmatprep.subr.bf16.mxu0 %v13906_v21 }
 0x195   :  { %11654 = vmatpush3.bf16.msra.mxu0 %v13906_v21  ;;  %v1298_v21 = vld [vmem:[#allocation2 + $0x10a] sm:$0xff] }
 0x196   :  { %11655 = vmatprep.subr.bf16.mxu0 %v13907_v31  ;;  %v14971_v30 = vpack.c.bf16 %v1299_v22, %v1298_v21  ;;  %v1313_v21 = vld [vmem:[#allocation2 + $0x1ea] sm:$0xff]  ;;  %v14994_v22 = vpack.c.bf16 %v1311_v12, %v1310_v9  ;;  %v1322_v9 = vld [vmem:[#allocation2 + $0x25a] sm:$0xff]  ;;  %v1323_v12 = vld [vmem:[#allocation2 + $0x262] sm:$0xff] }
 0x198   :  { %11592 = vmatmul.mubr.bf16.gmra.mrb[4].mxu0 %v14926_v35 }
 0x199   :  { %11595 = vmatprep.mubr.bf16.mxu0 %v14928_v23  ;;  %11656 = vmatpush3.bf16.msra.mxu0 %v13907_v31  ;;  %v14973_v31 = vpack.c.bf16 %v1301_v29, %v1300_v27  ;;  %v14996_v27 = vpack.c.bf16 %v1313_v21, %v1312_v13  ;;  %v1314_v29 = vld [vmem:[#allocation2 + $0x1fa] sm:$0xff]  ;;  %v1324_v13 = vld [vmem:[#allocation2 + $0x272] sm:$0xff] }
 0x19a   :  { %11657 = vmatprep.subr.bf16.mxu0 %v13908_v56  ;;  %v1325_v21 = vld [vmem:[#allocation2 + $0x27a] sm:$0xff] }
 0x19d   :  { %11658 = vmatpush3.bf16.msra.mxu0 %v13908_v56  ;;  %v1302_v56 = vld [vmem:[#allocation2 + $0x13a] sm:$0xff] }
 0x19e   :  { %11659 = vmatprep.subr.bf16.mxu0 %v13909_v45  ;;  %v14977_v44 = vpack.c.bf16 %v1303_v37, %v1302_v56  ;;  %v1315_v56 = vld [vmem:[#allocation2 + $0x202] sm:$0xff]  ;;  %v1316_v37 = vld [vmem:[#allocation2 + $0x212] sm:$0xff] }
 0x1a0   :  { %11596 = vmatmul.mubr.bf16.gmra.mrb[8].mxu0 %v14938_v46 }
 0x1a1   :  { %11599 = vmatprep.mubr.bf16.mxu0 %v14940_v51  ;;  %11660 = vmatpush3.bf16.msra.mxu0 %v13909_v45  ;;  %v14979_v45 = vpack.c.bf16 %v1305_v42, %v1304_v38  ;;  %v1317_v38 = vld [vmem:[#allocation2 + $0x21a] sm:$0xff]  ;;  %v15000_v42 = vpack.c.bf16 %v1315_v56, %v1314_v29  ;;  %v15012_v29 = vpack.c.bf16 %v1323_v12, %v1322_v9  ;;  %v1331_v12 = vld [vmem:[#allocation2 + $0x2c2] sm:$0xff] }
 0x1a2   :  { %11661 = vmatprep.subr.bf16.mxu0 %v13910_v52  ;;  %v15014_v56 = vpack.c.bf16 %v1325_v21, %v1324_v13  ;;  %v1330_v9 = vld [vmem:[#allocation2 + $0x2ba] sm:$0xff]  ;;  %v1332_v13 = vld [vmem:[#allocation2 + $0x2d2] sm:$0xff] }
 0x1a3   :  { %18320 = vst [vmem:[#allocation14_spill] sm:$0xff] %v15012_v29  ;;  %v1333_v21 = vld [vmem:[#allocation2 + $0x2da] sm:$0xff] }
 0x1a4   :  { %18321 = vst [vmem:[#allocation15_spill] sm:$0xff] %v15014_v56 }
 0x1a5   :  { %11662 = vmatpush3.bf16.msra.mxu0 %v13910_v52  ;;  %v208_v52 = vld [vmem:[%s18217_s0 + $0x180] sm:$0xff] }
 0x1a6   :  { %11663 = vmatprep.subr.bf16.mxu0 %v13911_v62  ;;  %318 = vst.msk [vmem:[#allocation2 + $0x180] sm:$0xff] %vm268_vm0, %v208_v52  ;;  %v15002_v52 = vpack.c.bf16 %v1317_v38, %v1316_v37  ;;  %v1326_v37 = vld [vmem:[#allocation2 + $0x28a] sm:$0xff]  ;;  %v1327_v38 = vld [vmem:[#allocation2 + $0x292] sm:$0xff] }
 0x1a8   :  { %11600 = vmatmul.mubr.bf16.gmra.mrb[12].mxu0 %v14950_v1 }
 0x1a9   :  { %11603 = vmatprep.mubr.bf16.mxu0 %v14952_v4  ;;  %11664 = vmatpush3.bf16.msra.mxu0 %v13911_v62  ;;  %v1309_v62 = vld [vmem:[#allocation2 + $0x1ba] sm:$0xff] }
 0x1aa   :  { %11665 = vmatprep.subr.bf16.mxu0 %v13912_v7  ;;  %v1356_v8 = vpack.c.bf16 %v1309_v62, %v1308_v61  ;;  %v1321_v61 = vld [vmem:[#allocation2 + $0x24a] sm:$0xff] }
 0x1ad   :  { %11666 = vmatpush3.bf16.msra.mxu0 %v13912_v7  ;;  %v14991_v7 = vpack.c.bf16 %v1307_v60, %v1306_v54  ;;  %v1319_v54 = vld [vmem:[#allocation2 + $0x232] sm:$0xff]  ;;  %v1320_v60 = vld [vmem:[#allocation2 + $0x242] sm:$0xff] }
 0x1ae   :  { %11731 = vmatprep.subr.bf16.mxu0 %v14962_v14  ;;  %v15006_v62 = vpack.c.bf16 %v1319_v54, %v1318_v53  ;;  %v1328_v53 = vld [vmem:[#allocation2 + $0x2a2] sm:$0xff]  ;;  %v1329_v54 = vld [vmem:[#allocation2 + $0x2aa] sm:$0xff] }
 0x1b0   :  { %11604 = vmatmul.mubr.bf16.gmra.mrb[16].mxu0 %v14964_v15 }
 0x1b1   :  { %11607 = vmatprep.mubr.bf16.mxu0 %v14966_v16 }
 0x1b8   :  { %11608 = vmatmul.mubr.bf16.gmra.mrb[20].mxu0 %v14971_v30 }
 0x1b9   :  { %11611 = vmatprep.mubr.bf16.mxu0 %v14973_v31 }
 0x1c0   :  { %11612 = vmatmul.mubr.bf16.gmra.mrb[24].mxu0 %v14977_v44 }
 0x1c1   :  { %11615 = vmatprep.mubr.bf16.mxu0 %v14979_v45 }
 0x1c8   :  { %11616 = vmatmul.mubr.bf16.gmra.mrb[28].mxu0 %v14991_v7 }
 0x1c9   :  { %11619 = vmatprep.mubr.bf16.mxu0 %v1356_v8  ;;  %v15008_v8 = vpack.c.bf16 %v1321_v61, %v1320_v60  ;;  %v15018_v60 = vpack.c.bf16 %v1327_v38, %v1326_v37  ;;  %v15020_v61 = vpack.c.bf16 %v1329_v54, %v1328_v53  ;;  %v1334_v37 = vld [vmem:[#allocation2 + $0x2ea] sm:$0xff]  ;;  %v1335_v38 = vld [vmem:[#allocation2 + $0x2f2] sm:$0xff]  ;;  %v1336_v53 = vld [vmem:[#allocation2 + $0x302] sm:$0xff] }
 0x1ca   :  { %v1337_v54 = vld [vmem:[#allocation2 + $0x30a] sm:$0xff] }
 0x1cb   :  { %18319 = vst [vmem:[#allocation13_spill] sm:$0xff] %v15008_v8  ;;  %18322 = vst [vmem:[#allocation16_spill] sm:$0xff] %v15018_v60 }
 0x1cc   :  { %18323 = vst [vmem:[#allocation17_spill] sm:$0xff] %v15020_v61 }
 0x1d0   :  { %11620 = vmatmul.mubr.bf16.gmra.mrb[32].mxu0 %v14994_v22 }
 0x1d1   :  { %11623 = vmatprep.mubr.bf16.mxu0 %v14996_v27 }
 0x1d8   :  { %11624 = vmatmul.mubr.bf16.gmra.mrb[36].mxu0 %v15000_v42 }
 0x1d9   :  { %11627 = vmatprep.mubr.bf16.mxu0 %v15002_v52 }
 0x1e0   :  { %11628 = vmatmul.mubr.bf16.gmra.mrb[40].mxu0 %v15006_v62 }
 0x1e1   :  { %11631 = vmatprep.mubr.bf16.mxu0 %v15008_v8  ;;  %v15024_v8 = vpack.c.bf16 %v1331_v12, %v1330_v9  ;;  %v263_v9 = vld [vmem:[%s18217_s0 + $0x338] sm:$0xff] }
 0x1e2   :  { %373 = vst.msk [vmem:[#allocation2 + $0x338] sm:$0xff] %vm268_vm0, %v263_v9  ;;  %v1338_v12 = vld [vmem:[#allocation2 + $0x31a] sm:$0xff]  ;;  %v2315_v9 = vld [vmem:[#allocation2 + $0xa9] sm:$0xff] }
 0x1e8   :  { %11632 = vmatmul.mubr.bf16.gmra.mrb[44].mxu0 %v15012_v29  ;;  %v15026_v29 = vpack.c.bf16 %v1333_v21, %v1332_v13  ;;  %v1339_v13 = vld [vmem:[#allocation2 + $0x322] sm:$0xff] }
 0x1e9   :  { %11635 = vmatprep.mubr.bf16.mxu0 %v15014_v56  ;;  %v15030_v56 = vpack.c.bf16 %v1335_v38, %v1334_v37  ;;  %v15044_v21 = vpack.c.bf16 %v1339_v13, %v1338_v12  ;;  %v13914_v37 = vld [vmem:[%s18218_s1 + $0x108] sm:$0xff]   ;;  %v13924_v38 = vld [vmem:[%s18218_s1 + $0x158] sm:$0xff]   ;;  %v13925_v13 = vld [vmem:[%s18218_s1 + $0x160] sm:$0xff]  }
 0x1ea   :  { %v2316_v12 = vld [vmem:[#allocation2 + $0xb1] sm:$0xff] }
 0x1f0   :  { %11636 = vmatmul.mubr.bf16.gmra.mrb[48].mxu0 %v15018_v60  ;;  %v15032_v60 = vpack.c.bf16 %v1337_v54, %v1336_v53  ;;  %v2313_v53 = vld [vmem:[#allocation2 + $0x91] sm:$0xff]  ;;  %v2314_v54 = vld [vmem:[#allocation2 + $0x99] sm:$0xff] }
 0x1f1   :  { %11639 = vmatprep.mubr.bf16.mxu0 %v15020_v61  ;;  %v262_v61 = vld [vmem:[%s18217_s0 + $0x330] sm:$0xff] }
 0x1f2   :  { %372 = vst.msk [vmem:[#allocation2 + $0x330] sm:$0xff] %vm268_vm0, %v262_v61  ;;  %v13915_v61 = vld [vmem:[%s18218_s1 + $0x110] sm:$0xff]  }
 0x1f8   :  { %11640 = vmatmul.mubr.bf16.gmra.mrb[52].mxu0 %v15024_v8 }
 0x1f9   :  { %11643 = vmatprep.mubr.bf16.mxu0 %v15026_v29 }
 0x200   :  { %11644 = vmatmul.mubr.bf16.gmra.mrb[56].mxu0 %v15030_v56 }
 0x201   :  { %11647 = vmatprep.mubr.bf16.mxu0 %v15032_v60 }
 0x208   :  { %11648 = vmatmul.mubr.bf16.gmra.mrb[60].mxu0 %v15044_v21 }
 0x209   :  { %11667 = vmatprep.mubr.bf16.mxu0 %v14795_v26  ;;  %v13916_v26 = vld [vmem:[%s18218_s1 + $0x118] sm:$0xff]  }
 0x210   :  { %11668 = vmatmul.mubr.bf16.vlgmr.msra.gmra.mrb[0].mxu0 %v14800_v28  ;;  %v13917_v28 = vld [vmem:[%s18218_s1 + $0x120] sm:$0xff]  }
 0x211   :  { %11732 = vmatpush3.bf16.msra.mxu0 %v14962_v14  ;;  %11671 = vmatprep.mubr.bf16.mxu0 %v14808_v34  ;;  %v13918_v34 = vld [vmem:[%s18218_s1 + $0x128] sm:$0xff]  }
 0x212   :  { %11733 = vmatprep.subr.bf16.mxu0 %v13914_v37 }
 0x215   :  { %11734 = vmatpush3.bf16.msra.mxu0 %v13914_v37  ;;  %v15140_v37 = vpack.c.bf16 %v2314_v54, %v2313_v53 }
 0x216   :  { %11735 = vmatprep.subr.bf16.mxu0 %v13915_v61 }
 0x218   :  { %11672 = vmatmul.mubr.bf16.gmra.mrb[4].mxu0 %v14813_v36  ;;  %v13919_v36 = vld [vmem:[%s18218_s1 + $0x130] sm:$0xff]  }
 0x219   :  { %11675 = vmatprep.mubr.bf16.mxu0 %v14820_v41  ;;  %11736 = vmatpush3.bf16.msra.mxu0 %v13915_v61  ;;  %v13920_v41 = vld [vmem:[%s18218_s1 + $0x138] sm:$0xff]   ;;  %v15142_v61 = vpack.c.bf16 %v2316_v12, %v2315_v9  ;;  %v2333_v9 = vld [vmem:[#allocation2 + $0x181] sm:$0xff] }
 0x21a   :  { %11737 = vmatprep.subr.bf16.mxu0 %v13916_v26 }
 0x21d   :  { %11738 = vmatpush3.bf16.msra.mxu0 %v13916_v26  ;;  %v13926_v26 = vld [vmem:[%s18218_s1 + $0x168] sm:$0xff]  }
 0x21e   :  { %11739 = vmatprep.subr.bf16.mxu0 %v13917_v28 }
 0x220   :  { %11676 = vmatmul.mubr.bf16.gmra.mrb[8].mxu0 %v14825_v43  ;;  %v13921_v43 = vld [vmem:[%s18218_s1 + $0x140] sm:$0xff]  }
 0x221   :  { %11679 = vmatprep.mubr.bf16.mxu0 %v14832_v49  ;;  %11740 = vmatpush3.bf16.msra.mxu0 %v13917_v28  ;;  %v210_v49 = vld [vmem:[%s18217_s0 + $0x190] sm:$0x3]  ;;  %v2317_v28 = vld [vmem:[#allocation2 + $0xc1] sm:$0xff] }
 0x222   :  { %11741 = vmatprep.subr.bf16.mxu0 %v13918_v34  ;;  %320 = vst.msk [vmem:[#allocation2 + $0x190] sm:$0x3] %vm271_vm1, %v210_v49 }
 0x225   :  { %11742 = vmatpush3.bf16.msra.mxu0 %v13918_v34  ;;  %v2318_v34 = vld [vmem:[#allocation2 + $0xc9] sm:$0xff] }
 0x226   :  { %11743 = vmatprep.subr.bf16.mxu0 %v13919_v36  ;;  %v15152_v49 = vpack.c.bf16 %v2318_v34, %v2317_v28 }
 0x228   :  { %11680 = vmatmul.mubr.bf16.gmra.mrb[12].mxu0 %v14834_v50  ;;  %v1820_v50 = vld [vmem:[#allocation2 + $0x180] sm:$0xff] }
 0x229   :  { %11683 = vmatprep.mubr.bf16.mxu0 %v14846_v57  ;;  %11744 = vmatpush3.bf16.msra.mxu0 %v13919_v36  ;;  %v1821_v57 = vld [vmem:[#allocation2 + $0x188] sm:$0xff]  ;;  %v2319_v36 = vld [vmem:[#allocation2 + $0xd9] sm:$0xff] }
 0x22a   :  { %11745 = vmatprep.subr.bf16.mxu0 %v13920_v41  ;;  %v15091_v14 = vpack.c.bf16 %v1821_v57, %v1820_v50  ;;  %v13928_v57 = vld [vmem:[%s18218_s1 + $0x178] sm:$0xff]   ;;  %v2334_v12 = vld [vmem:[#allocation2 + $0x189] sm:$0xff] }
 0x22b   :  { %v15185_v28 = vpack.c.bf16 %v2334_v12, %v2333_v9 }
 0x22d   :  { %11746 = vmatpush3.bf16.msra.mxu0 %v13920_v41  ;;  %v2320_v41 = vld [vmem:[#allocation2 + $0xe1] sm:$0xff] }
 0x22e   :  { %11811 = vmatprep.subr.bf16.mxu0 %v13921_v43  ;;  %v15154_v50 = vpack.c.bf16 %v2320_v41, %v2319_v36  ;;  %v2337_v36 = vld [vmem:[#allocation2 + $0x1e1] sm:$0xff]  ;;  %v2338_v41 = vld [vmem:[#allocation2 + $0x1e9] sm:$0xff] }
 0x230   :  { %11684 = vmatmul.mubr.bf16.gmra.mrb[16].mxu0 %v14848_v58  ;;  %v264_v58 = vld [vmem:[%s18217_s0 + $0x340] sm:$0x3] }
 0x231   :  { %11687 = vmatprep.mubr.bf16.mxu0 %v14853_v63  ;;  %374 = vst.msk [vmem:[#allocation2 + $0x340] sm:$0x3] %vm271_vm1, %v264_v58  ;;  %v1852_v63 = vld [vmem:[#allocation2 + $0x330] sm:$0xff] }
 0x232   :  { %v2321_v58 = vld [vmem:[#allocation2 + $0xf1] sm:$0xff] }
 0x238   :  { %11688 = vmatmul.mubr.bf16.gmra.mrb[20].mxu0 %v14855_v0  ;;  %v1853_v0 = vld [vmem:[#allocation2 + $0x338] sm:$0xff] }
 0x239   :  { %11691 = vmatprep.mubr.bf16.mxu0 %v14859_v5  ;;  %v2303_v5 = vld [vmem:[#allocation2 + $0x19] sm:$0xff] }
 0x240   :  { %11692 = vmatmul.mubr.bf16.gmra.mrb[24].mxu0 %v14861_v6  ;;  %v2304_v6 = vld [vmem:[#allocation2 + $0x21] sm:$0xff] }
 0x241   :  { %11695 = vmatprep.mubr.bf16.mxu0 %v14865_v11  ;;  %v15113_v11 = vpack.c.bf16 %v1853_v0, %v1852_v63  ;;  %v2322_v63 = vld [vmem:[#allocation2 + $0xf9] sm:$0xff]  ;;  %v2323_v0 = vld [vmem:[#allocation2 + $0x109] sm:$0xff] }
 0x248   :  { %11696 = vmatmul.mubr.bf16.gmra.mrb[28].mxu0 %v15091_v14 }
 0x249   :  { %11699 = vmatprep.mubr.bf16.mxu0 %v14868_v17  ;;  %v2367_v17 = vpack.c.bf16 %v2304_v6, %v2303_v5  ;;  %v2324_v5 = vld [vmem:[#allocation2 + $0x111] sm:$0xff]  ;;  %v15164_v6 = vld [vmem:[%s18218_s1 + $0x180] sm:$0xff]  }
 0x250   :  { %11700 = vmatmul.mubr.bf16.gmra.mrb[32].mxu0 %v14870_v18  ;;  %v2305_v18 = vld [vmem:[#allocation2 + $0x31] sm:$0xff] }
 0x251   :  { %11703 = vmatprep.mubr.bf16.mxu0 %v14874_v24  ;;  %v2306_v24 = vld [vmem:[#allocation2 + $0x39] sm:$0xff] }
 0x258   :  { %11704 = vmatmul.mubr.bf16.gmra.mrb[36].mxu0 %v14876_v25  ;;  %v2307_v25 = vld [vmem:[#allocation2 + $0x49] sm:$0xff] }
 0x259   :  { %11707 = vmatprep.mubr.bf16.mxu0 %v14880_v32  ;;  %v2308_v32 = vld [vmem:[#allocation2 + $0x51] sm:$0xff] }
 0x260   :  { %11708 = vmatmul.mubr.bf16.gmra.mrb[40].mxu0 %v14882_v33  ;;  %v15116_v33 = vpack.c.bf16 %v2306_v24, %v2305_v18  ;;  %v15168_v18 = vpack.c.bf16 %v2324_v5, %v2323_v0  ;;  %v2325_v24 = vld [vmem:[#allocation2 + $0x121] sm:$0xff]  ;;  %v2341_v0 = vld [vmem:[#allocation2 + $0x211] sm:$0xff]  ;;  %v2342_v5 = vld [vmem:[#allocation2 + $0x219] sm:$0xff] }
 0x261   :  { %11711 = vmatprep.mubr.bf16.mxu0 %v14886_v39  ;;  %v15118_v39 = vpack.c.bf16 %v2308_v32, %v2307_v25  ;;  %v2326_v25 = vld [vmem:[#allocation2 + $0x129] sm:$0xff]  ;;  %v2327_v32 = vld [vmem:[#allocation2 + $0x139] sm:$0xff] }
 0x268   :  { %11712 = vmatmul.mubr.bf16.gmra.mrb[44].mxu0 %v14888_v40  ;;  %v13922_v40 = vld [vmem:[%s18218_s1 + $0x148] sm:$0xff]  }
 0x269   :  { %11715 = vmatprep.mubr.bf16.mxu0 %v14892_v47  ;;  %v2309_v47 = vld [vmem:[#allocation2 + $0x61] sm:$0xff] }
 0x270   :  { %11716 = vmatmul.mubr.bf16.gmra.mrb[48].mxu0 %v14894_v48  ;;  %v2310_v48 = vld [vmem:[#allocation2 + $0x69] sm:$0xff] }
 0x271   :  { %11719 = vmatprep.mubr.bf16.mxu0 %v14898_v55  ;;  %v2311_v55 = vld [vmem:[#allocation2 + $0x79] sm:$0xff] }
 0x278   :  { %11720 = vmatmul.mubr.bf16.gmra.mrb[52].mxu0 %v14900_v59  ;;  %v2312_v59 = vld [vmem:[#allocation2 + $0x81] sm:$0xff] }
 0x279   :  { %11723 = vmatprep.mubr.bf16.mxu0 %v14904_v2  ;;  %v13923_v2 = vld [vmem:[%s18218_s1 + $0x150] sm:$0xff]  }
 0x280   :  { %11724 = vmatmul.mubr.bf16.gmra.mrb[56].mxu0 %v14906_v3  ;;  %v15128_v3 = vpack.c.bf16 %v2310_v48, %v2309_v47  ;;  %v15173_v47 = vpack.c.bf16 %v2326_v25, %v2325_v24  ;;  %v2343_v24 = vld [vmem:[#allocation2 + $0x229] sm:$0xff]  ;;  %v2344_v25 = vld [vmem:[#allocation2 + $0x231] sm:$0xff] }
 0x281   :  { %11727 = vmatprep.mubr.bf16.mxu0 %v14910_v10  ;;  %v15130_v10 = vpack.c.bf16 %v2312_v59, %v2311_v55  ;;  %v2329_v55 = vld [vmem:[#allocation2 + $0x151] sm:$0xff]  ;;  %v2330_v59 = vld [vmem:[#allocation2 + $0x159] sm:$0xff] }
 0x282   :  { %v15179_v53 = vpack.c.bf16 %v2330_v59, %v2329_v55  ;;  %v2345_v55 = vld [vmem:[#allocation2 + $0x241] sm:$0xff]  ;;  %v2346_v59 = vld [vmem:[#allocation2 + $0x249] sm:$0xff] }
 0x283   :  { %v15200_v9 = vpack.c.bf16 %v2346_v59, %v2345_v55  ;;  %v2357_v59 = vld [vmem:[#allocation2 + $0x2d1] sm:$0xff] }
 0x288   :  { %11728 = vmatmul.mubr.bf16.gmra.mrb[60].mxu0 %v15113_v11 }
 0x289   :  { %11747 = vmatprep.mubr.bf16.mxu0 %v2367_v17  ;;  %v15166_v17 = vpack.c.bf16 %v2322_v63, %v2321_v58  ;;  %v15188_v58 = vpack.c.bf16 %v2338_v41, %v2337_v36  ;;  %v2352_v36 = vld [vmem:[#allocation2 + $0x291] sm:$0xff] }
 0x290   :  { %11748 = vmatmul.mubr.bf16.vlgmr.msra.gmra.mrb[0].mxu0 %v15116_v33 }
 0x291   :  { %11812 = vmatpush3.bf16.msra.mxu0 %v13921_v43  ;;  %11751 = vmatprep.mubr.bf16.mxu0 %v15118_v39  ;;  %v13927_v43 = vld [vmem:[%s18218_s1 + $0x170] sm:$0xff]  }
 0x292   :  { %11813 = vmatprep.subr.bf16.mxu0 %v13922_v40 }
 0x295   :  { %11814 = vmatpush3.bf16.msra.mxu0 %v13922_v40  ;;  %v2328_v40 = vld [vmem:[#allocation2 + $0x141] sm:$0xff] }
 0x296   :  { %11815 = vmatprep.subr.bf16.mxu0 %v13923_v2  ;;  %v15175_v48 = vpack.c.bf16 %v2328_v40, %v2327_v32  ;;  %v15194_v32 = vpack.c.bf16 %v2342_v5, %v2341_v0  ;;  %v15196_v40 = vpack.c.bf16 %v2344_v25, %v2343_v24  ;;  %v2354_v0 = vld [vmem:[#allocation2 + $0x2a9] sm:$0xff]  ;;  %v2355_v5 = vld [vmem:[#allocation2 + $0x2b9] sm:$0xff]  ;;  %v2356_v24 = vld [vmem:[#allocation2 + $0x2c1] sm:$0xff] }
 0x297   :  { %v15214_v55 = vpack.c.bf16 %v2356_v24, %v2355_v5  ;;  %v2364_v5 = vld [vmem:[#allocation2 + $0x321] sm:$0xff] }
 0x298   :  { %11752 = vmatmul.mubr.bf16.gmra.mrb[4].mxu0 %v15128_v3 }
 0x299   :  { %11755 = vmatprep.mubr.bf16.mxu0 %v15130_v10  ;;  %11816 = vmatpush3.bf16.msra.mxu0 %v13923_v2  ;;  %v2331_v2 = vld [vmem:[#allocation2 + $0x169] sm:$0xff] }
 0x29a   :  { %11817 = vmatprep.subr.bf16.mxu0 %v13924_v38 }
 0x29d   :  { %11818 = vmatpush3.bf16.msra.mxu0 %v13924_v38  ;;  %v2332_v38 = vld [vmem:[#allocation2 + $0x171] sm:$0xff] }
 0x29e   :  { %11819 = vmatprep.subr.bf16.mxu0 %v13925_v13  ;;  %v15181_v54 = vpack.c.bf16 %v2332_v38, %v2331_v2  ;;  %v2347_v2 = vld [vmem:[#allocation2 + $0x259] sm:$0xff]  ;;  %v2348_v38 = vld [vmem:[#allocation2 + $0x261] sm:$0xff] }
 0x29f   :  { %v15202_v12 = vpack.c.bf16 %v2348_v38, %v2347_v2  ;;  %v2358_v2 = vld [vmem:[#allocation2 + $0x2d9] sm:$0xff]  ;;  %v2359_v38 = vld [vmem:[#allocation2 + $0x2e9] sm:$0xff] }
 0x2a0   :  { %11756 = vmatmul.mubr.bf16.gmra.mrb[8].mxu0 %v15140_v37 }
 0x2a1   :  { %11759 = vmatprep.mubr.bf16.mxu0 %v15142_v61  ;;  %11820 = vmatpush3.bf16.msra.mxu0 %v13925_v13  ;;  %v2335_v13 = vld [vmem:[#allocation2 + $0x1c9] sm:$0xff] }
 0x2a2   :  { %11821 = vmatprep.subr.bf16.mxu0 %v13926_v26 }
 0x2a5   :  { %11822 = vmatpush3.bf16.msra.mxu0 %v13926_v26  ;;  %v2336_v26 = vld [vmem:[#allocation2 + $0x1d1] sm:$0xff] }
 0x2a6   :  { %11823 = vmatprep.subr.bf16.mxu0 %v13927_v43  ;;  %v2383_v34 = vpack.c.bf16 %v2336_v26, %v2335_v13  ;;  %v2349_v13 = vld [vmem:[#allocation2 + $0x271] sm:$0xff]  ;;  %v2350_v26 = vld [vmem:[#allocation2 + $0x279] sm:$0xff] }
 0x2a7   :  { %v15206_v41 = vpack.c.bf16 %v2350_v26, %v2349_v13  ;;  %v2360_v13 = vld [vmem:[#allocation2 + $0x2f1] sm:$0xff]  ;;  %v15218_v26 = vpack.c.bf16 %v2358_v2, %v2357_v59  ;;  %v2366_v2 = vld [vmem:[#allocation2 + $0x339] sm:$0xff] }
 0x2a8   :  { %11760 = vmatmul.mubr.bf16.gmra.mrb[12].mxu0 %v15152_v49  ;;  %v2365_v59 = vld [vmem:[#allocation2 + $0x331] sm:$0xff] }
 0x2a9   :  { %11763 = vmatprep.mubr.bf16.mxu0 %v15154_v50  ;;  %11824 = vmatpush3.bf16.msra.mxu0 %v13927_v43  ;;  %v2339_v43 = vld [vmem:[#allocation2 + $0x1f9] sm:$0xff] }
 0x2aa   :  { %11825 = vmatprep.subr.bf16.mxu0 %v13928_v57 }
 0x2ad   :  { %11826 = vmatpush3.bf16.msra.mxu0 %v13928_v57  ;;  %v2340_v57 = vld [vmem:[#allocation2 + $0x201] sm:$0xff] }
 0x2ae   :  { %11891 = vmatprep.subr.bf16.mxu0 %v15164_v6  ;;  %v15190_v63 = vpack.c.bf16 %v2340_v57, %v2339_v43  ;;  %v2353_v57 = vld [vmem:[#allocation2 + $0x2a1] sm:$0xff] }
 0x2af   :  { %v15212_v25 = vpack.c.bf16 %v2354_v0, %v2353_v57  ;;  %v2362_v57 = vld [vmem:[#allocation2 + $0x309] sm:$0xff]  ;;  %v2363_v0 = vld [vmem:[#allocation2 + $0x319] sm:$0xff] }
 0x2b0   :  { %11764 = vmatmul.mubr.bf16.gmra.mrb[16].mxu0 %v15166_v17 }
 0x2b1   :  { %11767 = vmatprep.mubr.bf16.mxu0 %v15168_v18  ;;  %18324 = vst [vmem:[#allocation18_spill] sm:$0xff] %v15212_v25 }
 0x2b8   :  { %11768 = vmatmul.mubr.bf16.gmra.mrb[20].mxu0 %v15173_v47 }
 0x2b9   :  { %11771 = vmatprep.mubr.bf16.mxu0 %v15175_v48 }
 0x2c0   :  { %11772 = vmatmul.mubr.bf16.gmra.mrb[24].mxu0 %v15179_v53 }
 0x2c1   :  { %11775 = vmatprep.mubr.bf16.mxu0 %v15181_v54 }
 0x2c8   :  { %11776 = vmatmul.mubr.bf16.gmra.mrb[28].mxu0 %v15185_v28 }
 0x2c9   :  { %11779 = vmatprep.mubr.bf16.mxu0 %v2383_v34  ;;  %v2351_v34 = vld [vmem:[#allocation2 + $0x289] sm:$0xff] }
 0x2ca   :  { %v15208_v43 = vpack.c.bf16 %v2352_v36, %v2351_v34  ;;  %v15220_v34 = vpack.c.bf16 %v2360_v13, %v2359_v38  ;;  %v2361_v36 = vld [vmem:[#allocation2 + $0x301] sm:$0xff]  ;;  %v15230_v38 = vpack.c.bf16 %v2366_v2, %v2365_v59 }
 0x2cb   :  { %v15224_v24 = vpack.c.bf16 %v2362_v57, %v2361_v36  ;;  %v13930_v13 = vld [vmem:[%s18218_s1 + $0x188] sm:$0xff]   ;;  %v13931_v36 = vld [vmem:[%s18218_s1 + $0x190] sm:$0xff]  }
 0x2cc   :  { %v3332_v57 = vld [vmem:[#allocation2 + $0x48] sm:$0xff] }
 0x2cd   :  { %v3335_v59 = vld [vmem:[#allocation2 + $0x68] sm:$0xff] }
 0x2d0   :  { %11780 = vmatmul.mubr.bf16.gmra.mrb[32].mxu0 %v15188_v58 }
 0x2d1   :  { %11783 = vmatprep.mubr.bf16.mxu0 %v15190_v63 }
 0x2d8   :  { %11784 = vmatmul.mubr.bf16.gmra.mrb[36].mxu0 %v15194_v32 }
 0x2d9   :  { %11787 = vmatprep.mubr.bf16.mxu0 %v15196_v40 }
 0x2e0   :  { %11788 = vmatmul.mubr.bf16.gmra.mrb[40].mxu0 %v15200_v9 }
 0x2e1   :  { %11791 = vmatprep.mubr.bf16.mxu0 %v15202_v12 }
 0x2e8   :  { %11792 = vmatmul.mubr.bf16.gmra.mrb[44].mxu0 %v15206_v41 }
 0x2e9   :  { %11795 = vmatprep.mubr.bf16.mxu0 %v15208_v43 }
 0x2f0   :  { %11796 = vmatmul.mubr.bf16.gmra.mrb[48].mxu0 %v15212_v25  ;;  %v15226_v25 = vpack.c.bf16 %v2364_v5, %v2363_v0  ;;  %v3333_v0 = vld [vmem:[#allocation2 + $0x50] sm:$0xff]  ;;  %v3334_v5 = vld [vmem:[#allocation2 + $0x60] sm:$0xff] }
 0x2f1   :  { %11799 = vmatprep.mubr.bf16.mxu0 %v15214_v55  ;;  %v3395_v2 = vpack.c.bf16 %v3333_v0, %v3332_v57  ;;  %v3348_v57 = vld [vmem:[#allocation2 + $0x108] sm:$0xff]  ;;  %v3349_v0 = vld [vmem:[#allocation2 + $0x110] sm:$0xff] }
 0x2f8   :  { %11800 = vmatmul.mubr.bf16.gmra.mrb[52].mxu0 %v15218_v26 }
 0x2f9   :  { %11803 = vmatprep.mubr.bf16.mxu0 %v15220_v34 }
 0x300   :  { %11804 = vmatmul.mubr.bf16.gmra.mrb[56].mxu0 %v15224_v24 }
 0x301   :  { %11807 = vmatprep.mubr.bf16.mxu0 %v15226_v25 }
 0x308   :  { %11808 = vmatmul.mubr.bf16.gmra.mrb[60].mxu0 %v15230_v38 }
 0x309   :  { %11827 = vmatprep.mubr.bf16.mxu0 %v14913_v19  ;;  %v13932_v19 = vld [vmem:[%s18218_s1 + $0x198] sm:$0xff]  }
 0x310   :  { %11828 = vmatmul.mubr.bf16.vlgmr.msra.gmra.mrb[0].mxu0 %v14915_v20  ;;  %v13933_v20 = vld [vmem:[%s18218_s1 + $0x1a0] sm:$0xff]  }
 0x311   :  { %11892 = vmatpush3.bf16.msra.mxu0 %v15164_v6  ;;  %11831 = vmatprep.mubr.bf16.mxu0 %v14926_v35  ;;  %v13934_v35 = vld [vmem:[%s18218_s1 + $0x1a8] sm:$0xff]  }
 0x312   :  { %11893 = vmatprep.subr.bf16.mxu0 %v13930_v13  ;;  %v18329_v6 = vld [vmem:[#allocation17_spill] sm:$0xff] }
 0x315   :  { %11894 = vmatpush3.bf16.msra.mxu0 %v13930_v13  ;;  %v3396_v13 = vpack.c.bf16 %v3335_v59, %v3334_v5  ;;  %v3350_v5 = vld [vmem:[#allocation2 + $0x120] sm:$0xff]  ;;  %v3351_v59 = vld [vmem:[#allocation2 + $0x128] sm:$0xff] }
 0x316   :  { %11895 = vmatprep.subr.bf16.mxu0 %v13931_v36 }
 0x318   :  { %11832 = vmatmul.mubr.bf16.gmra.mrb[4].mxu0 %v14928_v23  ;;  %v13935_v23 = vld [vmem:[%s18218_s1 + $0x1b0] sm:$0xff]  }
 0x319   :  { %11835 = vmatprep.mubr.bf16.mxu0 %v14938_v46  ;;  %11896 = vmatpush3.bf16.msra.mxu0 %v13931_v36  ;;  %v13936_v46 = vld [vmem:[%s18218_s1 + $0x1b8] sm:$0xff]   ;;  %v3337_v36 = vld [vmem:[#allocation2 + $0x80] sm:$0xff] }
 0x31a   :  { %11897 = vmatprep.subr.bf16.mxu0 %v13932_v19 }
 0x31d   :  { %11898 = vmatpush3.bf16.msra.mxu0 %v13932_v19  ;;  %v3338_v19 = vld [vmem:[#allocation2 + $0x90] sm:$0xff] }
 0x31e   :  { %11899 = vmatprep.subr.bf16.mxu0 %v13933_v20 }
 0x320   :  { %11836 = vmatmul.mubr.bf16.gmra.mrb[8].mxu0 %v14940_v51  ;;  %v13937_v51 = vld [vmem:[%s18218_s1 + $0x1c0] sm:$0xff]  }
 0x321   :  { %11839 = vmatprep.mubr.bf16.mxu0 %v14950_v1  ;;  %11900 = vmatpush3.bf16.msra.mxu0 %v13933_v20  ;;  %v211_v1 = vld [vmem:[%s18217_s0 + $0x198] sm:$0xff] }
 0x322   :  { %11901 = vmatprep.subr.bf16.mxu0 %v13934_v35  ;;  %321 = vst.msk [vmem:[#allocation2 + $0x198] sm:$0xff] %vm268_vm0, %v211_v1  ;;  %v3339_v20 = vld [vmem:[#allocation2 + $0x98] sm:$0xff] }
 0x323   :  { %v13940_v1 = vld [vmem:[%s18218_s1 + $0x1d8] sm:$0xff]  }
 0x325   :  { %11902 = vmatpush3.bf16.msra.mxu0 %v13934_v35  ;;  %v13939_v35 = vld [vmem:[%s18218_s1 + $0x1d0] sm:$0xff]  }
 0x326   :  { %11903 = vmatprep.subr.bf16.mxu0 %v13935_v23 }
 0x328   :  { %11840 = vmatmul.mubr.bf16.gmra.mrb[12].mxu0 %v14952_v4  ;;  %v212_v4 = vld [vmem:[%s18217_s0 + $0x1a0] sm:$0xff] }
 0x329   :  { %11843 = vmatprep.mubr.bf16.mxu0 %v14964_v15  ;;  %11904 = vmatpush3.bf16.msra.mxu0 %v13935_v23  ;;  %322 = vst.msk [vmem:[#allocation2 + $0x1a0] sm:$0xff] %vm268_vm0, %v212_v4  ;;  %v2846_v15 = vld [vmem:[#allocation2 + $0x182] sm:$0xff]  ;;  %v3341_v4 = vld [vmem:[#allocation2 + $0xb0] sm:$0xff] }
 0x32a   :  { %11905 = vmatprep.subr.bf16.mxu0 %v13936_v46 }
 0x32d   :  { %11906 = vmatpush3.bf16.msra.mxu0 %v13936_v46  ;;  %v3398_v46 = vpack.c.bf16 %v3339_v20, %v3338_v19  ;;  %v3354_v19 = vld [vmem:[#allocation2 + $0x150] sm:$0xff]  ;;  %v3355_v20 = vld [vmem:[#allocation2 + $0x158] sm:$0xff] }
 0x32e   :  { %11971 = vmatprep.subr.bf16.mxu0 %v13937_v51 }
 0x330   :  { %11844 = vmatmul.mubr.bf16.gmra.mrb[16].mxu0 %v14966_v16  ;;  %v2847_v16 = vld [vmem:[#allocation2 + $0x18a] sm:$0xff] }
 0x331   :  { %11847 = vmatprep.mubr.bf16.mxu0 %v14971_v30  ;;  %v15281_v30 = vpack.c.bf16 %v2847_v16, %v2846_v15  ;;  %v3342_v15 = vld [vmem:[#allocation2 + $0xc0] sm:$0xff]  ;;  %v3343_v16 = vld [vmem:[#allocation2 + $0xc8] sm:$0xff] }
 0x338   :  { %11848 = vmatmul.mubr.bf16.gmra.mrb[20].mxu0 %v14973_v31  ;;  %v18325_v31 = vld [vmem:[#allocation13_spill] sm:$0xff] }
 0x339   :  { %11851 = vmatprep.mubr.bf16.mxu0 %v14977_v44  ;;  %v18326_v44 = vld [vmem:[#allocation14_spill] sm:$0xff] }
 0x340   :  { %11852 = vmatmul.mubr.bf16.gmra.mrb[24].mxu0 %v14979_v45  ;;  %v18327_v45 = vld [vmem:[#allocation15_spill] sm:$0xff] }
 0x341   :  { %11855 = vmatprep.mubr.bf16.mxu0 %v14991_v7  ;;  %v18328_v7 = vld [vmem:[#allocation16_spill] sm:$0xff] }
 0x348   :  { %11856 = vmatmul.mubr.bf16.gmra.mrb[28].mxu0 %v15281_v30 }
 0x349   :  { %11859 = vmatprep.mubr.bf16.mxu0 %v14994_v22  ;;  %v265_v22 = vld [vmem:[%s18217_s0 + $0x348] sm:$0xff] }
 0x34a   :  { %375 = vst.msk [vmem:[#allocation2 + $0x348] sm:$0xff] %vm268_vm0, %v265_v22  ;;  %v3345_v22 = vld [vmem:[#allocation2 + $0xe0] sm:$0xff] }
 0x350   :  { %11860 = vmatmul.mubr.bf16.gmra.mrb[32].mxu0 %v14996_v27  ;;  %v266_v27 = vld [vmem:[%s18217_s0 + $0x350] sm:$0xff] }
 0x351   :  { %11863 = vmatprep.mubr.bf16.mxu0 %v15000_v42  ;;  %376 = vst.msk [vmem:[#allocation2 + $0x350] sm:$0xff] %vm268_vm0, %v266_v27  ;;  %v2878_v42 = vld [vmem:[#allocation2 + $0x332] sm:$0xff] }
 0x352   :  { %v3346_v27 = vld [vmem:[#allocation2 + $0xf0] sm:$0xff] }
 0x358   :  { %11864 = vmatmul.mubr.bf16.gmra.mrb[36].mxu0 %v15002_v52  ;;  %v2879_v52 = vld [vmem:[#allocation2 + $0x33a] sm:$0xff] }
 0x359   :  { %11867 = vmatprep.mubr.bf16.mxu0 %v15006_v62  ;;  %v3330_v62 = vld [vmem:[#allocation2 + $0x30] sm:$0xff] }
 0x360   :  { %11868 = vmatmul.mubr.bf16.gmra.mrb[40].mxu0 %v18325_v31  ;;  %v13941_v31 = vld [vmem:[%s18218_s1 + $0x1e0] sm:$0xff]  }
 0x361   :  { %11871 = vmatprep.mubr.bf16.mxu0 %v18326_v44 }
 0x368   :  { %11872 = vmatmul.mubr.bf16.gmra.mrb[44].mxu0 %v18327_v45  ;;  %v3400_v45 = vpack.c.bf16 %v3343_v16, %v3342_v15  ;;  %v3360_v15 = vld [vmem:[#allocation2 + $0x198] sm:$0xff]  ;;  %v3361_v16 = vld [vmem:[#allocation2 + $0x1a0] sm:$0xff] }
 0x369   :  { %11875 = vmatprep.mubr.bf16.mxu0 %v18328_v7  ;;  %v13942_v7 = vld [vmem:[%s18218_s1 + $0x1e8] sm:$0xff]  }
 0x370   :  { %11876 = vmatmul.mubr.bf16.gmra.mrb[48].mxu0 %v18329_v6  ;;  %v3344_v6 = vld [vmem:[#allocation2 + $0xd8] sm:$0xff] }
 0x371   :  { %11879 = vmatprep.mubr.bf16.mxu0 %v15024_v8  ;;  %v3331_v8 = vld [vmem:[#allocation2 + $0x38] sm:$0xff] }
 0x378   :  { %11880 = vmatmul.mubr.bf16.gmra.mrb[52].mxu0 %v15026_v29  ;;  %v15307_v29 = vpack.c.bf16 %v2879_v52, %v2878_v42  ;;  %v3347_v42 = vld [vmem:[#allocation2 + $0xf8] sm:$0xff]  ;;  %v13943_v52 = vld [vmem:[%s18218_s1 + $0x1f0] sm:$0xff]  }
 0x379   :  { %11883 = vmatprep.mubr.bf16.mxu0 %v15030_v56  ;;  %v3394_v56 = vpack.c.bf16 %v3331_v8, %v3330_v62  ;;  %v3401_v62 = vpack.c.bf16 %v3345_v22, %v3344_v6  ;;  %v3402_v8 = vpack.c.bf16 %v3347_v42, %v3346_v27  ;;  %v3364_v6 = vld [vmem:[#allocation2 + $0x1f8] sm:$0xff]  ;;  %v3365_v22 = vld [vmem:[#allocation2 + $0x200] sm:$0xff]  ;;  %v3366_v27 = vld [vmem:[#allocation2 + $0x210] sm:$0xff] }
 0x37a   :  { %v3367_v42 = vld [vmem:[#allocation2 + $0x218] sm:$0xff] }
 0x380   :  { %11884 = vmatmul.mubr.bf16.gmra.mrb[56].mxu0 %v15032_v60  ;;  %v13938_v60 = vld [vmem:[%s18218_s1 + $0x1c8] sm:$0xff]  }
 0x381   :  { %11887 = vmatprep.mubr.bf16.mxu0 %v15044_v21  ;;  %v3336_v21 = vld [vmem:[#allocation2 + $0x78] sm:$0xff] }
 0x382   :  { %v3397_v23 = vpack.c.bf16 %v3337_v36, %v3336_v21  ;;  %v3352_v21 = vld [vmem:[#allocation2 + $0x138] sm:$0xff]  ;;  %v3353_v36 = vld [vmem:[#allocation2 + $0x140] sm:$0xff] }
 0x388   :  { %11888 = vmatmul.mubr.bf16.gmra.mrb[60].mxu0 %v15307_v29 }
 0x389   :  { %11907 = vmatprep.mubr.bf16.mxu0 %v3394_v56  ;;  %v13944_v56 = vld [vmem:[%s18218_s1 + $0x1f8] sm:$0xff]  }
 0x390   :  { %11908 = vmatmul.mubr.bf16.vlgmr.msra.gmra.mrb[0].mxu0 %v3395_v2  ;;  %v15334_v2 = vld [vmem:[%s18218_s1 + $0x200] sm:$0xff]  }
 0x391   :  { %11972 = vmatpush3.bf16.msra.mxu0 %v13937_v51  ;;  %11911 = vmatprep.mubr.bf16.mxu0 %v3396_v13  ;;  %v3340_v51 = vld [vmem:[#allocation2 + $0xa8] sm:$0xff]  ;;  %v3403_v13 = vpack.c.bf16 %v3349_v0, %v3348_v57  ;;  %v3370_v57 = vld [vmem:[#allocation2 + $0x240] sm:$0xff] }
 0x392   :  { %11973 = vmatprep.subr.bf16.mxu0 %v13938_v60  ;;  %v3399_v44 = vpack.c.bf16 %v3341_v4, %v3340_v51  ;;  %v213_v4 = vld [vmem:[%s18217_s0 + $0x1a8] sm:$0x3] }
 0x393   :  { %323 = vst.msk [vmem:[#allocation2 + $0x1a8] sm:$0x3] %vm271_vm1, %v213_v4  ;;  %v3380_v4 = vld [vmem:[#allocation2 + $0x2b8] sm:$0xff] }
 0x395   :  { %11974 = vmatpush3.bf16.msra.mxu0 %v13938_v60  ;;  %v3404_v60 = vpack.c.bf16 %v3351_v59, %v3350_v5  ;;  %v3372_v59 = vld [vmem:[#allocation2 + $0x258] sm:$0xff] }
 0x396   :  { %11975 = vmatprep.subr.bf16.mxu0 %v13939_v35 }
 0x398   :  { %11912 = vmatmul.mubr.bf16.gmra.mrb[4].mxu0 %v3397_v23  ;;  %v3406_v23 = vpack.c.bf16 %v3355_v20, %v3354_v19  ;;  %v3376_v20 = vld [vmem:[#allocation2 + $0x288] sm:$0xff] }
 0x399   :  { %11915 = vmatprep.mubr.bf16.mxu0 %v3398_v46  ;;  %11976 = vmatpush3.bf16.msra.mxu0 %v13939_v35  ;;  %v3405_v35 = vpack.c.bf16 %v3353_v36, %v3352_v21  ;;  %v3356_v46 = vld [vmem:[#allocation2 + $0x168] sm:$0xff]  ;;  %v3375_v21 = vld [vmem:[#allocation2 + $0x278] sm:$0xff] }
 0x39a   :  { %11977 = vmatprep.subr.bf16.mxu0 %v13940_v1 }
 0x39d   :  { %11978 = vmatpush3.bf16.msra.mxu0 %v13940_v1  ;;  %v3357_v1 = vld [vmem:[#allocation2 + $0x170] sm:$0xff] }
 0x39e   :  { %11979 = vmatprep.subr.bf16.mxu0 %v13941_v31  ;;  %v3407_v51 = vpack.c.bf16 %v3357_v1, %v3356_v46  ;;  %v3379_v46 = vld [vmem:[#allocation2 + $0x2a8] sm:$0xff] }
 0x3a0   :  { %11916 = vmatmul.mubr.bf16.gmra.mrb[8].mxu0 %v3399_v44  ;;  %v3363_v44 = vld [vmem:[#allocation2 + $0x1e8] sm:$0xff] }
 0x3a1   :  { %11919 = vmatprep.mubr.bf16.mxu0 %v3400_v45  ;;  %11980 = vmatpush3.bf16.msra.mxu0 %v13941_v31  ;;  %v3362_v31 = vld [vmem:[#allocation2 + $0x1e0] sm:$0xff]  ;;  %v3409_v45 = vpack.c.bf16 %v3361_v16, %v3360_v15  ;;  %v3382_v16 = vld [vmem:[#allocation2 + $0x2d0] sm:$0xff] }
 0x3a2   :  { %11981 = vmatprep.subr.bf16.mxu0 %v13942_v7  ;;  %v3381_v15 = vld [vmem:[#allocation2 + $0x2c0] sm:$0xff] }
 0x3a5   :  { %11982 = vmatpush3.bf16.msra.mxu0 %v13942_v7  ;;  %v3410_v7 = vpack.c.bf16 %v3363_v44, %v3362_v31  ;;  %v3383_v31 = vld [vmem:[#allocation2 + $0x2d8] sm:$0xff]  ;;  %v3419_v44 = vpack.c.bf16 %v3381_v15, %v3380_v4  ;;  %v4376_v4 = vld [vmem:[#allocation2 + $0x122] sm:$0xff]  ;;  %v4377_v15 = vld [vmem:[#allocation2 + $0x12a] sm:$0xff] }
 0x3a6   :  { %11983 = vmatprep.subr.bf16.mxu0 %v13943_v52 }
 0x3a8   :  { %11920 = vmatmul.mubr.bf16.gmra.mrb[12].mxu0 %v3401_v62  ;;  %v3412_v62 = vpack.c.bf16 %v3367_v42, %v3366_v27  ;;  %v3387_v27 = vld [vmem:[#allocation2 + $0x308] sm:$0xff] }
 0x3a9   :  { %11923 = vmatprep.mubr.bf16.mxu0 %v3402_v8  ;;  %11984 = vmatpush3.bf16.msra.mxu0 %v13943_v52  ;;  %v3411_v52 = vpack.c.bf16 %v3365_v22, %v3364_v6  ;;  %v3368_v8 = vld [vmem:[#allocation2 + $0x228] sm:$0xff]  ;;  %v3385_v6 = vld [vmem:[#allocation2 + $0x2f0] sm:$0xff]  ;;  %v3386_v22 = vld [vmem:[#allocation2 + $0x300] sm:$0xff] }
 0x3aa   :  { %11985 = vmatprep.subr.bf16.mxu0 %v13944_v56 }
 0x3ad   :  { %11986 = vmatpush3.bf16.msra.mxu0 %v13944_v56  ;;  %v3369_v56 = vld [vmem:[#allocation2 + $0x230] sm:$0xff] }
 0x3ae   :  { %12051 = vmatprep.subr.bf16.mxu0 %v15334_v2  ;;  %v3413_v0 = vpack.c.bf16 %v3369_v56, %v3368_v8  ;;  %v3389_v8 = vld [vmem:[#allocation2 + $0x320] sm:$0xff] }
 0x3b0   :  { %11924 = vmatmul.mubr.bf16.gmra.mrb[16].mxu0 %v3403_v13  ;;  %v3373_v13 = vld [vmem:[#allocation2 + $0x260] sm:$0xff] }
 0x3b1   :  { %11927 = vmatprep.mubr.bf16.mxu0 %v3404_v60  ;;  %v3374_v60 = vld [vmem:[#allocation2 + $0x270] sm:$0xff]  ;;  %v3415_v36 = vpack.c.bf16 %v3373_v13, %v3372_v59  ;;  %v13946_v59 = vld [vmem:[%s18218_s1 + $0x208] sm:$0xff]  }
 0x3b2   :  { %v3416_v19 = vpack.c.bf16 %v3375_v21, %v3374_v60  ;;  %v4369_v13 = vld [vmem:[#allocation2 + $0xca] sm:$0xff] }
 0x3b8   :  { %11928 = vmatmul.mubr.bf16.gmra.mrb[20].mxu0 %v3405_v35  ;;  %v3377_v35 = vld [vmem:[#allocation2 + $0x290] sm:$0xff] }
 0x3b9   :  { %11931 = vmatprep.mubr.bf16.mxu0 %v3406_v23  ;;  %v3378_v23 = vld [vmem:[#allocation2 + $0x2a0] sm:$0xff]  ;;  %v3417_v1 = vpack.c.bf16 %v3377_v35, %v3376_v20  ;;  %v4372_v20 = vld [vmem:[#allocation2 + $0xf2] sm:$0xff] }
 0x3ba   :  { %v4373_v35 = vld [vmem:[#allocation2 + $0xfa] sm:$0xff] }
 0x3c0   :  { %11932 = vmatmul.mubr.bf16.gmra.mrb[24].mxu0 %v3407_v51  ;;  %v3418_v51 = vpack.c.bf16 %v3379_v46, %v3378_v23  ;;  %v4428_v46 = vpack.c.bf16 %v4373_v35, %v4372_v20  ;;  %v4418_v35 = vld [vmem:[#allocation2 + $0x34a] sm:$0xff] }
 0x3c1   :  { %11935 = vmatprep.mubr.bf16.mxu0 %v15091_v14  ;;  %v3371_v14 = vld [vmem:[#allocation2 + $0x248] sm:$0xff] }
 0x3c2   :  { %v3414_v5 = vpack.c.bf16 %v3371_v14, %v3370_v57  ;;  %v267_v57 = vld [vmem:[%s18217_s0 + $0x358] sm:$0x3]  ;;  %v3392_v14 = vld [vmem:[#allocation2 + $0x348] sm:$0xff] }
 0x3c3   :  { %377 = vst.msk [vmem:[#allocation2 + $0x358] sm:$0x3] %vm271_vm1, %v267_v57  ;;  %v4388_v57 = vld [vmem:[#allocation2 + $0x1e2] sm:$0xff] }
 0x3c8   :  { %11936 = vmatmul.mubr.bf16.gmra.mrb[28].mxu0 %v3409_v45  ;;  %v3420_v45 = vpack.c.bf16 %v3383_v31, %v3382_v16  ;;  %v4430_v31 = vpack.c.bf16 %v4377_v15, %v4376_v4 }
 0x3c9   :  { %11939 = vmatprep.mubr.bf16.mxu0 %v3410_v7  ;;  %v3384_v7 = vld [vmem:[#allocation2 + $0x2e8] sm:$0xff] }
 0x3ca   :  { %v3421_v42 = vpack.c.bf16 %v3385_v6, %v3384_v7  ;;  %v4380_v7 = vld [vmem:[#allocation2 + $0x152] sm:$0xff]  ;;  %v4381_v6 = vld [vmem:[#allocation2 + $0x15a] sm:$0xff] }
 0x3d0   :  { %11940 = vmatmul.mubr.bf16.gmra.mrb[32].mxu0 %v3411_v52  ;;  %v3422_v52 = vpack.c.bf16 %v3387_v27, %v3386_v22  ;;  %v4432_v27 = vpack.c.bf16 %v4381_v6, %v4380_v7 }
 0x3d1   :  { %11943 = vmatprep.mubr.bf16.mxu0 %v3412_v62  ;;  %v3388_v62 = vld [vmem:[#allocation2 + $0x318] sm:$0xff] }
 0x3d2   :  { %v3423_v56 = vpack.c.bf16 %v3389_v8, %v3388_v62  ;;  %v4386_v8 = vld [vmem:[#allocation2 + $0x19a] sm:$0xff] }
 0x3d8   :  { %11944 = vmatmul.mubr.bf16.gmra.mrb[36].mxu0 %v3413_v0  ;;  %v3393_v0 = vld [vmem:[#allocation2 + $0x350] sm:$0xff] }
 0x3d9   :  { %11947 = vmatprep.mubr.bf16.mxu0 %v3414_v5  ;;  %v3425_v5 = vpack.c.bf16 %v3393_v0, %v3392_v14  ;;  %v4389_v14 = vld [vmem:[#allocation2 + $0x1ea] sm:$0xff] }
 0x3e0   :  { %11948 = vmatmul.mubr.bf16.gmra.mrb[40].mxu0 %v3415_v36  ;;  %v4370_v36 = vld [vmem:[#allocation2 + $0xda] sm:$0xff] }
 0x3e1   :  { %11951 = vmatprep.mubr.bf16.mxu0 %v3416_v19  ;;  %v4371_v19 = vld [vmem:[#allocation2 + $0xe2] sm:$0xff] }
 0x3e2   :  { %v4427_v23 = vpack.c.bf16 %v4371_v19, %v4370_v36  ;;  %v4414_v36 = vld [vmem:[#allocation2 + $0x31a] sm:$0xff]  ;;  %v4415_v19 = vld [vmem:[#allocation2 + $0x322] sm:$0xff] }
 0x3e3   :  { %v4449_v20 = vpack.c.bf16 %v4415_v19, %v4414_v36 }
 0x3e8   :  { %11952 = vmatmul.mubr.bf16.gmra.mrb[44].mxu0 %v3417_v1  ;;  %v4374_v1 = vld [vmem:[#allocation2 + $0x10a] sm:$0xff] }
 0x3e9   :  { %11955 = vmatprep.mubr.bf16.mxu0 %v3418_v51  ;;  %v4375_v51 = vld [vmem:[#allocation2 + $0x112] sm:$0xff] }
 0x3ea   :  { %v4429_v16 = vpack.c.bf16 %v4375_v51, %v4374_v1 }
 0x3f0   :  { %11956 = vmatmul.mubr.bf16.gmra.mrb[48].mxu0 %v3419_v44  ;;  %v4378_v44 = vld [vmem:[#allocation2 + $0x13a] sm:$0xff] }
 0x3f1   :  { %11959 = vmatprep.mubr.bf16.mxu0 %v3420_v45  ;;  %v4379_v45 = vld [vmem:[#allocation2 + $0x142] sm:$0xff] }
 0x3f2   :  { %v4431_v22 = vpack.c.bf16 %v4379_v45, %v4378_v44 }
 0x3f8   :  { %11960 = vmatmul.mubr.bf16.gmra.mrb[52].mxu0 %v3421_v42  ;;  %v4382_v42 = vld [vmem:[#allocation2 + $0x16a] sm:$0xff] }
 0x3f9   :  { %11963 = vmatprep.mubr.bf16.mxu0 %v3422_v52  ;;  %v4383_v52 = vld [vmem:[#allocation2 + $0x172] sm:$0xff] }
 0x3fa   :  { %v4433_v62 = vpack.c.bf16 %v4383_v52, %v4382_v42 }
 0x400   :  { %11964 = vmatmul.mubr.bf16.gmra.mrb[56].mxu0 %v3423_v56  ;;  %v4387_v56 = vld [vmem:[#allocation2 + $0x1a2] sm:$0xff] }
 0x401   :  { %11967 = vmatprep.mubr.bf16.mxu0 %v15113_v11  ;;  %v13947_v11 = vld [vmem:[%s18218_s1 + $0x210] sm:$0xff]   ;;  %v4435_v0 = vpack.c.bf16 %v4387_v56, %v4386_v8 }
 0x408   :  { %11968 = vmatmul.mubr.bf16.gmra.mrb[60].mxu0 %v3425_v5  ;;  %v4436_v5 = vpack.c.bf16 %v4389_v14, %v4388_v57 }
 0x409   :  { %11987 = vmatprep.mubr.bf16.mxu0 %v15116_v33  ;;  %v13948_v33 = vld [vmem:[%s18218_s1 + $0x218] sm:$0xff]  }
 0x410   :  { %11988 = vmatmul.mubr.bf16.vlgmr.msra.gmra.mrb[0].mxu0 %v15118_v39  ;;  %v13949_v39 = vld [vmem:[%s18218_s1 + $0x220] sm:$0xff]  }
 0x411   :  { %12052 = vmatpush3.bf16.msra.mxu0 %v15334_v2  ;;  %11991 = vmatprep.mubr.bf16.mxu0 %v15128_v3  ;;  %v13950_v3 = vld [vmem:[%s18218_s1 + $0x228] sm:$0xff]  }
 0x412   :  { %12053 = vmatprep.subr.bf16.mxu0 %v13946_v59  ;;  %v4368_v2 = vld [vmem:[#allocation2 + $0xc2] sm:$0xff] }
 0x413   :  { %v4426_v21 = vpack.c.bf16 %v4369_v13, %v4368_v2  ;;  %v4412_v2 = vld [vmem:[#allocation2 + $0x302] sm:$0xff]  ;;  %v4413_v13 = vld [vmem:[#allocation2 + $0x30a] sm:$0xff] }
 0x415   :  { %12054 = vmatpush3.bf16.msra.mxu0 %v13946_v59  ;;  %v4390_v59 = vld [vmem:[#allocation2 + $0x1fa] sm:$0xff] }
 0x416   :  { %12055 = vmatprep.subr.bf16.mxu0 %v13947_v11 }
 0x418   :  { %11992 = vmatmul.mubr.bf16.gmra.mrb[4].mxu0 %v15130_v10  ;;  %v13951_v10 = vld [vmem:[%s18218_s1 + $0x230] sm:$0xff]  }
 0x419   :  { %11995 = vmatprep.mubr.bf16.mxu0 %v15140_v37  ;;  %12056 = vmatpush3.bf16.msra.mxu0 %v13947_v11  ;;  %v13952_v37 = vld [vmem:[%s18218_s1 + $0x238] sm:$0xff]   ;;  %v4391_v11 = vld [vmem:[#allocation2 + $0x202] sm:$0xff] }
 0x41a   :  { %12057 = vmatprep.subr.bf16.mxu0 %v13948_v33 }
 0x41d   :  { %12058 = vmatpush3.bf16.msra.mxu0 %v13948_v33  ;;  %v4392_v33 = vld [vmem:[#allocation2 + $0x212] sm:$0xff] }
 0x41e   :  { %12059 = vmatprep.subr.bf16.mxu0 %v13949_v39 }
 0x420   :  { %11996 = vmatmul.mubr.bf16.gmra.mrb[8].mxu0 %v15142_v61  ;;  %v3873_v61 = vld [vmem:[#allocation2 + $0x199] sm:$0xff] }
 0x421   :  { %11999 = vmatprep.mubr.bf16.mxu0 %v15152_v49  ;;  %12060 = vmatpush3.bf16.msra.mxu0 %v13949_v39  ;;  %v3874_v49 = vld [vmem:[#allocation2 + $0x1a1] sm:$0xff] }
 0x422   :  { %12061 = vmatprep.subr.bf16.mxu0 %v13950_v3  ;;  %v4393_v39 = vld [vmem:[#allocation2 + $0x21a] sm:$0xff] }
 0x425   :  { %12062 = vmatpush3.bf16.msra.mxu0 %v13950_v3  ;;  %v4437_v3 = vpack.c.bf16 %v4391_v11, %v4390_v59 }
 0x426   :  { %12063 = vmatprep.subr.bf16.mxu0 %v13951_v10 }
 0x428   :  { %12000 = vmatmul.mubr.bf16.gmra.mrb[12].mxu0 %v15154_v50  ;;  %v3922_v50 = vpack.c.bf16 %v3874_v49, %v3873_v61  ;;  %v4395_v61 = vld [vmem:[#allocation2 + $0x232] sm:$0xff]  ;;  %v4396_v49 = vld [vmem:[#allocation2 + $0x242] sm:$0xff] }
 0x429   :  { %12003 = vmatprep.mubr.bf16.mxu0 %v15166_v17  ;;  %12064 = vmatpush3.bf16.msra.mxu0 %v13951_v10  ;;  %v18330_v17 = vld [vmem:[#allocation18_spill] sm:$0xff]  ;;  %v4438_v10 = vpack.c.bf16 %v4393_v39, %v4392_v33 }
 0x42a   :  { %12065 = vmatprep.subr.bf16.mxu0 %v13952_v37 }
 0x42d   :  { %12066 = vmatpush3.bf16.msra.mxu0 %v13952_v37  ;;  %v4394_v37 = vld [vmem:[#allocation2 + $0x22a] sm:$0xff] }
 0x430   :  { %12004 = vmatmul.mubr.bf16.gmra.mrb[16].mxu0 %v15168_v18  ;;  %v3905_v18 = vld [vmem:[#allocation2 + $0x349] sm:$0xff] }
 0x431   :  { %12007 = vmatprep.mubr.bf16.mxu0 %v15173_v47  ;;  %v3906_v47 = vld [vmem:[#allocation2 + $0x351] sm:$0xff] }
 0x438   :  { %12008 = vmatmul.mubr.bf16.gmra.mrb[20].mxu0 %v15175_v48  ;;  %v4356_v48 = vld [vmem:[#allocation2 + $0x32] sm:$0xff] }
 0x439   :  { %12011 = vmatprep.mubr.bf16.mxu0 %v15179_v53  ;;  %v4357_v53 = vld [vmem:[#allocation2 + $0x3a] sm:$0xff] }
 0x440   :  { %12012 = vmatmul.mubr.bf16.gmra.mrb[24].mxu0 %v15181_v54  ;;  %v3938_v54 = vpack.c.bf16 %v3906_v47, %v3905_v18  ;;  %v4398_v18 = vld [vmem:[#allocation2 + $0x25a] sm:$0xff]  ;;  %v4399_v47 = vld [vmem:[#allocation2 + $0x262] sm:$0xff] }
 0x441   :  { %12015 = vmatprep.mubr.bf16.mxu0 %v15185_v28  ;;  %v4420_v28 = vpack.c.bf16 %v4357_v53, %v4356_v48  ;;  %v4400_v48 = vld [vmem:[#allocation2 + $0x272] sm:$0xff]  ;;  %v4401_v53 = vld [vmem:[#allocation2 + $0x27a] sm:$0xff] }
 0x448   :  { %12016 = vmatmul.mubr.bf16.gmra.mrb[28].mxu0 %v3922_v50  ;;  %v4439_v50 = vpack.c.bf16 %v4395_v61, %v4394_v37 }
 0x449   :  { %12019 = vmatprep.mubr.bf16.mxu0 %v15188_v58  ;;  %v4358_v58 = vld [vmem:[#allocation2 + $0x4a] sm:$0xff] }
 0x450   :  { %12020 = vmatmul.mubr.bf16.gmra.mrb[32].mxu0 %v15190_v63  ;;  %v4359_v63 = vld [vmem:[#allocation2 + $0x52] sm:$0xff] }
 0x451   :  { %12023 = vmatprep.mubr.bf16.mxu0 %v15194_v32  ;;  %v4360_v32 = vld [vmem:[#allocation2 + $0x62] sm:$0xff] }
 0x458   :  { %12024 = vmatmul.mubr.bf16.gmra.mrb[36].mxu0 %v15196_v40  ;;  %v4361_v40 = vld [vmem:[#allocation2 + $0x6a] sm:$0xff] }
 0x459   :  { %12027 = vmatprep.mubr.bf16.mxu0 %v15200_v9  ;;  %v4421_v9 = vpack.c.bf16 %v4359_v63, %v4358_v58  ;;  %v4402_v58 = vld [vmem:[#allocation2 + $0x28a] sm:$0xff]  ;;  %v4403_v63 = vld [vmem:[#allocation2 + $0x292] sm:$0xff] }
 0x460   :  { %12028 = vmatmul.mubr.bf16.gmra.mrb[40].mxu0 %v15202_v12  ;;  %v4422_v12 = vpack.c.bf16 %v4361_v40, %v4360_v32  ;;  %v4404_v32 = vld [vmem:[#allocation2 + $0x2a2] sm:$0xff]  ;;  %v4405_v40 = vld [vmem:[#allocation2 + $0x2aa] sm:$0xff] }
 0x461   :  { %12031 = vmatprep.mubr.bf16.mxu0 %v15206_v41  ;;  %v4362_v41 = vld [vmem:[#allocation2 + $0x7a] sm:$0xff] }
 0x468   :  { %12032 = vmatmul.mubr.bf16.gmra.mrb[44].mxu0 %v15208_v43  ;;  %v4363_v43 = vld [vmem:[#allocation2 + $0x82] sm:$0xff] }
 0x469   :  { %12035 = vmatprep.mubr.bf16.mxu0 %v18330_v17 }
 0x470   :  { %12036 = vmatmul.mubr.bf16.gmra.mrb[48].mxu0 %v15214_v55  ;;  %v4365_v55 = vld [vmem:[#allocation2 + $0x9a] sm:$0xff] }
 0x471   :  { %12039 = vmatprep.mubr.bf16.mxu0 %v15218_v26  ;;  %v4423_v26 = vpack.c.bf16 %v4363_v43, %v4362_v41  ;;  %v4406_v41 = vld [vmem:[#allocation2 + $0x2ba] sm:$0xff]  ;;  %v4407_v43 = vld [vmem:[#allocation2 + $0x2c2] sm:$0xff] }
 0x478   :  { %12040 = vmatmul.mubr.bf16.gmra.mrb[52].mxu0 %v15220_v34 }
 0x479   :  { %12043 = vmatprep.mubr.bf16.mxu0 %v15224_v24  ;;  %v4366_v24 = vld [vmem:[#allocation2 + $0xaa] sm:$0xff] }
 0x480   :  { %12044 = vmatmul.mubr.bf16.gmra.mrb[56].mxu0 %v15226_v25  ;;  %v4364_v25 = vld [vmem:[#allocation2 + $0x92] sm:$0xff] }
 0x481   :  { %12047 = vmatprep.mubr.bf16.mxu0 %v15230_v38  ;;  %v4424_v34 = vpack.c.bf16 %v4365_v55, %v4364_v25  ;;  %v4367_v38 = vld [vmem:[#allocation2 + $0xb2] sm:$0xff]  ;;  %v4409_v55 = vld [vmem:[#allocation2 + $0x2da] sm:$0xff] }
 0x482   :  { %v4425_v60 = vpack.c.bf16 %v4367_v38, %v4366_v24  ;;  %v4408_v25 = vld [vmem:[#allocation2 + $0x2d2] sm:$0xff]  ;;  %v4410_v24 = vld [vmem:[#allocation2 + $0x2ea] sm:$0xff] }
 0x483   :  { %v4411_v38 = vld [vmem:[#allocation2 + $0x2f2] sm:$0xff] }
 0x488   :  { %12048 = vmatmul.mubr.bf16.gmra.mrb[60].mxu0 %v3938_v54  ;;  %v4441_v54 = vpack.c.bf16 %v4399_v47, %v4398_v18 }
 0x489   :  { %12067 = vmatprep.mubr.bf16.mxu0 %v4420_v28  ;;  %v4442_v28 = vpack.c.bf16 %v4401_v53, %v4400_v48 }
 0x490   :  { %12068 = vmatmul.mubr.bf16.vlgmr.msra.gmra.mrb[0].mxu0 %v4421_v9  ;;  %v4443_v9 = vpack.c.bf16 %v4403_v63, %v4402_v58 }
 0x491   :  { %12071 = vmatprep.mubr.bf16.mxu0 %v4422_v12  ;;  %v4444_v12 = vpack.c.bf16 %v4405_v40, %v4404_v32 }
 0x498   :  { %12072 = vmatmul.mubr.bf16.gmra.mrb[4].mxu0 %v4423_v26  ;;  %v4445_v26 = vpack.c.bf16 %v4407_v43, %v4406_v41 }
 0x499   :  { %12075 = vmatprep.mubr.bf16.mxu0 %v4424_v34  ;;  %v4446_v34 = vpack.c.bf16 %v4409_v55, %v4408_v25 }
 0x4a0   :  { %12076 = vmatmul.mubr.bf16.gmra.mrb[8].mxu0 %v4425_v60  ;;  %v4447_v60 = vpack.c.bf16 %v4411_v38, %v4410_v24 }
 0x4a1   :  { %12079 = vmatprep.mubr.bf16.mxu0 %v4426_v21  ;;  %v4448_v21 = vpack.c.bf16 %v4413_v13, %v4412_v2 }
 0x4a8   :  { %12080 = vmatmul.mubr.bf16.gmra.mrb[12].mxu0 %v4427_v23  ;;  %v4419_v23 = vld [vmem:[#allocation2 + $0x352] sm:$0xff] }
 0x4a9   :  { %12083 = vmatprep.mubr.bf16.mxu0 %v4428_v46  ;;  %v4451_v46 = vpack.c.bf16 %v4419_v23, %v4418_v35 }
 0x4b0   :  { %12084 = vmatmul.mubr.bf16.gmra.mrb[16].mxu0 %v4429_v16 }
 0x4b1   :  { %12087 = vmatprep.mubr.bf16.mxu0 %v4430_v31 }
 0x4b8   :  { %12088 = vmatmul.mubr.bf16.gmra.mrb[20].mxu0 %v4431_v22 }
 0x4b9   :  { %12091 = vmatprep.mubr.bf16.mxu0 %v4432_v27 }
 0x4c0   :  { %12092 = vmatmul.mubr.bf16.gmra.mrb[24].mxu0 %v4433_v62 }
 0x4c1   :  { %12095 = vmatprep.mubr.bf16.mxu0 %v15281_v30  ;;  %v4397_v30 = vld [vmem:[#allocation2 + $0x24a] sm:$0xff] }
 0x4c2   :  { %v4440_v17 = vpack.c.bf16 %v4397_v30, %v4396_v49 }
 0x4c8   :  { %12096 = vmatmul.mubr.bf16.gmra.mrb[28].mxu0 %v4435_v0 }
 0x4c9   :  { %12099 = vmatprep.mubr.bf16.mxu0 %v4436_v5 }
 0x4d0   :  { %12100 = vmatmul.mubr.bf16.gmra.mrb[32].mxu0 %v4437_v3 }
 0x4d1   :  { %12103 = vmatprep.mubr.bf16.mxu0 %v4438_v10 }
 0x4d8   :  { %12104 = vmatmul.mubr.bf16.gmra.mrb[36].mxu0 %v4439_v50 }
 0x4d9   :  { %12107 = vmatprep.mubr.bf16.mxu0 %v4440_v17 }
 0x4e0   :  { %12108 = vmatmul.mubr.bf16.gmra.mrb[40].mxu0 %v4441_v54 }
 0x4e1   :  { %12111 = vmatprep.mubr.bf16.mxu0 %v4442_v28 }
 0x4e8   :  { %12112 = vmatmul.mubr.bf16.gmra.mrb[44].mxu0 %v4443_v9 }
 0x4e9   :  { %12115 = vmatprep.mubr.bf16.mxu0 %v4444_v12 }
 0x4f0   :  { %12116 = vmatmul.mubr.bf16.gmra.mrb[48].mxu0 %v4445_v26 }
 0x4f1   :  { %12119 = vmatprep.mubr.bf16.mxu0 %v4446_v34 }
 0x4f8   :  { %12120 = vmatmul.mubr.bf16.gmra.mrb[52].mxu0 %v4447_v60 }
 0x4f9   :  { %12123 = vmatprep.mubr.bf16.mxu0 %v4448_v21 }
 0x500   :  { %12124 = vmatmul.mubr.bf16.gmra.mrb[56].mxu0 %v4449_v20 }
 0x501   :  { %12127 = vmatprep.mubr.bf16.mxu0 %v15307_v29 }
 0x508   :  { %12128 = vmatmul.mubr.bf16.gmra.mrb[60].mxu0 %v4451_v46 }
 0x563   :  { %v15401_v1 = vpop.f32.mrb[0].mxu0 }
 0x564   :  { %v15403_v51 = vpop.f32.mrb[1].mxu0  ;;  %v4940_v44 = vmul.f32 %v15401_v1, %v15401_v1 }
 0x565   :  { %v15405_v4 = vpop.f32.mrb[2].mxu0  ;;  %v4938_v16 = vmul.f32 %v15403_v51, %v15403_v51 }
 0x566   :  { %v15407_v15 = vpop.f32.mrb[3].mxu0  ;;  %v4941_v6 = vmul.f32 %v15405_v4, %v15405_v4 }
 0x567   :  { %v4869_v31 = vadd.f32 %v15407_v15, %v15403_v51  ;;  %v4939_v29 = vmul.f32 %v15407_v15, %v15407_v15 }
 0x569   :  { %v4870_v45 = vadd.f32 %v15401_v1, %v4869_v31  ;;  %v5002_v7 = vadd.f32 %v4939_v29, %v4938_v16 }
 0x56b   :  { %v5003_v22 = vadd.f32 %v5002_v7, %v4940_v44  ;;  %v15420_v27 = vpop.f32.mrb[4].mxu0  ;;  %v4871_v42 = vadd.f32 %v15405_v4, %v4870_v45 }
 0x56c   :  { %v15423_v52 = vpop.f32.mrb[5].mxu0  ;;  %v4944_v11 = vmul.f32 %v15420_v27, %v15420_v27 }
 0x56d   :  { %v4872_v62 = vadd.f32 %v4871_v42, %v15423_v52  ;;  %v4942_v8 = vmul.f32 %v15423_v52, %v15423_v52  ;;  %v5004_v56 = vadd.f32 %v5003_v22, %v4941_v6  ;;  %v15428_v57 = vpop.f32.mrb[6].mxu0 }
 0x56e   :  { %v15430_v14 = vpop.f32.mrb[7].mxu0  ;;  %v4945_v3 = vmul.f32 %v15428_v57, %v15428_v57 }
 0x56f   :  { %v5005_v0 = vadd.f32 %v5004_v56, %v4942_v8  ;;  %v4873_v5 = vadd.f32 %v4872_v62, %v15430_v14  ;;  %v4943_v59 = vmul.f32 %v15430_v14, %v15430_v14 }
 0x571   :  { %v4874_v33 = vadd.f32 %v15420_v27, %v4873_v5  ;;  %v5006_v39 = vadd.f32 %v5005_v0, %v4943_v59 }
 0x573   :  { %v5007_v10 = vadd.f32 %v5006_v39, %v4944_v11  ;;  %v15440_v37 = vpop.f32.mrb[8].mxu0  ;;  %v4875_v61 = vadd.f32 %v15428_v57, %v4874_v33 }
 0x574   :  { %v15443_v49 = vpop.f32.mrb[9].mxu0  ;;  %v4948_v28 = vmul.f32 %v15440_v37, %v15440_v37 }
 0x575   :  { %v4876_v30 = vadd.f32 %v4875_v61, %v15443_v49  ;;  %v4946_v50 = vmul.f32 %v15443_v49, %v15443_v49  ;;  %v5008_v17 = vadd.f32 %v5007_v10, %v4945_v3  ;;  %v15448_v18 = vpop.f32.mrb[10].mxu0 }
 0x576   :  { %v15450_v47 = vpop.f32.mrb[11].mxu0  ;;  %v4949_v32 = vmul.f32 %v15448_v18, %v15448_v18 }
 0x577   :  { %v5009_v48 = vadd.f32 %v5008_v17, %v4946_v50  ;;  %v4877_v53 = vadd.f32 %v4876_v30, %v15450_v47  ;;  %v4947_v54 = vmul.f32 %v15450_v47, %v15450_v47 }
 0x579   :  { %v4878_v58 = vadd.f32 %v15440_v37, %v4877_v53  ;;  %v5010_v63 = vadd.f32 %v5009_v48, %v4947_v54 }
 0x57b   :  { %v5011_v40 = vadd.f32 %v5010_v63, %v4948_v28  ;;  %v15460_v9 = vpop.f32.mrb[12].mxu0  ;;  %v4879_v12 = vadd.f32 %v15448_v18, %v4878_v58 }
 0x57c   :  { %v15463_v41 = vpop.f32.mrb[13].mxu0  ;;  %v4952_v13 = vmul.f32 %v15460_v9, %v15460_v9 }
 0x57d   :  { %v4880_v43 = vadd.f32 %v4879_v12, %v15463_v41  ;;  %v4950_v25 = vmul.f32 %v15463_v41, %v15463_v41  ;;  %v5012_v55 = vadd.f32 %v5011_v40, %v4949_v32  ;;  %v15468_v26 = vpop.f32.mrb[14].mxu0 }
 0x57e   :  { %v15470_v34 = vpop.f32.mrb[15].mxu0  ;;  %v4953_v36 = vmul.f32 %v15468_v26, %v15468_v26 }
 0x57f   :  { %v5013_v24 = vadd.f32 %v5012_v55, %v4950_v25  ;;  %v4881_v38 = vadd.f32 %v4880_v43, %v15470_v34  ;;  %v4951_v2 = vmul.f32 %v15470_v34, %v15470_v34 }
 0x581   :  { %v4882_v60 = vadd.f32 %v15460_v9, %v4881_v38  ;;  %v5014_v21 = vadd.f32 %v5013_v24, %v4951_v2 }
 0x583   :  { %v5015_v19 = vadd.f32 %v5014_v21, %v4952_v13  ;;  %v15480_v20 = vpop.f32.mrb[16].mxu0  ;;  %v4883_v35 = vadd.f32 %v15468_v26, %v4882_v60 }
 0x584   :  { %v15483_v23 = vpop.f32.mrb[17].mxu0  ;;  %v4956_v22 = vmul.f32 %v15480_v20, %v15480_v20 }
 0x585   :  { %v4884_v46 = vadd.f32 %v4883_v35, %v15483_v23  ;;  %v4954_v16 = vmul.f32 %v15483_v23, %v15483_v23  ;;  %v5016_v31 = vadd.f32 %v5015_v19, %v4953_v36  ;;  %v15488_v29 = vpop.f32.mrb[18].mxu0 }
 0x586   :  { %v15490_v44 = vpop.f32.mrb[19].mxu0  ;;  %v4957_v8 = vmul.f32 %v15488_v29, %v15488_v29 }
 0x587   :  { %v5017_v45 = vadd.f32 %v5016_v31, %v4954_v16  ;;  %v4885_v7 = vadd.f32 %v4884_v46, %v15490_v44  ;;  %v4955_v6 = vmul.f32 %v15490_v44, %v15490_v44  ;;  %v13953_v31 = vld [vmem:[%s18221_s4 + $0x40] sm:$0xff]  }
 0x588   :  { %12131 = vmatprep.subr.bf16.mxu1 %v13953_v31 }
 0x589   :  { %v4886_v42 = vadd.f32 %v15480_v20, %v4885_v7  ;;  %v5018_v62 = vadd.f32 %v5017_v45, %v4955_v6  ;;  %12132 = vmatpush3.bf16.msra.mxu1 %v13953_v31 }
 0x58b   :  { %v5019_v56 = vadd.f32 %v5018_v62, %v4956_v22  ;;  %v15500_v0 = vpop.f32.mrb[20].mxu0  ;;  %v4887_v5 = vadd.f32 %v15488_v29, %v4886_v42 }
 0x58c   :  { %v15503_v59 = vpop.f32.mrb[21].mxu0  ;;  %v4960_v17 = vmul.f32 %v15500_v0, %v15500_v0 }
 0x58d   :  { %v4888_v11 = vadd.f32 %v4887_v5, %v15503_v59  ;;  %v4958_v33 = vmul.f32 %v15503_v59, %v15503_v59  ;;  %v5020_v39 = vadd.f32 %v5019_v56, %v4957_v8  ;;  %v15508_v3 = vpop.f32.mrb[22].mxu0  ;;  %v13954_v5 = vld [vmem:[%s18221_s4 + $0x48] sm:$0xff]  }
 0x58e   :  { %v15510_v10 = vpop.f32.mrb[23].mxu0  ;;  %v4961_v54 = vmul.f32 %v15508_v3, %v15508_v3  ;;  %12133 = vmatprep.subr.bf16.mxu1 %v13954_v5 }
 0x58f   :  { %v5021_v61 = vadd.f32 %v5020_v39, %v4958_v33  ;;  %v4889_v30 = vadd.f32 %v4888_v11, %v15510_v10  ;;  %v4959_v50 = vmul.f32 %v15510_v10, %v15510_v10  ;;  %12134 = vmatpush3.bf16.msra.mxu1 %v13954_v5 }
 0x591   :  { %v4890_v48 = vadd.f32 %v15500_v0, %v4889_v30  ;;  %v5022_v53 = vadd.f32 %v5021_v61, %v4959_v50 }
 0x593   :  { %v5023_v28 = vadd.f32 %v5022_v53, %v4960_v17  ;;  %v15520_v58 = vpop.f32.mrb[24].mxu0  ;;  %v4891_v63 = vadd.f32 %v15508_v3, %v4890_v48  ;;  %v13955_v53 = vld [vmem:[%s18221_s4 + $0x50] sm:$0xff]  }
 0x594   :  { %v15523_v32 = vpop.f32.mrb[25].mxu0  ;;  %v4964_v13 = vmul.f32 %v15520_v58, %v15520_v58  ;;  %12135 = vmatprep.subr.bf16.mxu1 %v13955_v53 }
 0x595   :  { %v4892_v40 = vadd.f32 %v4891_v63, %v15523_v32  ;;  %v4962_v12 = vmul.f32 %v15523_v32, %v15523_v32  ;;  %v5024_v43 = vadd.f32 %v5023_v28, %v4961_v54  ;;  %v15528_v25 = vpop.f32.mrb[26].mxu0  ;;  %12136 = vmatpush3.bf16.msra.mxu1 %v13955_v53 }
 0x596   :  { %v15530_v55 = vpop.f32.mrb[27].mxu0  ;;  %v4965_v36 = vmul.f32 %v15528_v25, %v15528_v25 }
 0x597   :  { %v5025_v24 = vadd.f32 %v5024_v43, %v4962_v12  ;;  %v4893_v38 = vadd.f32 %v4892_v40, %v15530_v55  ;;  %v4963_v2 = vmul.f32 %v15530_v55, %v15530_v55 }
 0x599   :  { %v4894_v60 = vadd.f32 %v15520_v58, %v4893_v38  ;;  %v5026_v21 = vadd.f32 %v5025_v24, %v4963_v2  ;;  %v13956_v2 = vld [vmem:[%s18221_s4 + $0x58] sm:$0xff]  }
 0x59a   :  { %12137 = vmatprep.subr.bf16.mxu1 %v13956_v2 }
 0x59b   :  { %v5027_v19 = vadd.f32 %v5026_v21, %v4964_v13  ;;  %v15540_v35 = vpop.f32.mrb[28].mxu0  ;;  %v4895_v46 = vadd.f32 %v15528_v25, %v4894_v60  ;;  %12138 = vmatpush3.bf16.msra.mxu1 %v13956_v2 }
 0x59c   :  { %v15543_v16 = vpop.f32.mrb[29].mxu0  ;;  %v4968_v11 = vmul.f32 %v15540_v35, %v15540_v35 }
 0x59d   :  { %v4896_v45 = vadd.f32 %v4895_v46, %v15543_v16  ;;  %v4966_v7 = vmul.f32 %v15543_v16, %v15543_v16  ;;  %v5028_v6 = vadd.f32 %v5027_v19, %v4965_v36  ;;  %v15551_v22 = vpop.f32.mrb[30].mxu0 }
 0x59e   :  { %v15553_v42 = vpop.f32.mrb[31].mxu0  ;;  %v4969_v61 = vmul.f32 %v15551_v22, %v15551_v22 }
 0x59f   :  { %v5029_v62 = vadd.f32 %v5028_v6, %v4966_v7  ;;  %v4897_v8 = vadd.f32 %v4896_v45, %v15553_v42  ;;  %v4967_v56 = vmul.f32 %v15553_v42, %v15553_v42  ;;  %v13957_v7 = vld [vmem:[%s18221_s4 + $0x60] sm:$0xff]  }
 0x5a0   :  { %12139 = vmatprep.subr.bf16.mxu1 %v13957_v7 }
 0x5a1   :  { %v4898_v33 = vadd.f32 %v15540_v35, %v4897_v8  ;;  %v5030_v39 = vadd.f32 %v5029_v62, %v4967_v56  ;;  %12140 = vmatpush3.bf16.msra.mxu1 %v13957_v7 }
 0x5a3   :  { %v5031_v30 = vadd.f32 %v5030_v39, %v4968_v11  ;;  %v15566_v50 = vpop.f32.mrb[32].mxu0  ;;  %v4899_v17 = vadd.f32 %v15551_v22, %v4898_v33 }
 0x5a4   :  { %v15569_v48 = vpop.f32.mrb[33].mxu0  ;;  %v4972_v13 = vmul.f32 %v15566_v50, %v15566_v50 }
 0x5a5   :  { %v4900_v54 = vadd.f32 %v4899_v17, %v15569_v48  ;;  %v4970_v28 = vmul.f32 %v15569_v48, %v15569_v48  ;;  %v5032_v63 = vadd.f32 %v5031_v30, %v4969_v61  ;;  %v15577_v40 = vpop.f32.mrb[34].mxu0  ;;  %v13958_v61 = vld [vmem:[%s18221_s4 + $0x68] sm:$0xff]  }
 0x5a6   :  { %v15579_v12 = vpop.f32.mrb[35].mxu0  ;;  %v4973_v36 = vmul.f32 %v15577_v40, %v15577_v40  ;;  %12141 = vmatprep.subr.bf16.mxu1 %v13958_v61 }
 0x5a7   :  { %v5033_v43 = vadd.f32 %v5032_v63, %v4970_v28  ;;  %v4901_v24 = vadd.f32 %v4900_v54, %v15579_v12  ;;  %v4971_v38 = vmul.f32 %v15579_v12, %v15579_v12  ;;  %12142 = vmatpush3.bf16.msra.mxu1 %v13958_v61 }
 0x5a9   :  { %v4902_v60 = vadd.f32 %v15566_v50, %v4901_v24  ;;  %v5034_v21 = vadd.f32 %v5033_v43, %v4971_v38  ;;  %v13959_v38 = vld [vmem:[%s18221_s4 + $0x70] sm:$0xff]  }
 0x5aa   :  { %12143 = vmatprep.subr.bf16.mxu1 %v13959_v38 }
 0x5ab   :  { %v5035_v19 = vadd.f32 %v5034_v21, %v4972_v13  ;;  %v15592_v46 = vpop.f32.mrb[36].mxu0  ;;  %v4903_v31 = vadd.f32 %v15577_v40, %v4902_v60  ;;  %12144 = vmatpush3.bf16.msra.mxu1 %v13959_v38 }
 0x5ac   :  { %18331 = vst [vmem:[#allocation13_spill] sm:$0xff] %v15592_v46  ;;  %v15595_v45 = vpop.f32.mrb[37].mxu0  ;;  %v4976_v30 = vmul.f32 %v15592_v46, %v15592_v46 }
 0x5ad   :  { %v4904_v6 = vadd.f32 %v4903_v31, %v15595_v45  ;;  %v4974_v62 = vmul.f32 %v15595_v45, %v15595_v45  ;;  %v5036_v8 = vadd.f32 %v5035_v19, %v4973_v36  ;;  %v15603_v56 = vpop.f32.mrb[38].mxu0 }
 0x5ae   :  { %18332 = vst [vmem:[#allocation14_spill] sm:$0xff] %v15603_v56  ;;  %v15605_v5 = vpop.f32.mrb[39].mxu0  ;;  %v4977_v54 = vmul.f32 %v15603_v56, %v15603_v56 }
 0x5af   :  { %v5037_v11 = vadd.f32 %v5036_v8, %v4974_v62  ;;  %v4905_v33 = vadd.f32 %v4904_v6, %v15605_v5  ;;  %v4975_v39 = vmul.f32 %v15605_v5, %v15605_v5  ;;  %v13960_v6 = vld [vmem:[%s18221_s4 + $0x78] sm:$0xff]  }
 0x5b0   :  { %12145 = vmatprep.subr.bf16.mxu1 %v13960_v6 }
 0x5b1   :  { %v4906_v17 = vadd.f32 %v15592_v46, %v4905_v33  ;;  %v5038_v53 = vadd.f32 %v5037_v11, %v4975_v39  ;;  %v5541_v33 = vld [vmem:[#allocation3 + $0x1] sm:$0xff]  ;;  %v5542_v39 = vld [vmem:[#allocation3 + $0x9] sm:$0xff]  ;;  %12146 = vmatpush3.bf16.msra.mxu1 %v13960_v6 }
 0x5b3   :  { %v5039_v28 = vadd.f32 %v5038_v53, %v4976_v30  ;;  %v15618_v63 = vpop.f32.mrb[40].mxu0  ;;  %v4907_v43 = vadd.f32 %v15603_v56, %v4906_v17 }
 0x5b4   :  { %18333 = vst [vmem:[#allocation15_spill] sm:$0xff] %v15618_v63  ;;  %v15621_v24 = vpop.f32.mrb[41].mxu0  ;;  %v4980_v62 = vmul.f32 %v15618_v63, %v15618_v63 }
 0x5b5   :  { %18334 = vst [vmem:[#allocation16_spill] sm:$0xff] %v15621_v24  ;;  %v4908_v2 = vadd.f32 %v4907_v43, %v15621_v24  ;;  %v4978_v13 = vmul.f32 %v15621_v24, %v15621_v24  ;;  %v5040_v60 = vadd.f32 %v5039_v28, %v4977_v54  ;;  %v15629_v21 = vpop.f32.mrb[42].mxu0  ;;  %v5605_v54 = vpack.c.bf16 %v5542_v39, %v5541_v33  ;;  %v15652_v43 = vld [vmem:[%s18221_s4] sm:$0xff]  }
 0x5b6   :  { %18335 = vst [vmem:[#allocation17_spill] sm:$0xff] %v15629_v21  ;;  %v15631_v36 = vpop.f32.mrb[43].mxu0  ;;  %v4981_v61 = vmul.f32 %v15629_v21, %v15629_v21  ;;  %18339 = vst [vmem:[#allocation21_spill] sm:$0xff] %v15652_v43  ;;  %12211 = vmatprep.subr.bf16.mxu1 %v15652_v43 }
 0x5b7   :  { %18336 = vst [vmem:[#allocation18_spill] sm:$0xff] %v15631_v36  ;;  %v5041_v19 = vadd.f32 %v5040_v60, %v4978_v13  ;;  %v4909_v31 = vadd.f32 %v4908_v2, %v15631_v36  ;;  %v4979_v7 = vmul.f32 %v15631_v36, %v15631_v36  ;;  %12147 = vmatprep.mubr.bf16.mxu1 %v5605_v54 }
 0x5b9   :  { %v4910_v8 = vadd.f32 %v15618_v63, %v4909_v31  ;;  %v5042_v11 = vadd.f32 %v5041_v19, %v4979_v7 }
 0x5bb   :  { %v5043_v30 = vadd.f32 %v5042_v11, %v4980_v62  ;;  %v15644_v17 = vpop.f32.mrb[44].mxu0  ;;  %v4911_v53 = vadd.f32 %v15629_v21, %v4910_v8 }
 0x5bc   :  { %18337 = vst [vmem:[#allocation19_spill] sm:$0xff] %v15644_v17  ;;  %v15647_v28 = vpop.f32.mrb[45].mxu0  ;;  %v4984_v62 = vmul.f32 %v15644_v17, %v15644_v17 }
 0x5bd   :  { %18338 = vst [vmem:[#allocation20_spill] sm:$0xff] %v15647_v28  ;;  %v4912_v38 = vadd.f32 %v4911_v53, %v15647_v28  ;;  %v4982_v2 = vmul.f32 %v15647_v28, %v15647_v28  ;;  %v5044_v13 = vadd.f32 %v5043_v30, %v4981_v61  ;;  %v15657_v60 = vpop.f32.mrb[46].mxu0 }
 0x5be   :  { %18340 = vst [vmem:[#allocation22_spill] sm:$0xff] %v15657_v60  ;;  %v15659_v19 = vpop.f32.mrb[47].mxu0  ;;  %v4985_v33 = vmul.f32 %v15657_v60, %v15657_v60 }
 0x5bf   :  { %18341 = vst [vmem:[#allocation23_spill] sm:$0xff] %v15659_v19  ;;  %v5045_v31 = vadd.f32 %v5044_v13, %v4982_v2  ;;  %v4913_v7 = vadd.f32 %v4912_v38, %v15659_v19  ;;  %v4983_v6 = vmul.f32 %v15659_v19, %v15659_v19 }
 0x5c1   :  { %v4914_v8 = vadd.f32 %v15644_v17, %v4913_v7  ;;  %v5046_v11 = vadd.f32 %v5045_v31, %v4983_v6 }
 0x5c3   :  { %v5047_v39 = vadd.f32 %v5046_v11, %v4984_v62  ;;  %v15670_v61 = vpop.f32.mrb[48].mxu0  ;;  %v4915_v30 = vadd.f32 %v15657_v60, %v4914_v8 }
 0x5c4   :  { %18342 = vst [vmem:[#allocation24_spill] sm:$0xff] %v15670_v61  ;;  %v15673_v53 = vpop.f32.mrb[49].mxu0  ;;  %v4988_v8 = vmul.f32 %v15670_v61, %v15670_v61 }
 0x5c5   :  { %18343 = vst [vmem:[#allocation25_spill] sm:$0xff] %v15673_v53  ;;  %v4916_v54 = vadd.f32 %v4915_v30, %v15673_v53  ;;  %v4986_v38 = vmul.f32 %v15673_v53, %v15673_v53  ;;  %v5048_v2 = vadd.f32 %v5047_v39, %v4985_v33  ;;  %v15678_v13 = vpop.f32.mrb[50].mxu0 }
 0x5c6   :  { %18344 = vst [vmem:[#allocation26_spill] sm:$0xff] %v15678_v13  ;;  %v15680_v7 = vpop.f32.mrb[51].mxu0  ;;  %v4989_v43 = vmul.f32 %v15678_v13, %v15678_v13 }
 0x5c7   :  { %18345 = vst [vmem:[#allocation27_spill] sm:$0xff] %v15680_v7  ;;  %v5049_v31 = vadd.f32 %v5048_v2, %v4986_v38  ;;  %v4917_v6 = vadd.f32 %v4916_v54, %v15680_v7  ;;  %v4987_v62 = vmul.f32 %v15680_v7, %v15680_v7 }
 0x5c9   :  { %v4918_v11 = vadd.f32 %v15670_v61, %v4917_v6  ;;  %v5050_v30 = vadd.f32 %v5049_v31, %v4987_v62 }
 0x5cb   :  { %v5051_v33 = vadd.f32 %v5050_v30, %v4988_v8  ;;  %v15690_v39 = vpop.f32.mrb[52].mxu0  ;;  %v4919_v53 = vadd.f32 %v15678_v13, %v4918_v11 }
 0x5cc   :  { %18346 = vst [vmem:[#allocation28_spill] sm:$0xff] %v15690_v39  ;;  %v15693_v38 = vpop.f32.mrb[53].mxu0  ;;  %v4992_v11 = vmul.f32 %v15690_v39, %v15690_v39 }
 0x5cd   :  { %18347 = vst [vmem:[#allocation29_spill] sm:$0xff] %v15693_v38  ;;  %v4920_v54 = vadd.f32 %v4919_v53, %v15693_v38  ;;  %v4990_v2 = vmul.f32 %v15693_v38, %v15693_v38  ;;  %v5052_v7 = vadd.f32 %v5051_v33, %v4989_v43  ;;  %v15698_v60 = vpop.f32.mrb[54].mxu0 }
 0x5ce   :  { %18348 = vst [vmem:[#allocation30_spill] sm:$0xff] %v15698_v60  ;;  %v15700_v6 = vpop.f32.mrb[55].mxu0  ;;  %v4993_v38 = vmul.f32 %v15698_v60, %v15698_v60 }
 0x5cf   :  { %18349 = vst [vmem:[#allocation31_spill] sm:$0xff] %v15700_v6  ;;  %v5053_v31 = vadd.f32 %v5052_v7, %v4990_v2  ;;  %v4921_v62 = vadd.f32 %v4920_v54, %v15700_v6  ;;  %v4991_v8 = vmul.f32 %v15700_v6, %v15700_v6 }
 0x5d1   :  { %v4922_v30 = vadd.f32 %v15690_v39, %v4921_v62  ;;  %v5054_v53 = vadd.f32 %v5053_v31, %v4991_v8 }
 0x5d3   :  { %v5055_v43 = vadd.f32 %v5054_v53, %v4992_v11  ;;  %v15710_v33 = vpop.f32.mrb[56].mxu0  ;;  %v4923_v13 = vadd.f32 %v15698_v60, %v4922_v30 }
 0x5d4   :  { %18350 = vst [vmem:[#allocation32_spill] sm:$0xff] %v15710_v33  ;;  %v15713_v7 = vpop.f32.mrb[57].mxu0  ;;  %v4996_v30 = vmul.f32 %v15710_v33, %v15710_v33 }
 0x5d5   :  { %18351 = vst [vmem:[#allocation33_spill] sm:$0xff] %v15713_v7  ;;  %v4924_v54 = vadd.f32 %v4923_v13, %v15713_v7  ;;  %v4994_v2 = vmul.f32 %v15713_v7, %v15713_v7  ;;  %v5056_v6 = vadd.f32 %v5055_v43, %v4993_v38  ;;  %v15718_v61 = vpop.f32.mrb[58].mxu0 }
 0x5d6   :  { %18352 = vst [vmem:[#allocation34_spill] sm:$0xff] %v15718_v61  ;;  %v15720_v62 = vpop.f32.mrb[59].mxu0  ;;  %v4997_v7 = vmul.f32 %v15718_v61, %v15718_v61 }
 0x5d7   :  { %18353 = vst [vmem:[#allocation35_spill] sm:$0xff] %v15720_v62  ;;  %v5057_v31 = vadd.f32 %v5056_v6, %v4994_v2  ;;  %v4925_v8 = vadd.f32 %v4924_v54, %v15720_v62  ;;  %v4995_v11 = vmul.f32 %v15720_v62, %v15720_v62 }
 0x5d9   :  { %v4926_v53 = vadd.f32 %v15710_v33, %v4925_v8  ;;  %v5058_v13 = vadd.f32 %v5057_v31, %v4995_v11 }
 0x5db   :  { %v5059_v38 = vadd.f32 %v5058_v13, %v4996_v30  ;;  %v15730_v43 = vpop.f32.mrb[60].mxu0  ;;  %v4927_v60 = vadd.f32 %v15718_v61, %v4926_v53 }
 0x5dc   :  { %18354 = vst [vmem:[#allocation36_spill] sm:$0xff] %v15730_v43  ;;  %v15733_v6 = vpop.f32.mrb[61].mxu0  ;;  %v5000_v30 = vmul.f32 %v15730_v43, %v15730_v43 }
 0x5dd   :  { %18355 = vst [vmem:[#allocation37_spill] sm:$0xff] %v15733_v6  ;;  %v4928_v54 = vadd.f32 %v4927_v60, %v15733_v6  ;;  %v4998_v2 = vmul.f32 %v15733_v6, %v15733_v6  ;;  %v5060_v62 = vadd.f32 %v5059_v38, %v4997_v7  ;;  %v15738_v39 = vpop.f32.mrb[62].mxu0 }
 0x5de   :  { %v4793_v8 = vpop.f32.mrb[63].mxu0  ;;  %v5001_v61 = vmul.f32 %v15738_v39, %v15738_v39 }
 0x5df   :  { %v5061_v31 = vadd.f32 %v5060_v62, %v4998_v2  ;;  %v4929_v11 = vadd.f32 %v4928_v54, %v4793_v8  ;;  %v4999_v33 = vmul.f32 %v4793_v8, %v4793_v8 }
 0x5e1   :  { %v4930_v13 = vadd.f32 %v15730_v43, %v4929_v11  ;;  %v5062_v53 = vadd.f32 %v5061_v31, %v4999_v33 }
 0x5e3   :  { %v4931_v60 = vadd.f32 %v15738_v39, %v4930_v13  ;;  %v5063_v17 = vadd.f32 %v5062_v53, %v5000_v30  ;;  %v5162_v30 = vlaneseq  ;;  %v5080_v53 = vld [vmem:[#allocation7] sm:$0x1] }
 0x5e5   :  { %v4932_v6 = vrot.slane %v4931_v60, 4  ;;  %v5064_v7 = vadd.f32 %v5063_v17, %v5001_v61  ;;  %v5163_v17 = vshrl.u32 %v5162_v30, 7  ;;  %v5076_v61 = vld [vmem:[#allocation4] sm:$0x1] }
 0x5e7   :  { %v4933_v38 = vadd.f32 %v4932_v6, %v4931_v60  ;;  %v5065_v19 = vrot.slane %v5064_v7, 4  ;;  %v15746_v6 = vsub.s32 0, %v5163_v17  ;;  %v18364_v17 = vld [vmem:[#allocation20_spill] sm:$0xff] }
 0x5e9   :  { %v4934_v28 = vrot.slane %v4933_v38, 2  ;;  %v5066_v62 = vadd.f32 %v5065_v19, %v5064_v7  ;;  %18356 = vst [vmem:[#allocation38_spill] sm:$0xff] %v15746_v6 }
 0x5eb   :  { %v4935_v54 = vadd.f32 %v4934_v28, %v4933_v38  ;;  %v5067_v2 = vrot.slane %v5066_v62, 2 }
 0x5ed   :  { %v4936_v21 = vrot.slane %v4935_v54, 1  ;;  %v5068_v63 = vadd.f32 %v5067_v2, %v5066_v62  ;;  %v18359_v2 = vld [vmem:[#allocation14_spill] sm:$0xff] }
 0x5ef   :  { %v4937_v36 = vadd.f32 %v4936_v21, %v4935_v54  ;;  %v5069_v24 = vrot.slane %v5068_v63, 1  ;;  %v18358_v54 = vld [vmem:[#allocation13_spill] sm:$0xff] }
 0x5f1   :  { %v5070_v11 = vadd.f32 %v5069_v24, %v5068_v63  ;;  %v5071_v33 = vmul.f32 0.001953125, %v4937_v36 }
 0x5f3   :  { %v5072_v31 = vmul.f32 0.001953125, %v5070_v11  ;;  %v5073_v43 = vmul.f32 %v5071_v33, %v5071_v33  ;;  %v18360_v11 = vld [vmem:[#allocation16_spill] sm:$0xff] }
 0x5f5   :  { %v5074_v56 = vsub.f32 %v5072_v31, %v5073_v43  ;;  %v18362_v31 = vld [vmem:[#allocation15_spill] sm:$0xff] }
 0x5f7   :  { %v5075_v46 = vmax.f32 %v5074_v56, 0.0 }
 0x5f9   :  { %v5077_v13 = vadd.f32 1e-05, %v5075_v46 }
 0x5fb   :  { %14025 = vrsqrt.f32 %v5077_v13  ;;  %v18363_v13 = vld [vmem:[#allocation17_spill] sm:$0xff] }
 0x605   :  { %v14026_v19 = vpop.eup %14025 }
 0x606   :  { %v5079_v28 = vmul.f32 %v14026_v19, %v5076_v61  ;;  %v18365_v19 = vld [vmem:[#allocation23_spill] sm:$0xff] }
 0x608   :  { %v5081_v60 = vmul.f32 %v5079_v28, %v5071_v33  ;;  %v15749_v21 = vrot.slane %v5079_v28, %v15746_v6  ;;  %v18361_v33 = vld [vmem:[#allocation18_spill] sm:$0xff] }
 0x60a   :  { %v5082_v63 = vsub.f32 %v5080_v53, %v5081_v60  ;;  %v5228_v24 = vmul.f32 %v15749_v21, %v4793_v8  ;;  %v15754_v56 = vmul.f32 %v15749_v21, %v15403_v51  ;;  %v15758_v46 = vmul.f32 %v15749_v21, %v15407_v15  ;;  %v18366_v53 = vld [vmem:[#allocation19_spill] sm:$0xff] }
 0x60b   :  { %v15762_v36 = vmul.f32 %v15401_v1, %v15749_v21  ;;  %v15766_v43 = vmul.f32 %v15405_v4, %v15749_v21  ;;  %v15770_v7 = vmul.f32 %v15749_v21, %v15423_v52  ;;  %v15774_v51 = vmul.f32 %v15749_v21, %v15430_v14 }
 0x60c   :  { %v15777_v8 = vrot.slane %v5082_v63, %v15746_v6  ;;  %v15781_v15 = vmul.f32 %v15420_v27, %v15749_v21  ;;  %v15785_v1 = vmul.f32 %v15428_v57, %v15749_v21  ;;  %v15789_v4 = vmul.f32 %v15749_v21, %v15443_v49  ;;  %v18367_v63 = vld [vmem:[#allocation22_spill] sm:$0xff]  ;;  %v18378_v6 = vld [vmem:[#allocation28_spill] sm:$0xff] }
 0x60d   :  { %v15793_v52 = vmul.f32 %v15749_v21, %v15450_v47  ;;  %v15797_v14 = vmul.f32 %v15440_v37, %v15749_v21  ;;  %v15801_v27 = vmul.f32 %v15448_v18, %v15749_v21  ;;  %v15805_v57 = vmul.f32 %v15749_v21, %v15463_v41 }
 0x60e   :  { %v15808_v38 = vadd.f32 %v15777_v8, %v5228_v24  ;;  %v15812_v49 = vmul.f32 %v15749_v21, %v15470_v34  ;;  %v15816_v47 = vmul.f32 %v15460_v9, %v15749_v21  ;;  %v15820_v37 = vmul.f32 %v15468_v26, %v15749_v21 }
 0x60f   :  { %v15824_v18 = vmul.f32 %v15749_v21, %v15483_v23  ;;  %v15828_v41 = vmul.f32 %v15749_v21, %v15490_v44  ;;  %v15832_v34 = vmul.f32 %v15480_v20, %v15749_v21  ;;  %v15836_v9 = vmul.f32 %v15488_v29, %v15749_v21 }
 0x610   :  { %18357 = vst [vmem:[#allocation39_spill] sm:$0xff] %v15808_v38  ;;  %v18256_v62 = vmax.f32 %v15808_v38, 0.0  ;;  %v15841_v26 = vmul.f32 %v15749_v21, %v15503_v59  ;;  %v15845_v23 = vmul.f32 %v15749_v21, %v15510_v10  ;;  %v15849_v44 = vmul.f32 %v15500_v0, %v15749_v21  ;;  %v18380_v38 = vld [vmem:[#allocation30_spill] sm:$0xff] }
 0x611   :  { %v15853_v20 = vmul.f32 %v15508_v3, %v15749_v21  ;;  %v15857_v29 = vmul.f32 %v15749_v21, %v15523_v32  ;;  %v15861_v59 = vmul.f32 %v15749_v21, %v15530_v55  ;;  %v15865_v10 = vmul.f32 %v15520_v58, %v15749_v21 }
 0x612   :  { %5426 = vst [vmem:[#allocation3 + $0x321] sm:$0xff] %v18256_v62  ;;  %v15871_v0 = vmul.f32 %v15528_v25, %v15749_v21  ;;  %v15875_v3 = vmul.f32 %v15749_v21, %v15543_v16  ;;  %v15879_v32 = vmul.f32 %v15749_v21, %v15553_v42  ;;  %v15883_v55 = vmul.f32 %v15540_v35, %v15749_v21  ;;  %v18376_v62 = vld [vmem:[#allocation31_spill] sm:$0xff] }
 0x613   :  { %v15887_v58 = vmul.f32 %v15551_v22, %v15749_v21  ;;  %v15891_v25 = vmul.f32 %v15749_v21, %v15569_v48  ;;  %v15895_v16 = vmul.f32 %v15749_v21, %v15579_v12  ;;  %v15899_v42 = vmul.f32 %v15566_v50, %v15749_v21 }
 0x614   :  { %v15903_v35 = vmul.f32 %v15577_v40, %v15749_v21  ;;  %v15907_v22 = vmul.f32 %v15749_v21, %v15595_v45  ;;  %v15911_v48 = vmul.f32 %v15749_v21, %v15605_v5  ;;  %v15915_v12 = vmul.f32 %v18358_v54, %v15749_v21  ;;  %v18368_v54 = vld [vmem:[#allocation25_spill] sm:$0xff] }
 0x615   :  { %v15919_v50 = vmul.f32 %v18359_v2, %v15749_v21  ;;  %v15923_v40 = vmul.f32 %v15749_v21, %v18360_v11  ;;  %v15927_v45 = vmul.f32 %v15749_v21, %v18361_v33  ;;  %v15931_v5 = vmul.f32 %v18362_v31, %v15749_v21  ;;  %v18369_v11 = vld [vmem:[#allocation27_spill] sm:$0xff]  ;;  %v18370_v31 = vld [vmem:[#allocation24_spill] sm:$0xff] }
 0x616   :  { %v15935_v30 = vmul.f32 %v18363_v13, %v15749_v21  ;;  %v15939_v61 = vmul.f32 %v15749_v21, %v18364_v17  ;;  %v15943_v28 = vmul.f32 %v15749_v21, %v18365_v19  ;;  %v15947_v60 = vmul.f32 %v18366_v53, %v15749_v21  ;;  %v18372_v17 = vld [vmem:[#allocation26_spill] sm:$0xff]  ;;  %v18374_v53 = vld [vmem:[#allocation29_spill] sm:$0xff] }
 0x617   :  { %v15951_v24 = vmul.f32 %v18367_v63, %v15749_v21  ;;  %v15955_v2 = vmul.f32 %v15749_v21, %v18368_v54  ;;  %v15959_v33 = vmul.f32 %v15749_v21, %v18369_v11  ;;  %v15963_v13 = vmul.f32 %v18370_v31, %v15749_v21 }
 0x618   :  { %v15967_v19 = vmul.f32 %v18372_v17, %v15749_v21  ;;  %v15971_v63 = vmul.f32 %v15749_v21, %v18374_v53  ;;  %v15975_v54 = vmul.f32 %v15749_v21, %v18376_v62  ;;  %v15979_v11 = vmul.f32 %v18378_v6, %v15749_v21 }
 0x619   :  { %18371 = vst [vmem:[#allocation13_spill] sm:$0xff] %v15963_v13  ;;  %v15983_v31 = vmul.f32 %v18380_v38, %v15749_v21  ;;  %v18382_v13 = vld [vmem:[#allocation33_spill] sm:$0xff] }
 0x61a   :  { %18373 = vst [vmem:[#allocation14_spill] sm:$0xff] %v15967_v19  ;;  %18375 = vst [vmem:[#allocation16_spill] sm:$0xff] %v15971_v63  ;;  %v15987_v17 = vmul.f32 %v15749_v21, %v18382_v13  ;;  %v18383_v19 = vld [vmem:[#allocation35_spill] sm:$0xff]  ;;  %v18384_v63 = vld [vmem:[#allocation32_spill] sm:$0xff] }
 0x61b   :  { %18377 = vst [vmem:[#allocation18_spill] sm:$0xff] %v15975_v54  ;;  %18379 = vst [vmem:[#allocation15_spill] sm:$0xff] %v15979_v11  ;;  %v15991_v53 = vmul.f32 %v15749_v21, %v18383_v19  ;;  %v15995_v62 = vmul.f32 %v18384_v63, %v15749_v21  ;;  %v18385_v54 = vld [vmem:[#allocation34_spill] sm:$0xff]  ;;  %v18386_v11 = vld [vmem:[#allocation37_spill] sm:$0xff]  ;;  %v16011_v19 = vmul.f32 %v15738_v39, %v15749_v21 }
 0x61c   :  { %18381 = vst [vmem:[#allocation17_spill] sm:$0xff] %v15983_v31  ;;  %v15999_v6 = vmul.f32 %v18385_v54, %v15749_v21  ;;  %v16003_v38 = vmul.f32 %v15749_v21, %v18386_v11  ;;  %v18387_v31 = vld [vmem:[#allocation36_spill] sm:$0xff]  ;;  %v16015_v63 = vadd.f32 %v15777_v8, %v15754_v56  ;;  %v16019_v54 = vadd.f32 %v15777_v8, %v15758_v46 }
 0x61d   :  { %v16007_v13 = vmul.f32 %v18387_v31, %v15749_v21  ;;  %v16023_v11 = vadd.f32 %v15777_v8, %v15762_v36  ;;  %v16027_v31 = vadd.f32 %v15777_v8, %v15766_v43  ;;  %v16031_v39 = vadd.f32 %v15777_v8, %v15770_v7 }
 0x61e   :  { %v16035_v21 = vadd.f32 %v15777_v8, %v15774_v51  ;;  %v16039_v56 = vadd.f32 %v15777_v8, %v15781_v15  ;;  %v16043_v46 = vadd.f32 %v15777_v8, %v15785_v1  ;;  %v16047_v36 = vadd.f32 %v15777_v8, %v15789_v4 }
 0x61f   :  { %v16051_v43 = vadd.f32 %v15777_v8, %v15793_v52  ;;  %v16055_v7 = vadd.f32 %v15777_v8, %v15797_v14  ;;  %v16059_v51 = vadd.f32 %v15777_v8, %v15801_v27  ;;  %v16063_v15 = vadd.f32 %v15777_v8, %v15805_v57 }
 0x620   :  { %v16067_v1 = vadd.f32 %v15777_v8, %v15812_v49  ;;  %v16071_v4 = vadd.f32 %v15777_v8, %v15816_v47  ;;  %v16075_v52 = vadd.f32 %v15777_v8, %v15820_v37  ;;  %v16079_v14 = vadd.f32 %v15777_v8, %v15824_v18 }
 0x621   :  { %v16083_v27 = vadd.f32 %v15777_v8, %v15828_v41  ;;  %v16087_v57 = vadd.f32 %v15777_v8, %v15832_v34  ;;  %v16091_v49 = vadd.f32 %v15777_v8, %v15836_v9  ;;  %v16095_v47 = vadd.f32 %v15777_v8, %v15841_v26 }
 0x622   :  { %v16099_v37 = vadd.f32 %v15777_v8, %v15845_v23  ;;  %v16103_v18 = vadd.f32 %v15777_v8, %v15849_v44  ;;  %v16107_v41 = vadd.f32 %v15777_v8, %v15853_v20  ;;  %v16111_v34 = vadd.f32 %v15777_v8, %v15857_v29 }
 0x623   :  { %v16115_v9 = vadd.f32 %v15777_v8, %v15861_v59  ;;  %v16119_v26 = vadd.f32 %v15777_v8, %v15865_v10  ;;  %v16123_v23 = vadd.f32 %v15777_v8, %v15871_v0  ;;  %v16127_v44 = vadd.f32 %v15777_v8, %v15875_v3 }
 0x624   :  { %v16131_v20 = vadd.f32 %v15777_v8, %v15879_v32  ;;  %v16135_v29 = vadd.f32 %v15777_v8, %v15883_v55  ;;  %v16139_v59 = vadd.f32 %v15777_v8, %v15887_v58  ;;  %v16143_v10 = vadd.f32 %v15777_v8, %v15891_v25 }
 0x625   :  { %v16147_v0 = vadd.f32 %v15777_v8, %v15895_v16  ;;  %v16151_v3 = vadd.f32 %v15777_v8, %v15899_v42  ;;  %v16155_v32 = vadd.f32 %v15777_v8, %v15903_v35  ;;  %v16159_v55 = vadd.f32 %v15777_v8, %v15907_v22 }
 0x626   :  { %v16163_v58 = vadd.f32 %v15777_v8, %v15911_v48  ;;  %v16167_v25 = vadd.f32 %v15777_v8, %v15915_v12  ;;  %v16171_v16 = vadd.f32 %v15777_v8, %v15919_v50  ;;  %v16175_v42 = vadd.f32 %v15777_v8, %v15923_v40 }
 0x627   :  { %v16179_v35 = vadd.f32 %v15777_v8, %v15927_v45  ;;  %v16183_v22 = vadd.f32 %v15777_v8, %v15931_v5  ;;  %v16187_v48 = vadd.f32 %v15777_v8, %v15935_v30  ;;  %v16191_v12 = vadd.f32 %v15777_v8, %v15939_v61  ;;  %v18397_v61 = vld [vmem:[#allocation13_spill] sm:$0xff] }
 0x628   :  { %18388 = vst [vmem:[#allocation20_spill] sm:$0xff] %v16163_v58  ;;  %v16195_v50 = vadd.f32 %v15777_v8, %v15943_v28  ;;  %v16199_v40 = vadd.f32 %v15777_v8, %v15947_v60  ;;  %v16203_v45 = vadd.f32 %v15777_v8, %v15951_v24  ;;  %v16207_v5 = vadd.f32 %v15777_v8, %v15955_v2 }
 0x629   :  { %18389 = vst [vmem:[#allocation23_spill] sm:$0xff] %v16183_v22  ;;  %18390 = vst [vmem:[#allocation19_spill] sm:$0xff] %v16187_v48  ;;  %v16211_v30 = vadd.f32 %v15777_v8, %v15959_v33  ;;  %v16215_v28 = vadd.f32 %v15777_v8, %v18397_v61 }
 0x62a   :  { %18391 = vst [vmem:[#allocation22_spill] sm:$0xff] %v16191_v12  ;;  %18392 = vst [vmem:[#allocation25_spill] sm:$0xff] %v16195_v50  ;;  %v18399_v50 = vld [vmem:[#allocation14_spill] sm:$0xff] }
 0x62b   :  { %18393 = vst [vmem:[#allocation27_spill] sm:$0xff] %v16199_v40  ;;  %18394 = vst [vmem:[#allocation24_spill] sm:$0xff] %v16203_v45  ;;  %v16219_v60 = vadd.f32 %v15777_v8, %v18399_v50  ;;  %v18401_v40 = vld [vmem:[#allocation16_spill] sm:$0xff]  ;;  %v18403_v45 = vld [vmem:[#allocation18_spill] sm:$0xff]  ;;  %v16239_v50 = vadd.f32 %v15777_v8, %v15987_v17  ;;  %v16259_v17 = vadd.f32 %v15777_v8, %v16007_v13  ;;  %v18412_v13 = vmax.f32 %v16027_v31, 0.0 }
 0x62c   :  { %18395 = vst [vmem:[#allocation26_spill] sm:$0xff] %v16207_v5  ;;  %18396 = vst [vmem:[#allocation29_spill] sm:$0xff] %v16211_v30  ;;  %v16223_v24 = vadd.f32 %v15777_v8, %v18401_v40  ;;  %v16227_v2 = vadd.f32 %v15777_v8, %v18403_v45  ;;  %v18404_v5 = vld [vmem:[#allocation15_spill] sm:$0xff]  ;;  %v18405_v30 = vld [vmem:[#allocation17_spill] sm:$0xff]  ;;  %v16243_v40 = vadd.f32 %v15777_v8, %v15991_v53 }
 0x62d   :  { %18398 = vst [vmem:[#allocation31_spill] sm:$0xff] %v16215_v28  ;;  %18400 = vst [vmem:[#allocation28_spill] sm:$0xff] %v16219_v60  ;;  %v16231_v33 = vadd.f32 %v15777_v8, %v18404_v5  ;;  %v16235_v61 = vadd.f32 %v15777_v8, %v18405_v30  ;;  %v16247_v45 = vadd.f32 %v15777_v8, %v15995_v62  ;;  %v18266_v62 = vmax.f32 %v16019_v54, 0.0 }
 0x62e   :  { %18402 = vst [vmem:[#allocation30_spill] sm:$0xff] %v16223_v24  ;;  %18406 = vst [vmem:[#allocation33_spill] sm:$0xff] %v16243_v40  ;;  %v16251_v5 = vadd.f32 %v15777_v8, %v15999_v6  ;;  %v16255_v30 = vadd.f32 %v15777_v8, %v16003_v38  ;;  %v16263_v53 = vadd.f32 %v15777_v8, %v16011_v19  ;;  %v18265_v40 = vmax.f32 %v16015_v63, 0.0 }
 0x62f   :  { %18407 = vst [vmem:[#allocation35_spill] sm:$0xff] %v16247_v45  ;;  %18410 = vst [vmem:[#allocation37_spill] sm:$0xff] %v16259_v17  ;;  %v18268_v38 = vmax.f32 %v16035_v21, 0.0  ;;  %v18269_v17 = vmax.f32 %v16047_v36, 0.0  ;;  %v18270_v8 = vmax.f32 %v16051_v43, 0.0  ;;  %v18272_v19 = vmax.f32 %v16071_v4, 0.0 }
 0x630   :  { %18408 = vst [vmem:[#allocation32_spill] sm:$0xff] %v16251_v5  ;;  %18409 = vst [vmem:[#allocation34_spill] sm:$0xff] %v16255_v30  ;;  %v18267_v5 = vmax.f32 %v16031_v39, 0.0  ;;  %v18411_v30 = vmax.f32 %v16023_v11, 0.0  ;;  %v5332_v45 = vmax.f32 %v16139_v59, 0.0  ;;  %v18277_v6 = vmax.f32 %v16143_v10, 0.0 }
 0x631   :  { %5365 = vst [vmem:[#allocation3 + $0x19] sm:$0xff] %v18265_v40  ;;  %5366 = vst [vmem:[#allocation3 + $0x21] sm:$0xff] %v18266_v62  ;;  %v18271_v40 = vmax.f32 %v16067_v1, 0.0  ;;  %v18413_v62 = vmax.f32 %v16039_v56, 0.0 }
 0x632   :  { %5367 = vst [vmem:[#allocation3 + $0x31] sm:$0xff] %v18411_v30  ;;  %5368 = vst [vmem:[#allocation3 + $0x39] sm:$0xff] %v18412_v13  ;;  %v18414_v30 = vmax.f32 %v16043_v46, 0.0  ;;  %v18273_v13 = vmax.f32 %v16083_v27, 0.0  ;;  %v18433_v59 = vld [vmem:[#allocation24_spill] sm:$0xff] }
 0x633   :  { %5369 = vst [vmem:[#allocation3 + $0x49] sm:$0xff] %v18267_v5  ;;  %5370 = vst [vmem:[#allocation3 + $0x51] sm:$0xff] %v18268_v38  ;;  %v18415_v38 = vmax.f32 %v16055_v7, 0.0  ;;  %v18275_v5 = vmax.f32 %v16103_v18, 0.0 }
 0x634   :  { %5371 = vst [vmem:[#allocation3 + $0x61] sm:$0xff] %v18413_v62  ;;  %5372 = vst [vmem:[#allocation3 + $0x69] sm:$0xff] %v18414_v30  ;;  %v18416_v62 = vmax.f32 %v16059_v51, 0.0  ;;  %v18417_v30 = vmax.f32 %v16063_v15, 0.0 }
 0x635   :  { %5373 = vst [vmem:[#allocation3 + $0x79] sm:$0xff] %v18269_v17  ;;  %5374 = vst [vmem:[#allocation3 + $0x81] sm:$0xff] %v18270_v8  ;;  %v18274_v17 = vmax.f32 %v16099_v37, 0.0  ;;  %v5331_v8 = vmax.f32 %v16135_v29, 0.0  ;;  %v18434_v29 = vld [vmem:[#allocation26_spill] sm:$0xff] }
 0x636   :  { %5375 = vst [vmem:[#allocation3 + $0x91] sm:$0xff] %v18415_v38  ;;  %5376 = vst [vmem:[#allocation3 + $0x99] sm:$0xff] %v18416_v62  ;;  %v18418_v38 = vmax.f32 %v16075_v52, 0.0  ;;  %v18419_v62 = vmax.f32 %v16079_v14, 0.0 }
 0x637   :  { %5377 = vst [vmem:[#allocation3 + $0xa9] sm:$0xff] %v18417_v30  ;;  %5378 = vst [vmem:[#allocation3 + $0xb1] sm:$0xff] %v18271_v40  ;;  %v18276_v30 = vmax.f32 %v16115_v9, 0.0  ;;  %v18420_v40 = vmax.f32 %v16087_v57, 0.0 }
 0x638   :  { %5379 = vst [vmem:[#allocation3 + $0xc1] sm:$0xff] %v18272_v19  ;;  %5380 = vst [vmem:[#allocation3 + $0xc9] sm:$0xff] %v18418_v38  ;;  %v18421_v19 = vmax.f32 %v16091_v49, 0.0  ;;  %v18422_v38 = vmax.f32 %v16095_v47, 0.0 }
 0x639   :  { %5381 = vst [vmem:[#allocation3 + $0xd9] sm:$0xff] %v18419_v62  ;;  %5382 = vst [vmem:[#allocation3 + $0xe1] sm:$0xff] %v18273_v13  ;;  %v18278_v62 = vmax.f32 %v16131_v20, 0.0  ;;  %v18428_v13 = vmax.f32 %v16151_v3, 0.0 }
 0x63a   :  { %5383 = vst [vmem:[#allocation3 + $0xf1] sm:$0xff] %v18420_v40  ;;  %5384 = vst [vmem:[#allocation3 + $0xf9] sm:$0xff] %v18421_v19  ;;  %v18423_v40 = vmax.f32 %v16107_v41, 0.0  ;;  %v18424_v19 = vmax.f32 %v16111_v34, 0.0 }
 0x63b   :  { %5385 = vst [vmem:[#allocation3 + $0x109] sm:$0xff] %v18422_v38  ;;  %5386 = vst [vmem:[#allocation3 + $0x111] sm:$0xff] %v18274_v17  ;;  %v18279_v38 = vmax.f32 %v16147_v0, 0.0  ;;  %v18425_v17 = vmax.f32 %v16119_v26, 0.0 }
 0x63c   :  { %5387 = vst [vmem:[#allocation3 + $0x121] sm:$0xff] %v18275_v5  ;;  %5388 = vst [vmem:[#allocation3 + $0x129] sm:$0xff] %v18423_v40  ;;  %v18426_v5 = vmax.f32 %v16123_v23, 0.0  ;;  %v18427_v40 = vmax.f32 %v16127_v44, 0.0 }
 0x63d   :  { %5389 = vst [vmem:[#allocation3 + $0x139] sm:$0xff] %v18424_v19  ;;  %5390 = vst [vmem:[#allocation3 + $0x141] sm:$0xff] %v18276_v30  ;;  %v18281_v19 = vmax.f32 %v16163_v58, 0.0  ;;  %v18439_v58 = vmax.f32 %v16179_v35, 0.0  ;;  %v5357_v30 = vmax.f32 %v16239_v50, 0.0 }
 0x63e   :  { %5391 = vst [vmem:[#allocation3 + $0x151] sm:$0xff] %v18425_v17  ;;  %5392 = vst [vmem:[#allocation3 + $0x159] sm:$0xff] %v18426_v5  ;;  %v18432_v5 = vld [vmem:[#allocation27_spill] sm:$0xff]  ;;  %v5355_v17 = vmax.f32 %v16231_v33, 0.0 }
 0x63f   :  { %5393 = vst [vmem:[#allocation3 + $0x169] sm:$0xff] %v18427_v40  ;;  %5394 = vst [vmem:[#allocation3 + $0x171] sm:$0xff] %v18278_v62  ;;  %v5356_v40 = vmax.f32 %v16235_v61, 0.0 }
 0x640   :  { %5395 = vst [vmem:[#allocation3 + $0x181] sm:$0xff] %v5331_v8  ;;  %5396 = vst [vmem:[#allocation3 + $0x189] sm:$0xff] %v5332_v45  ;;  %v18429_v8 = vmax.f32 %v16155_v32, 0.0  ;;  %v18430_v45 = vmax.f32 %v16159_v55, 0.0 }
 0x641   :  { %5397 = vst [vmem:[#allocation3 + $0x1c9] sm:$0xff] %v18277_v6  ;;  %5398 = vst [vmem:[#allocation3 + $0x1d1] sm:$0xff] %v18279_v38  ;;  %v18431_v6 = vld [vmem:[#allocation25_spill] sm:$0xff]  ;;  %v18435_v38 = vmax.f32 %v16167_v25, 0.0 }
 0x642   :  { %5399 = vst [vmem:[#allocation3 + $0x1e1] sm:$0xff] %v18428_v13  ;;  %5400 = vst [vmem:[#allocation3 + $0x1e9] sm:$0xff] %v18429_v8  ;;  %v18436_v13 = vmax.f32 %v16171_v16, 0.0  ;;  %v18437_v8 = vmax.f32 %v16175_v42, 0.0  ;;  %v18443_v62 = vmax.f32 %v18431_v6, 0.0 }
 0x643   :  { %5401 = vst [vmem:[#allocation3 + $0x1f9] sm:$0xff] %v18430_v45  ;;  %5402 = vst [vmem:[#allocation3 + $0x201] sm:$0xff] %v18281_v19  ;;  %v18438_v45 = vld [vmem:[#allocation29_spill] sm:$0xff]  ;;  %v18440_v19 = vmax.f32 %v16183_v22, 0.0  ;;  %v18450_v22 = vld [vmem:[#allocation34_spill] sm:$0xff] }
 0x644   :  { %5403 = vst [vmem:[#allocation3 + $0x211] sm:$0xff] %v18435_v38  ;;  %5404 = vst [vmem:[#allocation3 + $0x219] sm:$0xff] %v18436_v13  ;;  %v18441_v38 = vmax.f32 %v16187_v48, 0.0  ;;  %v18442_v13 = vmax.f32 %v16191_v12, 0.0  ;;  %v18448_v12 = vld [vmem:[#allocation35_spill] sm:$0xff]  ;;  %v18449_v48 = vld [vmem:[#allocation32_spill] sm:$0xff] }
 0x645   :  { %5405 = vst [vmem:[#allocation3 + $0x229] sm:$0xff] %v18437_v8  ;;  %5406 = vst [vmem:[#allocation3 + $0x231] sm:$0xff] %v18439_v58  ;;  %v5354_v8 = vmax.f32 %v16227_v2, 0.0  ;;  %v18444_v58 = vmax.f32 %v18432_v5, 0.0  ;;  %v5359_v33 = vmax.f32 %v18448_v12, 0.0  ;;  %v5360_v61 = vmax.f32 %v18449_v48, 0.0 }
 0x646   :  { %5407 = vst [vmem:[#allocation3 + $0x241] sm:$0xff] %v18440_v19  ;;  %5408 = vst [vmem:[#allocation3 + $0x249] sm:$0xff] %v18441_v38  ;;  %v18445_v19 = vmax.f32 %v18433_v59, 0.0  ;;  %v18446_v38 = vmax.f32 %v18434_v29, 0.0  ;;  %v5361_v50 = vmax.f32 %v18450_v22, 0.0  ;;  %v18451_v6 = vmax.f32 %v18438_v45, 0.0 }
 0x647   :  { %5409 = vst [vmem:[#allocation3 + $0x259] sm:$0xff] %v18442_v13  ;;  %5410 = vst [vmem:[#allocation3 + $0x261] sm:$0xff] %v18443_v62  ;;  %v18447_v13 = vld [vmem:[#allocation33_spill] sm:$0xff]  ;;  %v18452_v62 = vmax.f32 %v16215_v28, 0.0  ;;  %v5364_v12 = vmax.f32 %v16263_v53, 0.0  ;;  %v18456_v22 = vmax.f32 %v16015_v63, 0.0 }
 0x648   :  { %5411 = vst [vmem:[#allocation3 + $0x271] sm:$0xff] %v18444_v58  ;;  %5412 = vst [vmem:[#allocation3 + $0x279] sm:$0xff] %v18445_v19  ;;  %v5358_v2 = vmax.f32 %v18447_v13, 0.0  ;;  %v18453_v58 = vmax.f32 %v16219_v60, 0.0  ;;  %v18454_v19 = vmax.f32 %v16223_v24, 0.0  ;;  %v18457_v48 = vmax.f32 %v16019_v54, 0.0 }
 0x649   :  { %5413 = vst [vmem:[#allocation3 + $0x289] sm:$0xff] %v18446_v38  ;;  %5414 = vst [vmem:[#allocation3 + $0x291] sm:$0xff] %v18451_v6  ;;  %v18455_v38 = vld [vmem:[#allocation37_spill] sm:$0xff]  ;;  %v18460_v53 = vmax.f32 %v16031_v39, 0.0  ;;  %v18461_v63 = vmax.f32 %v16035_v21, 0.0  ;;  %v18462_v54 = vmax.f32 %v16039_v56, 0.0 }
 0x64a   :  { %5415 = vst [vmem:[#allocation3 + $0x2a1] sm:$0xff] %v18452_v62  ;;  %5416 = vst [vmem:[#allocation3 + $0x2a9] sm:$0xff] %v18453_v58  ;;  %v5363_v13 = vmax.f32 %v18455_v38, 0.0  ;;  %v5606_v6 = vpack.c.bf16 %v18457_v48, %v18456_v22  ;;  %v18458_v62 = vmax.f32 %v16023_v11, 0.0  ;;  %v18459_v58 = vmax.f32 %v16027_v31, 0.0 }
 0x64b   :  { %5417 = vst [vmem:[#allocation3 + $0x2b9] sm:$0xff] %v18454_v19  ;;  %5418 = vst [vmem:[#allocation3 + $0x2c1] sm:$0xff] %v5354_v8  ;;  %v13962_v19 = vld [vmem:[%s18221_s4 + $0x8] sm:$0xff]   ;;  %v5608_v38 = vpack.c.bf16 %v18461_v63, %v18460_v53  ;;  %v18463_v11 = vmax.f32 %v16043_v46, 0.0  ;;  %v18464_v31 = vmax.f32 %v16047_v36, 0.0  ;;  %v18465_v48 = vmax.f32 %v16051_v43, 0.0 }
 0x64c   :  { %5419 = vst [vmem:[#allocation3 + $0x2d1] sm:$0xff] %v5355_v17  ;;  %5420 = vst [vmem:[#allocation3 + $0x2d9] sm:$0xff] %v5356_v40  ;;  %v5607_v60 = vpack.c.bf16 %v18459_v58, %v18458_v62  ;;  %v18466_v58 = vmax.f32 %v16055_v7, 0.0  ;;  %v18467_v24 = vmax.f32 %v16059_v51, 0.0  ;;  %12148 = vmatmul.mubr.bf16.vlgmr.msra.gmra.mrb[0].mxu1 %v5606_v6  ;;  %v18468_v39 = vmax.f32 %v16063_v15, 0.0  ;;  %v18476_v15 = vld [vmem:[#allocation21_spill] sm:$0xff] }
 0x64d   :  { %5421 = vst [vmem:[#allocation3 + $0x2e9] sm:$0xff] %v5357_v30  ;;  %5422 = vst [vmem:[#allocation3 + $0x2f1] sm:$0xff] %v5358_v2  ;;  %v5609_v22 = vpack.c.bf16 %v18463_v11, %v18462_v54  ;;  %v5610_v62 = vpack.c.bf16 %v18465_v48, %v18464_v31  ;;  %v18469_v21 = vmax.f32 %v16067_v1, 0.0  ;;  %v18470_v46 = vmax.f32 %v16071_v4, 0.0  ;;  %12212 = vmatpush3.bf16.msra.mxu1 %v18476_v15  ;;  %v18502_v15 = vld [vmem:[#allocation22_spill] sm:$0xff] }
 0x64e   :  { %5423 = vst [vmem:[#allocation3 + $0x301] sm:$0xff] %v5359_v33  ;;  %5424 = vst [vmem:[#allocation3 + $0x309] sm:$0xff] %v5360_v61  ;;  %v5611_v28 = vpack.c.bf16 %v18467_v24, %v18466_v58  ;;  %v18471_v36 = vmax.f32 %v16075_v52, 0.0  ;;  %v18472_v43 = vmax.f32 %v16079_v14, 0.0  ;;  %v18473_v7 = vmax.f32 %v16083_v27, 0.0  ;;  %12151 = vmatprep.mubr.bf16.mxu1 %v5607_v60  ;;  %12213 = vmatprep.subr.bf16.mxu1 %v13962_v19 }
 0x64f   :  { %5425 = vst [vmem:[#allocation3 + $0x319] sm:$0xff] %v5361_v50  ;;  %5427 = vst [vmem:[#allocation3 + $0x331] sm:$0xff] %v5363_v13  ;;  %v5612_v56 = vpack.c.bf16 %v18469_v21, %v18468_v39  ;;  %v18474_v51 = vmax.f32 %v16087_v57, 0.0  ;;  %v18475_v24 = vmax.f32 %v16091_v49, 0.0  ;;  %v18477_v1 = vmax.f32 %v16095_v47, 0.0  ;;  %v13963_v49 = vld [vmem:[%s18221_s4 + $0x10] sm:$0xff]  }
 0x650   :  { %5428 = vst [vmem:[#allocation3 + $0x339] sm:$0xff] %v5364_v12  ;;  %v5613_v53 = vpack.c.bf16 %v18471_v36, %v18470_v46  ;;  %v5614_v63 = vpack.c.bf16 %v18473_v7, %v18472_v43  ;;  %v18478_v4 = vmax.f32 %v16099_v37, 0.0  ;;  %v18479_v52 = vmax.f32 %v16103_v18, 0.0  ;;  %v18492_v21 = vld [vmem:[#allocation20_spill] sm:$0xff]  ;;  %v18498_v7 = vld [vmem:[#allocation23_spill] sm:$0xff] }
 0x651   :  { %v5615_v13 = vpack.c.bf16 %v18475_v24, %v18474_v51  ;;  %v18480_v14 = vmax.f32 %v16107_v41, 0.0  ;;  %v18481_v27 = vmax.f32 %v16111_v34, 0.0  ;;  %v18482_v57 = vmax.f32 %v16115_v9, 0.0  ;;  %v18500_v51 = vld [vmem:[#allocation19_spill] sm:$0xff]  ;;  %12214 = vmatpush3.bf16.msra.mxu1 %v13962_v19  ;;  %v13965_v19 = vld [vmem:[%s18221_s4 + $0x20] sm:$0xff]  }
 0x652   :  { %v5616_v12 = vpack.c.bf16 %v18478_v4, %v18477_v1  ;;  %v18483_v47 = vmax.f32 %v16119_v26, 0.0  ;;  %v18484_v37 = vmax.f32 %v16123_v23, 0.0  ;;  %v18485_v18 = vmax.f32 %v16127_v44, 0.0  ;;  %v18504_v1 = vld [vmem:[#allocation25_spill] sm:$0xff]  ;;  %12215 = vmatprep.subr.bf16.mxu1 %v13963_v49 }
 0x653   :  { %v5617_v6 = vpack.c.bf16 %v18480_v14, %v18479_v52  ;;  %v5618_v54 = vpack.c.bf16 %v18482_v57, %v18481_v27  ;;  %v18486_v41 = vmax.f32 %v16131_v20, 0.0  ;;  %v18487_v34 = vmax.f32 %v16143_v10, 0.0  ;;  %v18510_v57 = vld [vmem:[#allocation31_spill] sm:$0xff] }
 0x654   :  { %v5619_v60 = vpack.c.bf16 %v18484_v37, %v18483_v47  ;;  %v18488_v9 = vmax.f32 %v16147_v0, 0.0  ;;  %v18489_v48 = vmax.f32 %v16151_v3, 0.0  ;;  %v18490_v58 = vmax.f32 %v16155_v32, 0.0  ;;  %v18512_v37 = vld [vmem:[#allocation28_spill] sm:$0xff]  ;;  %12152 = vmatmul.mubr.bf16.gmra.mrb[4].mxu1 %v5608_v38 }
 0x655   :  { %v5620_v11 = vpack.c.bf16 %v18486_v41, %v18485_v18  ;;  %v18491_v26 = vmax.f32 %v16159_v55, 0.0  ;;  %v18493_v23 = vmax.f32 %v18492_v21, 0.0  ;;  %v18494_v44 = vmax.f32 %v16167_v25, 0.0  ;;  %12155 = vmatprep.mubr.bf16.mxu1 %v5609_v22  ;;  %12216 = vmatpush3.bf16.msra.mxu1 %v13963_v49  ;;  %v5431_v38 = vld [vmem:[#allocation3 + $0x18] sm:$0xff]  ;;  %v5432_v22 = vld [vmem:[#allocation3 + $0x20] sm:$0xff] }
 0x656   :  { %v5622_v31 = vpack.c.bf16 %v18488_v9, %v18487_v34  ;;  %v5623_v39 = vpack.c.bf16 %v18490_v58, %v18489_v48  ;;  %v18495_v20 = vmax.f32 %v16171_v16, 0.0  ;;  %v18496_v10 = vmax.f32 %v16175_v42, 0.0  ;;  %v18514_v34 = vld [vmem:[#allocation30_spill] sm:$0xff]  ;;  %v5437_v49 = vld [vmem:[#allocation3 + $0x60] sm:$0xff] }
 0x657   :  { %v5624_v46 = vpack.c.bf16 %v18493_v23, %v18491_v26  ;;  %v18497_v0 = vmax.f32 %v16179_v35, 0.0  ;;  %v18499_v3 = vmax.f32 %v18498_v7, 0.0  ;;  %v18501_v32 = vmax.f32 %v18500_v51, 0.0  ;;  %v13973_v23 = vld [vmem:[%s18221_s4 + $0xa0] sm:$0xff]   ;;  %v13975_v7 = vld [vmem:[%s18221_s4 + $0xb0] sm:$0xff]  }
 0x658   :  { %v5625_v36 = vpack.c.bf16 %v18495_v20, %v18494_v44  ;;  %v18503_v55 = vmax.f32 %v18502_v15, 0.0  ;;  %v18505_v4 = vmax.f32 %v18504_v1, 0.0  ;;  %v18506_v25 = vmax.f32 %v18432_v5, 0.0  ;;  %v5440_v44 = vld [vmem:[#allocation3 + $0x80] sm:$0xff]  ;;  %v5441_v20 = vld [vmem:[#allocation3 + $0x90] sm:$0xff] }
 0x659   :  { %v5626_v43 = vpack.c.bf16 %v18497_v0, %v18496_v10  ;;  %v5627_v24 = vpack.c.bf16 %v18501_v32, %v18499_v3  ;;  %v18507_v16 = vmax.f32 %v18433_v59, 0.0  ;;  %v18508_v42 = vmax.f32 %v18434_v29, 0.0  ;;  %v13964_v29 = vld [vmem:[%s18221_s4 + $0x18] sm:$0xff]   ;;  %v13974_v0 = vld [vmem:[%s18221_s4 + $0xa8] sm:$0xff]   ;;  %v5444_v51 = vld [vmem:[#allocation3 + $0xb0] sm:$0xff] }
 0x65a   :  { %v5628_v52 = vpack.c.bf16 %v18505_v4, %v18503_v55  ;;  %v18509_v35 = vmax.f32 %v18438_v45, 0.0  ;;  %v18511_v47 = vmax.f32 %v18510_v57, 0.0  ;;  %v18513_v18 = vmax.f32 %v18512_v37, 0.0  ;;  %v18516_v59 = vld [vmem:[#allocation39_spill] sm:$0xff]  ;;  %12217 = vmatprep.subr.bf16.mxu1 %v13964_v29  ;;  %v5443_v3 = vld [vmem:[#allocation3 + $0xa8] sm:$0xff]  ;;  %v5445_v32 = vld [vmem:[#allocation3 + $0xc0] sm:$0xff] }
 0x65b   :  { %v5629_v14 = vpack.c.bf16 %v18507_v16, %v18506_v25  ;;  %v18515_v9 = vmax.f32 %v18514_v34, 0.0  ;;  %v5633_v58 = vpack.c.bf16 %v5356_v40, %v5355_v17  ;;  %v5634_v26 = vpack.c.bf16 %v5358_v2, %v5357_v30  ;;  %12218 = vmatpush3.bf16.msra.mxu1 %v13964_v29  ;;  %v13966_v30 = vld [vmem:[%s18221_s4 + $0x28] sm:$0xff]   ;;  %v13967_v17 = vld [vmem:[%s18221_s4 + $0x30] sm:$0xff]   ;;  %v13968_v40 = vld [vmem:[%s18221_s4 + $0x38] sm:$0xff]  }
 0x65c   :  { %v5630_v27 = vpack.c.bf16 %v18509_v35, %v18508_v42  ;;  %v5631_v41 = vpack.c.bf16 %v18513_v18, %v18511_v47  ;;  %v5635_v5 = vpack.c.bf16 %v5360_v61, %v5359_v33  ;;  %v18517_v45 = vmax.f32 %v18516_v59, 0.0  ;;  %12219 = vmatprep.subr.bf16.mxu1 %v13965_v19  ;;  %12156 = vmatmul.mubr.bf16.gmra.mrb[8].mxu1 %v5610_v62  ;;  %v5574_v2 = vld [vmem:[#allocation3 + $0x1b9] sm:$0xff]  ;;  %v5433_v62 = vld [vmem:[#allocation3 + $0x30] sm:$0xff]  ;;  %v5454_v37 = vld [vmem:[#allocation3 + $0x128] sm:$0xff] }
 0x65d   :  { %v5632_v48 = vpack.c.bf16 %v5354_v8, %v18515_v9  ;;  %12159 = vmatprep.mubr.bf16.mxu1 %v5611_v28  ;;  %v13969_v28 = vld [vmem:[%s18221_s4 + $0x80] sm:$0xff]   ;;  %v5573_v8 = vld [vmem:[#allocation3 + $0x1b1] sm:$0xff]  ;;  %v16598_v15 = vpack.c.bf16 %v5444_v51, %v5443_v3  ;;  %v5459_v29 = vld [vmem:[#allocation3 + $0x168] sm:$0xff] }
 0x65e   :  { %v5636_v21 = vpack.c.bf16 %v18517_v45, %v5361_v50  ;;  %v5621_v33 = vpack.c.bf16 %v5574_v2, %v5573_v8  ;;  %v14029_v61 = vld [vmem:[#allocation3] sm:$0xff]  ;;  %v13976_v55 = vld [vmem:[%s18221_s4 + $0xb8] sm:$0xff]   ;;  %v5449_v16 = vld [vmem:[#allocation3 + $0xf0] sm:$0xff] }
 0x65f   :  { %12220 = vmatpush3.bf16.msra.mxu1 %v13965_v19  ;;  %v16559_v50 = vpack.c.bf16 %v14029_v61, %v14029_v61  ;;  %v16610_v4 = vld [vmem:[%s18221_s4 + $0xc0] sm:$0xff]   ;;  %v5452_v57 = vld [vmem:[#allocation3 + $0x110] sm:$0xff]  ;;  %v5455_v34 = vld [vmem:[#allocation3 + $0x138] sm:$0xff] }
 0x660   :  { %12221 = vmatprep.subr.bf16.mxu1 %v13966_v30  ;;  %v5448_v25 = vld [vmem:[#allocation3 + $0xe0] sm:$0xff]  ;;  %v5460_v59 = vld [vmem:[#allocation3 + $0x170] sm:$0xff]  ;;  %v5467_v8 = vld [vmem:[#allocation3 + $0x1f8] sm:$0xff] }
 0x661   :  { %v5453_v47 = vld [vmem:[#allocation3 + $0x120] sm:$0xff]  ;;  %v16631_v45 = vpack.c.bf16 %v5460_v59, %v5459_v29  ;;  %v5464_v19 = vld [vmem:[#allocation3 + $0x1d0] sm:$0xff]  ;;  %v5470_v61 = vld [vmem:[#allocation3 + $0x218] sm:$0xff] }
 0x662   :  { %v5456_v9 = vld [vmem:[#allocation3 + $0x140] sm:$0xff]  ;;  %v5483_v51 = vld [vmem:[#allocation3 + $0x2b8] sm:$0xff] }
 0x663   :  { %12222 = vmatpush3.bf16.msra.mxu1 %v13966_v30  ;;  %v5465_v30 = vld [vmem:[#allocation3 + $0x1e0] sm:$0xff] }
 0x664   :  { %12223 = vmatprep.subr.bf16.mxu1 %v13967_v17  ;;  %12160 = vmatmul.mubr.bf16.gmra.mrb[12].mxu1 %v5612_v56  ;;  %v5434_v56 = vld [vmem:[#allocation3 + $0x38] sm:$0xff]  ;;  %v5468_v2 = vld [vmem:[#allocation3 + $0x200] sm:$0xff] }
 0x665   :  { %12163 = vmatprep.mubr.bf16.mxu1 %v5613_v53  ;;  %v16562_v53 = vpack.c.bf16 %v5432_v22, %v5431_v38  ;;  %v16641_v38 = vpack.c.bf16 %v5468_v2, %v5467_v8  ;;  %v13978_v2 = vld [vmem:[%s18221_s4 + $0xc8] sm:$0xff]  }
 0x667   :  { %12224 = vmatpush3.bf16.msra.mxu1 %v13967_v17  ;;  %v5466_v17 = vld [vmem:[#allocation3 + $0x1e8] sm:$0xff] }
 0x668   :  { %12225 = vmatprep.subr.bf16.mxu1 %v13968_v40 }
 0x66b   :  { %12226 = vmatpush3.bf16.msra.mxu1 %v13968_v40 }
 0x66c   :  { %12291 = vmatprep.subr.bf16.mxu1 %v13969_v28  ;;  %12164 = vmatmul.mubr.bf16.gmra.mrb[16].mxu1 %v5614_v63  ;;  %v13970_v63 = vld [vmem:[%s18221_s4 + $0x88] sm:$0xff]  }
 0x66d   :  { %12167 = vmatprep.mubr.bf16.mxu1 %v5615_v13  ;;  %v16567_v13 = vpack.c.bf16 %v5434_v56, %v5433_v62  ;;  %v5472_v62 = vld [vmem:[#allocation3 + $0x230] sm:$0xff]  ;;  %v5473_v56 = vld [vmem:[#allocation3 + $0x240] sm:$0xff] }
 0x674   :  { %12168 = vmatmul.mubr.bf16.gmra.mrb[20].mxu1 %v5616_v12  ;;  %v13971_v12 = vld [vmem:[%s18221_s4 + $0x90] sm:$0xff]  }
 0x675   :  { %12171 = vmatprep.mubr.bf16.mxu1 %v5617_v6  ;;  %v5435_v6 = vld [vmem:[#allocation3 + $0x48] sm:$0xff] }
 0x67c   :  { %12172 = vmatmul.mubr.bf16.gmra.mrb[24].mxu1 %v5618_v54  ;;  %v5436_v54 = vld [vmem:[#allocation3 + $0x50] sm:$0xff] }
 0x67d   :  { %12175 = vmatprep.mubr.bf16.mxu1 %v5619_v60  ;;  %v5438_v60 = vld [vmem:[#allocation3 + $0x68] sm:$0xff] }
 0x684   :  { %12176 = vmatmul.mubr.bf16.gmra.mrb[28].mxu1 %v5620_v11  ;;  %v16574_v11 = vpack.c.bf16 %v5436_v54, %v5435_v6  ;;  %v5475_v54 = vld [vmem:[#allocation3 + $0x258] sm:$0xff] }
 0x685   :  { %12179 = vmatprep.mubr.bf16.mxu1 %v5621_v33  ;;  %v5469_v33 = vld [vmem:[#allocation3 + $0x210] sm:$0xff] }
 0x686   :  { %v16643_v22 = vpack.c.bf16 %v5470_v61, %v5469_v33  ;;  %v13979_v61 = vld [vmem:[%s18221_s4 + $0xd0] sm:$0xff]  }
 0x68c   :  { %12180 = vmatmul.mubr.bf16.gmra.mrb[32].mxu1 %v5622_v31  ;;  %v13972_v31 = vld [vmem:[%s18221_s4 + $0x98] sm:$0xff]  }
 0x68d   :  { %12183 = vmatprep.mubr.bf16.mxu1 %v5623_v39  ;;  %v16579_v39 = vpack.c.bf16 %v5438_v60, %v5437_v49  ;;  %v5476_v49 = vld [vmem:[#allocation3 + $0x260] sm:$0xff]  ;;  %v5477_v60 = vld [vmem:[#allocation3 + $0x270] sm:$0xff] }
 0x694   :  { %12184 = vmatmul.mubr.bf16.gmra.mrb[36].mxu1 %v5624_v46  ;;  %v5439_v46 = vld [vmem:[#allocation3 + $0x78] sm:$0xff] }
 0x695   :  { %12187 = vmatprep.mubr.bf16.mxu1 %v5625_v36  ;;  %v5442_v36 = vld [vmem:[#allocation3 + $0x98] sm:$0xff]  ;;  %v16586_v10 = vpack.c.bf16 %v5440_v44, %v5439_v46  ;;  %v5479_v44 = vld [vmem:[#allocation3 + $0x288] sm:$0xff] }
 0x69c   :  { %12188 = vmatmul.mubr.bf16.gmra.mrb[40].mxu1 %v5626_v43  ;;  %v16591_v43 = vpack.c.bf16 %v5442_v36, %v5441_v20  ;;  %v5480_v20 = vld [vmem:[#allocation3 + $0x290] sm:$0xff]  ;;  %v5481_v36 = vld [vmem:[#allocation3 + $0x2a0] sm:$0xff] }
 0x69d   :  { %12191 = vmatprep.mubr.bf16.mxu1 %v5627_v24  ;;  %v5446_v24 = vld [vmem:[#allocation3 + $0xc8] sm:$0xff] }
 0x69e   :  { %v16603_v1 = vpack.c.bf16 %v5446_v24, %v5445_v32  ;;  %v5484_v32 = vld [vmem:[#allocation3 + $0x2c0] sm:$0xff]  ;;  %v5485_v24 = vld [vmem:[#allocation3 + $0x2d0] sm:$0xff] }
 0x6a4   :  { %12192 = vmatmul.mubr.bf16.gmra.mrb[44].mxu1 %v5628_v52  ;;  %v5447_v52 = vld [vmem:[#allocation3 + $0xd8] sm:$0xff] }
 0x6a5   :  { %12195 = vmatprep.mubr.bf16.mxu1 %v5629_v14  ;;  %v5450_v14 = vld [vmem:[#allocation3 + $0xf8] sm:$0xff]  ;;  %v16612_v42 = vpack.c.bf16 %v5448_v25, %v5447_v52  ;;  %v16665_v52 = vpack.c.bf16 %v5484_v32, %v5483_v51  ;;  %v13982_v51 = vld [vmem:[%s18221_s4 + $0xe8] sm:$0xff]  }
 0x6a6   :  { %v16615_v35 = vpack.c.bf16 %v5450_v14, %v5449_v16  ;;  %v5487_v16 = vld [vmem:[#allocation3 + $0x2e8] sm:$0xff]  ;;  %v5488_v14 = vld [vmem:[#allocation3 + $0x2f0] sm:$0xff] }
 0x6ac   :  { %12196 = vmatmul.mubr.bf16.gmra.mrb[48].mxu1 %v5630_v27  ;;  %v5451_v27 = vld [vmem:[#allocation3 + $0x108] sm:$0xff] }
 0x6ad   :  { %12199 = vmatprep.mubr.bf16.mxu1 %v5631_v41  ;;  %v16619_v18 = vpack.c.bf16 %v5452_v57, %v5451_v27  ;;  %v16621_v41 = vpack.c.bf16 %v5454_v37, %v5453_v47  ;;  %v5489_v27 = vld [vmem:[#allocation3 + $0x300] sm:$0xff]  ;;  %v5490_v57 = vld [vmem:[#allocation3 + $0x308] sm:$0xff]  ;;  %v16671_v47 = vpack.c.bf16 %v5488_v14, %v5487_v16  ;;  %v6342_v16 = vld [vmem:[#allocation3 + $0xb2] sm:$0xff] }
 0x6ae   :  { %v16673_v37 = vpack.c.bf16 %v5490_v57, %v5489_v27  ;;  %v6343_v14 = vld [vmem:[#allocation3 + $0xc2] sm:$0xff]  ;;  %v6344_v27 = vld [vmem:[#allocation3 + $0xca] sm:$0xff] }
 0x6b4   :  { %12200 = vmatmul.mubr.bf16.gmra.mrb[52].mxu1 %v5632_v48  ;;  %v5457_v48 = vld [vmem:[#allocation3 + $0x150] sm:$0xff] }
 0x6b5   :  { %12203 = vmatprep.mubr.bf16.mxu1 %v5633_v58  ;;  %v5458_v58 = vld [vmem:[#allocation3 + $0x158] sm:$0xff] }
 0x6bc   :  { %12204 = vmatmul.mubr.bf16.gmra.mrb[56].mxu1 %v5634_v26  ;;  %v16625_v26 = vpack.c.bf16 %v5456_v9, %v5455_v34  ;;  %v6327_v34 = vld [vmem:[#allocation3 + $0x2] sm:$0xff]  ;;  %v6328_v9 = vld [vmem:[#allocation3 + $0xa] sm:$0xff] }
 0x6bd   :  { %12207 = vmatprep.mubr.bf16.mxu1 %v5635_v5  ;;  %v16627_v5 = vpack.c.bf16 %v5458_v58, %v5457_v48  ;;  %v5491_v48 = vld [vmem:[#allocation3 + $0x318] sm:$0xff]  ;;  %v5492_v58 = vld [vmem:[#allocation3 + $0x320] sm:$0xff]  ;;  %v6391_v29 = vpack.c.bf16 %v6328_v9, %v6327_v34  ;;  %v16722_v9 = vpack.c.bf16 %v6344_v27, %v6343_v14 }
 0x6be   :  { %v16677_v59 = vpack.c.bf16 %v5492_v58, %v5491_v48  ;;  %v13984_v34 = vld [vmem:[%s18221_s4 + $0xf8] sm:$0xff]   ;;  %v16729_v48 = vld [vmem:[%s18221_s4 + $0x100] sm:$0xff]  }
 0x6bf   :  { %v6345_v58 = vld [vmem:[#allocation3 + $0xda] sm:$0xff] }
 0x6c4   :  { %12208 = vmatmul.mubr.bf16.gmra.mrb[60].mxu1 %v5636_v21  ;;  %v5463_v21 = vld [vmem:[#allocation3 + $0x1c8] sm:$0xff] }
 0x6c5   :  { %12227 = vmatprep.mubr.bf16.mxu1 %v16559_v50  ;;  %v16635_v40 = vpack.c.bf16 %v5464_v19, %v5463_v21  ;;  %v6329_v21 = vld [vmem:[#allocation3 + $0x1a] sm:$0xff]  ;;  %v6330_v19 = vld [vmem:[#allocation3 + $0x22] sm:$0xff] }
 0x6c6   :  { %v16680_v8 = vpack.c.bf16 %v6330_v19, %v6329_v21  ;;  %v6347_v21 = vld [vmem:[#allocation3 + $0xf2] sm:$0xff]  ;;  %v6348_v19 = vld [vmem:[#allocation3 + $0xfa] sm:$0xff] }
 0x6cc   :  { %12228 = vmatmul.mubr.bf16.vlgmr.msra.gmra.mrb[0].mxu1 %v16562_v53 }
 0x6cd   :  { %12231 = vmatprep.mubr.bf16.mxu1 %v16567_v13  ;;  %12292 = vmatpush3.bf16.msra.mxu1 %v13969_v28  ;;  %v16637_v28 = vpack.c.bf16 %v5466_v17, %v5465_v30  ;;  %v6331_v30 = vld [vmem:[#allocation3 + $0x32] sm:$0xff]  ;;  %v6332_v17 = vld [vmem:[#allocation3 + $0x3a] sm:$0xff] }
 0x6ce   :  { %12293 = vmatprep.subr.bf16.mxu1 %v13970_v63  ;;  %v16685_v33 = vpack.c.bf16 %v6332_v17, %v6331_v30  ;;  %v16734_v17 = vpack.c.bf16 %v6348_v19, %v6347_v21  ;;  %v6364_v21 = vld [vmem:[#allocation3 + $0x1ea] sm:$0xff] }
 0x6d1   :  { %12294 = vmatpush3.bf16.msra.mxu1 %v13970_v63  ;;  %v5474_v63 = vld [vmem:[#allocation3 + $0x248] sm:$0xff] }
 0x6d2   :  { %12295 = vmatprep.subr.bf16.mxu1 %v13971_v12  ;;  %v16649_v6 = vpack.c.bf16 %v5474_v63, %v5473_v56  ;;  %v6335_v56 = vld [vmem:[#allocation3 + $0x62] sm:$0xff]  ;;  %v6336_v63 = vld [vmem:[#allocation3 + $0x6a] sm:$0xff] }
 0x6d4   :  { %12232 = vmatmul.mubr.bf16.gmra.mrb[4].mxu1 %v16574_v11 }
 0x6d5   :  { %12235 = vmatprep.mubr.bf16.mxu1 %v16579_v39  ;;  %12296 = vmatpush3.bf16.msra.mxu1 %v13971_v12 }
 0x6d6   :  { %12297 = vmatprep.subr.bf16.mxu1 %v13972_v31 }
 0x6d9   :  { %12298 = vmatpush3.bf16.msra.mxu1 %v13972_v31  ;;  %v5478_v31 = vld [vmem:[#allocation3 + $0x278] sm:$0xff] }
 0x6da   :  { %12299 = vmatprep.subr.bf16.mxu1 %v13973_v23  ;;  %v16655_v46 = vpack.c.bf16 %v5478_v31, %v5477_v60  ;;  %v16698_v60 = vpack.c.bf16 %v6336_v63, %v6335_v56  ;;  %v6337_v31 = vld [vmem:[#allocation3 + $0x7a] sm:$0xff] }
 0x6dc   :  { %12236 = vmatmul.mubr.bf16.gmra.mrb[8].mxu1 %v16586_v10 }
 0x6dd   :  { %12239 = vmatprep.mubr.bf16.mxu1 %v16591_v43  ;;  %12300 = vmatpush3.bf16.msra.mxu1 %v13973_v23  ;;  %v16653_v23 = vpack.c.bf16 %v5476_v49, %v5475_v54  ;;  %v13980_v49 = vld [vmem:[%s18221_s4 + $0xd8] sm:$0xff]  }
 0x6de   :  { %12301 = vmatprep.subr.bf16.mxu1 %v13974_v0 }
 0x6e1   :  { %12302 = vmatpush3.bf16.msra.mxu1 %v13974_v0  ;;  %v5482_v0 = vld [vmem:[#allocation3 + $0x2a8] sm:$0xff] }
 0x6e2   :  { %12303 = vmatprep.subr.bf16.mxu1 %v13975_v7  ;;  %v16661_v3 = vpack.c.bf16 %v5482_v0, %v5481_v36  ;;  %v6340_v36 = vld [vmem:[#allocation3 + $0x9a] sm:$0xff] }
 0x6e4   :  { %12240 = vmatmul.mubr.bf16.gmra.mrb[12].mxu1 %v16598_v15 }
 0x6e5   :  { %12243 = vmatprep.mubr.bf16.mxu1 %v16603_v1  ;;  %12304 = vmatpush3.bf16.msra.mxu1 %v13975_v7  ;;  %v16659_v7 = vpack.c.bf16 %v5480_v20, %v5479_v44  ;;  %v6338_v44 = vld [vmem:[#allocation3 + $0x82] sm:$0xff]  ;;  %v6339_v20 = vld [vmem:[#allocation3 + $0x92] sm:$0xff] }
 0x6e6   :  { %12305 = vmatprep.subr.bf16.mxu1 %v13976_v55  ;;  %v16705_v0 = vpack.c.bf16 %v6338_v44, %v6337_v31  ;;  %v16710_v32 = vpack.c.bf16 %v6340_v36, %v6339_v20  ;;  %v6355_v31 = vld [vmem:[#allocation3 + $0x152] sm:$0xff]  ;;  %v6356_v44 = vld [vmem:[#allocation3 + $0x15a] sm:$0xff] }
 0x6e7   :  { %v16746_v36 = vpack.c.bf16 %v6356_v44, %v6355_v31  ;;  %v6369_v44 = vld [vmem:[#allocation3 + $0x22a] sm:$0xff] }
 0x6e9   :  { %12306 = vmatpush3.bf16.msra.mxu1 %v13976_v55  ;;  %v5486_v55 = vld [vmem:[#allocation3 + $0x2d8] sm:$0xff] }
 0x6ea   :  { %12371 = vmatprep.subr.bf16.mxu1 %v16610_v4  ;;  %v16667_v25 = vpack.c.bf16 %v5486_v55, %v5485_v24  ;;  %v13983_v24 = vld [vmem:[%s18221_s4 + $0xf0] sm:$0xff]  }
 0x6eb   :  { %v6341_v55 = vld [vmem:[#allocation3 + $0xaa] sm:$0xff] }
 0x6ec   :  { %12244 = vmatmul.mubr.bf16.gmra.mrb[16].mxu1 %v16612_v42  ;;  %v16717_v57 = vpack.c.bf16 %v6342_v16, %v6341_v55  ;;  %v6357_v55 = vld [vmem:[#allocation3 + $0x16a] sm:$0xff]  ;;  %v6358_v16 = vld [vmem:[#allocation3 + $0x172] sm:$0xff] }
 0x6ed   :  { %12247 = vmatprep.mubr.bf16.mxu1 %v16615_v35  ;;  %v16750_v27 = vpack.c.bf16 %v6358_v16, %v6357_v55  ;;  %v6372_v55 = vld [vmem:[#allocation3 + $0x24a] sm:$0xff] }
 0x6f4   :  { %12248 = vmatmul.mubr.bf16.gmra.mrb[20].mxu1 %v16619_v18 }
 0x6f5   :  { %12251 = vmatprep.mubr.bf16.mxu1 %v16621_v41 }
 0x6fc   :  { %12252 = vmatmul.mubr.bf16.gmra.mrb[24].mxu1 %v16625_v26 }
 0x6fd   :  { %12255 = vmatprep.mubr.bf16.mxu1 %v16627_v5 }
 0x704   :  { %12256 = vmatmul.mubr.bf16.gmra.mrb[28].mxu1 %v16631_v45 }
 0x705   :  { %12259 = vmatprep.mubr.bf16.mxu1 %v16559_v50  ;;  %v5471_v50 = vld [vmem:[#allocation3 + $0x228] sm:$0xff] }
 0x706   :  { %v16647_v12 = vpack.c.bf16 %v5472_v62, %v5471_v50  ;;  %v6333_v50 = vld [vmem:[#allocation3 + $0x4a] sm:$0xff]  ;;  %v6334_v62 = vld [vmem:[#allocation3 + $0x52] sm:$0xff] }
 0x707   :  { %v16693_v54 = vpack.c.bf16 %v6334_v62, %v6333_v50  ;;  %v6351_v50 = vld [vmem:[#allocation3 + $0x122] sm:$0xff]  ;;  %v6352_v62 = vld [vmem:[#allocation3 + $0x12a] sm:$0xff] }
 0x708   :  { %v16740_v63 = vpack.c.bf16 %v6352_v62, %v6351_v50  ;;  %v6366_v50 = vld [vmem:[#allocation3 + $0x202] sm:$0xff]  ;;  %v6367_v62 = vld [vmem:[#allocation3 + $0x212] sm:$0xff] }
 0x70c   :  { %12260 = vmatmul.mubr.bf16.gmra.mrb[32].mxu1 %v16635_v40 }
 0x70d   :  { %12263 = vmatprep.mubr.bf16.mxu1 %v16637_v28 }
 0x714   :  { %12264 = vmatmul.mubr.bf16.gmra.mrb[36].mxu1 %v16641_v38 }
 0x715   :  { %12267 = vmatprep.mubr.bf16.mxu1 %v16643_v22 }
 0x71c   :  { %12268 = vmatmul.mubr.bf16.gmra.mrb[40].mxu1 %v16647_v12 }
 0x71d   :  { %12271 = vmatprep.mubr.bf16.mxu1 %v16649_v6 }
 0x724   :  { %12272 = vmatmul.mubr.bf16.gmra.mrb[44].mxu1 %v16653_v23 }
 0x725   :  { %12275 = vmatprep.mubr.bf16.mxu1 %v16655_v46 }
 0x72c   :  { %12276 = vmatmul.mubr.bf16.gmra.mrb[48].mxu1 %v16659_v7 }
 0x72d   :  { %12279 = vmatprep.mubr.bf16.mxu1 %v16661_v3 }
 0x734   :  { %12280 = vmatmul.mubr.bf16.gmra.mrb[52].mxu1 %v16665_v52 }
 0x735   :  { %12283 = vmatprep.mubr.bf16.mxu1 %v16667_v25 }
 0x73c   :  { %12284 = vmatmul.mubr.bf16.gmra.mrb[56].mxu1 %v16671_v47 }
 0x73d   :  { %12287 = vmatprep.mubr.bf16.mxu1 %v16673_v37 }
 0x744   :  { %12288 = vmatmul.mubr.bf16.gmra.mrb[60].mxu1 %v16677_v59 }
 0x745   :  { %12307 = vmatprep.mubr.bf16.mxu1 %v6391_v29  ;;  %v6346_v29 = vld [vmem:[#allocation3 + $0xe2] sm:$0xff] }
 0x746   :  { %v16731_v30 = vpack.c.bf16 %v6346_v29, %v6345_v58  ;;  %v6362_v58 = vld [vmem:[#allocation3 + $0x1d2] sm:$0xff]  ;;  %v6363_v29 = vld [vmem:[#allocation3 + $0x1e2] sm:$0xff] }
 0x74c   :  { %12308 = vmatmul.mubr.bf16.vlgmr.msra.gmra.mrb[0].mxu1 %v16680_v8 }
 0x74d   :  { %12311 = vmatprep.mubr.bf16.mxu1 %v16685_v33  ;;  %12372 = vmatpush3.bf16.msra.mxu1 %v16610_v4  ;;  %v13981_v4 = vld [vmem:[%s18221_s4 + $0xe0] sm:$0xff]  }
 0x74e   :  { %12373 = vmatprep.subr.bf16.mxu1 %v13978_v2 }
 0x751   :  { %12374 = vmatpush3.bf16.msra.mxu1 %v13978_v2  ;;  %v6349_v2 = vld [vmem:[#allocation3 + $0x10a] sm:$0xff] }
 0x752   :  { %12375 = vmatprep.subr.bf16.mxu1 %v13979_v61 }
 0x754   :  { %12312 = vmatmul.mubr.bf16.gmra.mrb[4].mxu1 %v16693_v54 }
 0x755   :  { %12315 = vmatprep.mubr.bf16.mxu1 %v16698_v60  ;;  %12376 = vmatpush3.bf16.msra.mxu1 %v13979_v61  ;;  %v6350_v61 = vld [vmem:[#allocation3 + $0x112] sm:$0xff] }
 0x756   :  { %12377 = vmatprep.subr.bf16.mxu1 %v13980_v49  ;;  %v16738_v56 = vpack.c.bf16 %v6350_v61, %v6349_v2  ;;  %v16755_v2 = vpack.c.bf16 %v6364_v21, %v6363_v29  ;;  %v6365_v61 = vld [vmem:[#allocation3 + $0x1fa] sm:$0xff]  ;;  %v6375_v29 = vld [vmem:[#allocation3 + $0x272] sm:$0xff] }
 0x757   :  { %v6376_v21 = vld [vmem:[#allocation3 + $0x27a] sm:$0xff] }
 0x759   :  { %12378 = vmatpush3.bf16.msra.mxu1 %v13980_v49  ;;  %v6353_v49 = vld [vmem:[#allocation3 + $0x13a] sm:$0xff] }
 0x75a   :  { %12379 = vmatprep.subr.bf16.mxu1 %v13981_v4 }
 0x75c   :  { %12316 = vmatmul.mubr.bf16.gmra.mrb[8].mxu1 %v16705_v0 }
 0x75d   :  { %12319 = vmatprep.mubr.bf16.mxu1 %v16710_v32  ;;  %12380 = vmatpush3.bf16.msra.mxu1 %v13981_v4  ;;  %v6354_v4 = vld [vmem:[#allocation3 + $0x142] sm:$0xff] }
 0x75e   :  { %12381 = vmatprep.subr.bf16.mxu1 %v13982_v51  ;;  %v16744_v20 = vpack.c.bf16 %v6354_v4, %v6353_v49  ;;  %v6368_v49 = vld [vmem:[#allocation3 + $0x21a] sm:$0xff]  ;;  %v16759_v4 = vpack.c.bf16 %v6366_v50, %v6365_v61  ;;  %v16773_v50 = vpack.c.bf16 %v6376_v21, %v6375_v29  ;;  %v6383_v29 = vld [vmem:[#allocation3 + $0x2d2] sm:$0xff] }
 0x75f   :  { %v16761_v31 = vpack.c.bf16 %v6368_v49, %v6367_v62  ;;  %v6377_v62 = vld [vmem:[#allocation3 + $0x28a] sm:$0xff]  ;;  %v6378_v49 = vld [vmem:[#allocation3 + $0x292] sm:$0xff]  ;;  %v6384_v21 = vld [vmem:[#allocation3 + $0x2da] sm:$0xff] }
 0x760   :  { %18520 = vst [vmem:[#allocation14_spill] sm:$0xff] %v16773_v50 }
 0x761   :  { %12382 = vmatpush3.bf16.msra.mxu1 %v13982_v51  ;;  %v6359_v51 = vld [vmem:[#allocation3 + $0x1b2] sm:$0xff] }
 0x762   :  { %12383 = vmatprep.subr.bf16.mxu1 %v13983_v24 }
 0x764   :  { %12320 = vmatmul.mubr.bf16.gmra.mrb[12].mxu1 %v16717_v57 }
 0x765   :  { %12323 = vmatprep.mubr.bf16.mxu1 %v16722_v9  ;;  %12384 = vmatpush3.bf16.msra.mxu1 %v13983_v24  ;;  %v6360_v24 = vld [vmem:[#allocation3 + $0x1ba] sm:$0xff] }
 0x766   :  { %12385 = vmatprep.subr.bf16.mxu1 %v13984_v34  ;;  %v6407_v14 = vpack.c.bf16 %v6360_v24, %v6359_v51  ;;  %v6370_v51 = vld [vmem:[#allocation3 + $0x232] sm:$0xff]  ;;  %v6371_v24 = vld [vmem:[#allocation3 + $0x242] sm:$0xff] }
 0x767   :  { %v16765_v16 = vpack.c.bf16 %v6370_v51, %v6369_v44  ;;  %v6379_v44 = vld [vmem:[#allocation3 + $0x2a2] sm:$0xff]  ;;  %v6380_v51 = vld [vmem:[#allocation3 + $0x2aa] sm:$0xff] }
 0x769   :  { %12386 = vmatpush3.bf16.msra.mxu1 %v13984_v34  ;;  %v6361_v34 = vld [vmem:[#allocation3 + $0x1ca] sm:$0xff] }
 0x76a   :  { %12451 = vmatprep.subr.bf16.mxu1 %v16729_v48  ;;  %v16753_v19 = vpack.c.bf16 %v6362_v58, %v6361_v34  ;;  %v6373_v34 = vld [vmem:[#allocation3 + $0x25a] sm:$0xff]  ;;  %v6374_v58 = vld [vmem:[#allocation3 + $0x262] sm:$0xff] }
 0x76b   :  { %v16771_v61 = vpack.c.bf16 %v6374_v58, %v6373_v34  ;;  %v6381_v34 = vld [vmem:[#allocation3 + $0x2ba] sm:$0xff]  ;;  %v6382_v58 = vld [vmem:[#allocation3 + $0x2c2] sm:$0xff] }
 0x76c   :  { %12324 = vmatmul.mubr.bf16.gmra.mrb[16].mxu1 %v16731_v30 }
 0x76d   :  { %12327 = vmatprep.mubr.bf16.mxu1 %v16734_v17  ;;  %18519 = vst [vmem:[#allocation13_spill] sm:$0xff] %v16771_v61 }
 0x774   :  { %12328 = vmatmul.mubr.bf16.gmra.mrb[20].mxu1 %v16738_v56 }
 0x775   :  { %12331 = vmatprep.mubr.bf16.mxu1 %v16740_v63 }
 0x77c   :  { %12332 = vmatmul.mubr.bf16.gmra.mrb[24].mxu1 %v16744_v20 }
 0x77d   :  { %12335 = vmatprep.mubr.bf16.mxu1 %v16746_v36 }
 0x784   :  { %12336 = vmatmul.mubr.bf16.gmra.mrb[28].mxu1 %v16750_v27 }
 0x785   :  { %12339 = vmatprep.mubr.bf16.mxu1 %v6407_v14  ;;  %v16767_v14 = vpack.c.bf16 %v6372_v55, %v6371_v24  ;;  %v16777_v24 = vpack.c.bf16 %v6378_v49, %v6377_v62  ;;  %v16779_v55 = vpack.c.bf16 %v6380_v51, %v6379_v44  ;;  %v6385_v62 = vld [vmem:[#allocation3 + $0x2ea] sm:$0xff]  ;;  %v6386_v49 = vld [vmem:[#allocation3 + $0x2f2] sm:$0xff]  ;;  %v6387_v44 = vld [vmem:[#allocation3 + $0x302] sm:$0xff] }
 0x786   :  { %v6388_v51 = vld [vmem:[#allocation3 + $0x30a] sm:$0xff] }
 0x787   :  { %18518 = vst [vmem:[#allocation36_spill] sm:$0xff] %v16767_v14  ;;  %18521 = vst [vmem:[#allocation16_spill] sm:$0xff] %v16777_v24 }
 0x78c   :  { %12340 = vmatmul.mubr.bf16.gmra.mrb[32].mxu1 %v16753_v19 }
 0x78d   :  { %12343 = vmatprep.mubr.bf16.mxu1 %v16755_v2 }
 0x794   :  { %12344 = vmatmul.mubr.bf16.gmra.mrb[36].mxu1 %v16759_v4 }
 0x795   :  { %12347 = vmatprep.mubr.bf16.mxu1 %v16761_v31 }
 0x79c   :  { %12348 = vmatmul.mubr.bf16.gmra.mrb[40].mxu1 %v16765_v16 }
 0x79d   :  { %12351 = vmatprep.mubr.bf16.mxu1 %v16767_v14  ;;  %v16783_v14 = vpack.c.bf16 %v6382_v58, %v6381_v34  ;;  %v6389_v34 = vld [vmem:[#allocation3 + $0x31a] sm:$0xff]  ;;  %v6390_v58 = vld [vmem:[#allocation3 + $0x322] sm:$0xff] }
 0x7a4   :  { %12352 = vmatmul.mubr.bf16.gmra.mrb[44].mxu1 %v16771_v61  ;;  %v16785_v61 = vpack.c.bf16 %v6384_v21, %v6383_v29  ;;  %v16795_v29 = vpack.c.bf16 %v6390_v58, %v6389_v34  ;;  %v13986_v21 = vld [vmem:[%s18221_s4 + $0x108] sm:$0xff]   ;;  %v7366_v34 = vld [vmem:[#allocation3 + $0xb1] sm:$0xff] }
 0x7a5   :  { %12355 = vmatprep.mubr.bf16.mxu1 %v16773_v50  ;;  %v16789_v50 = vpack.c.bf16 %v6386_v49, %v6385_v62  ;;  %v13987_v62 = vld [vmem:[%s18221_s4 + $0x110] sm:$0xff]  }
 0x7a6   :  { %v7363_v49 = vld [vmem:[#allocation3 + $0x91] sm:$0xff] }
 0x7ac   :  { %12356 = vmatmul.mubr.bf16.gmra.mrb[48].mxu1 %v16777_v24  ;;  %v16791_v24 = vpack.c.bf16 %v6388_v51, %v6387_v44  ;;  %v7364_v44 = vld [vmem:[#allocation3 + $0x99] sm:$0xff]  ;;  %v7365_v51 = vld [vmem:[#allocation3 + $0xa9] sm:$0xff] }
 0x7ad   :  { %12359 = vmatprep.mubr.bf16.mxu1 %v16779_v55  ;;  %v16883_v58 = vpack.c.bf16 %v7364_v44, %v7363_v49 }
 0x7b4   :  { %12360 = vmatmul.mubr.bf16.gmra.mrb[52].mxu1 %v16783_v14 }
 0x7b5   :  { %12363 = vmatprep.mubr.bf16.mxu1 %v16785_v61 }
 0x7bc   :  { %12364 = vmatmul.mubr.bf16.gmra.mrb[56].mxu1 %v16789_v50 }
 0x7bd   :  { %12367 = vmatprep.mubr.bf16.mxu1 %v16791_v24 }
 0x7c4   :  { %12368 = vmatmul.mubr.bf16.gmra.mrb[60].mxu1 %v16795_v29 }
 0x7c5   :  { %12387 = vmatprep.mubr.bf16.mxu1 %v16562_v53  ;;  %v13988_v53 = vld [vmem:[%s18221_s4 + $0x118] sm:$0xff]  }
 0x7cc   :  { %12388 = vmatmul.mubr.bf16.vlgmr.msra.gmra.mrb[0].mxu1 %v16567_v13  ;;  %v13989_v13 = vld [vmem:[%s18221_s4 + $0x120] sm:$0xff]  }
 0x7cd   :  { %12391 = vmatprep.mubr.bf16.mxu1 %v16574_v11  ;;  %12452 = vmatpush3.bf16.msra.mxu1 %v16729_v48  ;;  %v13990_v11 = vld [vmem:[%s18221_s4 + $0x128] sm:$0xff]   ;;  %v13997_v48 = vld [vmem:[%s18221_s4 + $0x160] sm:$0xff]  }
 0x7ce   :  { %12453 = vmatprep.subr.bf16.mxu1 %v13986_v21 }
 0x7d1   :  { %12454 = vmatpush3.bf16.msra.mxu1 %v13986_v21  ;;  %v13998_v21 = vld [vmem:[%s18221_s4 + $0x168] sm:$0xff]  }
 0x7d2   :  { %12455 = vmatprep.subr.bf16.mxu1 %v13987_v62 }
 0x7d4   :  { %12392 = vmatmul.mubr.bf16.gmra.mrb[4].mxu1 %v16579_v39  ;;  %v13991_v39 = vld [vmem:[%s18221_s4 + $0x130] sm:$0xff]  }
 0x7d5   :  { %12395 = vmatprep.mubr.bf16.mxu1 %v16586_v10  ;;  %12456 = vmatpush3.bf16.msra.mxu1 %v13987_v62  ;;  %v13992_v10 = vld [vmem:[%s18221_s4 + $0x138] sm:$0xff]   ;;  %v16888_v62 = vpack.c.bf16 %v7366_v34, %v7365_v51  ;;  %v7383_v51 = vld [vmem:[#allocation3 + $0x181] sm:$0xff]  ;;  %v7384_v34 = vld [vmem:[#allocation3 + $0x189] sm:$0xff] }
 0x7d6   :  { %12457 = vmatprep.subr.bf16.mxu1 %v13988_v53 }
 0x7d9   :  { %12458 = vmatpush3.bf16.msra.mxu1 %v13988_v53  ;;  %v13999_v53 = vld [vmem:[%s18221_s4 + $0x170] sm:$0xff]  }
 0x7da   :  { %12459 = vmatprep.subr.bf16.mxu1 %v13989_v13 }
 0x7dc   :  { %12396 = vmatmul.mubr.bf16.gmra.mrb[8].mxu1 %v16591_v43  ;;  %v13993_v43 = vld [vmem:[%s18221_s4 + $0x140] sm:$0xff]  }
 0x7dd   :  { %12399 = vmatprep.mubr.bf16.mxu1 %v16598_v15  ;;  %12460 = vmatpush3.bf16.msra.mxu1 %v13989_v13  ;;  %v6870_v15 = vld [vmem:[#allocation3 + $0x180] sm:$0xff] }
 0x7de   :  { %12461 = vmatprep.subr.bf16.mxu1 %v13990_v11  ;;  %v7367_v13 = vld [vmem:[#allocation3 + $0xc1] sm:$0xff] }
 0x7e1   :  { %12462 = vmatpush3.bf16.msra.mxu1 %v13990_v11  ;;  %v7368_v11 = vld [vmem:[#allocation3 + $0xc9] sm:$0xff] }
 0x7e2   :  { %12463 = vmatprep.subr.bf16.mxu1 %v13991_v39 }
 0x7e4   :  { %12400 = vmatmul.mubr.bf16.gmra.mrb[12].mxu1 %v16603_v1  ;;  %v6871_v1 = vld [vmem:[#allocation3 + $0x188] sm:$0xff] }
 0x7e5   :  { %12403 = vmatprep.mubr.bf16.mxu1 %v16612_v42  ;;  %12464 = vmatpush3.bf16.msra.mxu1 %v13991_v39  ;;  %v16838_v42 = vpack.c.bf16 %v6871_v1, %v6870_v15  ;;  %v7369_v39 = vld [vmem:[#allocation3 + $0xd9] sm:$0xff] }
 0x7e6   :  { %12465 = vmatprep.subr.bf16.mxu1 %v13992_v10  ;;  %v14000_v15 = vld [vmem:[%s18221_s4 + $0x178] sm:$0xff]  }
 0x7e9   :  { %12466 = vmatpush3.bf16.msra.mxu1 %v13992_v10  ;;  %v7370_v10 = vld [vmem:[#allocation3 + $0xe1] sm:$0xff] }
 0x7ea   :  { %12531 = vmatprep.subr.bf16.mxu1 %v13993_v43  ;;  %v16900_v1 = vpack.c.bf16 %v7370_v10, %v7369_v39  ;;  %v7387_v39 = vld [vmem:[#allocation3 + $0x1e1] sm:$0xff]  ;;  %v7388_v10 = vld [vmem:[#allocation3 + $0x1e9] sm:$0xff] }
 0x7ec   :  { %12404 = vmatmul.mubr.bf16.gmra.mrb[16].mxu1 %v16615_v35  ;;  %v6902_v35 = vld [vmem:[#allocation3 + $0x330] sm:$0xff] }
 0x7ed   :  { %12407 = vmatprep.mubr.bf16.mxu1 %v16619_v18  ;;  %v6903_v18 = vld [vmem:[#allocation3 + $0x338] sm:$0xff] }
 0x7f4   :  { %12408 = vmatmul.mubr.bf16.gmra.mrb[20].mxu1 %v16621_v41  ;;  %v7353_v41 = vld [vmem:[#allocation3 + $0x19] sm:$0xff] }
 0x7f5   :  { %12411 = vmatprep.mubr.bf16.mxu1 %v16625_v26  ;;  %v7354_v26 = vld [vmem:[#allocation3 + $0x21] sm:$0xff] }
 0x7fc   :  { %12412 = vmatmul.mubr.bf16.gmra.mrb[24].mxu1 %v16627_v5  ;;  %v16856_v5 = vpack.c.bf16 %v6903_v18, %v6902_v35  ;;  %v16907_v35 = vld [vmem:[%s18221_s4 + $0x180] sm:$0xff]   ;;  %v7371_v18 = vld [vmem:[#allocation3 + $0xf1] sm:$0xff] }
 0x7fd   :  { %12415 = vmatprep.mubr.bf16.mxu1 %v16631_v45  ;;  %v7417_v45 = vpack.c.bf16 %v7354_v26, %v7353_v41  ;;  %v7372_v41 = vld [vmem:[#allocation3 + $0xf9] sm:$0xff]  ;;  %v7373_v26 = vld [vmem:[#allocation3 + $0x109] sm:$0xff] }
 0x804   :  { %12416 = vmatmul.mubr.bf16.gmra.mrb[28].mxu1 %v16838_v42 }
 0x805   :  { %12419 = vmatprep.mubr.bf16.mxu1 %v16635_v40  ;;  %v7355_v40 = vld [vmem:[#allocation3 + $0x31] sm:$0xff] }
 0x80c   :  { %12420 = vmatmul.mubr.bf16.gmra.mrb[32].mxu1 %v16637_v28  ;;  %v7356_v28 = vld [vmem:[#allocation3 + $0x39] sm:$0xff] }
 0x80d   :  { %12423 = vmatprep.mubr.bf16.mxu1 %v16641_v38  ;;  %v7357_v38 = vld [vmem:[#allocation3 + $0x49] sm:$0xff] }
 0x814   :  { %12424 = vmatmul.mubr.bf16.gmra.mrb[36].mxu1 %v16643_v22  ;;  %v7358_v22 = vld [vmem:[#allocation3 + $0x51] sm:$0xff] }
 0x815   :  { %12427 = vmatprep.mubr.bf16.mxu1 %v16647_v12  ;;  %v16859_v12 = vpack.c.bf16 %v7356_v28, %v7355_v40  ;;  %v16909_v40 = vpack.c.bf16 %v7372_v41, %v7371_v18  ;;  %v7390_v18 = vld [vmem:[#allocation3 + $0x201] sm:$0xff]  ;;  %v16931_v41 = vpack.c.bf16 %v7388_v10, %v7387_v39  ;;  %v7401_v39 = vld [vmem:[#allocation3 + $0x289] sm:$0xff]  ;;  %v7402_v10 = vld [vmem:[#allocation3 + $0x291] sm:$0xff] }
 0x81c   :  { %12428 = vmatmul.mubr.bf16.gmra.mrb[40].mxu1 %v16649_v6  ;;  %v13994_v6 = vld [vmem:[%s18221_s4 + $0x148] sm:$0xff]  }
 0x81d   :  { %12431 = vmatprep.mubr.bf16.mxu1 %v16653_v23  ;;  %v16864_v23 = vpack.c.bf16 %v7358_v22, %v7357_v38  ;;  %v7375_v38 = vld [vmem:[#allocation3 + $0x121] sm:$0xff]  ;;  %v7376_v22 = vld [vmem:[#allocation3 + $0x129] sm:$0xff] }
 0x824   :  { %12432 = vmatmul.mubr.bf16.gmra.mrb[44].mxu1 %v16655_v46  ;;  %v13995_v46 = vld [vmem:[%s18221_s4 + $0x150] sm:$0xff]  }
 0x825   :  { %12435 = vmatprep.mubr.bf16.mxu1 %v16659_v7  ;;  %v7359_v7 = vld [vmem:[#allocation3 + $0x61] sm:$0xff] }
 0x82c   :  { %12436 = vmatmul.mubr.bf16.gmra.mrb[48].mxu1 %v16661_v3  ;;  %v7360_v3 = vld [vmem:[#allocation3 + $0x69] sm:$0xff] }
 0x82d   :  { %12439 = vmatprep.mubr.bf16.mxu1 %v16665_v52  ;;  %v7361_v52 = vld [vmem:[#allocation3 + $0x79] sm:$0xff] }
 0x834   :  { %12440 = vmatmul.mubr.bf16.gmra.mrb[52].mxu1 %v16667_v25  ;;  %v7362_v25 = vld [vmem:[#allocation3 + $0x81] sm:$0xff] }
 0x835   :  { %12443 = vmatprep.mubr.bf16.mxu1 %v16671_v47  ;;  %v16871_v47 = vpack.c.bf16 %v7360_v3, %v7359_v7  ;;  %v16916_v7 = vpack.c.bf16 %v7376_v22, %v7375_v38  ;;  %v7392_v38 = vld [vmem:[#allocation3 + $0x219] sm:$0xff]  ;;  %v7393_v22 = vld [vmem:[#allocation3 + $0x229] sm:$0xff] }
 0x83c   :  { %12444 = vmatmul.mubr.bf16.gmra.mrb[56].mxu1 %v16673_v37  ;;  %v13996_v37 = vld [vmem:[%s18221_s4 + $0x158] sm:$0xff]  }
 0x83d   :  { %12447 = vmatprep.mubr.bf16.mxu1 %v16677_v59  ;;  %v16876_v59 = vpack.c.bf16 %v7362_v25, %v7361_v52  ;;  %v7379_v52 = vld [vmem:[#allocation3 + $0x151] sm:$0xff]  ;;  %v7380_v25 = vld [vmem:[#allocation3 + $0x159] sm:$0xff] }
 0x83e   :  { %v16922_v49 = vpack.c.bf16 %v7380_v25, %v7379_v52  ;;  %v7395_v25 = vld [vmem:[#allocation3 + $0x241] sm:$0xff] }
 0x844   :  { %12448 = vmatmul.mubr.bf16.gmra.mrb[60].mxu1 %v16856_v5 }
 0x845   :  { %12467 = vmatprep.mubr.bf16.mxu1 %v7417_v45  ;;  %v7374_v45 = vld [vmem:[#allocation3 + $0x111] sm:$0xff] }
 0x846   :  { %v16912_v28 = vpack.c.bf16 %v7374_v45, %v7373_v26  ;;  %v7391_v45 = vld [vmem:[#allocation3 + $0x211] sm:$0xff] }
 0x84c   :  { %12468 = vmatmul.mubr.bf16.vlgmr.msra.gmra.mrb[0].mxu1 %v16859_v12 }
 0x84d   :  { %12471 = vmatprep.mubr.bf16.mxu1 %v16864_v23  ;;  %12532 = vmatpush3.bf16.msra.mxu1 %v13993_v43  ;;  %v16895_v43 = vpack.c.bf16 %v7368_v11, %v7367_v13  ;;  %v16928_v13 = vpack.c.bf16 %v7384_v34, %v7383_v51  ;;  %v7398_v51 = vld [vmem:[#allocation3 + $0x261] sm:$0xff] }
 0x84e   :  { %12533 = vmatprep.subr.bf16.mxu1 %v13994_v6 }
 0x851   :  { %12534 = vmatpush3.bf16.msra.mxu1 %v13994_v6  ;;  %v7377_v6 = vld [vmem:[#allocation3 + $0x139] sm:$0xff] }
 0x852   :  { %12535 = vmatprep.subr.bf16.mxu1 %v13995_v46 }
 0x854   :  { %12472 = vmatmul.mubr.bf16.gmra.mrb[4].mxu1 %v16871_v47 }
 0x855   :  { %12475 = vmatprep.mubr.bf16.mxu1 %v16876_v59  ;;  %12536 = vmatpush3.bf16.msra.mxu1 %v13995_v46  ;;  %v7378_v46 = vld [vmem:[#allocation3 + $0x141] sm:$0xff] }
 0x856   :  { %12537 = vmatprep.subr.bf16.mxu1 %v13996_v37  ;;  %v16918_v3 = vpack.c.bf16 %v7378_v46, %v7377_v6  ;;  %v7394_v6 = vld [vmem:[#allocation3 + $0x231] sm:$0xff]  ;;  %v16937_v46 = vpack.c.bf16 %v7392_v38, %v7391_v45  ;;  %v7403_v45 = vld [vmem:[#allocation3 + $0x2a1] sm:$0xff]  ;;  %v7404_v38 = vld [vmem:[#allocation3 + $0x2a9] sm:$0xff] }
 0x857   :  { %v16939_v52 = vpack.c.bf16 %v7394_v6, %v7393_v22  ;;  %v7405_v22 = vld [vmem:[#allocation3 + $0x2b9] sm:$0xff]  ;;  %v7406_v6 = vld [vmem:[#allocation3 + $0x2c1] sm:$0xff] }
 0x859   :  { %12538 = vmatpush3.bf16.msra.mxu1 %v13996_v37  ;;  %v7381_v37 = vld [vmem:[#allocation3 + $0x169] sm:$0xff] }
 0x85a   :  { %12539 = vmatprep.subr.bf16.mxu1 %v13997_v48 }
 0x85c   :  { %12476 = vmatmul.mubr.bf16.gmra.mrb[8].mxu1 %v16883_v58 }
 0x85d   :  { %12479 = vmatprep.mubr.bf16.mxu1 %v16888_v62  ;;  %12540 = vmatpush3.bf16.msra.mxu1 %v13997_v48  ;;  %v7382_v48 = vld [vmem:[#allocation3 + $0x171] sm:$0xff] }
 0x85e   :  { %12541 = vmatprep.subr.bf16.mxu1 %v13998_v21  ;;  %v16924_v44 = vpack.c.bf16 %v7382_v48, %v7381_v37  ;;  %v7396_v37 = vld [vmem:[#allocation3 + $0x249] sm:$0xff]  ;;  %v7397_v48 = vld [vmem:[#allocation3 + $0x259] sm:$0xff] }
 0x85f   :  { %v16943_v34 = vpack.c.bf16 %v7396_v37, %v7395_v25  ;;  %v16955_v25 = vpack.c.bf16 %v7404_v38, %v7403_v45  ;;  %v16957_v37 = vpack.c.bf16 %v7406_v6, %v7405_v22  ;;  %v7411_v45 = vld [vmem:[#allocation3 + $0x301] sm:$0xff]  ;;  %v7412_v38 = vld [vmem:[#allocation3 + $0x309] sm:$0xff]  ;;  %v7413_v22 = vld [vmem:[#allocation3 + $0x319] sm:$0xff] }
 0x860   :  { %v7414_v6 = vld [vmem:[#allocation3 + $0x321] sm:$0xff] }
 0x861   :  { %12542 = vmatpush3.bf16.msra.mxu1 %v13998_v21  ;;  %v7385_v21 = vld [vmem:[#allocation3 + $0x1c9] sm:$0xff]  ;;  %18523 = vst [vmem:[#allocation15_spill] sm:$0xff] %v16955_v25 }
 0x862   :  { %12543 = vmatprep.subr.bf16.mxu1 %v13999_v53 }
 0x864   :  { %12480 = vmatmul.mubr.bf16.gmra.mrb[12].mxu1 %v16895_v43 }
 0x865   :  { %12483 = vmatprep.mubr.bf16.mxu1 %v16900_v1  ;;  %12544 = vmatpush3.bf16.msra.mxu1 %v13999_v53  ;;  %v7386_v53 = vld [vmem:[#allocation3 + $0x1d1] sm:$0xff] }
 0x866   :  { %12545 = vmatprep.subr.bf16.mxu1 %v14000_v15  ;;  %v7433_v11 = vpack.c.bf16 %v7386_v53, %v7385_v21  ;;  %v16945_v21 = vpack.c.bf16 %v7398_v51, %v7397_v48  ;;  %v7399_v53 = vld [vmem:[#allocation3 + $0x271] sm:$0xff]  ;;  %v7408_v51 = vld [vmem:[#allocation3 + $0x2d9] sm:$0xff] }
 0x867   :  { %v7407_v48 = vld [vmem:[#allocation3 + $0x2d1] sm:$0xff] }
 0x869   :  { %12546 = vmatpush3.bf16.msra.mxu1 %v14000_v15  ;;  %v7389_v15 = vld [vmem:[#allocation3 + $0x1f9] sm:$0xff] }
 0x86a   :  { %12611 = vmatprep.subr.bf16.mxu1 %v16907_v35  ;;  %v16933_v26 = vpack.c.bf16 %v7390_v18, %v7389_v15  ;;  %v16951_v18 = vpack.c.bf16 %v7402_v10, %v7401_v39  ;;  %v16961_v39 = vpack.c.bf16 %v7408_v51, %v7407_v48  ;;  %v7415_v48 = vld [vmem:[#allocation3 + $0x331] sm:$0xff]  ;;  %v7416_v51 = vld [vmem:[#allocation3 + $0x339] sm:$0xff] }
 0x86c   :  { %12484 = vmatmul.mubr.bf16.gmra.mrb[16].mxu1 %v16909_v40  ;;  %18522 = vst [vmem:[#allocation18_spill] sm:$0xff] %v16951_v18 }
 0x86d   :  { %12487 = vmatprep.mubr.bf16.mxu1 %v16912_v28 }
 0x874   :  { %12488 = vmatmul.mubr.bf16.gmra.mrb[20].mxu1 %v16916_v7 }
 0x875   :  { %12491 = vmatprep.mubr.bf16.mxu1 %v16918_v3 }
 0x87c   :  { %12492 = vmatmul.mubr.bf16.gmra.mrb[24].mxu1 %v16922_v49 }
 0x87d   :  { %12495 = vmatprep.mubr.bf16.mxu1 %v16924_v44 }
 0x884   :  { %12496 = vmatmul.mubr.bf16.gmra.mrb[28].mxu1 %v16928_v13 }
 0x885   :  { %12499 = vmatprep.mubr.bf16.mxu1 %v7433_v11  ;;  %v7400_v11 = vld [vmem:[#allocation3 + $0x279] sm:$0xff] }
 0x886   :  { %v16949_v15 = vpack.c.bf16 %v7400_v11, %v7399_v53  ;;  %v7409_v53 = vld [vmem:[#allocation3 + $0x2e9] sm:$0xff]  ;;  %v7410_v11 = vld [vmem:[#allocation3 + $0x2f1] sm:$0xff] }
 0x887   :  { %v16963_v10 = vpack.c.bf16 %v7410_v11, %v7409_v53  ;;  %v16973_v53 = vpack.c.bf16 %v7416_v51, %v7415_v48  ;;  %v14002_v11 = vld [vmem:[%s18221_s4 + $0x188] sm:$0xff]   ;;  %v8389_v48 = vld [vmem:[#allocation3 + $0x98] sm:$0xff] }
 0x88c   :  { %12500 = vmatmul.mubr.bf16.gmra.mrb[32].mxu1 %v16931_v41 }
 0x88d   :  { %12503 = vmatprep.mubr.bf16.mxu1 %v16933_v26 }
 0x894   :  { %12504 = vmatmul.mubr.bf16.gmra.mrb[36].mxu1 %v16937_v46 }
 0x895   :  { %12507 = vmatprep.mubr.bf16.mxu1 %v16939_v52 }
 0x89c   :  { %12508 = vmatmul.mubr.bf16.gmra.mrb[40].mxu1 %v16943_v34 }
 0x89d   :  { %12511 = vmatprep.mubr.bf16.mxu1 %v16945_v21 }
 0x8a4   :  { %12512 = vmatmul.mubr.bf16.gmra.mrb[44].mxu1 %v16949_v15 }
 0x8a5   :  { %12515 = vmatprep.mubr.bf16.mxu1 %v16951_v18  ;;  %v16967_v18 = vpack.c.bf16 %v7412_v38, %v7411_v45  ;;  %v14003_v45 = vld [vmem:[%s18221_s4 + $0x190] sm:$0xff]   ;;  %v8386_v38 = vld [vmem:[#allocation3 + $0x78] sm:$0xff] }
 0x8ac   :  { %12516 = vmatmul.mubr.bf16.gmra.mrb[48].mxu1 %v16955_v25  ;;  %v16969_v25 = vpack.c.bf16 %v7414_v6, %v7413_v22  ;;  %v8387_v22 = vld [vmem:[#allocation3 + $0x80] sm:$0xff]  ;;  %v8388_v6 = vld [vmem:[#allocation3 + $0x90] sm:$0xff] }
 0x8ad   :  { %12519 = vmatprep.mubr.bf16.mxu1 %v16957_v37  ;;  %v8447_v51 = vpack.c.bf16 %v8387_v22, %v8386_v38  ;;  %v8404_v38 = vld [vmem:[#allocation3 + $0x150] sm:$0xff]  ;;  %v8405_v22 = vld [vmem:[#allocation3 + $0x158] sm:$0xff] }
 0x8b4   :  { %12520 = vmatmul.mubr.bf16.gmra.mrb[52].mxu1 %v16961_v39 }
 0x8b5   :  { %12523 = vmatprep.mubr.bf16.mxu1 %v16963_v10 }
 0x8bc   :  { %12524 = vmatmul.mubr.bf16.gmra.mrb[56].mxu1 %v16967_v18 }
 0x8bd   :  { %12527 = vmatprep.mubr.bf16.mxu1 %v16969_v25 }
 0x8c4   :  { %12528 = vmatmul.mubr.bf16.gmra.mrb[60].mxu1 %v16973_v53 }
 0x8c5   :  { %12547 = vmatprep.mubr.bf16.mxu1 %v16680_v8  ;;  %v14004_v8 = vld [vmem:[%s18221_s4 + $0x198] sm:$0xff]  }
 0x8cc   :  { %12548 = vmatmul.mubr.bf16.vlgmr.msra.gmra.mrb[0].mxu1 %v16685_v33  ;;  %v14005_v33 = vld [vmem:[%s18221_s4 + $0x1a0] sm:$0xff]  }
 0x8cd   :  { %12551 = vmatprep.mubr.bf16.mxu1 %v16693_v54  ;;  %12612 = vmatpush3.bf16.msra.mxu1 %v16907_v35  ;;  %v14006_v54 = vld [vmem:[%s18221_s4 + $0x1a8] sm:$0xff]  }
 0x8ce   :  { %12613 = vmatprep.subr.bf16.mxu1 %v14002_v11 }
 0x8d1   :  { %12614 = vmatpush3.bf16.msra.mxu1 %v14002_v11  ;;  %v14012_v11 = vld [vmem:[%s18221_s4 + $0x1d8] sm:$0xff]  }
 0x8d2   :  { %12615 = vmatprep.subr.bf16.mxu1 %v14003_v45 }
 0x8d4   :  { %12552 = vmatmul.mubr.bf16.gmra.mrb[4].mxu1 %v16698_v60  ;;  %v14007_v60 = vld [vmem:[%s18221_s4 + $0x1b0] sm:$0xff]  }
 0x8d5   :  { %12555 = vmatprep.mubr.bf16.mxu1 %v16705_v0  ;;  %12616 = vmatpush3.bf16.msra.mxu1 %v14003_v45  ;;  %v14008_v0 = vld [vmem:[%s18221_s4 + $0x1b8] sm:$0xff]   ;;  %v8448_v45 = vpack.c.bf16 %v8389_v48, %v8388_v6  ;;  %v8456_v48 = vpack.c.bf16 %v8405_v22, %v8404_v38  ;;  %v8428_v38 = vld [vmem:[#allocation3 + $0x2a0] sm:$0xff]  ;;  %v8429_v22 = vld [vmem:[#allocation3 + $0x2a8] sm:$0xff] }
 0x8d6   :  { %12617 = vmatprep.subr.bf16.mxu1 %v14004_v8 }
 0x8d9   :  { %12618 = vmatpush3.bf16.msra.mxu1 %v14004_v8  ;;  %v14013_v8 = vld [vmem:[%s18221_s4 + $0x1e0] sm:$0xff]  }
 0x8da   :  { %12619 = vmatprep.subr.bf16.mxu1 %v14005_v33 }
 0x8dc   :  { %12556 = vmatmul.mubr.bf16.gmra.mrb[8].mxu1 %v16710_v32  ;;  %v14009_v32 = vld [vmem:[%s18221_s4 + $0x1c0] sm:$0xff]  }
 0x8dd   :  { %12559 = vmatprep.mubr.bf16.mxu1 %v16717_v57  ;;  %12620 = vmatpush3.bf16.msra.mxu1 %v14005_v33  ;;  %v7896_v57 = vld [vmem:[#allocation3 + $0x182] sm:$0xff] }
 0x8de   :  { %12621 = vmatprep.subr.bf16.mxu1 %v14006_v54  ;;  %v8390_v33 = vld [vmem:[#allocation3 + $0xa8] sm:$0xff] }
 0x8e1   :  { %12622 = vmatpush3.bf16.msra.mxu1 %v14006_v54  ;;  %v8391_v54 = vld [vmem:[#allocation3 + $0xb0] sm:$0xff] }
 0x8e2   :  { %12623 = vmatprep.subr.bf16.mxu1 %v14007_v60 }
 0x8e4   :  { %12560 = vmatmul.mubr.bf16.gmra.mrb[12].mxu1 %v16722_v9  ;;  %v7897_v9 = vld [vmem:[#allocation3 + $0x18a] sm:$0xff] }
 0x8e5   :  { %12563 = vmatprep.mubr.bf16.mxu1 %v16731_v30  ;;  %12624 = vmatpush3.bf16.msra.mxu1 %v14007_v60  ;;  %v17016_v30 = vpack.c.bf16 %v7897_v9, %v7896_v57  ;;  %v8392_v60 = vld [vmem:[#allocation3 + $0xc0] sm:$0xff]  ;;  %v14014_v57 = vld [vmem:[%s18221_s4 + $0x1e8] sm:$0xff]  }
 0x8e6   :  { %12625 = vmatprep.subr.bf16.mxu1 %v14008_v0 }
 0x8e9   :  { %12626 = vmatpush3.bf16.msra.mxu1 %v14008_v0  ;;  %v8393_v0 = vld [vmem:[#allocation3 + $0xc8] sm:$0xff] }
 0x8ea   :  { %12691 = vmatprep.subr.bf16.mxu1 %v14009_v32  ;;  %v8450_v9 = vpack.c.bf16 %v8393_v0, %v8392_v60  ;;  %v8413_v60 = vld [vmem:[#allocation3 + $0x1e8] sm:$0xff] }
 0x8ec   :  { %12564 = vmatmul.mubr.bf16.gmra.mrb[16].mxu1 %v16734_v17  ;;  %v18524_v17 = vld [vmem:[#allocation36_spill] sm:$0xff] }
 0x8ed   :  { %12567 = vmatprep.mubr.bf16.mxu1 %v16738_v56  ;;  %v18525_v56 = vld [vmem:[#allocation13_spill] sm:$0xff] }
 0x8f4   :  { %12568 = vmatmul.mubr.bf16.gmra.mrb[20].mxu1 %v16740_v63  ;;  %v18526_v63 = vld [vmem:[#allocation14_spill] sm:$0xff] }
 0x8f5   :  { %12571 = vmatprep.mubr.bf16.mxu1 %v16744_v20  ;;  %v18527_v20 = vld [vmem:[#allocation16_spill] sm:$0xff] }
 0x8fc   :  { %12572 = vmatmul.mubr.bf16.gmra.mrb[24].mxu1 %v16746_v36  ;;  %v7928_v36 = vld [vmem:[#allocation3 + $0x332] sm:$0xff] }
 0x8fd   :  { %12575 = vmatprep.mubr.bf16.mxu1 %v16750_v27  ;;  %v7929_v27 = vld [vmem:[#allocation3 + $0x33a] sm:$0xff] }
 0x904   :  { %12576 = vmatmul.mubr.bf16.gmra.mrb[28].mxu1 %v17016_v30 }
 0x905   :  { %12579 = vmatprep.mubr.bf16.mxu1 %v16753_v19  ;;  %v8380_v19 = vld [vmem:[#allocation3 + $0x30] sm:$0xff] }
 0x90c   :  { %12580 = vmatmul.mubr.bf16.gmra.mrb[32].mxu1 %v16755_v2  ;;  %v8381_v2 = vld [vmem:[#allocation3 + $0x38] sm:$0xff] }
 0x90d   :  { %12583 = vmatprep.mubr.bf16.mxu1 %v16759_v4  ;;  %v17034_v4 = vpack.c.bf16 %v7929_v27, %v7928_v36  ;;  %v8397_v36 = vld [vmem:[#allocation3 + $0xf8] sm:$0xff] }
 0x914   :  { %12584 = vmatmul.mubr.bf16.gmra.mrb[36].mxu1 %v16761_v31  ;;  %v8444_v31 = vpack.c.bf16 %v8381_v2, %v8380_v19  ;;  %v14016_v19 = vld [vmem:[%s18221_s4 + $0x1f8] sm:$0xff]  }
 0x915   :  { %12587 = vmatprep.mubr.bf16.mxu1 %v16765_v16  ;;  %v8382_v16 = vld [vmem:[#allocation3 + $0x48] sm:$0xff] }
 0x91c   :  { %12588 = vmatmul.mubr.bf16.gmra.mrb[40].mxu1 %v18524_v17  ;;  %v14015_v17 = vld [vmem:[%s18221_s4 + $0x1f0] sm:$0xff]  }
 0x91d   :  { %12591 = vmatprep.mubr.bf16.mxu1 %v18525_v56  ;;  %v8394_v56 = vld [vmem:[#allocation3 + $0xd8] sm:$0xff] }
 0x924   :  { %12592 = vmatmul.mubr.bf16.gmra.mrb[44].mxu1 %v18526_v63  ;;  %v8395_v63 = vld [vmem:[#allocation3 + $0xe0] sm:$0xff] }
 0x925   :  { %12595 = vmatprep.mubr.bf16.mxu1 %v18527_v20  ;;  %v8396_v20 = vld [vmem:[#allocation3 + $0xf0] sm:$0xff]  ;;  %v8451_v27 = vpack.c.bf16 %v8395_v63, %v8394_v56 }
 0x926   :  { %v8452_v2 = vpack.c.bf16 %v8397_v36, %v8396_v20  ;;  %v8418_v20 = vld [vmem:[#allocation3 + $0x228] sm:$0xff]  ;;  %v8419_v36 = vld [vmem:[#allocation3 + $0x230] sm:$0xff] }
 0x92c   :  { %12596 = vmatmul.mubr.bf16.gmra.mrb[48].mxu1 %v16779_v55  ;;  %v8384_v55 = vld [vmem:[#allocation3 + $0x60] sm:$0xff] }
 0x92d   :  { %12599 = vmatprep.mubr.bf16.mxu1 %v16783_v14  ;;  %v8383_v14 = vld [vmem:[#allocation3 + $0x50] sm:$0xff] }
 0x92e   :  { %v8445_v35 = vpack.c.bf16 %v8383_v14, %v8382_v16  ;;  %v8398_v16 = vld [vmem:[#allocation3 + $0x108] sm:$0xff]  ;;  %v8399_v14 = vld [vmem:[#allocation3 + $0x110] sm:$0xff] }
 0x934   :  { %12600 = vmatmul.mubr.bf16.gmra.mrb[52].mxu1 %v16785_v61  ;;  %v8385_v61 = vld [vmem:[#allocation3 + $0x68] sm:$0xff] }
 0x935   :  { %12603 = vmatprep.mubr.bf16.mxu1 %v16789_v50  ;;  %v14010_v50 = vld [vmem:[%s18221_s4 + $0x1c8] sm:$0xff]  }
 0x93c   :  { %12604 = vmatmul.mubr.bf16.gmra.mrb[56].mxu1 %v16791_v24  ;;  %v8446_v24 = vpack.c.bf16 %v8385_v61, %v8384_v55  ;;  %v8400_v55 = vld [vmem:[#allocation3 + $0x120] sm:$0xff]  ;;  %v8401_v61 = vld [vmem:[#allocation3 + $0x128] sm:$0xff] }
 0x93d   :  { %12607 = vmatprep.mubr.bf16.mxu1 %v16795_v29  ;;  %v14011_v29 = vld [vmem:[%s18221_s4 + $0x1d0] sm:$0xff]  }
 0x944   :  { %12608 = vmatmul.mubr.bf16.gmra.mrb[60].mxu1 %v17034_v4 }
 0x945   :  { %12627 = vmatprep.mubr.bf16.mxu1 %v8444_v31  ;;  %v17061_v31 = vld [vmem:[%s18221_s4 + $0x200] sm:$0xff]  }
 0x94c   :  { %12628 = vmatmul.mubr.bf16.vlgmr.msra.gmra.mrb[0].mxu1 %v8445_v35  ;;  %v8453_v35 = vpack.c.bf16 %v8399_v14, %v8398_v16  ;;  %v8422_v16 = vld [vmem:[#allocation3 + $0x258] sm:$0xff]  ;;  %v8423_v14 = vld [vmem:[#allocation3 + $0x260] sm:$0xff] }
 0x94d   :  { %12631 = vmatprep.mubr.bf16.mxu1 %v8446_v24  ;;  %12692 = vmatpush3.bf16.msra.mxu1 %v14009_v32  ;;  %v8449_v32 = vpack.c.bf16 %v8391_v54, %v8390_v33  ;;  %v8402_v24 = vld [vmem:[#allocation3 + $0x138] sm:$0xff]  ;;  %v8412_v54 = vld [vmem:[#allocation3 + $0x1e0] sm:$0xff] }
 0x94e   :  { %12693 = vmatprep.subr.bf16.mxu1 %v14010_v50  ;;  %v8460_v0 = vpack.c.bf16 %v8413_v60, %v8412_v54 }
 0x951   :  { %12694 = vmatpush3.bf16.msra.mxu1 %v14010_v50  ;;  %v8454_v50 = vpack.c.bf16 %v8401_v61, %v8400_v55  ;;  %v8424_v55 = vld [vmem:[#allocation3 + $0x270] sm:$0xff]  ;;  %v8425_v61 = vld [vmem:[#allocation3 + $0x278] sm:$0xff] }
 0x952   :  { %12695 = vmatprep.subr.bf16.mxu1 %v14011_v29 }
 0x954   :  { %12632 = vmatmul.mubr.bf16.gmra.mrb[4].mxu1 %v8447_v51  ;;  %v8406_v51 = vld [vmem:[#allocation3 + $0x168] sm:$0xff] }
 0x955   :  { %12635 = vmatprep.mubr.bf16.mxu1 %v8448_v45  ;;  %12696 = vmatpush3.bf16.msra.mxu1 %v14011_v29  ;;  %v8403_v29 = vld [vmem:[#allocation3 + $0x140] sm:$0xff] }
 0x956   :  { %12697 = vmatprep.subr.bf16.mxu1 %v14012_v11  ;;  %v8455_v6 = vpack.c.bf16 %v8403_v29, %v8402_v24  ;;  %v8426_v24 = vld [vmem:[#allocation3 + $0x288] sm:$0xff]  ;;  %v8427_v29 = vld [vmem:[#allocation3 + $0x290] sm:$0xff] }
 0x959   :  { %12698 = vmatpush3.bf16.msra.mxu1 %v14012_v11  ;;  %v8407_v11 = vld [vmem:[#allocation3 + $0x170] sm:$0xff] }
 0x95a   :  { %12699 = vmatprep.subr.bf16.mxu1 %v14013_v8  ;;  %v8457_v45 = vpack.c.bf16 %v8407_v11, %v8406_v51  ;;  %v8430_v51 = vld [vmem:[#allocation3 + $0x2b8] sm:$0xff]  ;;  %v8431_v11 = vld [vmem:[#allocation3 + $0x2c0] sm:$0xff] }
 0x95b   :  { %v8469_v54 = vpack.c.bf16 %v8431_v11, %v8430_v51  ;;  %v9428_v11 = vld [vmem:[#allocation3 + $0x13a] sm:$0xff] }
 0x95c   :  { %12636 = vmatmul.mubr.bf16.gmra.mrb[8].mxu1 %v8449_v32  ;;  %v8414_v32 = vld [vmem:[#allocation3 + $0x1f8] sm:$0xff] }
 0x95d   :  { %12639 = vmatprep.mubr.bf16.mxu1 %v8450_v9  ;;  %12700 = vmatpush3.bf16.msra.mxu1 %v14013_v8  ;;  %v14030_v8 = vld [vmem:[#allocation3] sm:$0xff]  ;;  %v8416_v9 = vld [vmem:[#allocation3 + $0x210] sm:$0xff] }
 0x95e   :  { %12701 = vmatprep.subr.bf16.mxu1 %v14014_v57  ;;  %v8459_v33 = vpack.c.bf16 %v14030_v8, %v14030_v8  ;;  %v8433_v8 = vld [vmem:[#allocation3 + $0x2d8] sm:$0xff] }
 0x961   :  { %12702 = vmatpush3.bf16.msra.mxu1 %v14014_v57  ;;  %v8415_v57 = vld [vmem:[#allocation3 + $0x200] sm:$0xff] }
 0x962   :  { %12703 = vmatprep.subr.bf16.mxu1 %v14015_v17  ;;  %v8461_v56 = vpack.c.bf16 %v8415_v57, %v8414_v32  ;;  %v8435_v32 = vld [vmem:[#allocation3 + $0x2f0] sm:$0xff]  ;;  %v8436_v57 = vld [vmem:[#allocation3 + $0x300] sm:$0xff] }
 0x964   :  { %12640 = vmatmul.mubr.bf16.gmra.mrb[12].mxu1 %v8451_v27  ;;  %v8420_v27 = vld [vmem:[#allocation3 + $0x240] sm:$0xff] }
 0x965   :  { %12643 = vmatprep.mubr.bf16.mxu1 %v8452_v2  ;;  %12704 = vmatpush3.bf16.msra.mxu1 %v14015_v17  ;;  %v8417_v17 = vld [vmem:[#allocation3 + $0x218] sm:$0xff] }
 0x966   :  { %12705 = vmatprep.subr.bf16.mxu1 %v14016_v19  ;;  %v8462_v63 = vpack.c.bf16 %v8417_v17, %v8416_v9  ;;  %v8437_v9 = vld [vmem:[#allocation3 + $0x308] sm:$0xff] }
 0x969   :  { %12706 = vmatpush3.bf16.msra.mxu1 %v14016_v19  ;;  %v8421_v19 = vld [vmem:[#allocation3 + $0x248] sm:$0xff] }
 0x96a   :  { %12771 = vmatprep.subr.bf16.mxu1 %v17061_v31  ;;  %v8464_v2 = vpack.c.bf16 %v8421_v19, %v8420_v27  ;;  %v14018_v27 = vld [vmem:[%s18221_s4 + $0x208] sm:$0xff]   ;;  %v14019_v19 = vld [vmem:[%s18221_s4 + $0x210] sm:$0xff]  }
 0x96c   :  { %12644 = vmatmul.mubr.bf16.gmra.mrb[16].mxu1 %v8453_v35  ;;  %v8465_v35 = vpack.c.bf16 %v8423_v14, %v8422_v16  ;;  %v9420_v14 = vld [vmem:[#allocation3 + $0xda] sm:$0xff] }
 0x96d   :  { %12647 = vmatprep.mubr.bf16.mxu1 %v8454_v50  ;;  %v8466_v50 = vpack.c.bf16 %v8425_v61, %v8424_v55  ;;  %v9421_v55 = vld [vmem:[#allocation3 + $0xe2] sm:$0xff]  ;;  %v9422_v61 = vld [vmem:[#allocation3 + $0xf2] sm:$0xff] }
 0x974   :  { %12648 = vmatmul.mubr.bf16.gmra.mrb[20].mxu1 %v8455_v6  ;;  %v8467_v6 = vpack.c.bf16 %v8427_v29, %v8426_v24  ;;  %v9424_v29 = vld [vmem:[#allocation3 + $0x10a] sm:$0xff] }
 0x975   :  { %12651 = vmatprep.mubr.bf16.mxu1 %v8456_v48  ;;  %v8468_v48 = vpack.c.bf16 %v8429_v22, %v8428_v38  ;;  %v9425_v38 = vld [vmem:[#allocation3 + $0x112] sm:$0xff]  ;;  %v9426_v22 = vld [vmem:[#allocation3 + $0x122] sm:$0xff] }
 0x97c   :  { %12652 = vmatmul.mubr.bf16.gmra.mrb[24].mxu1 %v8457_v45  ;;  %v8432_v45 = vld [vmem:[#allocation3 + $0x2d0] sm:$0xff] }
 0x97d   :  { %12655 = vmatprep.mubr.bf16.mxu1 %v16838_v42  ;;  %v8463_v42 = vpack.c.bf16 %v8419_v36, %v8418_v20  ;;  %v8470_v60 = vpack.c.bf16 %v8433_v8, %v8432_v45  ;;  %v8439_v20 = vld [vmem:[#allocation3 + $0x320] sm:$0xff]  ;;  %v9430_v8 = vld [vmem:[#allocation3 + $0x152] sm:$0xff] }
 0x97e   :  { %v9429_v45 = vld [vmem:[#allocation3 + $0x142] sm:$0xff] }
 0x984   :  { %12656 = vmatmul.mubr.bf16.gmra.mrb[28].mxu1 %v8459_v33 }
 0x985   :  { %12659 = vmatprep.mubr.bf16.mxu1 %v8460_v0  ;;  %v8434_v0 = vld [vmem:[#allocation3 + $0x2e8] sm:$0xff] }
 0x986   :  { %v8471_v17 = vpack.c.bf16 %v8435_v32, %v8434_v0  ;;  %v9432_v32 = vld [vmem:[#allocation3 + $0x16a] sm:$0xff] }
 0x98c   :  { %12660 = vmatmul.mubr.bf16.gmra.mrb[32].mxu1 %v8461_v56  ;;  %v8472_v56 = vpack.c.bf16 %v8437_v9, %v8436_v57  ;;  %v9433_v57 = vld [vmem:[#allocation3 + $0x172] sm:$0xff] }
 0x98d   :  { %12663 = vmatprep.mubr.bf16.mxu1 %v8462_v63  ;;  %v8438_v63 = vld [vmem:[#allocation3 + $0x318] sm:$0xff]  ;;  %v9483_v9 = vpack.c.bf16 %v9433_v57, %v9432_v32 }
 0x98e   :  { %v8473_v36 = vpack.c.bf16 %v8439_v20, %v8438_v63  ;;  %v9438_v20 = vld [vmem:[#allocation3 + $0x1e2] sm:$0xff] }
 0x994   :  { %12664 = vmatmul.mubr.bf16.gmra.mrb[36].mxu1 %v8463_v42  ;;  %v9419_v42 = vld [vmem:[#allocation3 + $0xca] sm:$0xff] }
 0x995   :  { %12667 = vmatprep.mubr.bf16.mxu1 %v8464_v2 }
 0x99c   :  { %12668 = vmatmul.mubr.bf16.gmra.mrb[40].mxu1 %v8465_v35  ;;  %v9423_v35 = vld [vmem:[#allocation3 + $0xfa] sm:$0xff] }
 0x99d   :  { %12671 = vmatprep.mubr.bf16.mxu1 %v8466_v50  ;;  %v9477_v50 = vpack.c.bf16 %v9421_v55, %v9420_v14  ;;  %v9478_v24 = vpack.c.bf16 %v9423_v35, %v9422_v61  ;;  %v9464_v14 = vld [vmem:[#allocation3 + $0x31a] sm:$0xff]  ;;  %v9465_v55 = vld [vmem:[#allocation3 + $0x322] sm:$0xff]  ;;  %v9468_v35 = vld [vmem:[#allocation3 + $0x34a] sm:$0xff] }
 0x99e   :  { %v9499_v61 = vpack.c.bf16 %v9465_v55, %v9464_v14 }
 0x9a4   :  { %12672 = vmatmul.mubr.bf16.gmra.mrb[44].mxu1 %v8467_v6  ;;  %v9427_v6 = vld [vmem:[#allocation3 + $0x12a] sm:$0xff] }
 0x9a5   :  { %12675 = vmatprep.mubr.bf16.mxu1 %v8468_v48  ;;  %v9479_v48 = vpack.c.bf16 %v9425_v38, %v9424_v29  ;;  %v9480_v51 = vpack.c.bf16 %v9427_v6, %v9426_v22 }
 0x9ac   :  { %12676 = vmatmul.mubr.bf16.gmra.mrb[48].mxu1 %v8469_v54  ;;  %v9431_v54 = vld [vmem:[#allocation3 + $0x15a] sm:$0xff] }
 0x9ad   :  { %12679 = vmatprep.mubr.bf16.mxu1 %v8470_v60  ;;  %v9481_v60 = vpack.c.bf16 %v9429_v45, %v9428_v11  ;;  %v9482_v0 = vpack.c.bf16 %v9431_v54, %v9430_v8 }
 0x9b4   :  { %12680 = vmatmul.mubr.bf16.gmra.mrb[52].mxu1 %v8471_v17  ;;  %v9436_v17 = vld [vmem:[#allocation3 + $0x19a] sm:$0xff] }
 0x9b5   :  { %12683 = vmatprep.mubr.bf16.mxu1 %v8472_v56  ;;  %v9437_v56 = vld [vmem:[#allocation3 + $0x1a2] sm:$0xff] }
 0x9b6   :  { %v9485_v63 = vpack.c.bf16 %v9437_v56, %v9436_v17 }
 0x9bc   :  { %12684 = vmatmul.mubr.bf16.gmra.mrb[56].mxu1 %v8473_v36  ;;  %v9439_v36 = vld [vmem:[#allocation3 + $0x1ea] sm:$0xff] }
 0x9bd   :  { %12687 = vmatprep.mubr.bf16.mxu1 %v16856_v5  ;;  %v14020_v5 = vld [vmem:[%s18221_s4 + $0x218] sm:$0xff]  }
 0x9c4   :  { %12688 = vmatmul.mubr.bf16.gmra.mrb[60].mxu1 %v8459_v33  ;;  %v9418_v33 = vld [vmem:[#allocation3 + $0xc2] sm:$0xff] }
 0x9c5   :  { %12707 = vmatprep.mubr.bf16.mxu1 %v16859_v12  ;;  %v14021_v12 = vld [vmem:[%s18221_s4 + $0x220] sm:$0xff]   ;;  %v9476_v16 = vpack.c.bf16 %v9419_v42, %v9418_v33  ;;  %v9463_v42 = vld [vmem:[#allocation3 + $0x30a] sm:$0xff] }
 0x9c6   :  { %v9462_v33 = vld [vmem:[#allocation3 + $0x302] sm:$0xff] }
 0x9cc   :  { %12708 = vmatmul.mubr.bf16.vlgmr.msra.gmra.mrb[0].mxu1 %v16864_v23  ;;  %v14022_v23 = vld [vmem:[%s18221_s4 + $0x228] sm:$0xff]  }
 0x9cd   :  { %12711 = vmatprep.mubr.bf16.mxu1 %v16871_v47  ;;  %12772 = vmatpush3.bf16.msra.mxu1 %v17061_v31  ;;  %v14023_v47 = vld [vmem:[%s18221_s4 + $0x230] sm:$0xff]  }
 0x9ce   :  { %12773 = vmatprep.subr.bf16.mxu1 %v14018_v27  ;;  %v9417_v31 = vld [vmem:[#allocation3 + $0xb2] sm:$0xff] }
 0x9d1   :  { %12774 = vmatpush3.bf16.msra.mxu1 %v14018_v27  ;;  %v9486_v27 = vpack.c.bf16 %v9439_v36, %v9438_v20 }
 0x9d2   :  { %12775 = vmatprep.subr.bf16.mxu1 %v14019_v19 }
 0x9d4   :  { %12712 = vmatmul.mubr.bf16.gmra.mrb[4].mxu1 %v16876_v59  ;;  %v14024_v59 = vld [vmem:[%s18221_s4 + $0x238] sm:$0xff]  }
 0x9d5   :  { %12715 = vmatprep.mubr.bf16.mxu1 %v16883_v58  ;;  %12776 = vmatpush3.bf16.msra.mxu1 %v14019_v19  ;;  %v8923_v58 = vld [vmem:[#allocation3 + $0x199] sm:$0xff] }
 0x9d6   :  { %12777 = vmatprep.subr.bf16.mxu1 %v14020_v5  ;;  %v9440_v19 = vld [vmem:[#allocation3 + $0x1fa] sm:$0xff] }
 0x9d9   :  { %12778 = vmatpush3.bf16.msra.mxu1 %v14020_v5  ;;  %v9441_v5 = vld [vmem:[#allocation3 + $0x202] sm:$0xff] }
 0x9da   :  { %12779 = vmatprep.subr.bf16.mxu1 %v14021_v12 }
 0x9dc   :  { %12716 = vmatmul.mubr.bf16.gmra.mrb[8].mxu1 %v16888_v62  ;;  %v8924_v62 = vld [vmem:[#allocation3 + $0x1a1] sm:$0xff] }
 0x9dd   :  { %12719 = vmatprep.mubr.bf16.mxu1 %v16895_v43  ;;  %12780 = vmatpush3.bf16.msra.mxu1 %v14021_v12  ;;  %v8972_v43 = vpack.c.bf16 %v8924_v62, %v8923_v58  ;;  %v9442_v12 = vld [vmem:[#allocation3 + $0x212] sm:$0xff]  ;;  %v9444_v58 = vld [vmem:[#allocation3 + $0x22a] sm:$0xff] }
 0x9de   :  { %12781 = vmatprep.subr.bf16.mxu1 %v14022_v23  ;;  %v9445_v62 = vld [vmem:[#allocation3 + $0x232] sm:$0xff] }
 0x9e1   :  { %12782 = vmatpush3.bf16.msra.mxu1 %v14022_v23  ;;  %v9443_v23 = vld [vmem:[#allocation3 + $0x21a] sm:$0xff] }
 0x9e2   :  { %12783 = vmatprep.subr.bf16.mxu1 %v14023_v47 }
 0x9e4   :  { %12720 = vmatmul.mubr.bf16.gmra.mrb[12].mxu1 %v16900_v1  ;;  %v18528_v1 = vld [vmem:[#allocation18_spill] sm:$0xff] }
 0x9e5   :  { %12723 = vmatprep.mubr.bf16.mxu1 %v16909_v40  ;;  %12784 = vmatpush3.bf16.msra.mxu1 %v14023_v47  ;;  %v18529_v40 = vld [vmem:[#allocation15_spill] sm:$0xff]  ;;  %v9487_v47 = vpack.c.bf16 %v9441_v5, %v9440_v19 }
 0x9e6   :  { %12785 = vmatprep.subr.bf16.mxu1 %v14024_v59 }
 0x9e9   :  { %12786 = vmatpush3.bf16.msra.mxu1 %v14024_v59  ;;  %v9488_v59 = vpack.c.bf16 %v9443_v23, %v9442_v12 }
 0x9ec   :  { %12724 = vmatmul.mubr.bf16.gmra.mrb[16].mxu1 %v16912_v28  ;;  %v8955_v28 = vld [vmem:[#allocation3 + $0x349] sm:$0xff] }
 0x9ed   :  { %12727 = vmatprep.mubr.bf16.mxu1 %v16916_v7  ;;  %v8956_v7 = vld [vmem:[#allocation3 + $0x351] sm:$0xff] }
 0x9f4   :  { %12728 = vmatmul.mubr.bf16.gmra.mrb[20].mxu1 %v16918_v3  ;;  %v8988_v3 = vpack.c.bf16 %v8956_v7, %v8955_v28  ;;  %v9448_v28 = vld [vmem:[#allocation3 + $0x25a] sm:$0xff]  ;;  %v9449_v7 = vld [vmem:[#allocation3 + $0x262] sm:$0xff] }
 0x9f5   :  { %12731 = vmatprep.mubr.bf16.mxu1 %v16922_v49  ;;  %v9406_v49 = vld [vmem:[#allocation3 + $0x32] sm:$0xff] }
 0x9fc   :  { %12732 = vmatmul.mubr.bf16.gmra.mrb[24].mxu1 %v16924_v44  ;;  %v9407_v44 = vld [vmem:[#allocation3 + $0x3a] sm:$0xff] }
 0x9fd   :  { %12735 = vmatprep.mubr.bf16.mxu1 %v16928_v13  ;;  %v9470_v13 = vpack.c.bf16 %v9407_v44, %v9406_v49  ;;  %v9451_v49 = vld [vmem:[#allocation3 + $0x27a] sm:$0xff]  ;;  %v9491_v44 = vpack.c.bf16 %v9449_v7, %v9448_v28 }
 0xa04   :  { %12736 = vmatmul.mubr.bf16.gmra.mrb[28].mxu1 %v8972_v43  ;;  %v9446_v43 = vld [vmem:[#allocation3 + $0x242] sm:$0xff] }
 0xa05   :  { %12739 = vmatprep.mubr.bf16.mxu1 %v16931_v41  ;;  %v9408_v41 = vld [vmem:[#allocation3 + $0x4a] sm:$0xff] }
 0xa0c   :  { %12740 = vmatmul.mubr.bf16.gmra.mrb[32].mxu1 %v16933_v26  ;;  %v9409_v26 = vld [vmem:[#allocation3 + $0x52] sm:$0xff] }
 0xa0d   :  { %12743 = vmatprep.mubr.bf16.mxu1 %v16937_v46  ;;  %v9410_v46 = vld [vmem:[#allocation3 + $0x62] sm:$0xff] }
 0xa14   :  { %12744 = vmatmul.mubr.bf16.gmra.mrb[36].mxu1 %v16939_v52  ;;  %v9411_v52 = vld [vmem:[#allocation3 + $0x6a] sm:$0xff] }
 0xa15   :  { %12747 = vmatprep.mubr.bf16.mxu1 %v16943_v34  ;;  %v9471_v34 = vpack.c.bf16 %v9409_v26, %v9408_v41  ;;  %v9452_v41 = vld [vmem:[#allocation3 + $0x28a] sm:$0xff]  ;;  %v9453_v26 = vld [vmem:[#allocation3 + $0x292] sm:$0xff] }
 0xa1c   :  { %12748 = vmatmul.mubr.bf16.gmra.mrb[40].mxu1 %v16945_v21  ;;  %v9472_v21 = vpack.c.bf16 %v9411_v52, %v9410_v46  ;;  %v9454_v46 = vld [vmem:[#allocation3 + $0x2a2] sm:$0xff]  ;;  %v9455_v52 = vld [vmem:[#allocation3 + $0x2aa] sm:$0xff] }
 0xa1d   :  { %12751 = vmatprep.mubr.bf16.mxu1 %v16949_v15  ;;  %v9412_v15 = vld [vmem:[#allocation3 + $0x7a] sm:$0xff] }
 0xa24   :  { %12752 = vmatmul.mubr.bf16.gmra.mrb[44].mxu1 %v18528_v1  ;;  %v9489_v1 = vpack.c.bf16 %v9445_v62, %v9444_v58 }
 0xa25   :  { %12755 = vmatprep.mubr.bf16.mxu1 %v18529_v40 }
 0xa2c   :  { %12756 = vmatmul.mubr.bf16.gmra.mrb[48].mxu1 %v16957_v37  ;;  %v9415_v37 = vld [vmem:[#allocation3 + $0x9a] sm:$0xff] }
 0xa2d   :  { %12759 = vmatprep.mubr.bf16.mxu1 %v16961_v39 }
 0xa34   :  { %12760 = vmatmul.mubr.bf16.gmra.mrb[52].mxu1 %v16963_v10 }
 0xa35   :  { %12763 = vmatprep.mubr.bf16.mxu1 %v16967_v18  ;;  %v9413_v18 = vld [vmem:[#allocation3 + $0x82] sm:$0xff] }
 0xa36   :  { %v9473_v39 = vpack.c.bf16 %v9413_v18, %v9412_v15  ;;  %v9456_v15 = vld [vmem:[#allocation3 + $0x2ba] sm:$0xff]  ;;  %v9457_v18 = vld [vmem:[#allocation3 + $0x2c2] sm:$0xff] }
 0xa3c   :  { %12764 = vmatmul.mubr.bf16.gmra.mrb[56].mxu1 %v16969_v25  ;;  %v9414_v25 = vld [vmem:[#allocation3 + $0x92] sm:$0xff] }
 0xa3d   :  { %12767 = vmatprep.mubr.bf16.mxu1 %v16973_v53  ;;  %v9474_v10 = vpack.c.bf16 %v9415_v37, %v9414_v25  ;;  %v9416_v53 = vld [vmem:[#allocation3 + $0xaa] sm:$0xff]  ;;  %v9458_v25 = vld [vmem:[#allocation3 + $0x2d2] sm:$0xff]  ;;  %v9459_v37 = vld [vmem:[#allocation3 + $0x2da] sm:$0xff] }
 0xa3e   :  { %v9475_v2 = vpack.c.bf16 %v9417_v31, %v9416_v53  ;;  %v9460_v53 = vld [vmem:[#allocation3 + $0x2ea] sm:$0xff]  ;;  %v9461_v31 = vld [vmem:[#allocation3 + $0x2f2] sm:$0xff] }
 0xa44   :  { %12768 = vmatmul.mubr.bf16.gmra.mrb[60].mxu1 %v8988_v3  ;;  %v9450_v3 = vld [vmem:[#allocation3 + $0x272] sm:$0xff] }
 0xa45   :  { %12787 = vmatprep.mubr.bf16.mxu1 %v9470_v13  ;;  %v9492_v13 = vpack.c.bf16 %v9451_v49, %v9450_v3 }
 0xa4c   :  { %12788 = vmatmul.mubr.bf16.vlgmr.msra.gmra.mrb[0].mxu1 %v9471_v34  ;;  %v9493_v34 = vpack.c.bf16 %v9453_v26, %v9452_v41 }
 0xa4d   :  { %12791 = vmatprep.mubr.bf16.mxu1 %v9472_v21  ;;  %v9494_v21 = vpack.c.bf16 %v9455_v52, %v9454_v46 }
 0xa54   :  { %12792 = vmatmul.mubr.bf16.gmra.mrb[4].mxu1 %v9473_v39  ;;  %v9495_v39 = vpack.c.bf16 %v9457_v18, %v9456_v15 }
 0xa55   :  { %12795 = vmatprep.mubr.bf16.mxu1 %v9474_v10  ;;  %v9496_v10 = vpack.c.bf16 %v9459_v37, %v9458_v25 }
 0xa5c   :  { %12796 = vmatmul.mubr.bf16.gmra.mrb[8].mxu1 %v9475_v2  ;;  %v9497_v2 = vpack.c.bf16 %v9461_v31, %v9460_v53 }
 0xa5d   :  { %12799 = vmatprep.mubr.bf16.mxu1 %v9476_v16  ;;  %v9498_v16 = vpack.c.bf16 %v9463_v42, %v9462_v33 }
 0xa64   :  { %12800 = vmatmul.mubr.bf16.gmra.mrb[12].mxu1 %v9477_v50  ;;  %v9469_v50 = vld [vmem:[#allocation3 + $0x352] sm:$0xff] }
 0xa65   :  { %12803 = vmatprep.mubr.bf16.mxu1 %v9478_v24  ;;  %v9501_v24 = vpack.c.bf16 %v9469_v50, %v9468_v35 }
 0xa6c   :  { %12804 = vmatmul.mubr.bf16.gmra.mrb[16].mxu1 %v9479_v48 }
 0xa6d   :  { %12807 = vmatprep.mubr.bf16.mxu1 %v9480_v51 }
 0xa74   :  { %12808 = vmatmul.mubr.bf16.gmra.mrb[20].mxu1 %v9481_v60 }
 0xa75   :  { %12811 = vmatprep.mubr.bf16.mxu1 %v9482_v0 }
 0xa7c   :  { %12812 = vmatmul.mubr.bf16.gmra.mrb[24].mxu1 %v9483_v9 }
 0xa7d   :  { %12815 = vmatprep.mubr.bf16.mxu1 %v17016_v30  ;;  %v9447_v30 = vld [vmem:[#allocation3 + $0x24a] sm:$0xff] }
 0xa7e   :  { %v9490_v40 = vpack.c.bf16 %v9447_v30, %v9446_v43 }
 0xa84   :  { %12816 = vmatmul.mubr.bf16.gmra.mrb[28].mxu1 %v9485_v63 }
 0xa85   :  { %12819 = vmatprep.mubr.bf16.mxu1 %v9486_v27 }
 0xa8c   :  { %12820 = vmatmul.mubr.bf16.gmra.mrb[32].mxu1 %v9487_v47 }
 0xa8d   :  { %12823 = vmatprep.mubr.bf16.mxu1 %v9488_v59 }
 0xa94   :  { %12824 = vmatmul.mubr.bf16.gmra.mrb[36].mxu1 %v9489_v1 }
 0xa95   :  { %12827 = vmatprep.mubr.bf16.mxu1 %v9490_v40 }
 0xa9c   :  { %12828 = vmatmul.mubr.bf16.gmra.mrb[40].mxu1 %v9491_v44 }
 0xa9d   :  { %12831 = vmatprep.mubr.bf16.mxu1 %v9492_v13 }
 0xaa4   :  { %12832 = vmatmul.mubr.bf16.gmra.mrb[44].mxu1 %v9493_v34 }
 0xaa5   :  { %12835 = vmatprep.mubr.bf16.mxu1 %v9494_v21 }
 0xaac   :  { %12836 = vmatmul.mubr.bf16.gmra.mrb[48].mxu1 %v9495_v39 }
 0xaad   :  { %12839 = vmatprep.mubr.bf16.mxu1 %v9496_v10 }
 0xab4   :  { %12840 = vmatmul.mubr.bf16.gmra.mrb[52].mxu1 %v9497_v2 }
 0xab5   :  { %12843 = vmatprep.mubr.bf16.mxu1 %v9498_v16 }
 0xabc   :  { %12844 = vmatmul.mubr.bf16.gmra.mrb[56].mxu1 %v9499_v61 }
 0xabd   :  { %12847 = vmatprep.mubr.bf16.mxu1 %v17034_v4 }
 0xac4   :  { %12848 = vmatmul.mubr.bf16.gmra.mrb[60].mxu1 %v9501_v24 }
 0xb1f   :  { %v17120_v29 = vpop.f32.mrb[0].mxu1 }
 0xb20   :  { %v17122_v38 = vpop.f32.mrb[1].mxu1  ;;  %v9990_v11 = vmul.f32 %v17120_v29, %v17120_v29 }
 0xb21   :  { %v17124_v22 = vpop.f32.mrb[2].mxu1  ;;  %v9988_v48 = vmul.f32 %v17122_v38, %v17122_v38 }
 0xb22   :  { %v17126_v6 = vpop.f32.mrb[3].mxu1  ;;  %v9991_v54 = vmul.f32 %v17124_v22, %v17124_v22 }
 0xb23   :  { %v9919_v51 = vadd.f32 %v17126_v6, %v17122_v38  ;;  %v9989_v4 = vmul.f32 %v17126_v6, %v17126_v6 }
 0xb25   :  { %v9920_v45 = vadd.f32 %v17120_v29, %v9919_v51  ;;  %v10052_v8 = vadd.f32 %v9989_v4, %v9988_v48 }
 0xb27   :  { %v10053_v60 = vadd.f32 %v10052_v8, %v9990_v11  ;;  %v17139_v0 = vpop.f32.mrb[4].mxu1  ;;  %v9921_v32 = vadd.f32 %v17124_v22, %v9920_v45 }
 0xb28   :  { %v17142_v57 = vpop.f32.mrb[5].mxu1  ;;  %v9994_v5 = vmul.f32 %v17139_v0, %v17139_v0 }
 0xb29   :  { %v9922_v9 = vadd.f32 %v9921_v32, %v17142_v57  ;;  %v9992_v17 = vmul.f32 %v17142_v57, %v17142_v57  ;;  %v10054_v56 = vadd.f32 %v10053_v60, %v9991_v54  ;;  %v17147_v63 = vpop.f32.mrb[6].mxu1 }
 0xb2a   :  { %v17149_v20 = vpop.f32.mrb[7].mxu1  ;;  %v9995_v47 = vmul.f32 %v17147_v63, %v17147_v63 }
 0xb2b   :  { %v10055_v36 = vadd.f32 %v10054_v56, %v9992_v17  ;;  %v9923_v27 = vadd.f32 %v9922_v9, %v17149_v20  ;;  %v9993_v19 = vmul.f32 %v17149_v20, %v17149_v20 }
 0xb2d   :  { %v9924_v12 = vadd.f32 %v17139_v0, %v9923_v27  ;;  %v10056_v23 = vadd.f32 %v10055_v36, %v9993_v19 }
 0xb2f   :  { %v10057_v59 = vadd.f32 %v10056_v23, %v9994_v5  ;;  %v17159_v58 = vpop.f32.mrb[8].mxu1  ;;  %v9925_v62 = vadd.f32 %v17147_v63, %v9924_v12 }
 0xb30   :  { %v17162_v43 = vpop.f32.mrb[9].mxu1  ;;  %v9998_v13 = vmul.f32 %v17159_v58, %v17159_v58 }
 0xb31   :  { %v9926_v30 = vadd.f32 %v9925_v62, %v17162_v43  ;;  %v9996_v1 = vmul.f32 %v17162_v43, %v17162_v43  ;;  %v10058_v40 = vadd.f32 %v10057_v59, %v9995_v47  ;;  %v17167_v28 = vpop.f32.mrb[10].mxu1 }
 0xb32   :  { %v17169_v7 = vpop.f32.mrb[11].mxu1  ;;  %v9999_v46 = vmul.f32 %v17167_v28, %v17167_v28 }
 0xb33   :  { %v10059_v3 = vadd.f32 %v10058_v40, %v9996_v1  ;;  %v9927_v49 = vadd.f32 %v9926_v30, %v17169_v7  ;;  %v9997_v44 = vmul.f32 %v17169_v7, %v17169_v7 }
 0xb35   :  { %v9928_v41 = vadd.f32 %v17159_v58, %v9927_v49  ;;  %v10060_v26 = vadd.f32 %v10059_v3, %v9997_v44 }
 0xb37   :  { %v10061_v52 = vadd.f32 %v10060_v26, %v9998_v13  ;;  %v17179_v34 = vpop.f32.mrb[12].mxu1  ;;  %v9929_v21 = vadd.f32 %v17167_v28, %v9928_v41 }
 0xb38   :  { %v17182_v15 = vpop.f32.mrb[13].mxu1  ;;  %v10002_v42 = vmul.f32 %v17179_v34, %v17179_v34 }
 0xb39   :  { %v9930_v18 = vadd.f32 %v9929_v21, %v17182_v15  ;;  %v10000_v25 = vmul.f32 %v17182_v15, %v17182_v15  ;;  %v10062_v37 = vadd.f32 %v10061_v52, %v9999_v46  ;;  %v17187_v39 = vpop.f32.mrb[14].mxu1 }
 0xb3a   :  { %v17189_v10 = vpop.f32.mrb[15].mxu1  ;;  %v10003_v14 = vmul.f32 %v17187_v39, %v17187_v39 }
 0xb3b   :  { %v10063_v53 = vadd.f32 %v10062_v37, %v10000_v25  ;;  %v9931_v31 = vadd.f32 %v9930_v18, %v17189_v10  ;;  %v10001_v33 = vmul.f32 %v17189_v10, %v17189_v10 }
 0xb3d   :  { %v9932_v2 = vadd.f32 %v17179_v34, %v9931_v31  ;;  %v10064_v16 = vadd.f32 %v10063_v53, %v10001_v33 }
 0xb3f   :  { %v10065_v55 = vadd.f32 %v10064_v16, %v10002_v42  ;;  %v17199_v61 = vpop.f32.mrb[16].mxu1  ;;  %v9933_v35 = vadd.f32 %v17187_v39, %v9932_v2 }
 0xb40   :  { %v17202_v50 = vpop.f32.mrb[17].mxu1  ;;  %v10006_v60 = vmul.f32 %v17199_v61, %v17199_v61 }
 0xb41   :  { %v9934_v24 = vadd.f32 %v9933_v35, %v17202_v50  ;;  %v10004_v48 = vmul.f32 %v17202_v50, %v17202_v50  ;;  %v10066_v51 = vadd.f32 %v10065_v55, %v10003_v14  ;;  %v17207_v4 = vpop.f32.mrb[18].mxu1 }
 0xb42   :  { %v17209_v11 = vpop.f32.mrb[19].mxu1  ;;  %v10007_v17 = vmul.f32 %v17207_v4, %v17207_v4 }
 0xb43   :  { %v10067_v45 = vadd.f32 %v10066_v51, %v10004_v48  ;;  %v9935_v8 = vadd.f32 %v9934_v24, %v17209_v11  ;;  %v10005_v54 = vmul.f32 %v17209_v11, %v17209_v11 }
 0xb45   :  { %v9936_v32 = vadd.f32 %v17199_v61, %v9935_v8  ;;  %v10068_v9 = vadd.f32 %v10067_v45, %v10005_v54 }
 0xb47   :  { %v10069_v56 = vadd.f32 %v10068_v9, %v10006_v60  ;;  %v17219_v36 = vpop.f32.mrb[20].mxu1  ;;  %v9937_v27 = vadd.f32 %v17207_v4, %v9936_v32 }
 0xb48   :  { %v17222_v19 = vpop.f32.mrb[21].mxu1  ;;  %v10010_v40 = vmul.f32 %v17219_v36, %v17219_v36 }
 0xb49   :  { %v9938_v5 = vadd.f32 %v9937_v27, %v17222_v19  ;;  %v10008_v12 = vmul.f32 %v17222_v19, %v17222_v19  ;;  %v10070_v23 = vadd.f32 %v10069_v56, %v10007_v17  ;;  %v17227_v47 = vpop.f32.mrb[22].mxu1 }
 0xb4a   :  { %v17229_v59 = vpop.f32.mrb[23].mxu1  ;;  %v10011_v44 = vmul.f32 %v17227_v47, %v17227_v47 }
 0xb4b   :  { %v10071_v62 = vadd.f32 %v10070_v23, %v10008_v12  ;;  %v9939_v30 = vadd.f32 %v9938_v5, %v17229_v59  ;;  %v10009_v1 = vmul.f32 %v17229_v59, %v17229_v59 }
 0xb4d   :  { %v9940_v3 = vadd.f32 %v17219_v36, %v9939_v30  ;;  %v10072_v49 = vadd.f32 %v10071_v62, %v10009_v1 }
 0xb4f   :  { %v10073_v13 = vadd.f32 %v10072_v49, %v10010_v40  ;;  %v17239_v41 = vpop.f32.mrb[24].mxu1  ;;  %v9941_v26 = vadd.f32 %v17227_v47, %v9940_v3 }
 0xb50   :  { %v17242_v46 = vpop.f32.mrb[25].mxu1  ;;  %v10014_v42 = vmul.f32 %v17239_v41, %v17239_v41 }
 0xb51   :  { %v9942_v52 = vadd.f32 %v9941_v26, %v17242_v46  ;;  %v10012_v21 = vmul.f32 %v17242_v46, %v17242_v46  ;;  %v10074_v18 = vadd.f32 %v10073_v13, %v10011_v44  ;;  %v17247_v25 = vpop.f32.mrb[26].mxu1 }
 0xb52   :  { %v17249_v37 = vpop.f32.mrb[27].mxu1  ;;  %v10015_v14 = vmul.f32 %v17247_v25, %v17247_v25 }
 0xb53   :  { %v10075_v53 = vadd.f32 %v10074_v18, %v10012_v21  ;;  %v9943_v31 = vadd.f32 %v9942_v52, %v17249_v37  ;;  %v10013_v33 = vmul.f32 %v17249_v37, %v17249_v37 }
 0xb55   :  { %v9944_v2 = vadd.f32 %v17239_v41, %v9943_v31  ;;  %v10076_v16 = vadd.f32 %v10075_v53, %v10013_v33 }
 0xb57   :  { %v10077_v55 = vadd.f32 %v10076_v16, %v10014_v42  ;;  %v17259_v35 = vpop.f32.mrb[28].mxu1  ;;  %v9945_v24 = vadd.f32 %v17247_v25, %v9944_v2 }
 0xb58   :  { %v17262_v48 = vpop.f32.mrb[29].mxu1  ;;  %v10018_v56 = vmul.f32 %v17259_v35, %v17259_v35 }
 0xb59   :  { %v9946_v51 = vadd.f32 %v9945_v24, %v17262_v48  ;;  %v10016_v45 = vmul.f32 %v17262_v48, %v17262_v48  ;;  %v10078_v8 = vadd.f32 %v10077_v55, %v10015_v14  ;;  %v17267_v54 = vpop.f32.mrb[30].mxu1 }
 0xb5a   :  { %v17269_v60 = vpop.f32.mrb[31].mxu1  ;;  %v10019_v12 = vmul.f32 %v17267_v54, %v17267_v54 }
 0xb5b   :  { %v10079_v32 = vadd.f32 %v10078_v8, %v10016_v45  ;;  %v9947_v9 = vadd.f32 %v9946_v51, %v17269_v60  ;;  %v10017_v17 = vmul.f32 %v17269_v60, %v17269_v60 }
 0xb5d   :  { %v9948_v27 = vadd.f32 %v17259_v35, %v9947_v9  ;;  %v10080_v5 = vadd.f32 %v10079_v32, %v10017_v17 }
 0xb5f   :  { %v10081_v23 = vadd.f32 %v10080_v5, %v10018_v56  ;;  %v17279_v62 = vpop.f32.mrb[32].mxu1  ;;  %v9949_v30 = vadd.f32 %v17267_v54, %v9948_v27 }
 0xb60   :  { %v17282_v1 = vpop.f32.mrb[33].mxu1  ;;  %v10022_v18 = vmul.f32 %v17279_v62, %v17279_v62 }
 0xb61   :  { %v9950_v40 = vadd.f32 %v9949_v30, %v17282_v1  ;;  %v10020_v3 = vmul.f32 %v17282_v1, %v17282_v1  ;;  %v10082_v49 = vadd.f32 %v10081_v23, %v10019_v12  ;;  %v17287_v44 = vpop.f32.mrb[34].mxu1 }
 0xb62   :  { %v17289_v13 = vpop.f32.mrb[35].mxu1  ;;  %v10023_v33 = vmul.f32 %v17287_v44, %v17287_v44 }
 0xb63   :  { %v10083_v26 = vadd.f32 %v10082_v49, %v10020_v3  ;;  %v9951_v52 = vadd.f32 %v9950_v40, %v17289_v13  ;;  %v10021_v21 = vmul.f32 %v17289_v13, %v17289_v13 }
 0xb65   :  { %v9952_v53 = vadd.f32 %v17279_v62, %v9951_v52  ;;  %v10084_v31 = vadd.f32 %v10083_v26, %v10021_v21 }
 0xb67   :  { %v10085_v42 = vadd.f32 %v10084_v31, %v10022_v18  ;;  %v17299_v2 = vpop.f32.mrb[36].mxu1  ;;  %v9953_v16 = vadd.f32 %v17287_v44, %v9952_v53 }
 0xb68   :  { %18530 = vst [vmem:[#allocation17_spill] sm:$0xff] %v17299_v2  ;;  %v17302_v14 = vpop.f32.mrb[37].mxu1  ;;  %v10026_v56 = vmul.f32 %v17299_v2, %v17299_v2 }
 0xb69   :  { %v9954_v55 = vadd.f32 %v9953_v16, %v17302_v14  ;;  %v10024_v24 = vmul.f32 %v17302_v14, %v17302_v14  ;;  %v10086_v51 = vadd.f32 %v10085_v42, %v10023_v33  ;;  %v17307_v45 = vpop.f32.mrb[38].mxu1 }
 0xb6a   :  { %18531 = vst [vmem:[#allocation27_spill] sm:$0xff] %v17307_v45  ;;  %v17309_v8 = vpop.f32.mrb[39].mxu1  ;;  %v10027_v12 = vmul.f32 %v17307_v45, %v17307_v45 }
 0xb6b   :  { %v10087_v32 = vadd.f32 %v10086_v51, %v10024_v24  ;;  %v9955_v9 = vadd.f32 %v9954_v55, %v17309_v8  ;;  %v10025_v17 = vmul.f32 %v17309_v8, %v17309_v8 }
 0xb6d   :  { %v9956_v27 = vadd.f32 %v17299_v2, %v9955_v9  ;;  %v10088_v5 = vadd.f32 %v10087_v32, %v10025_v17 }
 0xb6f   :  { %v10089_v23 = vadd.f32 %v10088_v5, %v10026_v56  ;;  %v17319_v30 = vpop.f32.mrb[40].mxu1  ;;  %v9957_v40 = vadd.f32 %v17307_v45, %v9956_v27 }
 0xb70   :  { %18532 = vst [vmem:[#allocation24_spill] sm:$0xff] %v17319_v30  ;;  %v17322_v3 = vpop.f32.mrb[41].mxu1  ;;  %v10030_v42 = vmul.f32 %v17319_v30, %v17319_v30 }
 0xb71   :  { %18533 = vst [vmem:[#allocation26_spill] sm:$0xff] %v17322_v3  ;;  %v9958_v49 = vadd.f32 %v9957_v40, %v17322_v3  ;;  %v10028_v26 = vmul.f32 %v17322_v3, %v17322_v3  ;;  %v10090_v52 = vadd.f32 %v10089_v23, %v10027_v12  ;;  %v17327_v21 = vpop.f32.mrb[42].mxu1 }
 0xb72   :  { %18534 = vst [vmem:[#allocation29_spill] sm:$0xff] %v17327_v21  ;;  %v17329_v18 = vpop.f32.mrb[43].mxu1  ;;  %v10031_v24 = vmul.f32 %v17327_v21, %v17327_v21 }
 0xb73   :  { %18535 = vst [vmem:[#allocation33_spill] sm:$0xff] %v17329_v18  ;;  %v10091_v53 = vadd.f32 %v10090_v52, %v10028_v26  ;;  %v9959_v31 = vadd.f32 %v9958_v49, %v17329_v18  ;;  %v10029_v33 = vmul.f32 %v17329_v18, %v17329_v18 }
 0xb75   :  { %v9960_v16 = vadd.f32 %v17319_v30, %v9959_v31  ;;  %v10092_v55 = vadd.f32 %v10091_v53, %v10029_v33 }
 0xb77   :  { %v10093_v51 = vadd.f32 %v10092_v55, %v10030_v42  ;;  %v17339_v32 = vpop.f32.mrb[44].mxu1  ;;  %v9961_v9 = vadd.f32 %v17327_v21, %v9960_v16 }
 0xb78   :  { %18536 = vst [vmem:[#allocation35_spill] sm:$0xff] %v17339_v32  ;;  %v17342_v17 = vpop.f32.mrb[45].mxu1  ;;  %v10034_v52 = vmul.f32 %v17339_v32, %v17339_v32 }
 0xb79   :  { %18537 = vst [vmem:[#allocation32_spill] sm:$0xff] %v17342_v17  ;;  %v9962_v56 = vadd.f32 %v9961_v9, %v17342_v17  ;;  %v10032_v27 = vmul.f32 %v17342_v17, %v17342_v17  ;;  %v10094_v5 = vadd.f32 %v10093_v51, %v10031_v24  ;;  %v17347_v12 = vpop.f32.mrb[46].mxu1 }
 0xb7a   :  { %18538 = vst [vmem:[#allocation34_spill] sm:$0xff] %v17347_v12  ;;  %v17349_v23 = vpop.f32.mrb[47].mxu1  ;;  %v10035_v33 = vmul.f32 %v17347_v12, %v17347_v12 }
 0xb7b   :  { %18539 = vst [vmem:[#allocation37_spill] sm:$0xff] %v17349_v23  ;;  %v10095_v40 = vadd.f32 %v10094_v5, %v10032_v27  ;;  %v9963_v49 = vadd.f32 %v9962_v56, %v17349_v23  ;;  %v10033_v26 = vmul.f32 %v17349_v23, %v17349_v23 }
 0xb7d   :  { %v9964_v53 = vadd.f32 %v17339_v32, %v9963_v49  ;;  %v10096_v31 = vadd.f32 %v10095_v40, %v10033_v26 }
 0xb7f   :  { %v10097_v42 = vadd.f32 %v10096_v31, %v10034_v52  ;;  %v17359_v16 = vpop.f32.mrb[48].mxu1  ;;  %v9965_v55 = vadd.f32 %v17347_v12, %v9964_v53 }
 0xb80   :  { %18540 = vst [vmem:[#allocation21_spill] sm:$0xff] %v17359_v16  ;;  %v17362_v24 = vpop.f32.mrb[49].mxu1  ;;  %v10038_v52 = vmul.f32 %v17359_v16, %v17359_v16 }
 0xb81   :  { %18541 = vst [vmem:[#allocation20_spill] sm:$0xff] %v17362_v24  ;;  %v9966_v51 = vadd.f32 %v9965_v55, %v17362_v24  ;;  %v10036_v9 = vmul.f32 %v17362_v24, %v17362_v24  ;;  %v10098_v56 = vadd.f32 %v10097_v42, %v10035_v33  ;;  %v17367_v27 = vpop.f32.mrb[50].mxu1 }
 0xb82   :  { %18542 = vst [vmem:[#allocation23_spill] sm:$0xff] %v17367_v27  ;;  %v17369_v5 = vpop.f32.mrb[51].mxu1  ;;  %v10039_v55 = vmul.f32 %v17367_v27, %v17367_v27 }
 0xb83   :  { %18543 = vst [vmem:[#allocation19_spill] sm:$0xff] %v17369_v5  ;;  %v10099_v40 = vadd.f32 %v10098_v56, %v10036_v9  ;;  %v9967_v49 = vadd.f32 %v9966_v51, %v17369_v5  ;;  %v10037_v26 = vmul.f32 %v17369_v5, %v17369_v5 }
 0xb85   :  { %v9968_v53 = vadd.f32 %v17359_v16, %v9967_v49  ;;  %v10100_v31 = vadd.f32 %v10099_v40, %v10037_v26 }
 0xb87   :  { %v10101_v33 = vadd.f32 %v10100_v31, %v10038_v52  ;;  %v17379_v42 = vpop.f32.mrb[52].mxu1  ;;  %v9969_v24 = vadd.f32 %v17367_v27, %v9968_v53 }
 0xb88   :  { %18544 = vst [vmem:[#allocation22_spill] sm:$0xff] %v17379_v42  ;;  %v17382_v9 = vpop.f32.mrb[53].mxu1  ;;  %v10042_v53 = vmul.f32 %v17379_v42, %v17379_v42 }
 0xb89   :  { %18545 = vst [vmem:[#allocation25_spill] sm:$0xff] %v17382_v9  ;;  %v9970_v51 = vadd.f32 %v9969_v24, %v17382_v9  ;;  %v10040_v56 = vmul.f32 %v17382_v9, %v17382_v9  ;;  %v10102_v5 = vadd.f32 %v10101_v33, %v10039_v55  ;;  %v17387_v12 = vpop.f32.mrb[54].mxu1 }
 0xb8a   :  { %18546 = vst [vmem:[#allocation31_spill] sm:$0xff] %v17387_v12  ;;  %v17389_v49 = vpop.f32.mrb[55].mxu1  ;;  %v10043_v9 = vmul.f32 %v17387_v12, %v17387_v12 }
 0xb8b   :  { %18547 = vst [vmem:[#allocation28_spill] sm:$0xff] %v17389_v49  ;;  %v10103_v40 = vadd.f32 %v10102_v5, %v10040_v56  ;;  %v9971_v26 = vadd.f32 %v9970_v51, %v17389_v49  ;;  %v10041_v52 = vmul.f32 %v17389_v49, %v17389_v49 }
 0xb8d   :  { %v9972_v31 = vadd.f32 %v17379_v42, %v9971_v26  ;;  %v10104_v24 = vadd.f32 %v10103_v40, %v10041_v52 }
 0xb8f   :  { %v10105_v55 = vadd.f32 %v10104_v24, %v10042_v53  ;;  %v17399_v33 = vpop.f32.mrb[56].mxu1  ;;  %v9973_v27 = vadd.f32 %v17387_v12, %v9972_v31 }
 0xb90   :  { %18548 = vst [vmem:[#allocation30_spill] sm:$0xff] %v17399_v33  ;;  %v17402_v5 = vpop.f32.mrb[57].mxu1  ;;  %v10046_v31 = vmul.f32 %v17399_v33, %v17399_v33 }
 0xb91   :  { %18549 = vst [vmem:[#allocation39_spill] sm:$0xff] %v17402_v5  ;;  %v9974_v51 = vadd.f32 %v9973_v27, %v17402_v5  ;;  %v10044_v56 = vmul.f32 %v17402_v5, %v17402_v5  ;;  %v10106_v49 = vadd.f32 %v10105_v55, %v10043_v9  ;;  %v17407_v16 = vpop.f32.mrb[58].mxu1 }
 0xb92   :  { %18550 = vst [vmem:[#allocation36_spill] sm:$0xff] %v17407_v16  ;;  %v17409_v26 = vpop.f32.mrb[59].mxu1  ;;  %v10047_v5 = vmul.f32 %v17407_v16, %v17407_v16 }
 0xb93   :  { %18551 = vst [vmem:[#allocation13_spill] sm:$0xff] %v17409_v26  ;;  %v10107_v40 = vadd.f32 %v10106_v49, %v10044_v56  ;;  %v9975_v52 = vadd.f32 %v9974_v51, %v17409_v26  ;;  %v10045_v53 = vmul.f32 %v17409_v26, %v17409_v26 }
 0xb95   :  { %v9976_v24 = vadd.f32 %v17399_v33, %v9975_v52  ;;  %v10108_v27 = vadd.f32 %v10107_v40, %v10045_v53 }
 0xb97   :  { %v10109_v9 = vadd.f32 %v10108_v27, %v10046_v31  ;;  %v17419_v55 = vpop.f32.mrb[60].mxu1  ;;  %v9977_v12 = vadd.f32 %v17407_v16, %v9976_v24 }
 0xb98   :  { %18552 = vst [vmem:[#allocation14_spill] sm:$0xff] %v17419_v55  ;;  %v17422_v49 = vpop.f32.mrb[61].mxu1  ;;  %v10050_v31 = vmul.f32 %v17419_v55, %v17419_v55 }
 0xb99   :  { %18553 = vst [vmem:[#allocation16_spill] sm:$0xff] %v17422_v49  ;;  %v9978_v51 = vadd.f32 %v9977_v12, %v17422_v49  ;;  %v10048_v56 = vmul.f32 %v17422_v49, %v17422_v49  ;;  %v10110_v26 = vadd.f32 %v10109_v9, %v10047_v5  ;;  %v17427_v42 = vpop.f32.mrb[62].mxu1 }
 0xb9a   :  { %v9843_v52 = vpop.f32.mrb[63].mxu1  ;;  %v10051_v16 = vmul.f32 %v17427_v42, %v17427_v42 }
 0xb9b   :  { %v10111_v40 = vadd.f32 %v10110_v26, %v10048_v56  ;;  %v9979_v53 = vadd.f32 %v9978_v51, %v9843_v52  ;;  %v10049_v33 = vmul.f32 %v9843_v52, %v9843_v52 }
 0xb9d   :  { %v9980_v27 = vadd.f32 %v17419_v55, %v9979_v53  ;;  %v10112_v24 = vadd.f32 %v10111_v40, %v10049_v33 }
 0xb9f   :  { %v9981_v12 = vadd.f32 %v17427_v42, %v9980_v27  ;;  %v10113_v32 = vadd.f32 %v10112_v24, %v10050_v31 }
 0xba1   :  { %v9982_v49 = vrot.slane %v9981_v12, 4  ;;  %v10114_v5 = vadd.f32 %v10113_v32, %v10051_v16  ;;  %v10126_v32 = vld [vmem:[%s18222_s5] sm:$0x1]  ;;  %s14106_s5 = smov [#allocation9]  }
 0xba3   :  { %v9983_v9 = vadd.f32 %v9982_v49, %v9981_v12  ;;  %v10115_v23 = vrot.slane %v10114_v5, 4  ;;  %v18554_v49 = vld [vmem:[#allocation38_spill] sm:$0xff] }
 0xba5   :  { %v9984_v17 = vrot.slane %v9983_v9, 2  ;;  %v10116_v26 = vadd.f32 %v10115_v23, %v10114_v5 }
 0xba7   :  { %v9985_v51 = vadd.f32 %v9984_v17, %v9983_v9  ;;  %v10117_v56 = vrot.slane %v10116_v26, 2  ;;  %v10130_v17 = vld [vmem:[%s18223_s6] sm:$0x1]  ;;  %s10534_s6 = sshll.u32 %s14106_s5, 4  ;;  %s10535_s6 = int_to_ptr.vmem [resolvable:$true] %s10534_s6 }
 0xba8   :  { %s14075_s22 = scalar_lea.vmem %s10535_s6, 8192  ;;  %p14080_p3 = scmp.lt.s32.totalorder %s10535_s6, %s10535_s6 }
 0xba9   :  { %v9986_v21 = vrot.slane %v9985_v51, 1  ;;  %v10118_v30 = vadd.f32 %v10117_v56, %v10116_v26  ;;  %v18556_v56 = vld [vmem:[#allocation27_spill] sm:$0xff]  ;;  %p14076_p2 = scmp.ne.s32.totalorder %s10535_s6, %s14075_s22  ;;  %p14081_p4 = scmp.lt.s32.totalorder %s14075_s22, %s14075_s22 }
 0xbab   :  { %v9987_v18 = vadd.f32 %v9986_v21, %v9985_v51  ;;  %v10119_v3 = vrot.slane %v10118_v30, 1  ;;  %p14082_p5 = por %p14081_p4, %p14080_p3 }
 0xbad   :  { %v10120_v53 = vadd.f32 %v10119_v3, %v10118_v30  ;;  %v10121_v33 = vmul.f32 0.001953125, %v9987_v18  ;;  %p14083_p6 = pnand %p14082_p5, %p14076_p2 }
 0xbaf   :  { %v10122_v40 = vmul.f32 0.001953125, %v10120_v53  ;;  %v10123_v55 = vmul.f32 %v10121_v33, %v10121_v33  ;;  %v18557_v53 = vld [vmem:[#allocation26_spill] sm:$0xff] }
 0xbb1   :  { %v10124_v45 = vsub.f32 %v10122_v40, %v10123_v55  ;;  %v18559_v40 = vld [vmem:[#allocation24_spill] sm:$0xff] }
 0xbb3   :  { %v10125_v2 = vmax.f32 %v10124_v45, 0.0 }
 0xbb5   :  { %v10127_v27 = vadd.f32 1e-05, %v10125_v2 }
 0xbb7   :  { %14027 = vrsqrt.f32 %v10127_v27  ;;  %v18560_v27 = vld [vmem:[#allocation29_spill] sm:$0xff] }
 0xbc1   :  { %v14028_v16 = vpop.eup %14027 }
 0xbc2   :  { %v10129_v23 = vmul.f32 %v14028_v16, %v10126_v32  ;;  %v18561_v16 = vld [vmem:[#allocation32_spill] sm:$0xff] }
 0xbc4   :  { %v10131_v21 = vmul.f32 %v10129_v23, %v10121_v33  ;;  %v17442_v30 = vrot.slane %v10129_v23, %v18554_v49  ;;  %v18558_v33 = vld [vmem:[#allocation33_spill] sm:$0xff] }
 0xbc6   :  { %v10132_v3 = vsub.f32 %v10130_v17, %v10131_v21  ;;  %v10264_v18 = vmul.f32 %v17442_v30, %v9843_v52  ;;  %v17447_v2 = vmul.f32 %v17442_v30, %v17122_v38  ;;  %v17451_v45 = vmul.f32 %v17442_v30, %v17126_v6  ;;  %v18562_v17 = vld [vmem:[#allocation37_spill] sm:$0xff] }
 0xbc7   :  { %v17455_v55 = vmul.f32 %v17120_v29, %v17442_v30  ;;  %v17459_v31 = vmul.f32 %v17124_v22, %v17442_v30  ;;  %v17463_v24 = vmul.f32 %v17442_v30, %v17142_v57  ;;  %v17467_v38 = vmul.f32 %v17442_v30, %v17149_v20  ;;  %v10194_v57 = vld [vmem:[#allocation2 + $0x321] sm:$0xff] }
 0xbc8   :  { %v17470_v52 = vrot.slane %v10132_v3, %v18554_v49  ;;  %v17474_v6 = vmul.f32 %v17139_v0, %v17442_v30  ;;  %v17478_v29 = vmul.f32 %v17147_v63, %v17442_v30  ;;  %v17482_v22 = vmul.f32 %v17442_v30, %v17162_v43  ;;  %v18563_v49 = vld [vmem:[#allocation35_spill] sm:$0xff] }
 0xbc9   :  { %v17486_v20 = vmul.f32 %v17442_v30, %v17169_v7  ;;  %v17490_v12 = vmul.f32 %v17159_v58, %v17442_v30  ;;  %v17494_v0 = vmul.f32 %v17167_v28, %v17442_v30  ;;  %v17498_v63 = vmul.f32 %v17442_v30, %v17182_v15 }
 0xbca   :  { %v10334_v43 = vadd.f32 %v17470_v52, %v10264_v18  ;;  %v17503_v5 = vmul.f32 %v17442_v30, %v17189_v10  ;;  %v17507_v7 = vmul.f32 %v17179_v34, %v17442_v30  ;;  %v17511_v58 = vmul.f32 %v17187_v39, %v17442_v30  ;;  %v18564_v18 = vld [vmem:[#allocation34_spill] sm:$0xff] }
 0xbcb   :  { %v17515_v28 = vmul.f32 %v17442_v30, %v17202_v50  ;;  %v17519_v15 = vmul.f32 %v17442_v30, %v17209_v11  ;;  %v17523_v10 = vmul.f32 %v17199_v61, %v17442_v30  ;;  %v17527_v34 = vmul.f32 %v17207_v4, %v17442_v30 }
 0xbcc   :  { %v10398_v9 = vadd.f32 %v10334_v43, %v10194_v57  ;;  %v17531_v39 = vmul.f32 %v17442_v30, %v17222_v19  ;;  %v17535_v50 = vmul.f32 %v17442_v30, %v17229_v59  ;;  %v17539_v11 = vmul.f32 %v17219_v36, %v17442_v30  ;;  %v18565_v43 = vld [vmem:[#allocation20_spill] sm:$0xff] }
 0xbcd   :  { %v17543_v61 = vmul.f32 %v17227_v47, %v17442_v30  ;;  %v17547_v4 = vmul.f32 %v17442_v30, %v17242_v46  ;;  %v17551_v19 = vmul.f32 %v17442_v30, %v17249_v37  ;;  %v17555_v59 = vmul.f32 %v17239_v41, %v17442_v30 }
 0xbce   :  { %v10462_v26 = vmax.f32 %v10398_v9, 0.0  ;;  %v17559_v36 = vmul.f32 %v17247_v25, %v17442_v30  ;;  %v17563_v47 = vmul.f32 %v17442_v30, %v17262_v48  ;;  %v17567_v46 = vmul.f32 %v17442_v30, %v17269_v60 }
 0xbcf   :  { %v17571_v37 = vmul.f32 %v17259_v35, %v17442_v30  ;;  %v17575_v41 = vmul.f32 %v17267_v54, %v17442_v30  ;;  %v17579_v25 = vmul.f32 %v17442_v30, %v17282_v1  ;;  %v17583_v48 = vmul.f32 %v17442_v30, %v17289_v13  ;;  %v18555_v13 = vld [vmem:[#allocation17_spill] sm:$0xff] }
 0xbd0   :  { %10526 = vst [vmem:[#allocation9 + $0x1e8] sm:$0xff] %v10462_v26  ;;  %v17587_v60 = vmul.f32 %v17279_v62, %v17442_v30  ;;  %v17591_v35 = vmul.f32 %v17287_v44, %v17442_v30  ;;  %v17595_v54 = vmul.f32 %v17442_v30, %v17302_v14  ;;  %v17599_v1 = vmul.f32 %v17442_v30, %v17309_v8  ;;  %v18566_v26 = vld [vmem:[#allocation19_spill] sm:$0xff] }
 0xbd1   :  { %v17603_v51 = vmul.f32 %v18555_v13, %v17442_v30  ;;  %v17607_v62 = vmul.f32 %v18556_v56, %v17442_v30  ;;  %v17611_v44 = vmul.f32 %v17442_v30, %v18557_v53  ;;  %v17615_v14 = vmul.f32 %v17442_v30, %v18558_v33  ;;  %v18567_v56 = vld [vmem:[#allocation21_spill] sm:$0xff]  ;;  %v18569_v33 = vld [vmem:[#allocation23_spill] sm:$0xff] }
 0xbd2   :  { %v17619_v8 = vmul.f32 %v18559_v40, %v17442_v30  ;;  %v17623_v32 = vmul.f32 %v18560_v27, %v17442_v30  ;;  %v17627_v23 = vmul.f32 %v17442_v30, %v18561_v16  ;;  %v17631_v21 = vmul.f32 %v17442_v30, %v18562_v17  ;;  %v18571_v27 = vld [vmem:[#allocation25_spill] sm:$0xff]  ;;  %v18573_v17 = vld [vmem:[#allocation28_spill] sm:$0xff] }
 0xbd3   :  { %v17635_v3 = vmul.f32 %v18563_v49, %v17442_v30  ;;  %v17639_v57 = vmul.f32 %v18564_v18, %v17442_v30  ;;  %v17643_v9 = vmul.f32 %v17442_v30, %v18565_v43  ;;  %v17647_v13 = vmul.f32 %v17442_v30, %v18566_v26  ;;  %v18575_v18 = vld [vmem:[#allocation22_spill] sm:$0xff]  ;;  %v18577_v26 = vld [vmem:[#allocation31_spill] sm:$0xff] }
 0xbd4   :  { %v17651_v53 = vmul.f32 %v18567_v56, %v17442_v30  ;;  %v17655_v40 = vmul.f32 %v18569_v33, %v17442_v30  ;;  %v17659_v16 = vmul.f32 %v17442_v30, %v18571_v27  ;;  %v17663_v49 = vmul.f32 %v17442_v30, %v18573_v17 }
 0xbd5   :  { %v17667_v43 = vmul.f32 %v18575_v18, %v17442_v30  ;;  %v17671_v56 = vmul.f32 %v18577_v26, %v17442_v30 }
 0xbd6   :  { %18568 = vst [vmem:[#allocation18_spill] sm:$0xff] %v17651_v53  ;;  %18570 = vst [vmem:[#allocation15_spill] sm:$0xff] %v17655_v40  ;;  %v18579_v53 = vld [vmem:[#allocation39_spill] sm:$0xff]  ;;  %v18580_v40 = vld [vmem:[#allocation13_spill] sm:$0xff] }
 0xbd7   :  { %18572 = vst [vmem:[#allocation38_spill] sm:$0xff] %v17659_v16  ;;  %18574 = vst [vmem:[#allocation17_spill] sm:$0xff] %v17663_v49  ;;  %v17675_v33 = vmul.f32 %v17442_v30, %v18579_v53  ;;  %v17679_v27 = vmul.f32 %v17442_v30, %v18580_v40  ;;  %v18581_v16 = vld [vmem:[#allocation30_spill] sm:$0xff]  ;;  %v18582_v49 = vld [vmem:[#allocation36_spill] sm:$0xff]  ;;  %v17699_v40 = vmul.f32 %v17427_v42, %v17442_v30 }
 0xbd8   :  { %18576 = vst [vmem:[#allocation27_spill] sm:$0xff] %v17667_v43  ;;  %18578 = vst [vmem:[#allocation26_spill] sm:$0xff] %v17671_v56  ;;  %v17683_v17 = vmul.f32 %v18581_v16, %v17442_v30  ;;  %v17687_v18 = vmul.f32 %v18582_v49, %v17442_v30  ;;  %v18583_v43 = vld [vmem:[#allocation16_spill] sm:$0xff]  ;;  %v18584_v56 = vld [vmem:[#allocation14_spill] sm:$0xff]  ;;  %v17703_v16 = vadd.f32 %v17470_v52, %v17447_v2 }
 0xbd9   :  { %v17691_v26 = vmul.f32 %v17442_v30, %v18583_v43  ;;  %v17695_v53 = vmul.f32 %v18584_v56, %v17442_v30  ;;  %v17707_v49 = vadd.f32 %v17470_v52, %v17451_v45  ;;  %v17711_v43 = vadd.f32 %v17470_v52, %v17455_v55 }
 0xbda   :  { %v17715_v56 = vadd.f32 %v17470_v52, %v17459_v31  ;;  %v17719_v42 = vadd.f32 %v17470_v52, %v17463_v24  ;;  %v17723_v30 = vadd.f32 %v17470_v52, %v17467_v38  ;;  %v17727_v2 = vadd.f32 %v17470_v52, %v17474_v6 }
 0xbdb   :  { %v17731_v45 = vadd.f32 %v17470_v52, %v17478_v29  ;;  %v17735_v55 = vadd.f32 %v17470_v52, %v17482_v22  ;;  %v17739_v31 = vadd.f32 %v17470_v52, %v17486_v20  ;;  %v17743_v24 = vadd.f32 %v17470_v52, %v17490_v12 }
 0xbdc   :  { %v17747_v38 = vadd.f32 %v17470_v52, %v17494_v0  ;;  %v17751_v6 = vadd.f32 %v17470_v52, %v17498_v63  ;;  %v17755_v29 = vadd.f32 %v17470_v52, %v17503_v5  ;;  %v17759_v22 = vadd.f32 %v17470_v52, %v17507_v7 }
 0xbdd   :  { %v17763_v20 = vadd.f32 %v17470_v52, %v17511_v58  ;;  %v17767_v12 = vadd.f32 %v17470_v52, %v17515_v28  ;;  %v17771_v0 = vadd.f32 %v17470_v52, %v17519_v15  ;;  %v17775_v63 = vadd.f32 %v17470_v52, %v17523_v10 }
 0xbde   :  { %v17779_v5 = vadd.f32 %v17470_v52, %v17527_v34  ;;  %v17783_v7 = vadd.f32 %v17470_v52, %v17531_v39  ;;  %v17787_v58 = vadd.f32 %v17470_v52, %v17535_v50  ;;  %v17791_v28 = vadd.f32 %v17470_v52, %v17539_v11 }
 0xbdf   :  { %v17795_v15 = vadd.f32 %v17470_v52, %v17543_v61  ;;  %v17799_v10 = vadd.f32 %v17470_v52, %v17547_v4  ;;  %v17803_v34 = vadd.f32 %v17470_v52, %v17551_v19  ;;  %v17807_v39 = vadd.f32 %v17470_v52, %v17555_v59 }
 0xbe0   :  { %v17811_v50 = vadd.f32 %v17470_v52, %v17559_v36  ;;  %v17815_v11 = vadd.f32 %v17470_v52, %v17563_v47  ;;  %v17819_v61 = vadd.f32 %v17470_v52, %v17567_v46  ;;  %v17823_v4 = vadd.f32 %v17470_v52, %v17571_v37 }
 0xbe1   :  { %v17827_v19 = vadd.f32 %v17470_v52, %v17575_v41  ;;  %v17831_v59 = vadd.f32 %v17470_v52, %v17579_v25  ;;  %v17835_v36 = vadd.f32 %v17470_v52, %v17583_v48  ;;  %v17839_v47 = vadd.f32 %v17470_v52, %v17587_v60 }
 0xbe2   :  { %18585 = vst [vmem:[#allocation33_spill] sm:$0xff] %v17823_v4  ;;  %v17843_v46 = vadd.f32 %v17470_v52, %v17591_v35  ;;  %v17847_v37 = vadd.f32 %v17470_v52, %v17595_v54  ;;  %v17851_v41 = vadd.f32 %v17470_v52, %v17599_v1  ;;  %v17855_v25 = vadd.f32 %v17470_v52, %v17603_v51  ;;  %v10135_v1 = vld [vmem:[#allocation2 + $0x31] sm:$0xff]  ;;  %v10136_v51 = vld [vmem:[#allocation2 + $0x39] sm:$0xff] }
 0xbe3   :  { %18586 = vst [vmem:[#allocation24_spill] sm:$0xff] %v17827_v19  ;;  %18587 = vst [vmem:[#allocation29_spill] sm:$0xff] %v17831_v59  ;;  %v17859_v48 = vadd.f32 %v17470_v52, %v17607_v62  ;;  %v17863_v60 = vadd.f32 %v17470_v52, %v17611_v44  ;;  %v17867_v35 = vadd.f32 %v17470_v52, %v17615_v14  ;;  %v10146_v59 = vld [vmem:[#allocation2 + $0xb1] sm:$0xff] }
 0xbe4   :  { %18588 = vst [vmem:[#allocation32_spill] sm:$0xff] %v17835_v36  ;;  %18589 = vst [vmem:[#allocation37_spill] sm:$0xff] %v17839_v47  ;;  %v17871_v54 = vadd.f32 %v17470_v52, %v17619_v8  ;;  %v17875_v62 = vadd.f32 %v17470_v52, %v17623_v32  ;;  %v17879_v44 = vadd.f32 %v17470_v52, %v17627_v23  ;;  %v10145_v47 = vld [vmem:[#allocation2 + $0xa9] sm:$0xff] }
 0xbe5   :  { %18590 = vst [vmem:[#allocation35_spill] sm:$0xff] %v17843_v46  ;;  %18591 = vst [vmem:[#allocation34_spill] sm:$0xff] %v17847_v37  ;;  %v17883_v14 = vadd.f32 %v17470_v52, %v17631_v21  ;;  %v17887_v8 = vadd.f32 %v17470_v52, %v17635_v3  ;;  %v17891_v32 = vadd.f32 %v17470_v52, %v17639_v57  ;;  %v10142_v37 = vld [vmem:[#allocation2 + $0x81] sm:$0xff]  ;;  %v18607_v46 = vld [vmem:[#allocation15_spill] sm:$0xff] }
 0xbe6   :  { %18592 = vst [vmem:[#allocation20_spill] sm:$0xff] %v17851_v41  ;;  %18593 = vst [vmem:[#allocation19_spill] sm:$0xff] %v17855_v25  ;;  %v10133_v41 = vld [vmem:[#allocation2 + $0x19] sm:$0xff]  ;;  %v10134_v25 = vld [vmem:[#allocation2 + $0x21] sm:$0xff]  ;;  %v17895_v23 = vadd.f32 %v17470_v52, %v17643_v9  ;;  %v17899_v21 = vadd.f32 %v17470_v52, %v17647_v13  ;;  %v17907_v57 = vadd.f32 %v17470_v52, %v18607_v46 }
 0xbe7   :  { %18594 = vst [vmem:[#allocation21_spill] sm:$0xff] %v17859_v48  ;;  %18595 = vst [vmem:[#allocation23_spill] sm:$0xff] %v17863_v60  ;;  %v10140_v60 = vld [vmem:[#allocation2 + $0x69] sm:$0xff]  ;;  %v10138_v48 = vld [vmem:[#allocation2 + $0x51] sm:$0xff]  ;;  %v17954_v4 = vadd.f32 %v17703_v16, %v10133_v41 }
 0xbe8   :  { %18596 = vst [vmem:[#allocation25_spill] sm:$0xff] %v17867_v35  ;;  %18597 = vst [vmem:[#allocation28_spill] sm:$0xff] %v17871_v54  ;;  %v10139_v54 = vld [vmem:[#allocation2 + $0x61] sm:$0xff]  ;;  %v10137_v35 = vld [vmem:[#allocation2 + $0x49] sm:$0xff] }
 0xbe9   :  { %18598 = vst [vmem:[#allocation22_spill] sm:$0xff] %v17875_v62  ;;  %18599 = vst [vmem:[#allocation31_spill] sm:$0xff] %v17879_v44  ;;  %v10141_v44 = vld [vmem:[#allocation2 + $0x79] sm:$0xff]  ;;  %v10148_v36 = vld [vmem:[#allocation2 + $0xc9] sm:$0xff]  ;;  %v17972_v16 = vadd.f32 %v17727_v2, %v10139_v54  ;;  %v17993_v54 = vadd.f32 %v17755_v29, %v10146_v59 }
 0xbea   :  { %18600 = vst [vmem:[#allocation39_spill] sm:$0xff] %v17883_v14  ;;  %18601 = vst [vmem:[#allocation13_spill] sm:$0xff] %v17887_v8  ;;  %v18605_v14 = vld [vmem:[#allocation18_spill] sm:$0xff]  ;;  %v10144_v62 = vld [vmem:[#allocation2 + $0x99] sm:$0xff] }
 0xbeb   :  { %18602 = vst [vmem:[#allocation30_spill] sm:$0xff] %v17891_v32  ;;  %18603 = vst [vmem:[#allocation36_spill] sm:$0xff] %v17895_v23  ;;  %v17903_v3 = vadd.f32 %v17470_v52, %v18605_v14  ;;  %v10143_v8 = vld [vmem:[#allocation2 + $0x91] sm:$0xff]  ;;  %v18611_v23 = vld [vmem:[#allocation17_spill] sm:$0xff] }
 0xbec   :  { %18604 = vst [vmem:[#allocation16_spill] sm:$0xff] %v17899_v21  ;;  %18608 = vst [vmem:[#allocation18_spill] sm:$0xff] %v17907_v57  ;;  %v18609_v32 = vld [vmem:[#allocation38_spill] sm:$0xff]  ;;  %v17915_v13 = vadd.f32 %v17470_v52, %v18611_v23  ;;  %v18613_v21 = vld [vmem:[#allocation27_spill] sm:$0xff]  ;;  %v17931_v23 = vadd.f32 %v17470_v52, %v17679_v27  ;;  %v17947_v27 = vadd.f32 %v17470_v52, %v17695_v53 }
 0xbed   :  { %18606 = vst [vmem:[#allocation14_spill] sm:$0xff] %v17903_v3  ;;  %v17911_v9 = vadd.f32 %v17470_v52, %v18609_v32  ;;  %v17919_v14 = vadd.f32 %v17470_v52, %v18613_v21  ;;  %v10147_v3 = vld [vmem:[#allocation2 + $0xc1] sm:$0xff]  ;;  %v18615_v19 = vld [vmem:[#allocation26_spill] sm:$0xff]  ;;  %v17927_v32 = vadd.f32 %v17470_v52, %v17675_v33  ;;  %v17935_v21 = vadd.f32 %v17470_v52, %v17683_v17 }
 0xbee   :  { %18612 = vst [vmem:[#allocation38_spill] sm:$0xff] %v17915_v13  ;;  %v17923_v46 = vadd.f32 %v17470_v52, %v18615_v19  ;;  %18618 = vst [vmem:[#allocation40_spill] sm:$0xff] %v17931_v23  ;;  %v10149_v13 = vld [vmem:[#allocation2 + $0xd9] sm:$0xff]  ;;  %v10150_v57 = vld [vmem:[#allocation2 + $0xe1] sm:$0xff]  ;;  %v17939_v19 = vadd.f32 %v17470_v52, %v17687_v18  ;;  %v17943_v33 = vadd.f32 %v17470_v52, %v17691_v26 }
 0xbef   :  { %18610 = vst [vmem:[#allocation15_spill] sm:$0xff] %v17911_v9  ;;  %18614 = vst [vmem:[#allocation17_spill] sm:$0xff] %v17919_v14  ;;  %v10151_v14 = vld [vmem:[#allocation2 + $0xf1] sm:$0xff]  ;;  %v10152_v9 = vld [vmem:[#allocation2 + $0xf9] sm:$0xff]  ;;  %v17951_v17 = vadd.f32 %v17470_v52, %v17699_v40  ;;  %v17957_v18 = vadd.f32 %v17707_v49, %v10134_v25  ;;  %v17960_v26 = vadd.f32 %v17711_v43, %v10135_v1 }
 0xbf0   :  { %18616 = vst [vmem:[#allocation27_spill] sm:$0xff] %v17923_v46  ;;  %18617 = vst [vmem:[#allocation26_spill] sm:$0xff] %v17927_v32  ;;  %v10153_v23 = vld [vmem:[#allocation2 + $0x109] sm:$0xff]  ;;  %v10154_v46 = vld [vmem:[#allocation2 + $0x111] sm:$0xff]  ;;  %v17963_v53 = vadd.f32 %v17715_v56, %v10136_v51  ;;  %v17975_v49 = vadd.f32 %v17731_v45, %v10140_v60  ;;  %v17978_v1 = vadd.f32 %v17735_v55, %v10141_v44 }
 0xbf1   :  { %18619 = vst [vmem:[#allocation41_spill] sm:$0xff] %v17935_v21  ;;  %18620 = vst [vmem:[#allocation42_spill] sm:$0xff] %v17939_v19  ;;  %v10155_v21 = vld [vmem:[#allocation2 + $0x121] sm:$0xff]  ;;  %v10156_v32 = vld [vmem:[#allocation2 + $0x129] sm:$0xff]  ;;  %v17969_v19 = vadd.f32 %v17723_v30, %v10138_v48  ;;  %v17981_v51 = vadd.f32 %v17739_v31, %v10142_v37  ;;  %v17987_v30 = vadd.f32 %v17747_v38, %v10144_v62 }
 0xbf2   :  { %18621 = vst [vmem:[#allocation43_spill] sm:$0xff] %v17943_v33  ;;  %18622 = vst [vmem:[#allocation44_spill] sm:$0xff] %v17947_v27  ;;  %v10159_v27 = vld [vmem:[#allocation2 + $0x151] sm:$0xff]  ;;  %v10157_v33 = vld [vmem:[#allocation2 + $0x139] sm:$0xff]  ;;  %v17996_v55 = vadd.f32 %v17759_v22, %v10147_v3  ;;  %v17999_v31 = vadd.f32 %v17763_v20, %v10148_v36  ;;  %v18002_v62 = vadd.f32 %v17767_v12, %v10149_v13 }
 0xbf3   :  { %18623 = vst [vmem:[#allocation45_spill] sm:$0xff] %v17951_v17  ;;  %v10160_v52 = vld [vmem:[#allocation2 + $0x159] sm:$0xff]  ;;  %v10158_v40 = vld [vmem:[#allocation2 + $0x141] sm:$0xff]  ;;  %v17966_v17 = vadd.f32 %v17719_v42, %v10137_v35  ;;  %v10161_v41 = vld [vmem:[#allocation2 + $0x169] sm:$0xff]  ;;  %v17984_v42 = vadd.f32 %v17743_v24, %v10143_v8  ;;  %v17990_v35 = vadd.f32 %v17751_v6, %v10145_v47  ;;  %v18005_v44 = vadd.f32 %v17771_v0, %v10150_v57 }
 0xbf4   :  { %v10163_v43 = vld [vmem:[#allocation2 + $0x181] sm:$0xff]  ;;  %v10164_v56 = vld [vmem:[#allocation2 + $0x189] sm:$0xff]  ;;  %v10162_v25 = vld [vmem:[#allocation2 + $0x171] sm:$0xff]  ;;  %v18008_v6 = vadd.f32 %v17775_v63, %v10151_v14  ;;  %v18011_v29 = vadd.f32 %v17779_v5, %v10152_v9  ;;  %v18014_v20 = vadd.f32 %v17783_v7, %v10153_v23  ;;  %v18017_v36 = vadd.f32 %v17787_v58, %v10154_v46 }
 0xbf5   :  { %v10167_v2 = vld [vmem:[#allocation2 + $0x1e1] sm:$0xff]  ;;  %v10165_v48 = vld [vmem:[#allocation2 + $0x1c9] sm:$0xff]  ;;  %v10166_v60 = vld [vmem:[#allocation2 + $0x1d1] sm:$0xff]  ;;  %v18020_v12 = vadd.f32 %v17791_v28, %v10155_v21  ;;  %v18023_v0 = vadd.f32 %v17795_v15, %v10156_v32  ;;  %v18026_v5 = vadd.f32 %v17799_v10, %v10157_v33  ;;  %v18029_v57 = vadd.f32 %v17803_v34, %v10158_v40 }
 0xbf6   :  { %v10168_v45 = vld [vmem:[#allocation2 + $0x1e9] sm:$0xff]  ;;  %v10171_v24 = vld [vmem:[#allocation2 + $0x211] sm:$0xff]  ;;  %v10169_v37 = vld [vmem:[#allocation2 + $0x1f9] sm:$0xff]  ;;  %v18032_v7 = vadd.f32 %v17807_v39, %v10159_v27  ;;  %v18035_v58 = vadd.f32 %v17811_v50, %v10160_v52  ;;  %v18038_v15 = vadd.f32 %v17815_v11, %v10161_v41  ;;  %v18041_v14 = vadd.f32 %v17819_v61, %v10162_v25 }
 0xbf7   :  { %v10172_v38 = vld [vmem:[#allocation2 + $0x219] sm:$0xff]  ;;  %v10170_v22 = vld [vmem:[#allocation2 + $0x201] sm:$0xff]  ;;  %v10173_v47 = vld [vmem:[#allocation2 + $0x229] sm:$0xff] }
 0xbf8   :  { %v10175_v59 = vld [vmem:[#allocation2 + $0x241] sm:$0xff]  ;;  %v10176_v63 = vld [vmem:[#allocation2 + $0x249] sm:$0xff]  ;;  %v10174_v8 = vld [vmem:[#allocation2 + $0x231] sm:$0xff] }
 0xbf9   :  { %v10179_v3 = vld [vmem:[#allocation2 + $0x271] sm:$0xff]  ;;  %v10177_v28 = vld [vmem:[#allocation2 + $0x259] sm:$0xff]  ;;  %v10178_v13 = vld [vmem:[#allocation2 + $0x261] sm:$0xff] }
 0xbfa   :  { %v10180_v9 = vld [vmem:[#allocation2 + $0x279] sm:$0xff]  ;;  %v18624_v10 = vld [vmem:[#allocation33_spill] sm:$0xff]  ;;  %v10187_v25 = vld [vmem:[#allocation2 + $0x2d1] sm:$0xff] }
 0xbfb   :  { %v18044_v46 = vadd.f32 %v18624_v10, %v10163_v43  ;;  %v18626_v34 = vld [vmem:[#allocation24_spill] sm:$0xff]  ;;  %v10181_v23 = vld [vmem:[#allocation2 + $0x289] sm:$0xff]  ;;  %v18633_v61 = vld [vmem:[#allocation35_spill] sm:$0xff] }
 0xbfc   :  { %v18047_v32 = vadd.f32 %v18626_v34, %v10164_v56  ;;  %v10183_v39 = vld [vmem:[#allocation2 + $0x2a1] sm:$0xff]  ;;  %v10184_v21 = vld [vmem:[#allocation2 + $0x2a9] sm:$0xff]  ;;  %v18059_v41 = vadd.f32 %v18633_v61, %v10168_v45  ;;  %v10182_v43 = vld [vmem:[#allocation2 + $0x291] sm:$0xff] }
 0xbfd   :  { %18625 = vst [vmem:[#allocation33_spill] sm:$0xff] %v18044_v46  ;;  %v18628_v50 = vld [vmem:[#allocation29_spill] sm:$0xff]  ;;  %v18629_v27 = vld [vmem:[#allocation32_spill] sm:$0xff]  ;;  %v18635_v56 = vld [vmem:[#allocation34_spill] sm:$0xff] }
 0xbfe   :  { %18627 = vst [vmem:[#allocation24_spill] sm:$0xff] %v18047_v32  ;;  %v18050_v33 = vadd.f32 %v18628_v50, %v10165_v48  ;;  %v18053_v52 = vadd.f32 %v18629_v27, %v10166_v60  ;;  %v18631_v11 = vld [vmem:[#allocation37_spill] sm:$0xff]  ;;  %v10185_v10 = vld [vmem:[#allocation2 + $0x2b9] sm:$0xff]  ;;  %v18062_v34 = vadd.f32 %v18635_v56, %v10169_v37 }
 0xbff   :  { %v18056_v40 = vadd.f32 %v18631_v11, %v10167_v2  ;;  %18634 = vst [vmem:[#allocation37_spill] sm:$0xff] %v18059_v41  ;;  %v18636_v32 = vld [vmem:[#allocation20_spill] sm:$0xff]  ;;  %v18638_v48 = vld [vmem:[#allocation19_spill] sm:$0xff]  ;;  %v18640_v60 = vld [vmem:[#allocation21_spill] sm:$0xff] }
 0xc00   :  { %18630 = vst [vmem:[#allocation29_spill] sm:$0xff] %v18053_v52  ;;  %v18065_v46 = vadd.f32 %v18636_v32, %v10170_v22  ;;  %v18068_v50 = vadd.f32 %v18638_v48, %v10171_v24  ;;  %v18071_v27 = vadd.f32 %v18640_v60, %v10172_v38  ;;  %v10188_v2 = vld [vmem:[#allocation2 + $0x2d9] sm:$0xff]  ;;  %v10186_v11 = vld [vmem:[#allocation2 + $0x2c1] sm:$0xff]  ;;  %v18647_v22 = vld [vmem:[#allocation22_spill] sm:$0xff] }
 0xc01   :  { %18632 = vst [vmem:[#allocation32_spill] sm:$0xff] %v18056_v40  ;;  %v10191_v40 = vld [vmem:[#allocation2 + $0x301] sm:$0xff]  ;;  %v18642_v45 = vld [vmem:[#allocation23_spill] sm:$0xff]  ;;  %v18083_v32 = vadd.f32 %v18647_v22, %v10176_v63  ;;  %v10189_v24 = vld [vmem:[#allocation2 + $0x2e9] sm:$0xff] }
 0xc02   :  { %18637 = vst [vmem:[#allocation35_spill] sm:$0xff] %v18065_v46  ;;  %18639 = vst [vmem:[#allocation34_spill] sm:$0xff] %v18068_v50  ;;  %v18074_v61 = vadd.f32 %v18642_v45, %v10173_v47  ;;  %v18643_v41 = vld [vmem:[#allocation25_spill] sm:$0xff]  ;;  %v18645_v37 = vld [vmem:[#allocation28_spill] sm:$0xff] }
 0xc03   :  { %18641 = vst [vmem:[#allocation20_spill] sm:$0xff] %v18071_v27  ;;  %v18077_v52 = vadd.f32 %v18643_v41, %v10174_v8  ;;  %v18080_v56 = vadd.f32 %v18645_v37, %v10175_v59  ;;  %18648 = vst [vmem:[#allocation23_spill] sm:$0xff] %v18083_v32  ;;  %v10192_v48 = vld [vmem:[#allocation2 + $0x309] sm:$0xff]  ;;  %v10190_v50 = vld [vmem:[#allocation2 + $0x2f1] sm:$0xff] }
 0xc04   :  { %v18649_v38 = vld [vmem:[#allocation31_spill] sm:$0xff]  ;;  %v18651_v47 = vld [vmem:[#allocation13_spill] sm:$0xff]  ;;  %v18653_v8 = vld [vmem:[#allocation30_spill] sm:$0xff] }
 0xc05   :  { %18644 = vst [vmem:[#allocation19_spill] sm:$0xff] %v18077_v52  ;;  %18646 = vst [vmem:[#allocation21_spill] sm:$0xff] %v18080_v56  ;;  %v18086_v60 = vadd.f32 %v18649_v38, %v10177_v28  ;;  %v18650_v27 = vld [vmem:[#allocation39_spill] sm:$0xff]  ;;  %v18092_v45 = vadd.f32 %v18651_v47, %v10179_v3  ;;  %v18095_v41 = vadd.f32 %v18653_v8, %v10180_v9  ;;  %v18655_v63 = vld [vmem:[#allocation36_spill] sm:$0xff] }
 0xc06   :  { %v18089_v46 = vadd.f32 %v18650_v27, %v10178_v13  ;;  %v10195_v59 = vld [vmem:[#allocation2 + $0x331] sm:$0xff]  ;;  %v10193_v37 = vld [vmem:[#allocation2 + $0x319] sm:$0xff]  ;;  %v18098_v22 = vadd.f32 %v18655_v63, %v10181_v23 }
 0xc07   :  { %18652 = vst [vmem:[#allocation25_spill] sm:$0xff] %v18092_v45  ;;  %18654 = vst [vmem:[#allocation28_spill] sm:$0xff] %v18095_v41  ;;  %v10196_v56 = vld [vmem:[#allocation2 + $0x339] sm:$0xff]  ;;  %v18657_v28 = vld [vmem:[#allocation14_spill] sm:$0xff] }
 0xc08   :  { %v18656_v32 = vld [vmem:[#allocation16_spill] sm:$0xff]  ;;  %v18104_v38 = vadd.f32 %v18657_v28, %v10183_v39  ;;  %v18658_v13 = vld [vmem:[#allocation18_spill] sm:$0xff]  ;;  %v18659_v3 = vld [vmem:[#allocation15_spill] sm:$0xff] }
 0xc09   :  { %v18101_v52 = vadd.f32 %v18656_v32, %v10182_v43  ;;  %v18107_v27 = vadd.f32 %v18658_v13, %v10184_v21  ;;  %v18110_v47 = vadd.f32 %v18659_v3, %v10185_v10  ;;  %v18660_v9 = vld [vmem:[#allocation38_spill] sm:$0xff]  ;;  %v18661_v41 = vld [vmem:[#allocation17_spill] sm:$0xff]  ;;  %v18662_v23 = vld [vmem:[#allocation27_spill] sm:$0xff] }
 0xc0a   :  { %v18113_v8 = vadd.f32 %v18660_v9, %v10186_v11  ;;  %v18116_v45 = vadd.f32 %v18661_v41, %v10187_v25  ;;  %v18119_v63 = vadd.f32 %v18662_v23, %v10188_v2  ;;  %v18663_v43 = vld [vmem:[#allocation26_spill] sm:$0xff]  ;;  %v18664_v39 = vld [vmem:[#allocation40_spill] sm:$0xff]  ;;  %v18665_v21 = vld [vmem:[#allocation41_spill] sm:$0xff] }
 0xc0b   :  { %v18122_v32 = vadd.f32 %v18663_v43, %v10189_v24  ;;  %v18125_v28 = vadd.f32 %v18664_v39, %v10190_v50  ;;  %v18128_v13 = vadd.f32 %v18665_v21, %v10191_v40  ;;  %v18666_v10 = vld [vmem:[#allocation42_spill] sm:$0xff]  ;;  %v18667_v11 = vld [vmem:[#allocation43_spill] sm:$0xff]  ;;  %v18668_v25 = vld [vmem:[#allocation44_spill] sm:$0xff]  ;;  %v10401_v24 = vmax.f32 %v17954_v4, 0.0 }
 0xc0c   :  { %v18131_v3 = vadd.f32 %v18666_v10, %v10192_v48  ;;  %v18134_v9 = vadd.f32 %v18667_v11, %v10193_v37  ;;  %v18137_v41 = vadd.f32 %v18668_v25, %v10195_v59  ;;  %v18669_v2 = vld [vmem:[#allocation45_spill] sm:$0xff]  ;;  %v10402_v50 = vmax.f32 %v17957_v18, 0.0 }
 0xc0d   :  { %v18140_v23 = vadd.f32 %v18669_v2, %v10196_v56  ;;  %v10403_v43 = vmax.f32 %v17960_v26, 0.0  ;;  %v10404_v40 = vmax.f32 %v17963_v53, 0.0  ;;  %v10405_v48 = vmax.f32 %v17966_v17, 0.0  ;;  %10465 = vst [vmem:[#allocation9] sm:$0xff] %v10401_v24  ;;  %v18674_v10 = vld [vmem:[#allocation37_spill] sm:$0xff]  ;;  %v18676_v24 = vld [vmem:[#allocation34_spill] sm:$0xff] }
 0xc0e   :  { %v10406_v39 = vmax.f32 %v17969_v19, 0.0  ;;  %v10407_v37 = vmax.f32 %v17972_v16, 0.0  ;;  %v10408_v59 = vmax.f32 %v17975_v49, 0.0  ;;  %v10409_v21 = vmax.f32 %v17978_v1, 0.0  ;;  %10466 = vst [vmem:[#allocation9 + $0x8] sm:$0xff] %v10402_v50  ;;  %v18677_v50 = vld [vmem:[#allocation20_spill] sm:$0xff] }
 0xc0f   :  { %v10410_v56 = vmax.f32 %v17981_v51, 0.0  ;;  %v10411_v4 = vmax.f32 %v17984_v42, 0.0  ;;  %v10412_v18 = vmax.f32 %v17987_v30, 0.0  ;;  %v10413_v26 = vmax.f32 %v17990_v35, 0.0  ;;  %10467 = vst [vmem:[#allocation9 + $0x10] sm:$0xff] %v10403_v43  ;;  %10468 = vst [vmem:[#allocation9 + $0x18] sm:$0xff] %v10404_v40 }
 0xc10   :  { %10469 = vst [vmem:[#allocation9 + $0x20] sm:$0xff] %v10405_v48  ;;  %v10414_v19 = vmax.f32 %v17993_v54, 0.0  ;;  %v10415_v17 = vmax.f32 %v17996_v55, 0.0  ;;  %v10416_v53 = vmax.f32 %v17999_v31, 0.0  ;;  %v10417_v16 = vmax.f32 %v18002_v62, 0.0  ;;  %10470 = vst [vmem:[#allocation9 + $0x28] sm:$0xff] %v10406_v39 }
 0xc11   :  { %10471 = vst [vmem:[#allocation9 + $0x30] sm:$0xff] %v10407_v37  ;;  %10472 = vst [vmem:[#allocation9 + $0x38] sm:$0xff] %v10408_v59  ;;  %v10418_v49 = vmax.f32 %v18005_v44, 0.0  ;;  %v10419_v1 = vmax.f32 %v18008_v6, 0.0  ;;  %v10420_v51 = vmax.f32 %v18011_v29, 0.0  ;;  %v10421_v42 = vmax.f32 %v18014_v20, 0.0 }
 0xc12   :  { %10473 = vst [vmem:[#allocation9 + $0x40] sm:$0xff] %v10409_v21  ;;  %10474 = vst [vmem:[#allocation9 + $0x48] sm:$0xff] %v10410_v56  ;;  %v10422_v30 = vmax.f32 %v18017_v36, 0.0  ;;  %v10423_v35 = vmax.f32 %v18020_v12, 0.0  ;;  %v10424_v54 = vmax.f32 %v18023_v0, 0.0  ;;  %v10425_v55 = vmax.f32 %v18026_v5, 0.0 }
 0xc13   :  { %10475 = vst [vmem:[#allocation9 + $0x50] sm:$0xff] %v10411_v4  ;;  %10476 = vst [vmem:[#allocation9 + $0x58] sm:$0xff] %v10412_v18  ;;  %v10426_v31 = vmax.f32 %v18029_v57, 0.0  ;;  %v10427_v62 = vmax.f32 %v18032_v7, 0.0  ;;  %v10428_v44 = vmax.f32 %v18035_v58, 0.0  ;;  %v10429_v6 = vmax.f32 %v18038_v15, 0.0 }
 0xc14   :  { %10477 = vst [vmem:[#allocation9 + $0x60] sm:$0xff] %v10413_v26  ;;  %10478 = vst [vmem:[#allocation9 + $0x68] sm:$0xff] %v10414_v19  ;;  %v10430_v29 = vmax.f32 %v18041_v14, 0.0  ;;  %v18670_v20 = vld [vmem:[#allocation33_spill] sm:$0xff]  ;;  %v18671_v12 = vld [vmem:[#allocation24_spill] sm:$0xff]  ;;  %v10433_v5 = vmax.f32 %v18050_v33, 0.0 }
 0xc15   :  { %10479 = vst [vmem:[#allocation9 + $0x70] sm:$0xff] %v10415_v17  ;;  %10480 = vst [vmem:[#allocation9 + $0x78] sm:$0xff] %v10416_v53  ;;  %v10431_v36 = vmax.f32 %v18670_v20, 0.0  ;;  %v10432_v0 = vmax.f32 %v18671_v12, 0.0  ;;  %v18672_v57 = vld [vmem:[#allocation29_spill] sm:$0xff]  ;;  %v18673_v58 = vld [vmem:[#allocation32_spill] sm:$0xff] }
 0xc16   :  { %10481 = vst [vmem:[#allocation9 + $0x80] sm:$0xff] %v10417_v16  ;;  %10482 = vst [vmem:[#allocation9 + $0x88] sm:$0xff] %v10418_v49  ;;  %v10434_v7 = vmax.f32 %v18672_v57, 0.0  ;;  %v10435_v15 = vmax.f32 %v18673_v58, 0.0  ;;  %v10436_v11 = vmax.f32 %v18674_v10, 0.0  ;;  %v10437_v25 = vmax.f32 %v18062_v34, 0.0 }
 0xc17   :  { %10483 = vst [vmem:[#allocation9 + $0x90] sm:$0xff] %v10419_v1  ;;  %10484 = vst [vmem:[#allocation9 + $0x98] sm:$0xff] %v10420_v51  ;;  %v18675_v14 = vld [vmem:[#allocation35_spill] sm:$0xff]  ;;  %v10439_v33 = vmax.f32 %v18676_v24, 0.0  ;;  %v10440_v43 = vmax.f32 %v18677_v50, 0.0  ;;  %v10441_v40 = vmax.f32 %v18074_v61, 0.0 }
 0xc18   :  { %10485 = vst [vmem:[#allocation9 + $0xa0] sm:$0xff] %v10421_v42  ;;  %10486 = vst [vmem:[#allocation9 + $0xa8] sm:$0xff] %v10422_v30  ;;  %v10438_v2 = vmax.f32 %v18675_v14, 0.0  ;;  %v18678_v48 = vld [vmem:[#allocation19_spill] sm:$0xff]  ;;  %v18679_v37 = vld [vmem:[#allocation21_spill] sm:$0xff]  ;;  %v10445_v56 = vmax.f32 %v18086_v60, 0.0 }
 0xc19   :  { %10487 = vst [vmem:[#allocation9 + $0xb0] sm:$0xff] %v10423_v35  ;;  %10488 = vst [vmem:[#allocation9 + $0xb8] sm:$0xff] %v10424_v54  ;;  %v10442_v39 = vmax.f32 %v18678_v48, 0.0  ;;  %v10443_v34 = vmax.f32 %v18679_v37, 0.0  ;;  %v18680_v59 = vld [vmem:[#allocation23_spill] sm:$0xff]  ;;  %v10446_v4 = vmax.f32 %v18089_v46, 0.0 }
 0xc1a   :  { %10489 = vst [vmem:[#allocation9 + $0xc0] sm:$0xff] %v10425_v55  ;;  %10490 = vst [vmem:[#allocation9 + $0xc8] sm:$0xff] %v10426_v31  ;;  %v10444_v21 = vmax.f32 %v18680_v59, 0.0  ;;  %v18681_v18 = vld [vmem:[#allocation25_spill] sm:$0xff]  ;;  %v18682_v26 = vld [vmem:[#allocation28_spill] sm:$0xff]  ;;  %v10449_v17 = vmax.f32 %v18098_v22, 0.0 }
 0xc1b   :  { %10491 = vst [vmem:[#allocation9 + $0xd0] sm:$0xff] %v10427_v62  ;;  %10492 = vst [vmem:[#allocation9 + $0xd8] sm:$0xff] %v10428_v44  ;;  %v10447_v61 = vmax.f32 %v18681_v18, 0.0  ;;  %v10448_v19 = vmax.f32 %v18682_v26, 0.0  ;;  %v10450_v53 = vmax.f32 %v18101_v52, 0.0  ;;  %v10451_v60 = vmax.f32 %v18104_v38, 0.0 }
 0xc1c   :  { %10493 = vst [vmem:[#allocation9 + $0xe0] sm:$0xff] %v10429_v6  ;;  %10494 = vst [vmem:[#allocation9 + $0xe8] sm:$0xff] %v10430_v29  ;;  %v10452_v16 = vmax.f32 %v18107_v27, 0.0  ;;  %v10453_v49 = vmax.f32 %v18110_v47, 0.0  ;;  %v10454_v46 = vmax.f32 %v18113_v8, 0.0  ;;  %v10455_v22 = vmax.f32 %v18116_v45, 0.0 }
 0xc1d   :  { %10495 = vst [vmem:[#allocation9 + $0xf0] sm:$0xff] %v10431_v36  ;;  %10496 = vst [vmem:[#allocation9 + $0xf8] sm:$0xff] %v10432_v0  ;;  %v10456_v1 = vmax.f32 %v18119_v63, 0.0  ;;  %v10457_v52 = vmax.f32 %v18122_v32, 0.0  ;;  %v10458_v38 = vmax.f32 %v18125_v28, 0.0  ;;  %v10459_v27 = vmax.f32 %v18128_v13, 0.0 }
 0xc1e   :  { %10497 = vst [vmem:[#allocation9 + $0x100] sm:$0xff] %v10433_v5  ;;  %10498 = vst [vmem:[#allocation9 + $0x108] sm:$0xff] %v10434_v7  ;;  %v10460_v47 = vmax.f32 %v18131_v3, 0.0  ;;  %v10461_v51 = vmax.f32 %v18134_v9, 0.0  ;;  %v10463_v45 = vmax.f32 %v18137_v41, 0.0  ;;  %v10464_v8 = vmax.f32 %v18140_v23, 0.0 }
 0xc1f   :  { %10499 = vst [vmem:[#allocation9 + $0x110] sm:$0xff] %v10435_v15  ;;  %10500 = vst [vmem:[#allocation9 + $0x118] sm:$0xff] %v10436_v11 }
 0xc20   :  { %10501 = vst [vmem:[#allocation9 + $0x120] sm:$0xff] %v10437_v25  ;;  %10502 = vst [vmem:[#allocation9 + $0x128] sm:$0xff] %v10438_v2 }
 0xc21   :  { %10503 = vst [vmem:[#allocation9 + $0x130] sm:$0xff] %v10439_v33  ;;  %10504 = vst [vmem:[#allocation9 + $0x138] sm:$0xff] %v10440_v43 }
 0xc22   :  { %10505 = vst [vmem:[#allocation9 + $0x140] sm:$0xff] %v10441_v40  ;;  %10506 = vst [vmem:[#allocation9 + $0x148] sm:$0xff] %v10442_v39 }
 0xc23   :  { %10507 = vst [vmem:[#allocation9 + $0x150] sm:$0xff] %v10443_v34  ;;  %10508 = vst [vmem:[#allocation9 + $0x158] sm:$0xff] %v10444_v21 }
 0xc24   :  { %10509 = vst [vmem:[#allocation9 + $0x160] sm:$0xff] %v10445_v56  ;;  %10510 = vst [vmem:[#allocation9 + $0x168] sm:$0xff] %v10446_v4 }
 0xc25   :  { %10511 = vst [vmem:[#allocation9 + $0x170] sm:$0xff] %v10447_v61  ;;  %10512 = vst [vmem:[#allocation9 + $0x178] sm:$0xff] %v10448_v19 }
 0xc26   :  { %10513 = vst [vmem:[#allocation9 + $0x180] sm:$0xff] %v10449_v17  ;;  %10514 = vst [vmem:[#allocation9 + $0x188] sm:$0xff] %v10450_v53 }
 0xc27   :  { %10515 = vst [vmem:[#allocation9 + $0x190] sm:$0xff] %v10451_v60  ;;  %10516 = vst [vmem:[#allocation9 + $0x198] sm:$0xff] %v10452_v16 }
 0xc28   :  { %10517 = vst [vmem:[#allocation9 + $0x1a0] sm:$0xff] %v10453_v49  ;;  %10518 = vst [vmem:[#allocation9 + $0x1a8] sm:$0xff] %v10454_v46 }
 0xc29   :  { %10519 = vst [vmem:[#allocation9 + $0x1b0] sm:$0xff] %v10455_v22  ;;  %10520 = vst [vmem:[#allocation9 + $0x1b8] sm:$0xff] %v10456_v1 }
 0xc2a   :  { %10521 = vst [vmem:[#allocation9 + $0x1c0] sm:$0xff] %v10457_v52  ;;  %10522 = vst [vmem:[#allocation9 + $0x1c8] sm:$0xff] %v10458_v38 }
 0xc2b   :  { %10523 = vst [vmem:[#allocation9 + $0x1d0] sm:$0xff] %v10459_v27  ;;  %10524 = vst [vmem:[#allocation9 + $0x1d8] sm:$0xff] %v10460_v47 }
 0xc2c   :  { %10525 = vst [vmem:[#allocation9 + $0x1e0] sm:$0xff] %v10461_v51  ;;  %10527 = vst [vmem:[#allocation9 + $0x1f0] sm:$0xff] %v10463_v45 }
 0xc2d   :  { %10528 = vst [vmem:[#allocation9 + $0x1f8] sm:$0xff] %v10464_v8 }
 0xc2e   :  { %14086 = shalt.err (!%p14083_p6)
}
 0xc2f   :  { %s14087_s0 = scalar_lea.hbm %s18224_s7, 8192 }
 0xc30   :  { %p14088_p7 = scmp.ne.s32.totalorder %s18224_s7, %s14087_s0  ;;  %p14091_p8 = scmp.lt.u32.totalorder %s14087_s0, %s18224_s7 }
 0xc32   :  { %p14093_p9 = pnand %p14091_p8, %p14088_p7 }
 0xc34   :  { %14096 = shalt.err (!%p14093_p9)
}
 0xc35   :  { %s14107_s27 = smov 128   ;;  %s14108_s28 = smov 8  }
 0xc36   :  { %10540 = dma.vmem_to_hbm [thread:$0]  %s10535_s6, 8192, %s18224_s7, [#allocation6], %s14107_s27, %s14107_s27, %s14108_s28  }
 0xc37   :  { %14101 = dma.done.wait [#allocation6], 8192  }
 0xc38   :  { %14102 = vsyncadd [#allocation6], 4294959104 }
 0xc39   :  { %10544 = vsyncpa [#allocation5], 1 }
 0xc3a   :  { %10545 = vsyncpa [#allocation8], 1 }
 0xc3b   :  { %10546 = vsyncpa [#allocation6], 1 }

</bundles_post_ra>
